<compile_context>
chip_gen: v6e
topology: v6e:2x2x1
jax: 0.10.0
libtpu: 0.0.40
codegen_flags: <defaults>
</compile_context>

<pallas_src>
import jax
import jax.numpy as jnp
from jax.experimental import pallas as pl
from jax.experimental.pallas import tpu as pltpu


# ----------------------------------------------------------------------------
# helpers
# ----------------------------------------------------------------------------
def _pick_tile_m(m, cap):
    # cap is a multiple of 8.  If m fits in one block, use the full dim
    # (always a legal block shape); otherwise tile with `cap` rows and let
    # Pallas mask the partial last block.
    return m if m <= cap else cap


def fold_bn(conv_b, gamma, beta, mean, var, eps=1e-5):
    scale = gamma / jnp.sqrt(var + eps)
    shift = (conv_b - mean) * scale + beta
    return scale, shift


# ----------------------------------------------------------------------------
# Pallas kernels
# ----------------------------------------------------------------------------
def _conv_bn_relu_pool_kernel(p_ref, w_ref, scale_ref, shift_ref, o_ref):
    # p_ref: (4, tm, K) -- 4 pool candidates of im2col patches
    # w_ref: (K, Cout), scale/shift: (1, Cout), o_ref: (tm, Cout)
    w = w_ref[...]
    scale = scale_ref[...]
    shift = shift_ref[...]
    y = jnp.dot(p_ref[0], w, preferred_element_type=jnp.float32) * scale + shift
    for d in range(1, 4):
        yd = jnp.dot(p_ref[d], w, preferred_element_type=jnp.float32) * scale + shift
        y = jnp.maximum(y, yd)          # 2x2 max-pool (BN applied per candidate)
    o_ref[...] = jnp.maximum(y, 0.0)    # ReLU (commutes with the max)


def _mlp_kernel(x_ref, w3_ref, b3_ref, w4_ref, b4_ref, w5_ref, b5_ref, o_ref):
    # Fused fc3 -> ReLU -> fc4 -> ReLU -> fc5 (dropout = identity in eval).
    h = jnp.dot(x_ref[...], w3_ref[...], preferred_element_type=jnp.float32)
    h = jnp.maximum(h + b3_ref[...], 0.0)
    h = jnp.dot(h, w4_ref[...], preferred_element_type=jnp.float32)
    h = jnp.maximum(h + b4_ref[...], 0.0)
    o_ref[...] = jnp.dot(h, w5_ref[...], preferred_element_type=jnp.float32) + b5_ref[...]


_COMPILER_PARAMS = pltpu.CompilerParams(
    dimension_semantics=("parallel",),
    vmem_limit_bytes=32 * 1024 * 1024,
)


# ----------------------------------------------------------------------------
# wrappers
# ----------------------------------------------------------------------------
def im2col_pooled(x, kh, kw):
    """x: (N,H,W,C) -> patches (4, N*PH*PW, KH*KW*C) grouped by 2x2 pool slot."""
    n, h, w, c = x.shape
    oh, ow = h - kh + 1, w - kw + 1
    ph, pw = oh // 2, ow // 2
    cols = [x[:, i:i + oh, j:j + ow, :] for i in range(kh) for j in range(kw)]
    p = jnp.stack(cols, axis=3).reshape(n, oh, ow, kh * kw * c)
    cands = [
        p[:, dh:dh + 2 * ph:2, dw:dw + 2 * pw:2, :].reshape(n * ph * pw, kh * kw * c)
        for dh in (0, 1) for dw in (0, 1)
    ]
    return jnp.stack(cands, axis=0), (n, ph, pw)


def conv_bn_relu_pool(x, w_mat, scale, shift, row_cap):
    """Fused conv(5x5, valid) + BN(eval) + ReLU + maxpool 2x2.  x: (N,H,W,C)."""
    patches, (n, ph, pw) = im2col_pooled(x, 5, 5)
    m, k = patches.shape[1], patches.shape[2]
    cout = w_mat.shape[1]
    tm = _pick_tile_m(m, row_cap)
    grid = (pl.cdiv(m, tm),)
    out = pl.pallas_call(
        _conv_bn_relu_pool_kernel,
        out_shape=jax.ShapeDtypeStruct((m, cout), jnp.float32),
        grid=grid,
        in_specs=[
            pl.BlockSpec((4, tm, k), lambda i: (0, i, 0)),
            pl.BlockSpec((k, cout), lambda i: (0, 0)),
            pl.BlockSpec((1, cout), lambda i: (0, 0)),
            pl.BlockSpec((1, cout), lambda i: (0, 0)),
        ],
        out_specs=pl.BlockSpec((tm, cout), lambda i: (i, 0)),
        compiler_params=_COMPILER_PARAMS,
    )(patches, w_mat, scale.reshape(1, cout), shift.reshape(1, cout))
    return out.reshape(n, ph, pw, cout)


def mlp_head(x, w3t, b3, w4t, b4, w5t_pad, b5_pad, n_out):
    """Fused fc3+ReLU+fc4+ReLU+fc5.  x: (N, 1600) in (h,w,c) column order."""
    n, k = x.shape
    d3, d4, d5 = w3t.shape[1], w4t.shape[1], w5t_pad.shape[1]
    tm = _pick_tile_m(n, 128)
    grid = (pl.cdiv(n, tm),)
    out = pl.pallas_call(
        _mlp_kernel,
        out_shape=jax.ShapeDtypeStruct((n, d5), jnp.float32),
        grid=grid,
        in_specs=[
            pl.BlockSpec((tm, k), lambda i: (i, 0)),
            pl.BlockSpec((k, d3), lambda i: (0, 0)),
            pl.BlockSpec((1, d3), lambda i: (0, 0)),
            pl.BlockSpec((d3, d4), lambda i: (0, 0)),
            pl.BlockSpec((1, d4), lambda i: (0, 0)),
            pl.BlockSpec((d4, d5), lambda i: (0, 0)),
            pl.BlockSpec((1, d5), lambda i: (0, 0)),
        ],
        out_specs=pl.BlockSpec((tm, d5), lambda i: (i, 0)),
        compiler_params=_COMPILER_PARAMS,
    )(x, w3t, b3.reshape(1, d3), w4t, b4.reshape(1, d4),
      w5t_pad, b5_pad.reshape(1, d5))
    return out[:, :n_out]


# ----------------------------------------------------------------------------
# parameters
# ----------------------------------------------------------------------------
def init_params(key):
    ks = jax.random.split(key, 18)
    f32 = jnp.float32
    return {
        # conv weights in PyTorch layout (Cout, Cin, KH, KW)
        "conv1_w": 0.05 * jax.random.normal(ks[0], (64, 3, 5, 5), f32),
        "conv1_b": 0.05 * jax.random.normal(ks[1], (64,), f32),
        "bn1_gamma": 1.0 + 0.05 * jax.random.normal(ks[2], (64,), f32),
        "bn1_beta": 0.05 * jax.random.normal(ks[3], (64,), f32),
        "bn1_mean": 0.05 * jax.random.normal(ks[4], (64,), f32),
        "bn1_var": jnp.abs(1.0 + 0.05 * jax.random.normal(ks[5], (64,), f32)),
        "conv2_w": 0.02 * jax.random.normal(ks[6], (64, 64, 5, 5), f32),
        "conv2_b": 0.05 * jax.random.normal(ks[7], (64,), f32),
        "bn2_gamma": 1.0 + 0.05 * jax.random.normal(ks[8], (64,), f32),
        "bn2_beta": 0.05 * jax.random.normal(ks[9], (64,), f32),
        "bn2_mean": 0.05 * jax.random.normal(ks[10], (64,), f32),
        "bn2_var": jnp.abs(1.0 + 0.05 * jax.random.normal(ks[11], (64,), f32)),
        # fc weights in PyTorch layout (out_features, in_features)
        "fc3_w": 0.02 * jax.random.normal(ks[12], (384, 1600), f32),
        "fc3_b": 0.05 * jax.random.normal(ks[13], (384,), f32),
        "fc4_w": 0.05 * jax.random.normal(ks[14], (192, 384), f32),
        "fc4_b": 0.05 * jax.random.normal(ks[15], (192,), f32),
        "fc5_w": 0.05 * jax.random.normal(ks[16], (10, 192), f32),
        "fc5_b": 0.05 * jax.random.normal(ks[17], (10,), f32),
    }


def prepare_params(p):
    """One-time weight layout prep + BN folding (kept out of the hot forward)."""
    prep = {}
    # conv weights -> (KH*KW*Cin, Cout), rows ordered (kh, kw, cin)
    prep["w1"] = jnp.transpose(p["conv1_w"], (2, 3, 1, 0)).reshape(5 * 5 * 3, 64)
    prep["w2"] = jnp.transpose(p["conv2_w"], (2, 3, 1, 0)).reshape(5 * 5 * 64, 64)
    prep["scale1"], prep["shift1"] = fold_bn(p["conv1_b"], p["bn1_gamma"],
                                             p["bn1_beta"], p["bn1_mean"], p["bn1_var"])
    prep["scale2"], prep["shift2"] = fold_bn(p["conv2_b"], p["bn2_gamma"],
                                             p["bn2_beta"], p["bn2_mean"], p["bn2_var"])
    # fc3: permute input columns from PyTorch (c,h,w) flatten order to (h,w,c)
    # so the NHWC-flattened activations feed it directly (no NCHW transpose).
    w3 = p["fc3_w"].reshape(384, 64, 5, 5)                      # (out, c, h, w)
    prep["w3t"] = jnp.transpose(w3, (2, 3, 1, 0)).reshape(1600, 384)
    prep["b3"] = p["fc3_b"]
    prep["w4t"] = p["fc4_w"].T                                  # (384, 192)
    prep["b4"] = p["fc4_b"]
    # fc5 padded to 128 output lanes for lane-dense stores.
    prep["w5t"] = jnp.pad(p["fc5_w"].T, ((0, 0), (0, 128 - 10)))  # (192, 128)
    prep["b5"] = jnp.pad(p["fc5_b"], (0, 128 - 10))               # (128,)
    return prep


# ----------------------------------------------------------------------------
# forward
# ----------------------------------------------------------------------------
def cifarnet_forward(x_nchw, prep):
    x = jnp.transpose(x_nchw, (0, 2, 3, 1))                    # NCHW -> NHWC
    y = conv_bn_relu_pool(x, prep["w1"], prep["scale1"], prep["shift1"],
                          row_cap=256)                         # (N, 14, 14, 64)
    y = conv_bn_relu_pool(y, prep["w2"], prep["scale2"], prep["shift2"],
                          row_cap=128)                         # (N, 5, 5, 64)
    flat = y.reshape(y.shape[0], 5 * 5 * 64)                   # (N,1600), (h,w,c) order
    return mlp_head(flat, prep["w3t"], prep["b3"], prep["w4t"], prep["b4"],
                    prep["w5t"], prep["b5"], n_out=10)


# ----------------------------------------------------------------------------
# Pure-JAX reference (mirrors PyTorch ops) for a sanity check
# ----------------------------------------------------------------------------
def reference_forward(x_nchw, p):
    hp = jax.lax.Precision.HIGHEST

    def conv(x, w, b):
        y = jax.lax.conv_general_dilated(
            x, w, (1, 1), "VALID",
            dimension_numbers=("NCHW", "OIHW", "NCHW"), precision=hp)
        return y + b[None, :, None, None]

    def bn(x, g, bta, m, v):
        return (x - m[None, :, None, None]) / jnp.sqrt(v[None, :, None, None] + 1e-5) \
            * g[None, :, None, None] + bta[None, :, None, None]

    def pool(x):
        n, c, h, w = x.shape
        return x.reshape(n, c, h // 2, 2, w // 2, 2).max(axis=(3, 5))

    y = pool(jax.nn.relu(bn(conv(x_nchw, p["conv1_w"], p["conv1_b"]),
                            p["bn1_gamma"], p["bn1_beta"], p["bn1_mean"], p["bn1_var"])))
    y = pool(jax.nn.relu(bn(conv(y, p["conv2_w"], p["conv2_b"]),
                            p["bn2_gamma"], p["bn2_beta"], p["bn2_mean"], p["bn2_var"])))
    y = y.reshape(y.shape[0], -1)
    y = jax.nn.relu(y @ p["fc3_w"].T + p["fc3_b"])
    y = jax.nn.relu(y @ p["fc4_w"].T + p["fc4_b"])
    return y @ p["fc5_w"].T + p["fc5_b"]


if __name__ == "__main__":
    key = jax.random.PRNGKey(0)
    kx, kp = jax.random.split(key)
    # CIFAR-shaped input (3x32x32 required so the flatten yields 1600 features)
    x = jax.random.normal(kx, (2, 3, 32, 32), jnp.float32)
    params = init_params(kp)
    prep = prepare_params(params)

    fwd = jax.jit(cifarnet_forward)
    out = jax.block_until_ready(fwd(x, prep))
    assert out.shape == (2, 10), out.shape

    ref = jax.block_until_ready(reference_forward(x, params))
    assert jnp.allclose(out, ref, rtol=2e-2, atol=2e-2), (out, ref)

    print("KERNEL_OK")
</pallas_src>

<mosaic_0001>
module attributes {stable_mosaic.version = 11 : i64} {
  func.func @_conv_bn_relu_pool_kernel(%arg0: i32, %arg1: memref<4x256x75xf32, #tpu.memory_space<vmem>>, %arg2: memref<75x64xf32, #tpu.memory_space<vmem>>, %arg3: memref<1x64xf32, #tpu.memory_space<vmem>>, %arg4: memref<1x64xf32, #tpu.memory_space<vmem>>, %arg5: memref<256x64xf32, #tpu.memory_space<vmem>>) attributes {dimension_semantics = [#tpu.dimension_semantics<parallel>], iteration_bounds = array<i64: 2>, scalar_prefetch = 0 : i64, scratch_operands = 0 : i64, tpu.core_type = #tpu.core_type<tc>, window_params = [{transform_indices = @transform_0, window_bounds = array<i64: 4, 256, 75>}, {pipeline_mode = #tpu.pipeline_mode<synchronous>, transform_indices = @transform_1, window_bounds = array<i64: 75, 64>}, {pipeline_mode = #tpu.pipeline_mode<synchronous>, transform_indices = @transform_2, window_bounds = array<i64: 1, 64>}, {pipeline_mode = #tpu.pipeline_mode<synchronous>, transform_indices = @transform_3, window_bounds = array<i64: 1, 64>}, {transform_indices = @transform_4, window_bounds = array<i64: 256, 64>}]} {
    %c0 = arith.constant 0 : index
    %c0_0 = arith.constant 0 : index
    %0 = vector.load %arg2[%c0, %c0_0] : memref<75x64xf32, #tpu.memory_space<vmem>>, vector<75x64xf32>
    %c0_1 = arith.constant 0 : index
    %c0_2 = arith.constant 0 : index
    %1 = vector.load %arg3[%c0_1, %c0_2] : memref<1x64xf32, #tpu.memory_space<vmem>>, vector<1x64xf32>
    %c0_3 = arith.constant 0 : index
    %c0_4 = arith.constant 0 : index
    %2 = vector.load %arg4[%c0_3, %c0_4] : memref<1x64xf32, #tpu.memory_space<vmem>>, vector<1x64xf32>
    %c0_5 = arith.constant 0 : index
    %c0_6 = arith.constant 0 : index
    %c0_7 = arith.constant 0 : index
    %3 = vector.load %arg1[%c0_5, %c0_6, %c0_7] : memref<4x256x75xf32, #tpu.memory_space<vmem>>, vector<1x256x75xf32>
    %4 = vector.shape_cast %3 : vector<1x256x75xf32> to vector<256x75xf32>
    %cst = arith.constant dense<0.000000e+00> : vector<256x64xf32>
    %5 = tpu.matmul %4, %0, %cst {dimension_numbers = #tpu.dot_dimension_numbers<[1], [0], [0], [1], [0, 0, 1, 1], [], []>} : vector<256x75xf32>, vector<75x64xf32>, vector<256x64xf32> -> vector<256x64xf32>
    %6 = vector.broadcast %1 : vector<1x64xf32> to vector<256x64xf32>
    %7 = arith.mulf %5, %6 : vector<256x64xf32>
    %8 = vector.broadcast %2 : vector<1x64xf32> to vector<256x64xf32>
    %9 = arith.addf %7, %8 : vector<256x64xf32>
    %c1 = arith.constant 1 : index
    %c0_8 = arith.constant 0 : index
    %c0_9 = arith.constant 0 : index
    %10 = vector.load %arg1[%c1, %c0_8, %c0_9] : memref<4x256x75xf32, #tpu.memory_space<vmem>>, vector<1x256x75xf32>
    %11 = vector.shape_cast %10 : vector<1x256x75xf32> to vector<256x75xf32>
    %cst_10 = arith.constant dense<0.000000e+00> : vector<256x64xf32>
    %12 = tpu.matmul %11, %0, %cst_10 {dimension_numbers = #tpu.dot_dimension_numbers<[1], [0], [0], [1], [0, 0, 1, 1], [], []>} : vector<256x75xf32>, vector<75x64xf32>, vector<256x64xf32> -> vector<256x64xf32>
    %13 = vector.broadcast %1 : vector<1x64xf32> to vector<256x64xf32>
    %14 = arith.mulf %12, %13 : vector<256x64xf32>
    %15 = vector.broadcast %2 : vector<1x64xf32> to vector<256x64xf32>
    %16 = arith.addf %14, %15 : vector<256x64xf32>
    %17 = arith.maximumf %9, %16 : vector<256x64xf32>
    %c2 = arith.constant 2 : index
    %c0_11 = arith.constant 0 : index
    %c0_12 = arith.constant 0 : index
    %18 = vector.load %arg1[%c2, %c0_11, %c0_12] : memref<4x256x75xf32, #tpu.memory_space<vmem>>, vector<1x256x75xf32>
    %19 = vector.shape_cast %18 : vector<1x256x75xf32> to vector<256x75xf32>
    %cst_13 = arith.constant dense<0.000000e+00> : vector<256x64xf32>
    %20 = tpu.matmul %19, %0, %cst_13 {dimension_numbers = #tpu.dot_dimension_numbers<[1], [0], [0], [1], [0, 0, 1, 1], [], []>} : vector<256x75xf32>, vector<75x64xf32>, vector<256x64xf32> -> vector<256x64xf32>
    %21 = vector.broadcast %1 : vector<1x64xf32> to vector<256x64xf32>
    %22 = arith.mulf %20, %21 : vector<256x64xf32>
    %23 = vector.broadcast %2 : vector<1x64xf32> to vector<256x64xf32>
    %24 = arith.addf %22, %23 : vector<256x64xf32>
    %25 = arith.maximumf %17, %24 : vector<256x64xf32>
    %c3 = arith.constant 3 : index
    %c0_14 = arith.constant 0 : index
    %c0_15 = arith.constant 0 : index
    %26 = vector.load %arg1[%c3, %c0_14, %c0_15] : memref<4x256x75xf32, #tpu.memory_space<vmem>>, vector<1x256x75xf32>
    %27 = vector.shape_cast %26 : vector<1x256x75xf32> to vector<256x75xf32>
    %cst_16 = arith.constant dense<0.000000e+00> : vector<256x64xf32>
    %28 = tpu.matmul %27, %0, %cst_16 {dimension_numbers = #tpu.dot_dimension_numbers<[1], [0], [0], [1], [0, 0, 1, 1], [], []>} : vector<256x75xf32>, vector<75x64xf32>, vector<256x64xf32> -> vector<256x64xf32>
    %29 = vector.broadcast %1 : vector<1x64xf32> to vector<256x64xf32>
    %30 = arith.mulf %28, %29 : vector<256x64xf32>
    %31 = vector.broadcast %2 : vector<1x64xf32> to vector<256x64xf32>
    %32 = arith.addf %30, %31 : vector<256x64xf32>
    %33 = arith.maximumf %25, %32 : vector<256x64xf32>
    %cst_17 = arith.constant 0.000000e+00 : f32
    %34 = vector.broadcast %cst_17 : f32 to vector<256x64xf32>
    %35 = arith.maximumf %33, %34 : vector<256x64xf32>
    %c0_18 = arith.constant 0 : index
    %c0_19 = arith.constant 0 : index
    %36 = vector.load %arg5[%c0_18, %c0_19] : memref<256x64xf32, #tpu.memory_space<vmem>>, vector<256x64xf32>
    tpu.vector_store %arg5[%c0_18, %c0_19], %35 {strides = array<i32>} : memref<256x64xf32, #tpu.memory_space<vmem>>, vector<256x64xf32>,
    return
  }
  func.func @transform_0(%arg0: i32) -> (i32, i32, i32) {
    %c0_i32 = arith.constant 0 : i32
    %c0_i32_0 = arith.constant 0 : i32
    %c0_i32_1 = arith.constant 0 : i32
    return %c0_i32, %arg0, %c0_i32_0 : i32, i32, i32
  }
  func.func @transform_1(%arg0: i32) -> (i32, i32) {
    %c0_i32 = arith.constant 0 : i32
    %c0_i32_0 = arith.constant 0 : i32
    %c0_i32_1 = arith.constant 0 : i32
    return %c0_i32, %c0_i32_0 : i32, i32
  }
  func.func @transform_2(%arg0: i32) -> (i32, i32) {
    %c0_i32 = arith.constant 0 : i32
    %c0_i32_0 = arith.constant 0 : i32
    %c0_i32_1 = arith.constant 0 : i32
    return %c0_i32, %c0_i32_0 : i32, i32
  }
  func.func @transform_3(%arg0: i32) -> (i32, i32) {
    %c0_i32 = arith.constant 0 : i32
    %c0_i32_0 = arith.constant 0 : i32
    %c0_i32_1 = arith.constant 0 : i32
    return %c0_i32, %c0_i32_0 : i32, i32
  }
  func.func @transform_4(%arg0: i32) -> (i32, i32) {
    %c0_i32 = arith.constant 0 : i32
    %c0_i32_0 = arith.constant 0 : i32
    return %arg0, %c0_i32 : i32, i32
  }
}

module attributes {stable_mosaic.version = 11 : i64} {
  func.func @_conv_bn_relu_pool_kernel(%arg0: i32, %arg1: memref<4x50x1600xf32, #tpu.memory_space<vmem>>, %arg2: memref<1600x64xf32, #tpu.memory_space<vmem>>, %arg3: memref<1x64xf32, #tpu.memory_space<vmem>>, %arg4: memref<1x64xf32, #tpu.memory_space<vmem>>, %arg5: memref<50x64xf32, #tpu.memory_space<vmem>>) attributes {dimension_semantics = [#tpu.dimension_semantics<parallel>], iteration_bounds = array<i64: 1>, scalar_prefetch = 0 : i64, scratch_operands = 0 : i64, tpu.core_type = #tpu.core_type<tc>, window_params = [{transform_indices = @transform_0, window_bounds = array<i64: 4, 50, 1600>}, {pipeline_mode = #tpu.pipeline_mode<synchronous>, transform_indices = @transform_1, window_bounds = array<i64: 1600, 64>}, {pipeline_mode = #tpu.pipeline_mode<synchronous>, transform_indices = @transform_2, window_bounds = array<i64: 1, 64>}, {pipeline_mode = #tpu.pipeline_mode<synchronous>, transform_indices = @transform_3, window_bounds = array<i64: 1, 64>}, {transform_indices = @transform_4, window_bounds = array<i64: 50, 64>}]} {
    %c0 = arith.constant 0 : index
    %c0_0 = arith.constant 0 : index
    %0 = vector.load %arg2[%c0, %c0_0] : memref<1600x64xf32, #tpu.memory_space<vmem>>, vector<1600x64xf32>
    %c0_1 = arith.constant 0 : index
    %c0_2 = arith.constant 0 : index
    %1 = vector.load %arg3[%c0_1, %c0_2] : memref<1x64xf32, #tpu.memory_space<vmem>>, vector<1x64xf32>
    %c0_3 = arith.constant 0 : index
    %c0_4 = arith.constant 0 : index
    %2 = vector.load %arg4[%c0_3, %c0_4] : memref<1x64xf32, #tpu.memory_space<vmem>>, vector<1x64xf32>
    %c0_5 = arith.constant 0 : index
    %c0_6 = arith.constant 0 : index
    %c0_7 = arith.constant 0 : index
    %3 = vector.load %arg1[%c0_5, %c0_6, %c0_7] : memref<4x50x1600xf32, #tpu.memory_space<vmem>>, vector<1x50x1600xf32>
    %4 = vector.shape_cast %3 : vector<1x50x1600xf32> to vector<50x1600xf32>
    %cst = arith.constant dense<0.000000e+00> : vector<50x64xf32>
    %5 = tpu.matmul %4, %0, %cst {dimension_numbers = #tpu.dot_dimension_numbers<[1], [0], [0], [1], [0, 0, 1, 1], [], []>} : vector<50x1600xf32>, vector<1600x64xf32>, vector<50x64xf32> -> vector<50x64xf32>
    %6 = vector.broadcast %1 : vector<1x64xf32> to vector<50x64xf32>
    %7 = arith.mulf %5, %6 : vector<50x64xf32>
    %8 = vector.broadcast %2 : vector<1x64xf32> to vector<50x64xf32>
    %9 = arith.addf %7, %8 : vector<50x64xf32>
    %c1 = arith.constant 1 : index
    %c0_8 = arith.constant 0 : index
    %c0_9 = arith.constant 0 : index
    %10 = vector.load %arg1[%c1, %c0_8, %c0_9] : memref<4x50x1600xf32, #tpu.memory_space<vmem>>, vector<1x50x1600xf32>
    %11 = vector.shape_cast %10 : vector<1x50x1600xf32> to vector<50x1600xf32>
    %cst_10 = arith.constant dense<0.000000e+00> : vector<50x64xf32>
    %12 = tpu.matmul %11, %0, %cst_10 {dimension_numbers = #tpu.dot_dimension_numbers<[1], [0], [0], [1], [0, 0, 1, 1], [], []>} : vector<50x1600xf32>, vector<1600x64xf32>, vector<50x64xf32> -> vector<50x64xf32>
    %13 = vector.broadcast %1 : vector<1x64xf32> to vector<50x64xf32>
    %14 = arith.mulf %12, %13 : vector<50x64xf32>
    %15 = vector.broadcast %2 : vector<1x64xf32> to vector<50x64xf32>
    %16 = arith.addf %14, %15 : vector<50x64xf32>
    %17 = arith.maximumf %9, %16 : vector<50x64xf32>
    %c2 = arith.constant 2 : index
    %c0_11 = arith.constant 0 : index
    %c0_12 = arith.constant 0 : index
    %18 = vector.load %arg1[%c2, %c0_11, %c0_12] : memref<4x50x1600xf32, #tpu.memory_space<vmem>>, vector<1x50x1600xf32>
    %19 = vector.shape_cast %18 : vector<1x50x1600xf32> to vector<50x1600xf32>
    %cst_13 = arith.constant dense<0.000000e+00> : vector<50x64xf32>
    %20 = tpu.matmul %19, %0, %cst_13 {dimension_numbers = #tpu.dot_dimension_numbers<[1], [0], [0], [1], [0, 0, 1, 1], [], []>} : vector<50x1600xf32>, vector<1600x64xf32>, vector<50x64xf32> -> vector<50x64xf32>
    %21 = vector.broadcast %1 : vector<1x64xf32> to vector<50x64xf32>
    %22 = arith.mulf %20, %21 : vector<50x64xf32>
    %23 = vector.broadcast %2 : vector<1x64xf32> to vector<50x64xf32>
    %24 = arith.addf %22, %23 : vector<50x64xf32>
    %25 = arith.maximumf %17, %24 : vector<50x64xf32>
    %c3 = arith.constant 3 : index
    %c0_14 = arith.constant 0 : index
    %c0_15 = arith.constant 0 : index
    %26 = vector.load %arg1[%c3, %c0_14, %c0_15] : memref<4x50x1600xf32, #tpu.memory_space<vmem>>, vector<1x50x1600xf32>
    %27 = vector.shape_cast %26 : vector<1x50x1600xf32> to vector<50x1600xf32>
    %cst_16 = arith.constant dense<0.000000e+00> : vector<50x64xf32>
    %28 = tpu.matmul %27, %0, %cst_16 {dimension_numbers = #tpu.dot_dimension_numbers<[1], [0], [0], [1], [0, 0, 1, 1], [], []>} : vector<50x1600xf32>, vector<1600x64xf32>, vector<50x64xf32> -> vector<50x64xf32>
    %29 = vector.broadcast %1 : vector<1x64xf32> to vector<50x64xf32>
    %30 = arith.mulf %28, %29 : vector<50x64xf32>
    %31 = vector.broadcast %2 : vector<1x64xf32> to vector<50x64xf32>
    %32 = arith.addf %30, %31 : vector<50x64xf32>
    %33 = arith.maximumf %25, %32 : vector<50x64xf32>
    %cst_17 = arith.constant 0.000000e+00 : f32
    %34 = vector.broadcast %cst_17 : f32 to vector<50x64xf32>
    %35 = arith.maximumf %33, %34 : vector<50x64xf32>
    %c0_18 = arith.constant 0 : index
    %c0_19 = arith.constant 0 : index
    %36 = vector.load %arg5[%c0_18, %c0_19] : memref<50x64xf32, #tpu.memory_space<vmem>>, vector<50x64xf32>
    tpu.vector_store %arg5[%c0_18, %c0_19], %35 {strides = array<i32>} : memref<50x64xf32, #tpu.memory_space<vmem>>, vector<50x64xf32>,
    return
  }
  func.func @transform_0(%arg0: i32) -> (i32, i32, i32) {
    %c0_i32 = arith.constant 0 : i32
    %c0_i32_0 = arith.constant 0 : i32
    %c0_i32_1 = arith.constant 0 : i32
    return %c0_i32, %arg0, %c0_i32_0 : i32, i32, i32
  }
  func.func @transform_1(%arg0: i32) -> (i32, i32) {
    %c0_i32 = arith.constant 0 : i32
    %c0_i32_0 = arith.constant 0 : i32
    %c0_i32_1 = arith.constant 0 : i32
    return %c0_i32, %c0_i32_0 : i32, i32
  }
  func.func @transform_2(%arg0: i32) -> (i32, i32) {
    %c0_i32 = arith.constant 0 : i32
    %c0_i32_0 = arith.constant 0 : i32
    %c0_i32_1 = arith.constant 0 : i32
    return %c0_i32, %c0_i32_0 : i32, i32
  }
  func.func @transform_3(%arg0: i32) -> (i32, i32) {
    %c0_i32 = arith.constant 0 : i32
    %c0_i32_0 = arith.constant 0 : i32
    %c0_i32_1 = arith.constant 0 : i32
    return %c0_i32, %c0_i32_0 : i32, i32
  }
  func.func @transform_4(%arg0: i32) -> (i32, i32) {
    %c0_i32 = arith.constant 0 : i32
    %c0_i32_0 = arith.constant 0 : i32
    return %arg0, %c0_i32 : i32, i32
  }
}

module attributes {stable_mosaic.version = 11 : i64} {
  func.func @_mlp_kernel(%arg0: i32, %arg1: memref<2x1600xf32, #tpu.memory_space<vmem>>, %arg2: memref<1600x384xf32, #tpu.memory_space<vmem>>, %arg3: memref<1x384xf32, #tpu.memory_space<vmem>>, %arg4: memref<384x192xf32, #tpu.memory_space<vmem>>, %arg5: memref<1x192xf32, #tpu.memory_space<vmem>>, %arg6: memref<192x128xf32, #tpu.memory_space<vmem>>, %arg7: memref<1x128xf32, #tpu.memory_space<vmem>>, %arg8: memref<2x128xf32, #tpu.memory_space<vmem>>) attributes {dimension_semantics = [#tpu.dimension_semantics<parallel>], iteration_bounds = array<i64: 1>, scalar_prefetch = 0 : i64, scratch_operands = 0 : i64, tpu.core_type = #tpu.core_type<tc>, window_params = [{transform_indices = @transform_0, window_bounds = array<i64: 2, 1600>}, {pipeline_mode = #tpu.pipeline_mode<synchronous>, transform_indices = @transform_1, window_bounds = array<i64: 1600, 384>}, {pipeline_mode = #tpu.pipeline_mode<synchronous>, transform_indices = @transform_2, window_bounds = array<i64: 1, 384>}, {pipeline_mode = #tpu.pipeline_mode<synchronous>, transform_indices = @transform_3, window_bounds = array<i64: 384, 192>}, {pipeline_mode = #tpu.pipeline_mode<synchronous>, transform_indices = @transform_4, window_bounds = array<i64: 1, 192>}, {pipeline_mode = #tpu.pipeline_mode<synchronous>, transform_indices = @transform_5, window_bounds = array<i64: 192, 128>}, {pipeline_mode = #tpu.pipeline_mode<synchronous>, transform_indices = @transform_6, window_bounds = array<i64: 1, 128>}, {transform_indices = @transform_7, window_bounds = array<i64: 2, 128>}]} {
    %c0 = arith.constant 0 : index
    %c0_0 = arith.constant 0 : index
    %0 = vector.load %arg1[%c0, %c0_0] : memref<2x1600xf32, #tpu.memory_space<vmem>>, vector<2x1600xf32>
    %c0_1 = arith.constant 0 : index
    %c0_2 = arith.constant 0 : index
    %1 = vector.load %arg2[%c0_1, %c0_2] : memref<1600x384xf32, #tpu.memory_space<vmem>>, vector<1600x384xf32>
    %cst = arith.constant dense<0.000000e+00> : vector<2x384xf32>
    %2 = tpu.matmul %0, %1, %cst {dimension_numbers = #tpu.dot_dimension_numbers<[1], [0], [0], [1], [0, 0, 1, 1], [], []>} : vector<2x1600xf32>, vector<1600x384xf32>, vector<2x384xf32> -> vector<2x384xf32>
    %c0_3 = arith.constant 0 : index
    %c0_4 = arith.constant 0 : index
    %3 = vector.load %arg3[%c0_3, %c0_4] : memref<1x384xf32, #tpu.memory_space<vmem>>, vector<1x384xf32>
    %4 = vector.broadcast %3 : vector<1x384xf32> to vector<2x384xf32>
    %5 = arith.addf %2, %4 : vector<2x384xf32>
    %cst_5 = arith.constant 0.000000e+00 : f32
    %6 = vector.broadcast %cst_5 : f32 to vector<2x384xf32>
    %7 = arith.maximumf %5, %6 : vector<2x384xf32>
    %c0_6 = arith.constant 0 : index
    %c0_7 = arith.constant 0 : index
    %8 = vector.load %arg4[%c0_6, %c0_7] : memref<384x192xf32, #tpu.memory_space<vmem>>, vector<384x192xf32>
    %cst_8 = arith.constant dense<0.000000e+00> : vector<2x192xf32>
    %9 = tpu.matmul %7, %8, %cst_8 {dimension_numbers = #tpu.dot_dimension_numbers<[1], [0], [0], [1], [0, 0, 1, 1], [], []>} : vector<2x384xf32>, vector<384x192xf32>, vector<2x192xf32> -> vector<2x192xf32>
    %c0_9 = arith.constant 0 : index
    %c0_10 = arith.constant 0 : index
    %10 = vector.load %arg5[%c0_9, %c0_10] : memref<1x192xf32, #tpu.memory_space<vmem>>, vector<1x192xf32>
    %11 = vector.broadcast %10 : vector<1x192xf32> to vector<2x192xf32>
    %12 = arith.addf %9, %11 : vector<2x192xf32>
    %cst_11 = arith.constant 0.000000e+00 : f32
    %13 = vector.broadcast %cst_11 : f32 to vector<2x192xf32>
    %14 = arith.maximumf %12, %13 : vector<2x192xf32>
    %c0_12 = arith.constant 0 : index
    %c0_13 = arith.constant 0 : index
    %15 = vector.load %arg6[%c0_12, %c0_13] : memref<192x128xf32, #tpu.memory_space<vmem>>, vector<192x128xf32>
    %cst_14 = arith.constant dense<0.000000e+00> : vector<2x128xf32>
    %16 = tpu.matmul %14, %15, %cst_14 {dimension_numbers = #tpu.dot_dimension_numbers<[1], [0], [0], [1], [0, 0, 1, 1], [], []>} : vector<2x192xf32>, vector<192x128xf32>, vector<2x128xf32> -> vector<2x128xf32>
    %c0_15 = arith.constant 0 : index
    %c0_16 = arith.constant 0 : index
    %17 = vector.load %arg7[%c0_15, %c0_16] : memref<1x128xf32, #tpu.memory_space<vmem>>, vector<1x128xf32>
    %18 = vector.broadcast %17 : vector<1x128xf32> to vector<2x128xf32>
    %19 = arith.addf %16, %18 : vector<2x128xf32>
    %c0_17 = arith.constant 0 : index
    %c0_18 = arith.constant 0 : index
    %20 = vector.load %arg8[%c0_17, %c0_18] : memref<2x128xf32, #tpu.memory_space<vmem>>, vector<2x128xf32>
    tpu.vector_store %arg8[%c0_17, %c0_18], %19 {strides = array<i32>} : memref<2x128xf32, #tpu.memory_space<vmem>>, vector<2x128xf32>,
    return
  }
  func.func @transform_0(%arg0: i32) -> (i32, i32) {
    %c0_i32 = arith.constant 0 : i32
    %c0_i32_0 = arith.constant 0 : i32
    return %arg0, %c0_i32 : i32, i32
  }
  func.func @transform_1(%arg0: i32) -> (i32, i32) {
    %c0_i32 = arith.constant 0 : i32
    %c0_i32_0 = arith.constant 0 : i32
    %c0_i32_1 = arith.constant 0 : i32
    return %c0_i32, %c0_i32_0 : i32, i32
  }
  func.func @transform_2(%arg0: i32) -> (i32, i32) {
    %c0_i32 = arith.constant 0 : i32
    %c0_i32_0 = arith.constant 0 : i32
    %c0_i32_1 = arith.constant 0 : i32
    return %c0_i32, %c0_i32_0 : i32, i32
  }
  func.func @transform_3(%arg0: i32) -> (i32, i32) {
    %c0_i32 = arith.constant 0 : i32
    %c0_i32_0 = arith.constant 0 : i32
    %c0_i32_1 = arith.constant 0 : i32
    return %c0_i32, %c0_i32_0 : i32, i32
  }
  func.func @transform_4(%arg0: i32) -> (i32, i32) {
    %c0_i32 = arith.constant 0 : i32
    %c0_i32_0 = arith.constant 0 : i32
    %c0_i32_1 = arith.constant 0 : i32
    return %c0_i32, %c0_i32_0 : i32, i32
  }
  func.func @transform_5(%arg0: i32) -> (i32, i32) {
    %c0_i32 = arith.constant 0 : i32
    %c0_i32_0 = arith.constant 0 : i32
    %c0_i32_1 = arith.constant 0 : i32
    return %c0_i32, %c0_i32_0 : i32, i32
  }
  func.func @transform_6(%arg0: i32) -> (i32, i32) {
    %c0_i32 = arith.constant 0 : i32
    %c0_i32_0 = arith.constant 0 : i32
    %c0_i32_1 = arith.constant 0 : i32
    return %c0_i32, %c0_i32_0 : i32, i32
  }
  func.func @transform_7(%arg0: i32) -> (i32, i32) {
    %c0_i32 = arith.constant 0 : i32
    %c0_i32_0 = arith.constant 0 : i32
    return %arg0, %c0_i32 : i32, i32
  }
}

</mosaic_0001>

<bundles_post_ra>
// kernel: cifarnet_forward.3
= control target key start
LH: loop header
LB: loop body
LE: loop exit
PB: predicated region body
PF: predicated region fallthrough
CT: control target
= control target key end

     0   :  { %s3874_s15 = smov 0   ;;  %s3876_s16 = smov 0   ;;  %s5416_s0 = inlined_call_operand.vmem [shape: f32[4,392,75], index: 0, kind: input, shape index: {}]   ;;  %s5417_s1 = inlined_call_operand.vmem [shape: f32[75,64], index: 1, kind: input, shape index: {}]   ;;  %s5418_s2 = inlined_call_operand.vmem [shape: f32[1,64], index: 2, kind: input, shape index: {}]   ;;  %s5419_s3 = inlined_call_operand.vmem [shape: f32[1,64], index: 3, kind: input, shape index: {}]   ;;  %s5420_s4 = inlined_call_operand.vmem [shape: f32[392,64], index: 4, kind: output, shape index: {}]  }
   0x1   :  { %s3878_s17 = smov 0  }
   0x2 LB: > { %s3890_s18 = sadd.s32 4294967295, %s3783_s17   ;;  %s3893_s19 = sadd.s32 1, %s3783_s17   ;;  %s3783_s17 = sphi %s3878_s17, %s5512_s17   ;;  %s3779_s16 = sphi %s3876_s16, %s5511_s16   ;;  %s3775_s15 = sphi %s3874_s15, %s5510_s15  }
   0x3   : > { %s18_s20 = ssub.s32 %s3783_s17, %s3893_s19  ;;  %s21_s21 = sadd.s32 1, %s3779_s16 }
   0x4   : > { %p19_p0 = scmp.eq.s32.totalorder %s18_s20, 0  ;;  %p28_p1 = scmp.ne.s32.totalorder %s3779_s16, %s3775_s15 }
   0x5   : > { %p29_p2 = scmp.eq.s32.totalorder %s3783_s17, 0  ;;  %p121_p3 = scmp.eq.s32.totalorder %s3890_s18, 1 }
   0x6   : > { %s3903_s22 = scalar_select %p19_p0, %s3779_s16, %s21_s21  }
   0x7   : > { %p30_p4 = por %p29_p2, %p28_p1  ;;  %p3905_p5 = por %p121_p3, %p28_p1 }
   0x8   : > { %p2833_p6 = scmp.ge.s32.totalorder %s3783_s17, 2 }
   0xa   : > { %152 = sbr.rel (%p2833_p6) target bundleno = 84 (0x54), region = 28 }
   0xf   : > { %155 = sbr.rel (!%p30_p4) target bundleno = 84 (0x54), region = 32  ;;  %s157_s24 = sand.u32 (%p30_p4), 1, %s3779_s16  }
  0x10   : > { %s2835_s25 = sshll.u32 (%p30_p4), %s3783_s17, 5  ;;  %s2834_s26 = sshll.u32 (%p30_p4), %s157_s24, 10 }
  0x11   : > { %s161_s27 = ssub.s32 (%p30_p4), 49, %s2835_s25  ;;  %s3099_s28 = sshll.u32 (%p30_p4), %s3783_s17, 8 }
  0x12   : > { %p162_p7 = scmp.lt.s32.totalorder (%p30_p4), %s161_s27, 32  ;;  %s3918_s5 = scalar_lea.vmem (%p30_p4), %s5416_s0, %s3099_s28  }
  0x13   : > { %s3921_s7 = scalar_lea.vmem (%p30_p4), [#allocation2], %s2834_s26  }
  0x14   : > { %s5514_s27 = smov (!%p162_p7, %s161_s27), 32 }
  0x15   : > { %s2836_s6 = sshll.u32 %s5514_s27, 9 }
  0x16   : > { %p2839_p8 = scmp.eq.s32.totalorder %s2836_s6, 0 }
  0x17   : > { %s3924_s8 = sshrl.u32 (!%p2839_p8), %s5514_s27, 4 }
  0x18   : > { %170 = sbr.rel (%p2839_p8) target bundleno = 84 (0x54), region = 36  ;;  %p2840_p9 = scmp.le.s32.totalorder (!%p2839_p8), %s3924_s8, 0 }
  0x1d   : > { %2759 = sbr.rel (%p2840_p9) target bundleno = 67 (0x43), region = 188  ;;  %s5435_s9 = smov (!%p2840_p9), %s3921_s7 }
  0x1e   : > { %s5436_s10 = smov (!%p2840_p9), %s3918_s5  ;;  %s3933_s11 = smov (!%p2840_p9), 0  }
  0x1f   : > { %s3935_s12 = smov (!%p2840_p9), 0  }
  0x22 LB: >> { %v365_v0 = vld [vmem:[%s3791_s10] sm:$0xff]  ;;  %v367_v1 = vld [vmem:[%s3791_s10 + $0x8] sm:$0xff]  ;;  %v369_v2 = vld [vmem:[%s3791_s10 + $0x10] sm:$0xff]  ;;  %s493_s13 = sadd.s32 1, %s3795_s11  ;;  %s359_s12 = sadd.s32 1, %s3799_s12   ;;  %s3799_s12 = sphi %s3935_s12, %s359_s12   ;;  %s3795_s11 = sphi %s3933_s11, %s5439_s11   ;;  %s3791_s10 = sphi %s5436_s10, %s5438_s10   ;;  %s3787_s9 = sphi %s5435_s9, %s5437_s9  }
  0x23   : >> { %366 = vst [vmem:[%s3787_s9] sm:$0xff] %v365_v0  ;;  %368 = vst [vmem:[%s3787_s9 + $0x8] sm:$0xff] %v367_v1  ;;  %v371_v3 = vld [vmem:[%s3791_s10 + $0x18] sm:$0xff]  ;;  %v373_v4 = vld [vmem:[%s3791_s10 + $0x20] sm:$0xff]  ;;  %p494_p10 = scmp.ge.s32.totalorder %s493_s13, %s3924_s8  ;;  %p358_p11 = scmp.ge.s32.totalorder %s359_s12, %s3924_s8 }
  0x24   : >> { %370 = vst [vmem:[%s3787_s9 + $0x10] sm:$0xff] %v369_v2  ;;  %v375_v5 = vld [vmem:[%s3791_s10 + $0x28] sm:$0xff]  ;;  %372 = vst [vmem:[%s3787_s9 + $0x18] sm:$0xff] %v371_v3  ;;  %v377_v6 = vld [vmem:[%s3791_s10 + $0x30] sm:$0xff] }
  0x25   : >> { %374 = vst [vmem:[%s3787_s9 + $0x20] sm:$0xff] %v373_v4  ;;  %376 = vst [vmem:[%s3787_s9 + $0x28] sm:$0xff] %v375_v5  ;;  %v379_v7 = vld [vmem:[%s3791_s10 + $0x38] sm:$0xff]  ;;  %v381_v8 = vld [vmem:[%s3791_s10 + $0x40] sm:$0xff]  ;;  %s5516_s13 = smov (%p494_p10, %s493_s13), 0 }
  0x26   : >> { %378 = vst [vmem:[%s3787_s9 + $0x30] sm:$0xff] %v377_v6  ;;  %380 = vst [vmem:[%s3787_s9 + $0x38] sm:$0xff] %v379_v7  ;;  %v383_v9 = vld [vmem:[%s3791_s10 + $0x48] sm:$0xff]  ;;  %v385_v10 = vld [vmem:[%s3791_s10 + $0x50] sm:$0xff]  ;;  %s2841_s14 = sshll.u32 %s5516_s13, 7  ;;  %s5439_s11 = smov %s5516_s13 }
  0x27   : >> { %382 = vst [vmem:[%s3787_s9 + $0x40] sm:$0xff] %v381_v8  ;;  %v387_v11 = vld [vmem:[%s3791_s10 + $0x58] sm:$0xff]  ;;  %384 = vst [vmem:[%s3787_s9 + $0x48] sm:$0xff] %v383_v9  ;;  %v389_v12 = vld [vmem:[%s3791_s10 + $0x60] sm:$0xff]  ;;  %s3991_s20 = scalar_lea.vmem %s3918_s5, %s2841_s14   ;;  %s3994_s21 = scalar_lea.vmem %s3921_s7, %s2841_s14 [#allocation2]  }
  0x28   : >> { %386 = vst [vmem:[%s3787_s9 + $0x50] sm:$0xff] %v385_v10  ;;  %388 = vst [vmem:[%s3787_s9 + $0x58] sm:$0xff] %v387_v11  ;;  %v391_v13 = vld [vmem:[%s3791_s10 + $0x68] sm:$0xff]  ;;  %v393_v14 = vld [vmem:[%s3791_s10 + $0x70] sm:$0xff] }
  0x29   : >> { %390 = vst [vmem:[%s3787_s9 + $0x60] sm:$0xff] %v389_v12  ;;  %392 = vst [vmem:[%s3787_s9 + $0x68] sm:$0xff] %v391_v13  ;;  %v395_v15 = vld [vmem:[%s3791_s10 + $0x78] sm:$0xff]  ;;  %v397_v16 = vld [vmem:[%s3791_s10 + $0x188] sm:$0xff] }
  0x2a   : >> { %394 = vst [vmem:[%s3787_s9 + $0x70] sm:$0xff] %v393_v14  ;;  %v399_v17 = vld [vmem:[%s3791_s10 + $0x190] sm:$0xff]  ;;  %396 = vst [vmem:[%s3787_s9 + $0x78] sm:$0xff] %v395_v15  ;;  %v401_v18 = vld [vmem:[%s3791_s10 + $0x198] sm:$0xff] }
  0x2b   : >> { %398 = vst [vmem:[%s3787_s9 + $0x100] sm:$0xff] %v397_v16  ;;  %400 = vst [vmem:[%s3787_s9 + $0x108] sm:$0xff] %v399_v17  ;;  %v403_v19 = vld [vmem:[%s3791_s10 + $0x1a0] sm:$0xff]  ;;  %v405_v20 = vld [vmem:[%s3791_s10 + $0x1a8] sm:$0xff] }
  0x2c   : >> { %402 = vst [vmem:[%s3787_s9 + $0x110] sm:$0xff] %v401_v18  ;;  %404 = vst [vmem:[%s3787_s9 + $0x118] sm:$0xff] %v403_v19  ;;  %v407_v21 = vld [vmem:[%s3791_s10 + $0x1b0] sm:$0xff]  ;;  %v409_v22 = vld [vmem:[%s3791_s10 + $0x1b8] sm:$0xff] }
  0x2d   : >> { %406 = vst [vmem:[%s3787_s9 + $0x120] sm:$0xff] %v405_v20  ;;  %v411_v23 = vld [vmem:[%s3791_s10 + $0x1c0] sm:$0xff]  ;;  %408 = vst [vmem:[%s3787_s9 + $0x128] sm:$0xff] %v407_v21  ;;  %v413_v24 = vld [vmem:[%s3791_s10 + $0x1c8] sm:$0xff] }
  0x2e   : >> { %410 = vst [vmem:[%s3787_s9 + $0x130] sm:$0xff] %v409_v22  ;;  %412 = vst [vmem:[%s3787_s9 + $0x138] sm:$0xff] %v411_v23  ;;  %v415_v25 = vld [vmem:[%s3791_s10 + $0x1d0] sm:$0xff]  ;;  %v417_v26 = vld [vmem:[%s3791_s10 + $0x1d8] sm:$0xff] }
  0x2f   : >> { %414 = vst [vmem:[%s3787_s9 + $0x140] sm:$0xff] %v413_v24  ;;  %416 = vst [vmem:[%s3787_s9 + $0x148] sm:$0xff] %v415_v25  ;;  %v419_v27 = vld [vmem:[%s3791_s10 + $0x1e0] sm:$0xff]  ;;  %v421_v28 = vld [vmem:[%s3791_s10 + $0x1e8] sm:$0xff] }
  0x30   : >> { %418 = vst [vmem:[%s3787_s9 + $0x150] sm:$0xff] %v417_v26  ;;  %v423_v29 = vld [vmem:[%s3791_s10 + $0x1f0] sm:$0xff]  ;;  %420 = vst [vmem:[%s3787_s9 + $0x158] sm:$0xff] %v419_v27  ;;  %v425_v30 = vld [vmem:[%s3791_s10 + $0x1f8] sm:$0xff] }
  0x31   : >> { %422 = vst [vmem:[%s3787_s9 + $0x160] sm:$0xff] %v421_v28  ;;  %424 = vst [vmem:[%s3787_s9 + $0x168] sm:$0xff] %v423_v29  ;;  %v427_v31 = vld [vmem:[%s3791_s10 + $0x200] sm:$0xff]  ;;  %v429_v32 = vld [vmem:[%s3791_s10 + $0x310] sm:$0xff] }
  0x32   : >> { %426 = vst [vmem:[%s3787_s9 + $0x170] sm:$0xff] %v425_v30  ;;  %428 = vst [vmem:[%s3787_s9 + $0x178] sm:$0xff] %v427_v31  ;;  %v431_v33 = vld [vmem:[%s3791_s10 + $0x318] sm:$0xff]  ;;  %v433_v34 = vld [vmem:[%s3791_s10 + $0x320] sm:$0xff] }
  0x33   : >> { %430 = vst [vmem:[%s3787_s9 + $0x200] sm:$0xff] %v429_v32  ;;  %v435_v35 = vld [vmem:[%s3791_s10 + $0x328] sm:$0xff]  ;;  %432 = vst [vmem:[%s3787_s9 + $0x208] sm:$0xff] %v431_v33  ;;  %v437_v36 = vld [vmem:[%s3791_s10 + $0x330] sm:$0xff] }
  0x34   : >> { %434 = vst [vmem:[%s3787_s9 + $0x210] sm:$0xff] %v433_v34  ;;  %436 = vst [vmem:[%s3787_s9 + $0x218] sm:$0xff] %v435_v35  ;;  %v439_v37 = vld [vmem:[%s3791_s10 + $0x338] sm:$0xff]  ;;  %v441_v38 = vld [vmem:[%s3791_s10 + $0x340] sm:$0xff] }
  0x35   : >> { %438 = vst [vmem:[%s3787_s9 + $0x220] sm:$0xff] %v437_v36  ;;  %440 = vst [vmem:[%s3787_s9 + $0x228] sm:$0xff] %v439_v37  ;;  %v443_v39 = vld [vmem:[%s3791_s10 + $0x348] sm:$0xff]  ;;  %v445_v40 = vld [vmem:[%s3791_s10 + $0x350] sm:$0xff] }
  0x36   : >> { %442 = vst [vmem:[%s3787_s9 + $0x230] sm:$0xff] %v441_v38  ;;  %v447_v41 = vld [vmem:[%s3791_s10 + $0x358] sm:$0xff]  ;;  %444 = vst [vmem:[%s3787_s9 + $0x238] sm:$0xff] %v443_v39  ;;  %v449_v42 = vld [vmem:[%s3791_s10 + $0x360] sm:$0xff] }
  0x37   : >> { %446 = vst [vmem:[%s3787_s9 + $0x240] sm:$0xff] %v445_v40  ;;  %448 = vst [vmem:[%s3787_s9 + $0x248] sm:$0xff] %v447_v41  ;;  %v451_v43 = vld [vmem:[%s3791_s10 + $0x368] sm:$0xff]  ;;  %v453_v44 = vld [vmem:[%s3791_s10 + $0x370] sm:$0xff] }
  0x38   : >> { %450 = vst [vmem:[%s3787_s9 + $0x250] sm:$0xff] %v449_v42  ;;  %452 = vst [vmem:[%s3787_s9 + $0x258] sm:$0xff] %v451_v43  ;;  %v455_v45 = vld [vmem:[%s3791_s10 + $0x378] sm:$0xff]  ;;  %v457_v46 = vld [vmem:[%s3791_s10 + $0x380] sm:$0xff] }
  0x39   : >> { %454 = vst [vmem:[%s3787_s9 + $0x260] sm:$0xff] %v453_v44  ;;  %v459_v47 = vld [vmem:[%s3791_s10 + $0x388] sm:$0xff]  ;;  %456 = vst [vmem:[%s3787_s9 + $0x268] sm:$0xff] %v455_v45  ;;  %v461_v48 = vld [vmem:[%s3791_s10 + $0x498] sm:$0xff] }
  0x3a   : >> { %458 = vst [vmem:[%s3787_s9 + $0x270] sm:$0xff] %v457_v46  ;;  %460 = vst [vmem:[%s3787_s9 + $0x278] sm:$0xff] %v459_v47  ;;  %v463_v49 = vld [vmem:[%s3791_s10 + $0x4a0] sm:$0xff]  ;;  %v465_v50 = vld [vmem:[%s3791_s10 + $0x4a8] sm:$0xff] }
  0x3b   : >> { %462 = vst [vmem:[%s3787_s9 + $0x300] sm:$0xff] %v461_v48  ;;  %464 = vst [vmem:[%s3787_s9 + $0x308] sm:$0xff] %v463_v49  ;;  %v467_v51 = vld [vmem:[%s3791_s10 + $0x4b0] sm:$0xff]  ;;  %v469_v52 = vld [vmem:[%s3791_s10 + $0x4b8] sm:$0xff] }
  0x3c   : >> { %466 = vst [vmem:[%s3787_s9 + $0x310] sm:$0xff] %v465_v50  ;;  %v471_v53 = vld [vmem:[%s3791_s10 + $0x4c0] sm:$0xff]  ;;  %468 = vst [vmem:[%s3787_s9 + $0x318] sm:$0xff] %v467_v51  ;;  %v473_v54 = vld [vmem:[%s3791_s10 + $0x4c8] sm:$0xff] }
  0x3d   : >> { %470 = vst [vmem:[%s3787_s9 + $0x320] sm:$0xff] %v469_v52  ;;  %472 = vst [vmem:[%s3787_s9 + $0x328] sm:$0xff] %v471_v53  ;;  %v475_v55 = vld [vmem:[%s3791_s10 + $0x4d0] sm:$0xff]  ;;  %v477_v56 = vld [vmem:[%s3791_s10 + $0x4d8] sm:$0xff] }
  0x3e   : >> { %474 = vst [vmem:[%s3787_s9 + $0x330] sm:$0xff] %v473_v54  ;;  %476 = vst [vmem:[%s3787_s9 + $0x338] sm:$0xff] %v475_v55  ;;  %v479_v57 = vld [vmem:[%s3791_s10 + $0x4e0] sm:$0xff]  ;;  %v481_v58 = vld [vmem:[%s3791_s10 + $0x4e8] sm:$0xff]  ;;  %361 = sbr.rel (!%p358_p11) target bundleno = 34 (0x22), region = 194 }
  0x3f   : >> { %478 = vst [vmem:[%s3787_s9 + $0x340] sm:$0xff] %v477_v56  ;;  %v483_v59 = vld [vmem:[%s3791_s10 + $0x4f0] sm:$0xff]  ;;  %480 = vst [vmem:[%s3787_s9 + $0x348] sm:$0xff] %v479_v57  ;;  %v485_v60 = vld [vmem:[%s3791_s10 + $0x4f8] sm:$0xff] }
  0x40   : >> { %482 = vst [vmem:[%s3787_s9 + $0x350] sm:$0xff] %v481_v58  ;;  %484 = vst [vmem:[%s3787_s9 + $0x358] sm:$0xff] %v483_v59  ;;  %v487_v61 = vld [vmem:[%s3791_s10 + $0x500] sm:$0xff]  ;;  %v489_v62 = vld [vmem:[%s3791_s10 + $0x508] sm:$0xff] }
  0x41   : >> { %486 = vst [vmem:[%s3787_s9 + $0x360] sm:$0xff] %v485_v60  ;;  %488 = vst [vmem:[%s3787_s9 + $0x368] sm:$0xff] %v487_v61  ;;  %v491_v63 = vld [vmem:[%s3791_s10 + $0x510] sm:$0xff]  ;;  %s5438_s10 = smov %s3991_s20 }
  0x42   : >> { %490 = vst [vmem:[%s3787_s9 + $0x370] sm:$0xff] %v489_v62  ;;  %492 = vst [vmem:[%s3787_s9 + $0x378] sm:$0xff] %v491_v63  ;;  %s5437_s9 = smov %s3994_s21 }
  0x43 PF: > { %s4099_s24 = sand.u32 15, %s5514_s27   ;;  %s3100_s25 = sshll.u32 %s3924_s8, 7 }
  0x44   : > { %s4103_s26 = scalar_lea.vmem %s3918_s5, %s3100_s25   ;;  %s4106_s28 = scalar_lea.vmem %s3921_s7, %s3100_s25 [#allocation2]  }
  0x45   : > { %p2846_p12 = scmp.le.s32.totalorder %s4099_s24, 0 }
  0x46   : > { %s5440_s29 = smov (!%p2846_p12), %s4106_s28  ;;  %s5441_s30 = smov (!%p2846_p12), %s4103_s26 }
  0x47   : > { %2773 = sbr.rel (%p2846_p12) target bundleno = 84 (0x54), region = 199  ;;  %s3809_s6 = smov (!%p2846_p12), 0  }
  0x48   : > { %s3813_s9 = smov (!%p2846_p12), 0  }
  0x4c LB: >> { %v516_v0 = vld [vmem:[%s3807_s30] sm:$0xff]  ;;  %v518_v1 = vld [vmem:[%s3807_s30 + $0x188] sm:$0xff]  ;;  %v520_v2 = vld [vmem:[%s3807_s30 + $0x310] sm:$0xff]  ;;  %s524_s27 = sadd.s32 1, %s3811_s6  ;;  %s510_s9 = sadd.s32 1, %s3815_s9   ;;  %s3815_s9 = sphi %s3813_s9, %s510_s9   ;;  %s3811_s6 = sphi %s3809_s6, %s3810_s6   ;;  %s3807_s30 = sphi %s5441_s30, %s529_s30   ;;  %s3803_s29 = sphi %s5440_s29, %s530_s29  }
  0x4d   : >> { %517 = vst [vmem:[%s3803_s29] sm:$0xff] %v516_v0  ;;  %519 = vst [vmem:[%s3803_s29 + $0x100] sm:$0xff] %v518_v1  ;;  %v522_v3 = vld [vmem:[%s3807_s30 + $0x498] sm:$0xff]  ;;  %p525_p13 = scmp.ge.s32.totalorder %s524_s27, %s4099_s24  ;;  %p509_p0 = scmp.ge.s32.totalorder %s510_s9, %s4099_s24 }
  0x4e   : >> { %521 = vst [vmem:[%s3803_s29 + $0x200] sm:$0xff] %v520_v2  ;;  %523 = vst [vmem:[%s3803_s29 + $0x300] sm:$0xff] %v522_v3 }
  0x4f   : >> { %s5518_s27 = smov (%p525_p13, %s524_s27), 0  ;;  %512 = sbr.rel (!%p509_p0) target bundleno = 76 (0x4c), region = 205 }
  0x50   : >> { %s2847_s5 = sshll.u32 %s5518_s27, 3  ;;  %s3810_s6 = smov %s5518_s27  }
  0x51   : >> { %s529_s30 = scalar_lea.vmem %s4103_s26, %s2847_s5   ;;  %s530_s29 = scalar_lea.vmem %s4106_s28, %s2847_s5 [#allocation2]  }
  0x54 PF: > { %p2849_p1 = scmp.ge.s32.totalorder %s3783_s17, 1  ;;  %p535_p2 = scmp.lt.s32.totalorder %s3783_s17, 3 }
  0x56   : > { %p536_p3 = pnand %p2849_p1, %p535_p2 }
  0x58   : > { %539 = sbr.rel (%p536_p3) target bundleno = 498 (0x1f2), region = 84 }
  0x5d   : > { %v4130_v4 = vld [vmem:[%s5417_s1 + $0x48] sm:$0x7]  ;;  %vm717_vm0 = vcmask 1042432   ;;  %v4135_v5 = vld [vmem:[%s5417_s1 + $0x40] sm:$0xff]  ;;  %v4148_v6 = vld [vmem:[%s5417_s1 + $0x38] sm:$0xff]  ;;  %s542_s26 = sand.u32 1, %s3775_s15  }
  0x5e   : > { %3273 = vmatprep.subr.msk.mxu0 %vm717_vm0, %v4130_v4  ;;  %3341 = vmatprep.subr.msk.mxu1 %vm717_vm0, %v4130_v4  ;;  %v4157_v7 = vld [vmem:[%s5417_s1 + $0x30] sm:$0xff]  ;;  %v4166_v8 = vld [vmem:[%s5417_s1 + $0x28] sm:$0xff]  ;;  %v4175_v9 = vld [vmem:[%s5417_s1 + $0x20] sm:$0xff]  ;;  %s2850_s30 = sshll.u32 %s542_s26, 10  ;;  %vm620_vm1 = vcmask 613376   ;;  %vm2404_vm2 = vcmask 523264  }
  0x5f   : > { %3274 = vmatpush3.msk.msra.mxu0 %vm717_vm0, %v4130_v4  ;;  %3342 = vmatpush3.msk.msra.mxu1 %vm717_vm0, %v4130_v4  ;;  %v4185_v10 = vld [vmem:[%s5417_s1 + $0x18] sm:$0xff]  ;;  %v4196_v11 = vld [vmem:[%s5417_s1 + $0x10] sm:$0xff]  ;;  %v4205_v12 = vld [vmem:[%s5417_s1 + $0x8] sm:$0xff]  ;;  %s4218_s10 = scalar_lea.vmem [#allocation2], %s2850_s30  ;;  %s2851_s14 = sshll.u32 %s542_s26, 8 }
  0x60   : > { %3275 = vmatprep.subr.mxu0 %v4135_v5  ;;  %3343 = vmatprep.subr.mxu1 %v4135_v5  ;;  %v4214_v13 = vld [vmem:[%s5417_s1] sm:$0xff]  ;;  %v589_v16 = vld [vmem:[%s4218_s10 + $0x8] sm:$0xff]  ;;  %v590_v18 = vld [vmem:[%s4218_s10 + $0x10] sm:$0xff]  ;;  %s4961_s15 = scalar_lea.vmem [#allocation3], %s2851_s14   ;;  %s3083_s20 = sshll.u32 (%p3905_p5), %s3890_s18, 5 }
  0x61   : > { %3276 = vmatpush3.msra.mxu0 %v4135_v5  ;;  %3344 = vmatpush3.msra.mxu1 %v4135_v5  ;;  %v588_v14 = vld [vmem:[%s4218_s10] sm:$0xff]  ;;  %v2888_v17 = vld [vmem:[%s4218_s10 + $0x108] sm:$0xff]  ;;  %v2889_v19 = vld [vmem:[%s4218_s10 + $0x110] sm:$0xff]  ;;  %s3102_s21 = sshll.u32 (%p3905_p5), %s3890_s18, 8  ;;  %s2445_s24 = ssub.s32 (%p3905_p5), 49, %s3083_s20 }
  0x62   : > { %3277 = vmatprep.subr.mxu0 %v4148_v6  ;;  %3345 = vmatprep.subr.mxu1 %v4148_v6  ;;  %v2887_v15 = vld [vmem:[%s4218_s10 + $0x100] sm:$0xff]  ;;  %v591_v20 = vld [vmem:[%s4218_s10 + $0x18] sm:$0xff]  ;;  %v593_v24 = vld [vmem:[%s4218_s10 + $0x28] sm:$0xff]  ;;  %s5284_s28 = scalar_lea.vmem (%p3905_p5), %s5420_s4, %s3102_s21   ;;  %p2446_p4 = scmp.lt.s32.totalorder (%p3905_p5), %s2445_s24, 32 }
  0x63   : > { %3278 = vmatpush3.msra.mxu0 %v4148_v6  ;;  %3346 = vmatpush3.msra.mxu1 %v4148_v6  ;;  %v2890_v21 = vld [vmem:[%s4218_s10 + $0x118] sm:$0xff]  ;;  %v592_v22 = vld [vmem:[%s4218_s10 + $0x20] sm:$0xff]  ;;  %v2892_v25 = vld [vmem:[%s4218_s10 + $0x128] sm:$0xff] }
  0x64   : > { %3279 = vmatprep.subr.mxu0 %v4157_v7  ;;  %3347 = vmatprep.subr.mxu1 %v4157_v7  ;;  %v2891_v23 = vld [vmem:[%s4218_s10 + $0x120] sm:$0xff]  ;;  %v594_v26 = vld [vmem:[%s4218_s10 + $0x30] sm:$0xff]  ;;  %v595_v28 = vld [vmem:[%s4218_s10 + $0x38] sm:$0xff] }
  0x65   : > { %3280 = vmatpush3.msra.mxu0 %v4157_v7  ;;  %3348 = vmatpush3.msra.mxu1 %v4157_v7  ;;  %v2893_v27 = vld [vmem:[%s4218_s10 + $0x130] sm:$0xff]  ;;  %v2894_v29 = vld [vmem:[%s4218_s10 + $0x138] sm:$0xff]  ;;  %v596_v30 = vld [vmem:[%s4218_s10 + $0x40] sm:$0xff] }
  0x66   : > { %3281 = vmatprep.subr.mxu0 %v4166_v8  ;;  %3349 = vmatprep.subr.mxu1 %v4166_v8  ;;  %v2895_v31 = vld [vmem:[%s4218_s10 + $0x140] sm:$0xff]  ;;  %v597_v32 = vld [vmem:[%s4218_s10 + $0x48] sm:$0xff]  ;;  %v598_v34 = vld [vmem:[%s4218_s10 + $0x50] sm:$0xff] }
  0x67   : > { %3282 = vmatpush3.msra.mxu0 %v4166_v8  ;;  %3350 = vmatpush3.msra.mxu1 %v4166_v8  ;;  %v2896_v33 = vld [vmem:[%s4218_s10 + $0x148] sm:$0xff]  ;;  %v2897_v35 = vld [vmem:[%s4218_s10 + $0x150] sm:$0xff]  ;;  %v599_v36 = vld [vmem:[%s4218_s10 + $0x58] sm:$0xff] }
  0x68   : > { %3283 = vmatprep.subr.mxu0 %v4175_v9  ;;  %3351 = vmatprep.subr.mxu1 %v4175_v9  ;;  %v2898_v37 = vld [vmem:[%s4218_s10 + $0x158] sm:$0xff]  ;;  %v600_v38 = vld [vmem:[%s4218_s10 + $0x60] sm:$0xff]  ;;  %v601_v40 = vld [vmem:[%s4218_s10 + $0x68] sm:$0xff] }
  0x69   : > { %3284 = vmatpush3.msra.mxu0 %v4175_v9  ;;  %3352 = vmatpush3.msra.mxu1 %v4175_v9  ;;  %v2899_v39 = vld [vmem:[%s4218_s10 + $0x160] sm:$0xff]  ;;  %v2900_v41 = vld [vmem:[%s4218_s10 + $0x168] sm:$0xff]  ;;  %v602_v42 = vld [vmem:[%s4218_s10 + $0x70] sm:$0xff] }
  0x6a   : > { %3285 = vmatprep.subr.mxu0 %v4185_v10  ;;  %3353 = vmatprep.subr.mxu1 %v4185_v10  ;;  %v2901_v43 = vld [vmem:[%s4218_s10 + $0x170] sm:$0xff]  ;;  %v603_v44 = vld [vmem:[%s4218_s10 + $0x78] sm:$0xff]  ;;  %v604_v46 = vld [vmem:[%s4218_s10 + $0x80] sm:$0xff] }
  0x6b   : > { %3286 = vmatpush3.msra.mxu0 %v4185_v10  ;;  %3354 = vmatpush3.msra.mxu1 %v4185_v10  ;;  %v2902_v45 = vld [vmem:[%s4218_s10 + $0x178] sm:$0xff]  ;;  %v2903_v47 = vld [vmem:[%s4218_s10 + $0x180] sm:$0xff]  ;;  %v605_v48 = vld [vmem:[%s4218_s10 + $0x88] sm:$0xff] }
  0x6c   : > { %3287 = vmatprep.subr.mxu0 %v4196_v11  ;;  %3355 = vmatprep.subr.mxu1 %v4196_v11  ;;  %v2904_v49 = vld [vmem:[%s4218_s10 + $0x188] sm:$0xff]  ;;  %v606_v50 = vld [vmem:[%s4218_s10 + $0x90] sm:$0xff]  ;;  %v607_v52 = vld [vmem:[%s4218_s10 + $0x98] sm:$0xff] }
  0x6d   : > { %3288 = vmatpush3.msra.mxu0 %v4196_v11  ;;  %3356 = vmatpush3.msra.mxu1 %v4196_v11  ;;  %v2905_v51 = vld [vmem:[%s4218_s10 + $0x190] sm:$0xff]  ;;  %v2906_v53 = vld [vmem:[%s4218_s10 + $0x198] sm:$0xff]  ;;  %v608_v54 = vld [vmem:[%s4218_s10 + $0xa0] sm:$0xff] }
  0x6e   : > { %3289 = vmatprep.subr.mxu0 %v4205_v12  ;;  %3357 = vmatprep.subr.mxu1 %v4205_v12  ;;  %v2907_v55 = vld [vmem:[%s4218_s10 + $0x1a0] sm:$0xff]  ;;  %v609_v56 = vld [vmem:[%s4218_s10 + $0xa8] sm:$0xff]  ;;  %v610_v58 = vld [vmem:[%s4218_s10 + $0xb0] sm:$0xff] }
  0x6f   : > { %3290 = vmatpush3.msra.mxu0 %v4205_v12  ;;  %3358 = vmatpush3.msra.mxu1 %v4205_v12  ;;  %v2908_v57 = vld [vmem:[%s4218_s10 + $0x1a8] sm:$0xff]  ;;  %v2909_v59 = vld [vmem:[%s4218_s10 + $0x1b0] sm:$0xff]  ;;  %v611_v60 = vld [vmem:[%s4218_s10 + $0xb8] sm:$0xff] }
  0x70   : > { %3291 = vmatprep.subr.mxu0 %v4214_v13  ;;  %3359 = vmatprep.subr.mxu1 %v4214_v13  ;;  %v2910_v61 = vld [vmem:[%s4218_s10 + $0x1b8] sm:$0xff]  ;;  %v612_v62 = vld [vmem:[%s4218_s10 + $0xc0] sm:$0xff]  ;;  %v613_v0 = vld [vmem:[%s4218_s10 + $0xc8] sm:$0xff] }
  0x71   : > { %3292 = vmatpush3.msra.mxu0 %v4214_v13  ;;  %3293 = vmatprep.mubr.msk.f32.mxu0 %vm620_vm1, %v588_v14  ;;  %v2911_v63 = vld [vmem:[%s4218_s10 + $0x1c0] sm:$0xff]  ;;  %v2912_v1 = vld [vmem:[%s4218_s10 + $0x1c8] sm:$0xff]  ;;  %v614_v2 = vld [vmem:[%s4218_s10 + $0xd0] sm:$0xff] }
  0x72   : > { %3360 = vmatpush3.msra.mxu1 %v4214_v13  ;;  %3361 = vmatprep.mubr.msk.f32.mxu1 %vm620_vm1, %v2887_v15  ;;  %v2913_v3 = vld [vmem:[%s4218_s10 + $0x1d0] sm:$0xff]  ;;  %v2952_v14 = vld [vmem:[%s4218_s10 + $0x200] sm:$0xff] }
  0x73   : > { %3294 = vmatmul.mubr.msk.f32.vlgmr.msra.gmra.mxu0 %vm620_vm1, %v589_v16  ;;  %3362 = vmatmul.mubr.msk.f32.vlgmr.msra.gmra.mxu1 %vm620_vm1, %v2888_v17  ;;  %v3017_v15 = vld [vmem:[%s4218_s10 + $0x300] sm:$0xff]  ;;  %v2953_v16 = vld [vmem:[%s4218_s10 + $0x208] sm:$0xff] }
  0x74   : > { %3409 = vmatprep.subr.msk.mxu0 %vm717_vm0, %v4130_v4  ;;  %3477 = vmatprep.subr.msk.mxu1 %vm717_vm0, %v4130_v4  ;;  %v3018_v17 = vld [vmem:[%s4218_s10 + $0x308] sm:$0xff] }
  0x75   : > { %3410 = vmatpush3.msk.msra.mxu0 %vm717_vm0, %v4130_v4  ;;  %3296 = vmatprep.mubr.msk.f32.mxu0 %vm620_vm1, %v590_v18  ;;  %v2954_v18 = vld [vmem:[%s4218_s10 + $0x210] sm:$0xff] }
  0x76   : > { %3364 = vmatprep.mubr.msk.f32.mxu1 %vm620_vm1, %v2889_v19  ;;  %3478 = vmatpush3.msk.msra.mxu1 %vm717_vm0, %v4130_v4  ;;  %v615_v4 = vld [vmem:[%s4218_s10 + $0xd8] sm:$0xff]  ;;  %v3019_v19 = vld [vmem:[%s4218_s10 + $0x310] sm:$0xff] }
  0x77   : > { %3297 = vmatmul.mubr.msk.f32.gmra.mxu0 %vm620_vm1, %v591_v20  ;;  %3365 = vmatmul.mubr.msk.f32.gmra.mxu1 %vm620_vm1, %v2890_v21  ;;  %v2955_v20 = vld [vmem:[%s4218_s10 + $0x218] sm:$0xff] }
  0x78   : > { %3299 = vmatprep.mubr.msk.f32.mxu0 %vm620_vm1, %v592_v22  ;;  %3367 = vmatprep.mubr.msk.f32.mxu1 %vm620_vm1, %v2891_v23  ;;  %v3020_v21 = vld [vmem:[%s4218_s10 + $0x318] sm:$0xff]  ;;  %v2956_v22 = vld [vmem:[%s4218_s10 + $0x220] sm:$0xff] }
  0x79   : > { %3411 = vmatprep.subr.mxu0 %v4135_v5  ;;  %3479 = vmatprep.subr.mxu1 %v4135_v5  ;;  %v3021_v23 = vld [vmem:[%s4218_s10 + $0x320] sm:$0xff] }
  0x7a   : > { %3412 = vmatpush3.msra.mxu0 %v4135_v5  ;;  %3480 = vmatpush3.msra.mxu1 %v4135_v5  ;;  %v2914_v5 = vld [vmem:[%s4218_s10 + $0x1d8] sm:$0xff] }
  0x7b   : > { %3300 = vmatmul.mubr.msk.f32.gmra.mxu0 %vm620_vm1, %v593_v24  ;;  %3368 = vmatmul.mubr.msk.f32.gmra.mxu1 %vm620_vm1, %v2892_v25  ;;  %v2957_v24 = vld [vmem:[%s4218_s10 + $0x228] sm:$0xff] }
  0x7c   : > { %3302 = vmatprep.mubr.msk.f32.mxu0 %vm620_vm1, %v594_v26  ;;  %3370 = vmatprep.mubr.msk.f32.mxu1 %vm620_vm1, %v2893_v27  ;;  %v3022_v25 = vld [vmem:[%s4218_s10 + $0x328] sm:$0xff]  ;;  %v2958_v26 = vld [vmem:[%s4218_s10 + $0x230] sm:$0xff] }
  0x7d   : > { %3413 = vmatprep.subr.mxu0 %v4148_v6  ;;  %3481 = vmatprep.subr.mxu1 %v4148_v6  ;;  %v3023_v27 = vld [vmem:[%s4218_s10 + $0x330] sm:$0xff] }
  0x7e   : > { %3414 = vmatpush3.msra.mxu0 %v4148_v6  ;;  %3482 = vmatpush3.msra.mxu1 %v4148_v6  ;;  %v616_v6 = vld [vmem:[%s4218_s10 + $0xe0] sm:$0xff] }
  0x7f   : > { %3303 = vmatmul.mubr.msk.f32.gmra.mxu0 %vm620_vm1, %v595_v28  ;;  %3371 = vmatmul.mubr.msk.f32.gmra.mxu1 %vm620_vm1, %v2894_v29  ;;  %v2959_v28 = vld [vmem:[%s4218_s10 + $0x238] sm:$0xff] }
  0x80   : > { %3305 = vmatprep.mubr.msk.f32.mxu0 %vm620_vm1, %v596_v30  ;;  %3373 = vmatprep.mubr.msk.f32.mxu1 %vm620_vm1, %v2895_v31  ;;  %v3024_v29 = vld [vmem:[%s4218_s10 + $0x338] sm:$0xff]  ;;  %v2960_v30 = vld [vmem:[%s4218_s10 + $0x240] sm:$0xff] }
  0x81   : > { %3415 = vmatprep.subr.mxu0 %v4157_v7  ;;  %3483 = vmatprep.subr.mxu1 %v4157_v7  ;;  %v3025_v31 = vld [vmem:[%s4218_s10 + $0x340] sm:$0xff] }
  0x82   : > { %3416 = vmatpush3.msra.mxu0 %v4157_v7  ;;  %3484 = vmatpush3.msra.mxu1 %v4157_v7  ;;  %v2915_v7 = vld [vmem:[%s4218_s10 + $0x1e0] sm:$0xff] }
  0x83   : > { %3306 = vmatmul.mubr.msk.f32.gmra.mxu0 %vm620_vm1, %v597_v32  ;;  %3374 = vmatmul.mubr.msk.f32.gmra.mxu1 %vm620_vm1, %v2896_v33  ;;  %v2961_v32 = vld [vmem:[%s4218_s10 + $0x248] sm:$0xff] }
  0x84   : > { %3308 = vmatprep.mubr.msk.f32.mxu0 %vm620_vm1, %v598_v34  ;;  %3376 = vmatprep.mubr.msk.f32.mxu1 %vm620_vm1, %v2897_v35  ;;  %v3026_v33 = vld [vmem:[%s4218_s10 + $0x348] sm:$0xff]  ;;  %v2962_v34 = vld [vmem:[%s4218_s10 + $0x250] sm:$0xff] }
  0x85   : > { %3417 = vmatprep.subr.mxu0 %v4166_v8  ;;  %3485 = vmatprep.subr.mxu1 %v4166_v8  ;;  %v3027_v35 = vld [vmem:[%s4218_s10 + $0x350] sm:$0xff] }
  0x86   : > { %3418 = vmatpush3.msra.mxu0 %v4166_v8  ;;  %3486 = vmatpush3.msra.mxu1 %v4166_v8  ;;  %v617_v8 = vld [vmem:[%s4218_s10 + $0xe8] sm:$0xff] }
  0x87   : > { %3309 = vmatmul.mubr.msk.f32.gmra.mxu0 %vm620_vm1, %v599_v36  ;;  %3377 = vmatmul.mubr.msk.f32.gmra.mxu1 %vm620_vm1, %v2898_v37  ;;  %v2963_v36 = vld [vmem:[%s4218_s10 + $0x258] sm:$0xff] }
  0x88   : > { %3311 = vmatprep.mubr.msk.f32.mxu0 %vm620_vm1, %v600_v38  ;;  %3379 = vmatprep.mubr.msk.f32.mxu1 %vm620_vm1, %v2899_v39  ;;  %v3028_v37 = vld [vmem:[%s4218_s10 + $0x358] sm:$0xff]  ;;  %v2964_v38 = vld [vmem:[%s4218_s10 + $0x260] sm:$0xff] }
  0x89   : > { %3419 = vmatprep.subr.mxu0 %v4175_v9  ;;  %3487 = vmatprep.subr.mxu1 %v4175_v9  ;;  %v3029_v39 = vld [vmem:[%s4218_s10 + $0x360] sm:$0xff] }
  0x8a   : > { %3420 = vmatpush3.msra.mxu0 %v4175_v9  ;;  %3488 = vmatpush3.msra.mxu1 %v4175_v9  ;;  %v2916_v9 = vld [vmem:[%s4218_s10 + $0x1e8] sm:$0xff] }
  0x8b   : > { %3312 = vmatmul.mubr.msk.f32.gmra.mxu0 %vm620_vm1, %v601_v40  ;;  %3380 = vmatmul.mubr.msk.f32.gmra.mxu1 %vm620_vm1, %v2900_v41  ;;  %v2965_v40 = vld [vmem:[%s4218_s10 + $0x268] sm:$0xff] }
  0x8c   : > { %3314 = vmatprep.mubr.msk.f32.mxu0 %vm620_vm1, %v602_v42  ;;  %3382 = vmatprep.mubr.msk.f32.mxu1 %vm620_vm1, %v2901_v43  ;;  %v3030_v41 = vld [vmem:[%s4218_s10 + $0x368] sm:$0xff]  ;;  %v2966_v42 = vld [vmem:[%s4218_s10 + $0x270] sm:$0xff] }
  0x8d   : > { %3421 = vmatprep.subr.mxu0 %v4185_v10  ;;  %3489 = vmatprep.subr.mxu1 %v4185_v10  ;;  %v3031_v43 = vld [vmem:[%s4218_s10 + $0x370] sm:$0xff] }
  0x8e   : > { %3422 = vmatpush3.msra.mxu0 %v4185_v10  ;;  %3490 = vmatpush3.msra.mxu1 %v4185_v10  ;;  %v618_v10 = vld [vmem:[%s4218_s10 + $0xf0] sm:$0xff] }
  0x8f   : > { %3315 = vmatmul.mubr.msk.f32.gmra.mxu0 %vm620_vm1, %v603_v44  ;;  %3383 = vmatmul.mubr.msk.f32.gmra.mxu1 %vm620_vm1, %v2902_v45  ;;  %v2967_v44 = vld [vmem:[%s4218_s10 + $0x278] sm:$0xff] }
  0x90   : > { %3317 = vmatprep.mubr.msk.f32.mxu0 %vm620_vm1, %v604_v46  ;;  %3385 = vmatprep.mubr.msk.f32.mxu1 %vm620_vm1, %v2903_v47  ;;  %v3032_v45 = vld [vmem:[%s4218_s10 + $0x378] sm:$0xff]  ;;  %v2968_v46 = vld [vmem:[%s4218_s10 + $0x280] sm:$0xff] }
  0x91   : > { %3423 = vmatprep.subr.mxu0 %v4196_v11  ;;  %3491 = vmatprep.subr.mxu1 %v4196_v11  ;;  %v3033_v47 = vld [vmem:[%s4218_s10 + $0x380] sm:$0xff] }
  0x92   : > { %3424 = vmatpush3.msra.mxu0 %v4196_v11  ;;  %3492 = vmatpush3.msra.mxu1 %v4196_v11  ;;  %v2917_v11 = vld [vmem:[%s4218_s10 + $0x1f0] sm:$0xff] }
  0x93   : > { %3318 = vmatmul.mubr.msk.f32.gmra.mxu0 %vm620_vm1, %v605_v48  ;;  %3386 = vmatmul.mubr.msk.f32.gmra.mxu1 %vm620_vm1, %v2904_v49  ;;  %v2969_v48 = vld [vmem:[%s4218_s10 + $0x288] sm:$0xff] }
  0x94   : > { %3320 = vmatprep.mubr.msk.f32.mxu0 %vm620_vm1, %v606_v50  ;;  %3388 = vmatprep.mubr.msk.f32.mxu1 %vm620_vm1, %v2905_v51  ;;  %v3034_v49 = vld [vmem:[%s4218_s10 + $0x388] sm:$0xff]  ;;  %v2970_v50 = vld [vmem:[%s4218_s10 + $0x290] sm:$0xff] }
  0x95   : > { %3425 = vmatprep.subr.mxu0 %v4205_v12  ;;  %3493 = vmatprep.subr.mxu1 %v4205_v12  ;;  %v3035_v51 = vld [vmem:[%s4218_s10 + $0x390] sm:$0xff] }
  0x96   : > { %3426 = vmatpush3.msra.mxu0 %v4205_v12  ;;  %3494 = vmatpush3.msra.mxu1 %v4205_v12  ;;  %v619_v12 = vld [vmem:[%s4218_s10 + $0xf8] sm:$0xff] }
  0x97   : > { %3321 = vmatmul.mubr.msk.f32.gmra.mxu0 %vm620_vm1, %v607_v52  ;;  %3389 = vmatmul.mubr.msk.f32.gmra.mxu1 %vm620_vm1, %v2906_v53  ;;  %v2971_v52 = vld [vmem:[%s4218_s10 + $0x298] sm:$0xff] }
  0x98   : > { %3323 = vmatprep.mubr.msk.f32.mxu0 %vm620_vm1, %v608_v54  ;;  %3391 = vmatprep.mubr.msk.f32.mxu1 %vm620_vm1, %v2907_v55  ;;  %v3036_v53 = vld [vmem:[%s4218_s10 + $0x398] sm:$0xff]  ;;  %v2972_v54 = vld [vmem:[%s4218_s10 + $0x2a0] sm:$0xff] }
  0x99   : > { %3427 = vmatprep.subr.mxu0 %v4214_v13  ;;  %3495 = vmatprep.subr.mxu1 %v4214_v13  ;;  %v3037_v55 = vld [vmem:[%s4218_s10 + $0x3a0] sm:$0xff] }
  0x9a   : > { %3428 = vmatpush3.msra.mxu0 %v4214_v13  ;;  %3496 = vmatpush3.msra.mxu1 %v4214_v13  ;;  %v2918_v13 = vld [vmem:[%s4218_s10 + $0x1f8] sm:$0xff] }
  0x9b   : > { %3324 = vmatmul.mubr.msk.f32.gmra.mxu0 %vm620_vm1, %v609_v56  ;;  %3392 = vmatmul.mubr.msk.f32.gmra.mxu1 %vm620_vm1, %v2908_v57  ;;  %v2973_v56 = vld [vmem:[%s4218_s10 + $0x2a8] sm:$0xff] }
  0x9c   : > { %3326 = vmatprep.mubr.msk.f32.mxu0 %vm620_vm1, %v610_v58  ;;  %3394 = vmatprep.mubr.msk.f32.mxu1 %vm620_vm1, %v2909_v59  ;;  %v3038_v57 = vld [vmem:[%s4218_s10 + $0x3a8] sm:$0xff]  ;;  %v2974_v58 = vld [vmem:[%s4218_s10 + $0x2b0] sm:$0xff] }
  0x9d   : > { %v3039_v59 = vld [vmem:[%s4218_s10 + $0x3b0] sm:$0xff] }
  0x9f   : > { %3327 = vmatmul.mubr.msk.f32.gmra.mxu0 %vm620_vm1, %v611_v60  ;;  %3395 = vmatmul.mubr.msk.f32.gmra.mxu1 %vm620_vm1, %v2910_v61  ;;  %v2975_v60 = vld [vmem:[%s4218_s10 + $0x2b8] sm:$0xff] }
  0xa0   : > { %3329 = vmatprep.mubr.msk.f32.mxu0 %vm620_vm1, %v612_v62  ;;  %3397 = vmatprep.mubr.msk.f32.mxu1 %vm620_vm1, %v2911_v63  ;;  %v3040_v61 = vld [vmem:[%s4218_s10 + $0x3b8] sm:$0xff]  ;;  %v2976_v62 = vld [vmem:[%s4218_s10 + $0x2c0] sm:$0xff] }
  0xa1   : > { %v3041_v63 = vld [vmem:[%s4218_s10 + $0x3c0] sm:$0xff] }
  0xa3   : > { %3330 = vmatmul.mubr.msk.f32.gmra.mxu0 %vm620_vm1, %v613_v0  ;;  %3398 = vmatmul.mubr.msk.f32.gmra.mxu1 %vm620_vm1, %v2912_v1  ;;  %v2977_v0 = vld [vmem:[%s4218_s10 + $0x2c8] sm:$0xff] }
  0xa4   : > { %3332 = vmatprep.mubr.msk.f32.mxu0 %vm620_vm1, %v614_v2  ;;  %3400 = vmatprep.mubr.msk.f32.mxu1 %vm620_vm1, %v2913_v3  ;;  %v3042_v1 = vld [vmem:[%s4218_s10 + $0x3c8] sm:$0xff]  ;;  %v2978_v2 = vld [vmem:[%s4218_s10 + $0x2d0] sm:$0xff] }
  0xa5   : > { %v3043_v3 = vld [vmem:[%s4218_s10 + $0x3d0] sm:$0xff] }
  0xa7   : > { %3333 = vmatmul.mubr.msk.f32.gmra.mxu0 %vm620_vm1, %v615_v4  ;;  %3401 = vmatmul.mubr.msk.f32.gmra.mxu1 %vm620_vm1, %v2914_v5  ;;  %v2979_v4 = vld [vmem:[%s4218_s10 + $0x2d8] sm:$0xff] }
  0xa8   : > { %3335 = vmatprep.mubr.msk.f32.mxu0 %vm620_vm1, %v616_v6  ;;  %3403 = vmatprep.mubr.msk.f32.mxu1 %vm620_vm1, %v2915_v7  ;;  %v3044_v5 = vld [vmem:[%s4218_s10 + $0x3d8] sm:$0xff]  ;;  %v2980_v6 = vld [vmem:[%s4218_s10 + $0x2e0] sm:$0xff] }
  0xa9   : > { %v3045_v7 = vld [vmem:[%s4218_s10 + $0x3e0] sm:$0xff] }
  0xab   : > { %3336 = vmatmul.mubr.msk.f32.gmra.mxu0 %vm620_vm1, %v617_v8  ;;  %3404 = vmatmul.mubr.msk.f32.gmra.mxu1 %vm620_vm1, %v2916_v9  ;;  %v2981_v8 = vld [vmem:[%s4218_s10 + $0x2e8] sm:$0xff] }
  0xac   : > { %3338 = vmatprep.mubr.msk.f32.mxu0 %vm620_vm1, %v618_v10  ;;  %3406 = vmatprep.mubr.msk.f32.mxu1 %vm620_vm1, %v2917_v11  ;;  %v3046_v9 = vld [vmem:[%s4218_s10 + $0x3e8] sm:$0xff]  ;;  %v2982_v10 = vld [vmem:[%s4218_s10 + $0x2f0] sm:$0xff] }
  0xad   : > { %v3047_v11 = vld [vmem:[%s4218_s10 + $0x3f0] sm:$0xff] }
  0xaf   : > { %3339 = vmatmul.mubr.msk.f32.gmra.mxu0 %vm620_vm1, %v619_v12  ;;  %3407 = vmatmul.mubr.msk.f32.gmra.mxu1 %vm620_vm1, %v2918_v13  ;;  %v2983_v12 = vld [vmem:[%s4218_s10 + $0x2f8] sm:$0xff] }
  0xb0   : > { %3429 = vmatprep.mubr.msk.f32.mxu0 %vm620_vm1, %v2952_v14  ;;  %3497 = vmatprep.mubr.msk.f32.mxu1 %vm620_vm1, %v3017_v15  ;;  %v3048_v13 = vld [vmem:[%s4218_s10 + $0x3f8] sm:$0xff] }
  0xb3   : > { %3430 = vmatmul.mubr.msk.f32.vlgmr.msra.gmra.mxu0 %vm620_vm1, %v2953_v16  ;;  %3498 = vmatmul.mubr.msk.f32.vlgmr.msra.gmra.mxu1 %vm620_vm1, %v3018_v17 }
  0xb4   : > { %3432 = vmatprep.mubr.msk.f32.mxu0 %vm620_vm1, %v2954_v18  ;;  %3500 = vmatprep.mubr.msk.f32.mxu1 %vm620_vm1, %v3019_v19 }
  0xb7   : > { %3433 = vmatmul.mubr.msk.f32.gmra.mxu0 %vm620_vm1, %v2955_v20  ;;  %3501 = vmatmul.mubr.msk.f32.gmra.mxu1 %vm620_vm1, %v3020_v21 }
  0xb8   : > { %3435 = vmatprep.mubr.msk.f32.mxu0 %vm620_vm1, %v2956_v22  ;;  %3503 = vmatprep.mubr.msk.f32.mxu1 %vm620_vm1, %v3021_v23 }
  0xbb   : > { %3436 = vmatmul.mubr.msk.f32.gmra.mxu0 %vm620_vm1, %v2957_v24  ;;  %3504 = vmatmul.mubr.msk.f32.gmra.mxu1 %vm620_vm1, %v3022_v25 }
  0xbc   : > { %3438 = vmatprep.mubr.msk.f32.mxu0 %vm620_vm1, %v2958_v26  ;;  %3506 = vmatprep.mubr.msk.f32.mxu1 %vm620_vm1, %v3023_v27 }
  0xbf   : > { %3439 = vmatmul.mubr.msk.f32.gmra.mxu0 %vm620_vm1, %v2959_v28  ;;  %3507 = vmatmul.mubr.msk.f32.gmra.mxu1 %vm620_vm1, %v3024_v29 }
  0xc0   : > { %3441 = vmatprep.mubr.msk.f32.mxu0 %vm620_vm1, %v2960_v30  ;;  %3509 = vmatprep.mubr.msk.f32.mxu1 %vm620_vm1, %v3025_v31 }
  0xc3   : > { %3442 = vmatmul.mubr.msk.f32.gmra.mxu0 %vm620_vm1, %v2961_v32  ;;  %3510 = vmatmul.mubr.msk.f32.gmra.mxu1 %vm620_vm1, %v3026_v33 }
  0xc4   : > { %3444 = vmatprep.mubr.msk.f32.mxu0 %vm620_vm1, %v2962_v34  ;;  %3512 = vmatprep.mubr.msk.f32.mxu1 %vm620_vm1, %v3027_v35 }
  0xc7   : > { %3445 = vmatmul.mubr.msk.f32.gmra.mxu0 %vm620_vm1, %v2963_v36  ;;  %3513 = vmatmul.mubr.msk.f32.gmra.mxu1 %vm620_vm1, %v3028_v37 }
  0xc8   : > { %3447 = vmatprep.mubr.msk.f32.mxu0 %vm620_vm1, %v2964_v38  ;;  %3515 = vmatprep.mubr.msk.f32.mxu1 %vm620_vm1, %v3029_v39 }
  0xcb   : > { %3448 = vmatmul.mubr.msk.f32.gmra.mxu0 %vm620_vm1, %v2965_v40  ;;  %3516 = vmatmul.mubr.msk.f32.gmra.mxu1 %vm620_vm1, %v3030_v41 }
  0xcc   : > { %3450 = vmatprep.mubr.msk.f32.mxu0 %vm620_vm1, %v2966_v42  ;;  %3518 = vmatprep.mubr.msk.f32.mxu1 %vm620_vm1, %v3031_v43 }
  0xcf   : > { %3451 = vmatmul.mubr.msk.f32.gmra.mxu0 %vm620_vm1, %v2967_v44  ;;  %3519 = vmatmul.mubr.msk.f32.gmra.mxu1 %vm620_vm1, %v3032_v45  ;;  %v4557_v44 = vld [vmem:[%s5418_s2] ss:$0 sm:$0xff] }
  0xd0   : > { %3453 = vmatprep.mubr.msk.f32.mxu0 %vm620_vm1, %v2968_v46  ;;  %3521 = vmatprep.mubr.msk.f32.mxu1 %vm620_vm1, %v3033_v47 }
  0xd3   : > { %3454 = vmatmul.mubr.msk.f32.gmra.mxu0 %vm620_vm1, %v2969_v48  ;;  %3522 = vmatmul.mubr.msk.f32.gmra.mxu1 %vm620_vm1, %v3034_v49 }
  0xd4   : > { %3456 = vmatprep.mubr.msk.f32.mxu0 %vm620_vm1, %v2970_v50  ;;  %3524 = vmatprep.mubr.msk.f32.mxu1 %vm620_vm1, %v3035_v51 }
  0xd7   : > { %3457 = vmatmul.mubr.msk.f32.gmra.mxu0 %vm620_vm1, %v2971_v52  ;;  %3525 = vmatmul.mubr.msk.f32.gmra.mxu1 %vm620_vm1, %v3036_v53  ;;  %v4574_v53 = vld [vmem:[%s5419_s3] ss:$0 sm:$0xff] }
  0xd8   : > { %3459 = vmatprep.mubr.msk.f32.mxu0 %vm620_vm1, %v2972_v54  ;;  %3527 = vmatprep.mubr.msk.f32.mxu1 %vm620_vm1, %v3037_v55 }
  0xdb   : > { %3460 = vmatmul.mubr.msk.f32.gmra.mxu0 %vm620_vm1, %v2973_v56  ;;  %3528 = vmatmul.mubr.msk.f32.gmra.mxu1 %vm620_vm1, %v3038_v57 }
  0xdc   : > { %3462 = vmatprep.mubr.msk.f32.mxu0 %vm620_vm1, %v2974_v58  ;;  %3530 = vmatprep.mubr.msk.f32.mxu1 %vm620_vm1, %v3039_v59 }
  0xdf   : > { %3463 = vmatmul.mubr.msk.f32.gmra.mxu0 %vm620_vm1, %v2975_v60  ;;  %3531 = vmatmul.mubr.msk.f32.gmra.mxu1 %vm620_vm1, %v3040_v61 }
  0xe0   : > { %3465 = vmatprep.mubr.msk.f32.mxu0 %vm620_vm1, %v2976_v62  ;;  %3533 = vmatprep.mubr.msk.f32.mxu1 %vm620_vm1, %v3041_v63 }
  0xe3   : > { %3466 = vmatmul.mubr.msk.f32.gmra.mxu0 %vm620_vm1, %v2977_v0  ;;  %3534 = vmatmul.mubr.msk.f32.gmra.mxu1 %vm620_vm1, %v3042_v1 }
  0xe4   : > { %3468 = vmatprep.mubr.msk.f32.mxu0 %vm620_vm1, %v2978_v2  ;;  %3536 = vmatprep.mubr.msk.f32.mxu1 %vm620_vm1, %v3043_v3 }
  0xe7   : > { %3469 = vmatmul.mubr.msk.f32.gmra.mxu0 %vm620_vm1, %v2979_v4  ;;  %3537 = vmatmul.mubr.msk.f32.gmra.mxu1 %vm620_vm1, %v3044_v5 }
  0xe8   : > { %3471 = vmatprep.mubr.msk.f32.mxu0 %vm620_vm1, %v2980_v6  ;;  %3539 = vmatprep.mubr.msk.f32.mxu1 %vm620_vm1, %v3045_v7 }
  0xeb   : > { %3472 = vmatmul.mubr.msk.f32.gmra.mxu0 %vm620_vm1, %v2981_v8  ;;  %3540 = vmatmul.mubr.msk.f32.gmra.mxu1 %vm620_vm1, %v3046_v9 }
  0xec   : > { %3474 = vmatprep.mubr.msk.f32.mxu0 %vm620_vm1, %v2982_v10  ;;  %3542 = vmatprep.mubr.msk.f32.mxu1 %vm620_vm1, %v3047_v11 }
  0xef   : > { %3475 = vmatmul.mubr.msk.f32.gmra.mxu0 %vm620_vm1, %v2983_v12  ;;  %3543 = vmatmul.mubr.msk.f32.gmra.mxu1 %vm620_vm1, %v3048_v13 }
 0x133   : > { %v3295_v14 = vpop.f32.mrf.mxu0  ;;  %v3363_v15 = vpop.f32.mrf.mxu1 }
 0x134   : > { %v953_v49 = vmul.f32 %v3295_v14, %v4557_v44  ;;  %v1377_v50 = vmul.f32 %v3363_v15, %v4557_v44 }
 0x135   : > { %v787_v16 = vpop.f32.mrf.mxu0  ;;  %v1217_v17 = vpop.f32.mrf.mxu1 }
 0x136   : > { %v952_v51 = vmul.f32 %v4557_v44, %v787_v16  ;;  %v1376_v52 = vmul.f32 %v4557_v44, %v1217_v17  ;;  %v4589_v62 = vadd.f32 %v4574_v53, %v953_v49  ;;  %v4592_v63 = vadd.f32 %v4574_v53, %v1377_v50 }
 0x137   : > { %v3298_v18 = vpop.f32.mrf.mxu0  ;;  %v3366_v19 = vpop.f32.mrf.mxu1 }
 0x138   : > { %v955_v54 = vmul.f32 %v3298_v18, %v4557_v44  ;;  %v1379_v55 = vmul.f32 %v3366_v19, %v4557_v44  ;;  %v4595_v0 = vadd.f32 %v4574_v53, %v952_v51  ;;  %v4598_v1 = vadd.f32 %v4574_v53, %v1376_v52 }
 0x139   : > { %v797_v20 = vpop.f32.mrf.mxu0  ;;  %v1227_v21 = vpop.f32.mrf.mxu1 }
 0x13a   : > { %v954_v56 = vmul.f32 %v4557_v44, %v797_v20  ;;  %v1378_v57 = vmul.f32 %v4557_v44, %v1227_v21  ;;  %v4601_v2 = vadd.f32 %v4574_v53, %v955_v54  ;;  %v4604_v3 = vadd.f32 %v4574_v53, %v1379_v55 }
 0x13b   : > { %v3301_v22 = vpop.f32.mrf.mxu0  ;;  %v3369_v23 = vpop.f32.mrf.mxu1 }
 0x13c   : > { %v4607_v4 = vadd.f32 %v4574_v53, %v954_v56  ;;  %v4610_v5 = vadd.f32 %v4574_v53, %v1378_v57  ;;  %v957_v8 = vmul.f32 %v3301_v22, %v4557_v44  ;;  %v1381_v9 = vmul.f32 %v3369_v23, %v4557_v44 }
 0x13d   : > { %v807_v24 = vpop.f32.mrf.mxu0  ;;  %v1237_v25 = vpop.f32.mrf.mxu1 }
 0x13e   : > { %v956_v10 = vmul.f32 %v4557_v44, %v807_v24  ;;  %v1380_v11 = vmul.f32 %v4557_v44, %v1237_v25  ;;  %v4641_v24 = vadd.f32 %v4574_v53, %v957_v8  ;;  %v4644_v25 = vadd.f32 %v4574_v53, %v1381_v9 }
 0x13f   : > { %v3304_v26 = vpop.f32.mrf.mxu0  ;;  %v3372_v27 = vpop.f32.mrf.mxu1 }
 0x140   : > { %v959_v12 = vmul.f32 %v3304_v26, %v4557_v44  ;;  %v1383_v13 = vmul.f32 %v3372_v27, %v4557_v44  ;;  %v4647_v26 = vadd.f32 %v4574_v53, %v956_v10  ;;  %v4650_v27 = vadd.f32 %v4574_v53, %v1380_v11 }
 0x141   : > { %v817_v28 = vpop.f32.mrf.mxu0  ;;  %v1247_v29 = vpop.f32.mrf.mxu1 }
 0x142   : > { %v958_v14 = vmul.f32 %v4557_v44, %v817_v28  ;;  %v1382_v15 = vmul.f32 %v4557_v44, %v1247_v29  ;;  %v4653_v28 = vadd.f32 %v4574_v53, %v959_v12  ;;  %v4656_v29 = vadd.f32 %v4574_v53, %v1383_v13 }
 0x143   : > { %v4526_v30 = vpop.f32.mrf.mxu0  ;;  %v4528_v31 = vpop.f32.mrf.mxu1 }
 0x144   : > { %v4659_v49 = vadd.f32 %v4574_v53, %v958_v14  ;;  %v4662_v50 = vadd.f32 %v4574_v53, %v1382_v15  ;;  %v961_v54 = vmul.f32 %v4526_v30, %v4557_v44  ;;  %v1385_v55 = vmul.f32 %v4528_v31, %v4557_v44 }
 0x145   : > { %v4530_v32 = vpop.f32.mrf.mxu0  ;;  %v4532_v33 = vpop.f32.mrf.mxu1 }
 0x146   : > { %5442 = vst [vmem:[#allocation4_spill] sm:$0xff] %v4662_v50  ;;  %v960_v56 = vmul.f32 %v4557_v44, %v4530_v32  ;;  %v1384_v57 = vmul.f32 %v4557_v44, %v4532_v33 }
 0x147   : > { %v4534_v34 = vpop.f32.mrf.mxu0  ;;  %v4536_v35 = vpop.f32.mrf.mxu1 }
 0x148   : > { %v963_v8 = vmul.f32 %v4534_v34, %v4557_v44  ;;  %v1387_v9 = vmul.f32 %v4536_v35, %v4557_v44 }
 0x149   : > { %v4538_v36 = vpop.f32.mrf.mxu0  ;;  %v4540_v37 = vpop.f32.mrf.mxu1 }
 0x14a   : > { %v962_v10 = vmul.f32 %v4557_v44, %v4538_v36  ;;  %v1386_v30 = vmul.f32 %v4557_v44, %v4540_v37 }
 0x14b   : > { %v4542_v38 = vpop.f32.mrf.mxu0  ;;  %v4544_v39 = vpop.f32.mrf.mxu1 }
 0x14c   : > { %v965_v32 = vmul.f32 %v4542_v38, %v4557_v44  ;;  %v1389_v33 = vmul.f32 %v4544_v39, %v4557_v44  ;;  %v4727_v14 = vadd.f32 %v4574_v53, %v962_v10  ;;  %v4730_v15 = vadd.f32 %v4574_v53, %v1386_v30 }
 0x14d   : > { %v4546_v40 = vpop.f32.mrf.mxu0  ;;  %v4548_v41 = vpop.f32.mrf.mxu1 }
 0x14e   : > { %v964_v34 = vmul.f32 %v4557_v44, %v4546_v40  ;;  %v1388_v35 = vmul.f32 %v4557_v44, %v4548_v41  ;;  %v4709_v40 = vadd.f32 %v4574_v53, %v961_v54  ;;  %v4712_v41 = vadd.f32 %v4574_v53, %v1385_v55 }
 0x14f   : > { %v4550_v42 = vpop.f32.mrf.mxu0  ;;  %v4552_v43 = vpop.f32.mrf.mxu1 }
 0x150   : > { %v967_v36 = vmul.f32 %v4550_v42, %v4557_v44  ;;  %v1391_v37 = vmul.f32 %v4552_v43, %v4557_v44  ;;  %5443 = vst [vmem:[#allocation5_spill] sm:$0xff] %v4712_v41  ;;  %v4715_v42 = vadd.f32 %v4574_v53, %v960_v56  ;;  %v4718_v43 = vadd.f32 %v4574_v53, %v1384_v57 }
 0x151   : > { %v4559_v45 = vpop.f32.mrf.mxu0  ;;  %v4561_v46 = vpop.f32.mrf.mxu1  ;;  %v4737_v56 = vadd.f32 %v4574_v53, %v965_v32  ;;  %v4740_v57 = vadd.f32 %v4574_v53, %v1389_v33 }
 0x152   : > { %v966_v12 = vmul.f32 %v4557_v44, %v4559_v45  ;;  %v1390_v38 = vmul.f32 %v4557_v44, %v4561_v46  ;;  %v4721_v45 = vadd.f32 %v4574_v53, %v963_v8  ;;  %v4724_v46 = vadd.f32 %v4574_v53, %v1387_v9 }
 0x153   : > { %v4563_v47 = vpop.f32.mrf.mxu0  ;;  %v4565_v48 = vpop.f32.mrf.mxu1  ;;  %v4743_v8 = vadd.f32 %v4574_v53, %v964_v34  ;;  %v4746_v9 = vadd.f32 %v4574_v53, %v1388_v35  ;;  %v4749_v10 = vadd.f32 %v4574_v53, %v967_v36  ;;  %v4752_v30 = vadd.f32 %v4574_v53, %v1391_v37 }
 0x154   : > { %v4755_v21 = vadd.f32 %v4574_v53, %v966_v12  ;;  %v4758_v32 = vadd.f32 %v4574_v53, %v1390_v38  ;;  %v969_v36 = vmul.f32 %v4563_v47, %v4557_v44  ;;  %v1393_v37 = vmul.f32 %v4565_v48, %v4557_v44 }
 0x155   : > { %v4580_v58 = vpop.f32.mrf.mxu0  ;;  %v4582_v59 = vpop.f32.mrf.mxu1 }
 0x156   : > { %5444 = vst [vmem:[#allocation6_spill] sm:$0xff] %v4755_v21  ;;  %5445 = vst [vmem:[#allocation7_spill] sm:$0xff] %v4758_v32  ;;  %v968_v19 = vmul.f32 %v4557_v44, %v4580_v58  ;;  %v1392_v34 = vmul.f32 %v4557_v44, %v4582_v59  ;;  %v4805_v12 = vadd.f32 %v4574_v53, %v969_v36 }
 0x157   : > { %v4584_v60 = vpop.f32.mrf.mxu0  ;;  %v4586_v61 = vpop.f32.mrf.mxu1  ;;  %v4808_v38 = vadd.f32 %v4574_v53, %v1393_v37 }
 0x158   : > { %v971_v58 = vmul.f32 %v4584_v60, %v4557_v44  ;;  %v1395_v59 = vmul.f32 %v4586_v61, %v4557_v44  ;;  %v4815_v50 = vadd.f32 %v4574_v53, %v968_v19  ;;  %v4818_v47 = vadd.f32 %v4574_v53, %v1392_v34 }
 0x159   : > { %v4612_v6 = vpop.f32.mrf.mxu0  ;;  %v4614_v7 = vpop.f32.mrf.mxu1 }
 0x15a   : > { %5446 = vst [vmem:[#allocation8_spill] sm:$0xff] %v4815_v50  ;;  %5447 = vst [vmem:[#allocation9_spill] sm:$0xff] %v4818_v47  ;;  %v970_v32 = vmul.f32 %v4557_v44, %v4612_v6  ;;  %v1394_v36 = vmul.f32 %v4557_v44, %v4614_v7 }
 0x15b   : > { %v4624_v16 = vpop.f32.mrf.mxu0  ;;  %v4626_v17 = vpop.f32.mrf.mxu1 }
 0x15c   : > { %v973_v60 = vmul.f32 %v4624_v16, %v4557_v44  ;;  %v1397_v61 = vmul.f32 %v4626_v17, %v4557_v44 }
 0x15d   : > { %v4636_v22 = vpop.f32.mrf.mxu0  ;;  %v4638_v23 = vpop.f32.mrf.mxu1 }
 0x15e   : > { %v972_v19 = vmul.f32 %v4557_v44, %v4636_v22  ;;  %v1396_v34 = vmul.f32 %v4557_v44, %v4638_v23  ;;  %v4849_v22 = vadd.f32 %v4574_v53, %v971_v58  ;;  %v4852_v23 = vadd.f32 %v4574_v53, %v1395_v59 }
 0x15f   : > { %v4664_v51 = vpop.f32.mrf.mxu0  ;;  %v4666_v52 = vpop.f32.mrf.mxu1  ;;  %v4866_v58 = vadd.f32 %v4574_v53, %v1394_v36 }
 0x160   : > { %v975_v6 = vmul.f32 %v4664_v51, %v4557_v44  ;;  %v1399_v7 = vmul.f32 %v4666_v52, %v4557_v44  ;;  %5452 = vst [vmem:[#allocation14_spill] sm:$0xff] %v4849_v22  ;;  %5453 = vst [vmem:[#allocation15_spill] sm:$0xff] %v4852_v23 }
 0x161   : > { %v4684_v11 = vpop.f32.mrf.mxu0  ;;  %v4686_v31 = vpop.f32.mrf.mxu1  ;;  %5455 = vst [vmem:[#allocation17_spill] sm:$0xff] %v4866_v58 }
 0x162   : > { %v1398_v16 = vmul.f32 %v4557_v44, %v4686_v31  ;;  %v4882_v31 = vadd.f32 %v4574_v53, %v1396_v34  ;;  %v4888_v36 = vadd.f32 %v4574_v53, %v1399_v7 }
 0x163   : > { %v4704_v13 = vpop.f32.mrf.mxu0  ;;  %v4706_v39 = vpop.f32.mrf.mxu1 }
 0x164   : > { %v977_v51 = vmul.f32 %v4704_v13, %v4557_v44  ;;  %v1401_v52 = vmul.f32 %v4706_v39, %v4557_v44  ;;  %v4873_v13 = vadd.f32 %v4574_v53, %v973_v60  ;;  %v4876_v39 = vadd.f32 %v4574_v53, %v1397_v61 }
 0x165   : > { %v4732_v54 = vpop.f32.mrf.mxu0  ;;  %v4734_v55 = vpop.f32.mrf.mxu1  ;;  %v4894_v60 = vadd.f32 %v4574_v53, %v1398_v16 }
 0x166   : > { %v4899_v34 = vadd.f32 %v4574_v53, %v977_v51  ;;  %v976_v16 = vmul.f32 %v4557_v44, %v4732_v54  ;;  %v1400_v47 = vmul.f32 %v4557_v44, %v4734_v55 }
 0x167   : > { %v4760_v33 = vpop.f32.mrf.mxu0  ;;  %v4762_v20 = vpop.f32.mrf.mxu1  ;;  %5458 = vst [vmem:[#allocation20_spill] sm:$0xff] %v4894_v60 }
 0x168   : > { %5459 = vst [vmem:[#allocation21_spill] sm:$0xff] %v4899_v34 }
 0x169   : > { %v4780_v18 = vpop.f32.mrf.mxu0  ;;  %v4782_v35 = vpop.f32.mrf.mxu1 }
 0x16b   : > { %v4800_v41 = vpop.f32.mrf.mxu0  ;;  %v4802_v48 = vpop.f32.mrf.mxu1 }
 0x16d   : > { %v4824_v37 = vpop.f32.mrf.mxu0  ;;  %v4826_v21 = vpop.f32.mrf.mxu1 }
 0x16e   : > { %5448 = vst [vmem:[#allocation10_spill] sm:$0xff] %v4824_v37  ;;  %5449 = vst [vmem:[#allocation11_spill] sm:$0xff] %v4826_v21  ;;  %v974_v21 = vmul.f32 %v4557_v44, %v4684_v11  ;;  %v4879_v11 = vadd.f32 %v4574_v53, %v972_v19 }
 0x16f   : > { %v4844_v37 = vpop.f32.mrf.mxu0  ;;  %v4846_v17 = vpop.f32.mrf.mxu1 }
 0x170   : > { %5450 = vst [vmem:[#allocation12_spill] sm:$0xff] %v4844_v37  ;;  %5451 = vst [vmem:[#allocation13_spill] sm:$0xff] %v4846_v17  ;;  %v4863_v17 = vadd.f32 %v4574_v53, %v970_v32  ;;  %v4885_v32 = vadd.f32 %v4574_v53, %v975_v6  ;;  %v4902_v6 = vadd.f32 %v4574_v53, %v1401_v52 }
 0x171   : > { %v4868_v59 = vpop.f32.mrf.mxu0  ;;  %v4870_v37 = vpop.f32.mrf.mxu1  ;;  %v4934_v52 = vadd.f32 %v4574_v53, %v976_v16  ;;  %v979_v16 = vmul.f32 %v4760_v33, %v4557_v44 }
 0x172   : > { %5454 = vst [vmem:[#allocation16_spill] sm:$0xff] %v4863_v17  ;;  %5456 = vst [vmem:[#allocation18_spill] sm:$0xff] %v4868_v59 }
 0x173   : > { %5457 = vst [vmem:[#allocation19_spill] sm:$0xff] %v4870_v37  ;;  %v4891_v37 = vadd.f32 %v4574_v53, %v974_v21  ;;  %v3431_v61 = vpop.f32.mrf.mxu0  ;;  %v3499_v59 = vpop.f32.mrf.mxu1  ;;  %5460 = vst [vmem:[#allocation22_spill] sm:$0xff] %v4902_v6 }
 0x174   : > { %v1827_v7 = vmul.f32 %v3431_v61, %v4557_v44  ;;  %v2277_v19 = vmul.f32 %v3499_v59, %v4557_v44 }
 0x175   : > { %v1667_v23 = vpop.f32.mrf.mxu0  ;;  %v2117_v51 = vpop.f32.mrf.mxu1 }
 0x176   : > { %v1859_v22 = vadd.f32 %v4574_v53, %v1827_v7  ;;  %v1826_v61 = vmul.f32 %v4557_v44, %v1667_v23  ;;  %v2276_v21 = vmul.f32 %v4557_v44, %v2117_v51  ;;  %v2309_v58 = vadd.f32 %v4574_v53, %v2277_v19 }
 0x177   : > { %v3434_v17 = vpop.f32.mrf.mxu0  ;;  %v3502_v50 = vpop.f32.mrf.mxu1  ;;  %v5461_v23 = vmax.f32 %v4589_v62, %v4592_v63  ;;  %v4937_v19 = vadd.f32 %v4574_v53, %v1400_v47  ;;  %v5462_v63 = vmax.f32 %v4595_v0, %v4598_v1  ;;  %v1403_v47 = vmul.f32 %v4762_v20, %v4557_v44 }
 0x178   : > { %v1858_v54 = vadd.f32 %v4574_v53, %v1826_v61  ;;  %v1829_v55 = vmul.f32 %v3434_v17, %v4557_v44  ;;  %v2308_v59 = vadd.f32 %v4574_v53, %v2276_v21  ;;  %v2279_v7 = vmul.f32 %v3502_v50, %v4557_v44 }
 0x179   : > { %v1891_v51 = vmax.f32 %v5461_v23, %v1859_v22  ;;  %v1677_v6 = vpop.f32.mrf.mxu0  ;;  %v2127_v34 = vpop.f32.mrf.mxu1  ;;  %v5463_v0 = vmax.f32 %v4601_v2, %v4604_v3  ;;  %v1464_v33 = vmax.f32 %v4934_v52, %v4937_v19 }
 0x17a   : > { %v1890_v22 = vmax.f32 %v5462_v63, %v1858_v54  ;;  %v1861_v61 = vadd.f32 %v4574_v53, %v1829_v55  ;;  %v1828_v17 = vmul.f32 %v4557_v44, %v1677_v6  ;;  %v2311_v21 = vadd.f32 %v4574_v53, %v2279_v7 }
 0x17b   : > { %v2341_v62 = vmax.f32 %v1891_v51, %v2309_v58  ;;  %v2278_v50 = vmul.f32 %v4557_v44, %v2127_v34  ;;  %v3437_v23 = vpop.f32.mrf.mxu0  ;;  %v3505_v58 = vpop.f32.mrf.mxu1 }
 0x17c   : > { %v2340_v60 = vmax.f32 %v1890_v22, %v2308_v59  ;;  %v1893_v1 = vmax.f32 %v5463_v0, %v1861_v61  ;;  %v1860_v6 = vadd.f32 %v4574_v53, %v1828_v17  ;;  %v1831_v20 = vmul.f32 %v3437_v23, %v4557_v44 }
 0x17d   : > { %v2373_v51 = vmax.f32 %v2341_v62, 0.0  ;;  %v2310_v54 = vadd.f32 %v4574_v53, %v2278_v50  ;;  %v2281_v55 = vmul.f32 %v3505_v58, %v4557_v44  ;;  %v1687_v34 = vpop.f32.mrf.mxu0  ;;  %v2137_v7 = vpop.f32.mrf.mxu1  ;;  %v5464_v59 = vmax.f32 %v4607_v4, %v4610_v5 }
 0x17e   : > { %v2372_v2 = vmax.f32 %v2340_v60, 0.0  ;;  %v2343_v3 = vmax.f32 %v1893_v1, %v2311_v21  ;;  %v1830_v63 = vmul.f32 %v4557_v44, %v1687_v34  ;;  %v4970_v22 = vadd.f32 %v4574_v53, %v979_v16 }
 0x17f   : > { %2406 = vst.msk [vmem:[%s4961_s15 + $0x8] sm:$0xff] %vm2404_vm2, %v2373_v51  ;;  %v1892_v62 = vmax.f32 %v5464_v59, %v1860_v6  ;;  %v1863_v61 = vadd.f32 %v4574_v53, %v1831_v20  ;;  %v2313_v17 = vadd.f32 %v4574_v53, %v2281_v55  ;;  %v2280_v50 = vmul.f32 %v4557_v44, %v2137_v7  ;;  %v3440_v23 = vpop.f32.mrf.mxu0  ;;  %v3508_v58 = vpop.f32.mrf.mxu1 }
 0x180   : > { %2405 = vst.msk [vmem:[%s4961_s15] sm:$0xff] %vm2404_vm2, %v2372_v2  ;;  %v2375_v60 = vmax.f32 %v2343_v3, 0.0  ;;  %v1862_v4 = vadd.f32 %v4574_v53, %v1830_v63  ;;  %v1833_v5 = vmul.f32 %v3440_v23, %v4557_v44  ;;  %v978_v16 = vmul.f32 %v4557_v44, %v4780_v18 }
 0x181   : > { %v2342_v21 = vmax.f32 %v1892_v62, %v2310_v54  ;;  %v5465_v51 = vmax.f32 %v4641_v24, %v4644_v25  ;;  %v2312_v1 = vadd.f32 %v4574_v53, %v2280_v50  ;;  %v2283_v6 = vmul.f32 %v3508_v58, %v4557_v44  ;;  %v1697_v20 = vpop.f32.mrf.mxu0  ;;  %v2147_v55 = vpop.f32.mrf.mxu1 }
 0x182   : > { %2408 = vst.msk [vmem:[%s4961_s15 + $0x18] sm:$0xff] %vm2404_vm2, %v2375_v60  ;;  %v5466_v34 = vmax.f32 %v4647_v26, %v4650_v27  ;;  %v1865_v18 = vadd.f32 %v4574_v53, %v1833_v5  ;;  %v1832_v2 = vmul.f32 %v4557_v44, %v1697_v20  ;;  %v1402_v24 = vmul.f32 %v4557_v44, %v4782_v35 }
 0x183   : > { %v1895_v0 = vmax.f32 %v5465_v51, %v1863_v61  ;;  %v2374_v54 = vmax.f32 %v2342_v21, 0.0  ;;  %v2315_v3 = vadd.f32 %v4574_v53, %v2283_v6  ;;  %v2282_v59 = vmul.f32 %v4557_v44, %v2147_v55  ;;  %v3443_v62 = vpop.f32.mrf.mxu0  ;;  %v3511_v63 = vpop.f32.mrf.mxu1 }
 0x184   : > { %v1894_v7 = vmax.f32 %v5466_v34, %v1862_v4  ;;  %v5467_v26 = vmax.f32 %v4653_v28, %v4656_v29  ;;  %v1864_v50 = vadd.f32 %v4574_v53, %v1832_v2  ;;  %v1835_v23 = vmul.f32 %v3443_v62, %v4557_v44  ;;  %v5468_v28 = vld [vmem:[#allocation4_spill] sm:$0xff] }
 0x185   : > { %v2345_v25 = vmax.f32 %v1895_v0, %v2313_v17  ;;  %2407 = vst.msk [vmem:[%s4961_s15 + $0x10] sm:$0xff] %vm2404_vm2, %v2374_v54  ;;  %v5005_v35 = vadd.f32 %v4574_v53, %v1403_v47  ;;  %v2314_v58 = vadd.f32 %v4574_v53, %v2282_v59  ;;  %v2285_v60 = vmul.f32 %v3511_v63, %v4557_v44  ;;  %v1707_v21 = vpop.f32.mrf.mxu0  ;;  %v2157_v4 = vpop.f32.mrf.mxu1 }
 0x186   : > { %v2344_v61 = vmax.f32 %v1894_v7, %v2312_v1  ;;  %v1897_v27 = vmax.f32 %v5467_v26, %v1865_v18  ;;  %v5469_v29 = vmax.f32 %v4659_v49, %v5468_v28  ;;  %v1867_v1 = vadd.f32 %v4574_v53, %v1835_v23  ;;  %v5470_v18 = vld [vmem:[#allocation5_spill] sm:$0xff] }
 0x187   : > { %v2377_v17 = vmax.f32 %v2345_v25, 0.0  ;;  %v5014_v6 = vadd.f32 %v4574_v53, %v978_v16  ;;  %v2317_v47 = vadd.f32 %v4574_v53, %v2285_v60  ;;  %v1834_v20 = vmul.f32 %v4557_v44, %v1707_v21  ;;  %v3446_v54 = vpop.f32.mrf.mxu0  ;;  %v3514_v34 = vpop.f32.mrf.mxu1 }
 0x188   : > { %v2376_v5 = vmax.f32 %v2344_v61, 0.0  ;;  %v2347_v51 = vmax.f32 %v1897_v27, %v2315_v3  ;;  %v1896_v0 = vmax.f32 %v5469_v29, %v1864_v50  ;;  %v2284_v55 = vmul.f32 %v4557_v44, %v2157_v4 }
 0x189   : > { %2410 = vst.msk [vmem:[%s4961_s15 + $0x28] sm:$0xff] %vm2404_vm2, %v2377_v17  ;;  %v5471_v2 = vmax.f32 %v4709_v40, %v5470_v18  ;;  %v1837_v25 = vmul.f32 %v3446_v54, %v4557_v44  ;;  %v5028_v3 = vadd.f32 %v4574_v53, %v1402_v24  ;;  %v981_v59 = vmul.f32 %v4800_v41, %v4557_v44  ;;  %v1717_v61 = vpop.f32.mrf.mxu0  ;;  %v2167_v26 = vpop.f32.mrf.mxu1 }
 0x18a   : > { %2409 = vst.msk [vmem:[%s4961_s15 + $0x20] sm:$0xff] %vm2404_vm2, %v2376_v5  ;;  %v2379_v49 = vmax.f32 %v2347_v51, 0.0  ;;  %v2346_v7 = vmax.f32 %v1896_v0, %v2314_v58  ;;  %v1866_v62 = vadd.f32 %v4574_v53, %v1834_v20  ;;  %v2287_v63 = vmul.f32 %v3514_v34, %v4557_v44 }
 0x18b   : > { %v1899_v16 = vmax.f32 %v5471_v2, %v1867_v1  ;;  %v1869_v50 = vadd.f32 %v4574_v53, %v1837_v25  ;;  %v1836_v23 = vmul.f32 %v4557_v44, %v1717_v61  ;;  %v5472_v24 = vmax.f32 %v4715_v42, %v4718_v43  ;;  %v3449_v21 = vpop.f32.mrf.mxu0  ;;  %v3517_v4 = vpop.f32.mrf.mxu1 }
 0x18c   : > { %2412 = vst.msk [vmem:[%s4961_s15 + $0x38] sm:$0xff] %vm2404_vm2, %v2379_v49  ;;  %v2378_v27 = vmax.f32 %v2346_v7, 0.0  ;;  %v2316_v41 = vadd.f32 %v4574_v53, %v2284_v55  ;;  %v2319_v58 = vadd.f32 %v4574_v53, %v2287_v63  ;;  %v2286_v60 = vmul.f32 %v4557_v44, %v2167_v26 }
 0x18d   : > { %v2349_v40 = vmax.f32 %v1899_v16, %v2317_v47  ;;  %v1898_v17 = vmax.f32 %v5472_v24, %v1866_v62  ;;  %v5473_v51 = vmax.f32 %v4721_v45, %v4724_v46  ;;  %v1868_v29 = vadd.f32 %v4574_v53, %v1836_v23  ;;  %v1727_v20 = vpop.f32.mrf.mxu0  ;;  %v2177_v55 = vpop.f32.mrf.mxu1 }
 0x18e   : > { %2411 = vst.msk [vmem:[%s4961_s15 + $0x30] sm:$0xff] %vm2404_vm2, %v2378_v27  ;;  %v1839_v42 = vmul.f32 %v3449_v21, %v4557_v44  ;;  %v1405_v43 = vmul.f32 %v4802_v48, %v4557_v44  ;;  %v2318_v1 = vadd.f32 %v4574_v53, %v2286_v60  ;;  %v2289_v47 = vmul.f32 %v3517_v4, %v4557_v44 }
 0x18f   : > { %v2381_v5 = vmax.f32 %v2349_v40, 0.0  ;;  %v1901_v28 = vmax.f32 %v5473_v51, %v1869_v50  ;;  %v2348_v0 = vmax.f32 %v1898_v17, %v2316_v41  ;;  %v5474_v45 = vmax.f32 %v4727_v14, %v4730_v15  ;;  %v3452_v16 = vpop.f32.mrf.mxu0  ;;  %v3520_v25 = vpop.f32.mrf.mxu1 }
 0x190   : > { %v1871_v34 = vadd.f32 %v4574_v53, %v1839_v42  ;;  %v1838_v49 = vmul.f32 %v4557_v44, %v1727_v20  ;;  %v1467_v48 = vmax.f32 %v4970_v22, %v5005_v35  ;;  %v2321_v18 = vadd.f32 %v4574_v53, %v2289_v47 }
 0x191   : > { %2414 = vst.msk [vmem:[%s4961_s15 + $0x48] sm:$0xff] %vm2404_vm2, %v2381_v5  ;;  %v2351_v54 = vmax.f32 %v1901_v28, %v2319_v58  ;;  %v1900_v46 = vmax.f32 %v5474_v45, %v1868_v29  ;;  %v2380_v7 = vmax.f32 %v2348_v0, 0.0  ;;  %v2288_v2 = vmul.f32 %v4557_v44, %v2177_v55  ;;  %v1737_v23 = vpop.f32.mrf.mxu0  ;;  %v2187_v24 = vpop.f32.mrf.mxu1 }
 0x192   : > { %v5475_v14 = vmax.f32 %v4737_v56, %v4740_v57  ;;  %v1870_v61 = vadd.f32 %v4574_v53, %v1838_v49  ;;  %v1466_v26 = vmax.f32 %v5014_v6, %v5028_v3  ;;  %v1841_v40 = vmul.f32 %v3452_v16, %v4557_v44 }
 0x193   : > { %v2383_v62 = vmax.f32 %v2351_v54, 0.0  ;;  %v2350_v63 = vmax.f32 %v1900_v46, %v2318_v1  ;;  %2413 = vst.msk [vmem:[%s4961_s15 + $0x40] sm:$0xff] %vm2404_vm2, %v2380_v7  ;;  %v2320_v27 = vadd.f32 %v4574_v53, %v2288_v2  ;;  %v2291_v50 = vmul.f32 %v3520_v25, %v4557_v44  ;;  %v3455_v51 = vpop.f32.mrf.mxu0  ;;  %v3523_v28 = vpop.f32.mrf.mxu1  ;;  %v5478_v46 = vld [vmem:[#allocation6_spill] sm:$0xff] }
 0x194   : > { %v1903_v15 = vmax.f32 %v5475_v14, %v1871_v34  ;;  %v5476_v17 = vmax.f32 %v4743_v8, %v4746_v9  ;;  %v1840_v58 = vmul.f32 %v4557_v44, %v1737_v23  ;;  %v5084_v60 = vadd.f32 %v4574_v53, %v981_v59  ;;  %v5479_v34 = vld [vmem:[#allocation7_spill] sm:$0xff] }
 0x195   : > { %2416 = vst.msk [vmem:[%s4961_s15 + $0x58] sm:$0xff] %vm2404_vm2, %v2383_v62  ;;  %v2382_v56 = vmax.f32 %v2350_v63, 0.0  ;;  %v1873_v21 = vadd.f32 %v4574_v53, %v1841_v40  ;;  %v2323_v4 = vadd.f32 %v4574_v53, %v2291_v50  ;;  %v2290_v5 = vmul.f32 %v4557_v44, %v2187_v24  ;;  %v1747_v55 = vpop.f32.mrf.mxu0  ;;  %v2197_v54 = vpop.f32.mrf.mxu1  ;;  %v5483_v50 = vld [vmem:[#allocation11_spill] sm:$0xff] }
 0x196   : > { %v2353_v57 = vmax.f32 %v1903_v15, %v2321_v18  ;;  %v1902_v41 = vmax.f32 %v5476_v17, %v1870_v61  ;;  %v1872_v8 = vadd.f32 %v4574_v53, %v1840_v58  ;;  %v1843_v9 = vmul.f32 %v3455_v51, %v4557_v44 }
 0x197   : > { %2415 = vst.msk [vmem:[%s4961_s15 + $0x50] sm:$0xff] %vm2404_vm2, %v2382_v56  ;;  %v5094_v59 = vadd.f32 %v4574_v53, %v1405_v43  ;;  %v5477_v0 = vmax.f32 %v4749_v10, %v4752_v30  ;;  %v2322_v47 = vadd.f32 %v4574_v53, %v2290_v5  ;;  %v2293_v20 = vmul.f32 %v3523_v28, %v4557_v44  ;;  %v5481_v10 = vld [vmem:[#allocation10_spill] sm:$0xff]  ;;  %v3458_v62 = vpop.f32.mrf.mxu0  ;;  %v3526_v63 = vpop.f32.mrf.mxu1 }
 0x198   : > { %v2385_v29 = vmax.f32 %v2353_v57, 0.0  ;;  %v2352_v42 = vmax.f32 %v1902_v41, %v2320_v27  ;;  %v5480_v49 = vmax.f32 %v5478_v46, %v5479_v34  ;;  %v1875_v43 = vadd.f32 %v4574_v53, %v1843_v9 }
 0x199   : > { %v1905_v1 = vmax.f32 %v5477_v0, %v1873_v21  ;;  %v1842_v18 = vmul.f32 %v4557_v44, %v1747_v55  ;;  %v980_v30 = vmul.f32 %v4557_v44, %v5481_v10  ;;  %v2325_v16 = vadd.f32 %v4574_v53, %v2293_v20  ;;  %v1757_v17 = vpop.f32.mrf.mxu0  ;;  %v2207_v41 = vpop.f32.mrf.mxu1  ;;  %v5487_v20 = vld [vmem:[#allocation14_spill] sm:$0xff]  ;;  %v5488_v55 = vld [vmem:[#allocation15_spill] sm:$0xff] }
 0x19a   : > { %2418 = vst.msk [vmem:[%s4961_s15 + $0x68] sm:$0xff] %vm2404_vm2, %v2385_v29  ;;  %v2384_v45 = vmax.f32 %v2352_v42, 0.0  ;;  %v1904_v7 = vmax.f32 %v5480_v49, %v1872_v8  ;;  %v2292_v25 = vmul.f32 %v4557_v44, %v2197_v54  ;;  %v5482_v15 = vmax.f32 %v4805_v12, %v4808_v38  ;;  %v5485_v12 = vld [vmem:[#allocation9_spill] sm:$0xff]  ;;  %v5490_v49 = vld [vmem:[#allocation12_spill] sm:$0xff] }
 0x19b   : > { %v2355_v2 = vmax.f32 %v1905_v1, %v2323_v4  ;;  %v1874_v27 = vadd.f32 %v4574_v53, %v1842_v18  ;;  %v1845_v40 = vmul.f32 %v3458_v62, %v4557_v44  ;;  %v1404_v23 = vmul.f32 %v4557_v44, %v5483_v50  ;;  %v5484_v4 = vld [vmem:[#allocation8_spill] sm:$0xff]  ;;  %v3461_v9 = vpop.f32.mrf.mxu0  ;;  %v3529_v0 = vpop.f32.mrf.mxu1 }
 0x19c   : > { %2417 = vst.msk [vmem:[%s4961_s15 + $0x60] sm:$0xff] %vm2404_vm2, %v2384_v45  ;;  %v2354_v14 = vmax.f32 %v1904_v7, %v2322_v47  ;;  %v1907_v61 = vmax.f32 %v5482_v15, %v1875_v43  ;;  %v2324_v56 = vadd.f32 %v4574_v53, %v2292_v25  ;;  %v2295_v57 = vmul.f32 %v3526_v63, %v4557_v44 }
 0x19d   : > { %v2387_v24 = vmax.f32 %v2355_v2, 0.0  ;;  %v5486_v38 = vmax.f32 %v5484_v4, %v5485_v12  ;;  %v1877_v51 = vadd.f32 %v4574_v53, %v1845_v40  ;;  %v1469_v28 = vmax.f32 %v5084_v60, %v5094_v59  ;;  %v1767_v10 = vpop.f32.mrf.mxu0  ;;  %v2217_v2 = vpop.f32.mrf.mxu1  ;;  %v5495_v4 = vld [vmem:[#allocation13_spill] sm:$0xff] }
 0x19e   : > { %v2386_v58 = vmax.f32 %v2354_v14, 0.0  ;;  %v2357_v21 = vmax.f32 %v1907_v61, %v2325_v16  ;;  %v2327_v29 = vadd.f32 %v4574_v53, %v2295_v57  ;;  %v1844_v42 = vmul.f32 %v4557_v44, %v1757_v17  ;;  %v5492_v14 = vld [vmem:[#allocation17_spill] sm:$0xff] }
 0x19f   : > { %v1906_v5 = vmax.f32 %v5486_v38, %v1874_v27  ;;  %2420 = vst.msk [vmem:[%s4961_s15 + $0x78] sm:$0xff] %vm2404_vm2, %v2387_v24  ;;  %v2294_v8 = vmul.f32 %v4557_v44, %v2207_v41  ;;  %v5489_v54 = vmax.f32 %v5487_v20, %v5488_v55  ;;  %v1847_v46 = vmul.f32 %v3461_v9, %v4557_v44  ;;  %v3464_v24 = vpop.f32.mrf.mxu0 }
 0x1a0   : > { %2419 = vst.msk [vmem:[%s4961_s15 + $0x70] sm:$0xff] %vm2404_vm2, %v2386_v58  ;;  %v2389_v1 = vmax.f32 %v2357_v21, 0.0  ;;  %v5141_v34 = vadd.f32 %v4574_v53, %v980_v30  ;;  %v983_v7 = vmul.f32 %v5490_v49, %v4557_v44  ;;  %v1876_v43 = vadd.f32 %v4574_v53, %v1844_v42  ;;  %v5491_v30 = vld [vmem:[#allocation16_spill] sm:$0xff] }
 0x1a1   : > { %v2356_v47 = vmax.f32 %v1906_v5, %v2324_v56  ;;  %v1909_v45 = vmax.f32 %v5489_v54, %v1877_v51  ;;  %v2297_v18 = vmul.f32 %v3529_v0, %v4557_v44  ;;  %v1879_v62 = vadd.f32 %v4574_v53, %v1847_v46  ;;  %v3532_v56 = vpop.f32.mrf.mxu1 }
 0x1a2   : > { %2422 = vst.msk [vmem:[%s4961_s15 + $0x88] sm:$0xff] %vm2404_vm2, %v2389_v1  ;;  %v1846_v63 = vmul.f32 %v4557_v44, %v1767_v10  ;;  %v5493_v15 = vmax.f32 %v5491_v30, %v5492_v14  ;;  %v2326_v27 = vadd.f32 %v4574_v53, %v2294_v8  ;;  %v2296_v50 = vmul.f32 %v4557_v44, %v2217_v2 }
 0x1a3   : > { %v2388_v16 = vmax.f32 %v2356_v47, 0.0  ;;  %v2359_v25 = vmax.f32 %v1909_v45, %v2327_v29  ;;  %v2329_v40 = vadd.f32 %v4574_v53, %v2297_v18  ;;  %v5494_v17 = vmax.f32 %v4873_v13, %v4876_v39  ;;  %v1777_v29 = vpop.f32.mrf.mxu0  ;;  %v2227_v42 = vpop.f32.mrf.mxu1 }
 0x1a4   : > { %v1908_v61 = vmax.f32 %v5493_v15, %v1876_v43  ;;  %v1878_v58 = vadd.f32 %v4574_v53, %v1846_v63  ;;  %v1849_v21 = vmul.f32 %v3464_v24, %v4557_v44  ;;  %v1407_v12 = vmul.f32 %v5495_v4, %v4557_v44 }
 0x1a5   : > { %2421 = vst.msk [vmem:[%s4961_s15 + $0x80] sm:$0xff] %vm2404_vm2, %v2388_v16  ;;  %v2391_v57 = vmax.f32 %v2359_v25, 0.0  ;;  %v1911_v41 = vmax.f32 %v5494_v17, %v1879_v62  ;;  %v2328_v5 = vadd.f32 %v4574_v53, %v2296_v50  ;;  %v2299_v51 = vmul.f32 %v3532_v56, %v4557_v44  ;;  %v3467_v54 = vpop.f32.mrf.mxu0  ;;  %v3535_v45 = vpop.f32.mrf.mxu1  ;;  %v5498_v62 = vld [vmem:[#allocation20_spill] sm:$0xff]  ;;  %v5500_v17 = vld [vmem:[#allocation18_spill] sm:$0xff] }
 0x1a6   : > { %v2358_v38 = vmax.f32 %v1908_v61, %v2326_v27  ;;  %v5496_v13 = vmax.f32 %v4879_v11, %v4882_v31  ;;  %v1881_v9 = vadd.f32 %v4574_v53, %v1849_v21  ;;  %v1848_v0 = vmul.f32 %v4557_v44, %v1777_v29  ;;  %v5502_v21 = vld [vmem:[#allocation22_spill] sm:$0xff] }
 0x1a7   : > { %2424 = vst.msk [vmem:[%s4961_s15 + $0x98] sm:$0xff] %vm2404_vm2, %v2391_v57  ;;  %v2361_v8 = vmax.f32 %v1911_v41, %v2329_v40  ;;  %v5176_v1 = vadd.f32 %v4574_v53, %v1404_v23  ;;  %v2331_v20 = vadd.f32 %v4574_v53, %v2299_v51  ;;  %v2298_v55 = vmul.f32 %v4557_v44, %v2227_v42  ;;  %v1787_v16 = vpop.f32.mrf.mxu0  ;;  %v2237_v25 = vpop.f32.mrf.mxu1 }
 0x1a8   : > { %v1910_v39 = vmax.f32 %v5496_v13, %v1878_v58  ;;  %v2390_v47 = vmax.f32 %v2358_v38, 0.0  ;;  %v5497_v11 = vmax.f32 %v4885_v32, %v4888_v36  ;;  %v1880_v43 = vadd.f32 %v4574_v53, %v1848_v0  ;;  %v5501_v58 = vld [vmem:[#allocation21_spill] sm:$0xff] }
 0x1a9   : > { %v2393_v46 = vmax.f32 %v2361_v8, 0.0  ;;  %v5185_v18 = vadd.f32 %v4574_v53, %v983_v7  ;;  %v2330_v23 = vadd.f32 %v4574_v53, %v2298_v55  ;;  %v1851_v10 = vmul.f32 %v3467_v54, %v4557_v44  ;;  %v3470_v40 = vpop.f32.mrf.mxu0  ;;  %v3538_v50 = vpop.f32.mrf.mxu1 }
 0x1aa   : > { %v2360_v49 = vmax.f32 %v1910_v39, %v2328_v5  ;;  %v1913_v31 = vmax.f32 %v5497_v11, %v1881_v9  ;;  %2423 = vst.msk [vmem:[%s4961_s15 + $0x90] sm:$0xff] %vm2404_vm2, %v2390_v47  ;;  %v2301_v2 = vmul.f32 %v3535_v45, %v4557_v44  ;;  %v5499_v63 = vmax.f32 %v4891_v37, %v5498_v62  ;;  %v5504_v9 = vld [vmem:[#allocation19_spill] sm:$0xff] }
 0x1ab   : > { %2426 = vst.msk [vmem:[%s4961_s15 + $0xa8] sm:$0xff] %vm2404_vm2, %v2393_v46  ;;  %v1850_v30 = vmul.f32 %v4557_v44, %v1787_v16  ;;  %v5199_v14 = vadd.f32 %v4574_v53, %v1407_v12  ;;  %v1883_v15 = vadd.f32 %v4574_v53, %v1851_v10  ;;  %v2300_v27 = vmul.f32 %v4557_v44, %v2237_v25  ;;  %v1797_v51 = vpop.f32.mrf.mxu0  ;;  %v2247_v29 = vpop.f32.mrf.mxu1 }
 0x1ac   : > { %v2392_v32 = vmax.f32 %v2360_v49, 0.0  ;;  %v2363_v36 = vmax.f32 %v1913_v31, %v2331_v20  ;;  %v1912_v7 = vmax.f32 %v5499_v63, %v1880_v43  ;;  %v2333_v61 = vadd.f32 %v4574_v53, %v2301_v2 }
 0x1ad   : > { %v1882_v37 = vadd.f32 %v4574_v53, %v1850_v30  ;;  %v1853_v57 = vmul.f32 %v3470_v40, %v4557_v44  ;;  %v982_v41 = vmul.f32 %v4557_v44, %v5500_v17  ;;  %v5503_v4 = vmax.f32 %v5501_v58, %v5502_v21  ;;  %v3473_v54 = vpop.f32.mrf.mxu0  ;;  %v3541_v45 = vpop.f32.mrf.mxu1 }
 0x1ae   : > { %2425 = vst.msk [vmem:[%s4961_s15 + $0xa0] sm:$0xff] %vm2404_vm2, %v2392_v32  ;;  %v2395_v24 = vmax.f32 %v2363_v36, 0.0  ;;  %v2362_v56 = vmax.f32 %v1912_v7, %v2330_v23  ;;  %v2332_v38 = vadd.f32 %v4574_v53, %v2300_v27  ;;  %v2303_v5 = vmul.f32 %v3538_v50, %v4557_v44 }
 0x1af   : > { %v1915_v12 = vmax.f32 %v5503_v4, %v1883_v15  ;;  %v1914_v8 = vmax.f32 %v1464_v33, %v1882_v37  ;;  %v1885_v13 = vadd.f32 %v4574_v53, %v1853_v57  ;;  %v1852_v39 = vmul.f32 %v4557_v44, %v1797_v51  ;;  %v1807_v23 = vpop.f32.mrf.mxu0  ;;  %v2257_v10 = vpop.f32.mrf.mxu1 }
 0x1b0   : > { %2428 = vst.msk [vmem:[%s4961_s15 + $0xb8] sm:$0xff] %vm2404_vm2, %v2395_v24  ;;  %v2394_v42 = vmax.f32 %v2362_v56, 0.0  ;;  %v1406_v0 = vmul.f32 %v4557_v44, %v5504_v9  ;;  %v2335_v20 = vadd.f32 %v4574_v53, %v2303_v5  ;;  %v2302_v55 = vmul.f32 %v4557_v44, %v2247_v29 }
 0x1b1   : > { %v2365_v47 = vmax.f32 %v1915_v12, %v2333_v61  ;;  %v2364_v46 = vmax.f32 %v1914_v8, %v2332_v38  ;;  %v1917_v52 = vmax.f32 %v1467_v48, %v1885_v13  ;;  %v1884_v19 = vadd.f32 %v4574_v53, %v1852_v39  ;;  %v3476_v62 = vpop.f32.mrf.mxu0  ;;  %v3544_v63 = vpop.f32.mrf.mxu1 }
 0x1b2   : > { %2427 = vst.msk [vmem:[%s4961_s15 + $0xb0] sm:$0xff] %vm2404_vm2, %v2394_v42  ;;  %v1855_v33 = vmul.f32 %v3473_v54, %v4557_v44  ;;  %v1020_v49 = vadd.f32 %v4574_v53, %v982_v41  ;;  %v2334_v31 = vadd.f32 %v4574_v53, %v2302_v55  ;;  %v2305_v43 = vmul.f32 %v3541_v45, %v4557_v44 }
 0x1b3   : > { %v2397_v11 = vmax.f32 %v2365_v47, 0.0  ;;  %v2396_v2 = vmax.f32 %v2364_v46, 0.0  ;;  %v2367_v16 = vmax.f32 %v1917_v52, %v2335_v20  ;;  %v1916_v22 = vmax.f32 %v1466_v26, %v1884_v19  ;;  %v1817_v40 = vpop.f32.mrf.mxu0  ;;  %v2267_v50 = vpop.f32.mrf.mxu1 }
 0x1b4   : > { %v1887_v35 = vadd.f32 %v4574_v53, %v1855_v33  ;;  %v1438_v48 = vadd.f32 %v4574_v53, %v1406_v0  ;;  %v2337_v25 = vadd.f32 %v4574_v53, %v2305_v43  ;;  %v1854_v32 = vmul.f32 %v4557_v44, %v1807_v23 }
 0x1b5   : > { %2430 = vst.msk [vmem:[%s4961_s15 + $0xc8] sm:$0xff] %vm2404_vm2, %v2397_v11  ;;  %v2304_v36 = vmul.f32 %v4557_v44, %v2257_v10  ;;  %2429 = vst.msk [vmem:[%s4961_s15 + $0xc0] sm:$0xff] %vm2404_vm2, %v2396_v2  ;;  %v2399_v7 = vmax.f32 %v2367_v16, 0.0  ;;  %v2366_v6 = vmax.f32 %v1916_v22, %v2334_v31  ;;  %v1857_v26 = vmul.f32 %v3476_v62, %v4557_v44 }
 0x1b6   : > { %v1919_v3 = vmax.f32 %v1469_v28, %v1887_v35  ;;  %v1468_v30 = vmax.f32 %v5141_v34, %v5176_v1  ;;  %v1471_v15 = vmax.f32 %v5185_v18, %v5199_v14  ;;  %v1886_v61 = vadd.f32 %v4574_v53, %v1854_v32 }
 0x1b7   : > { %v2307_v27 = vmul.f32 %v3544_v63, %v4557_v44  ;;  %2432 = vst.msk [vmem:[%s4961_s15 + $0xd8] sm:$0xff] %vm2404_vm2, %v2399_v7  ;;  %v2398_v60 = vmax.f32 %v2366_v6, 0.0  ;;  %v1889_v28 = vadd.f32 %v4574_v53, %v1857_v26  ;;  %v1856_v24 = vmul.f32 %v4557_v44, %v1817_v40 }
 0x1b8   : > { %v2369_v59 = vmax.f32 %v1919_v3, %v2337_v25  ;;  %v1918_v34 = vmax.f32 %v1468_v30, %v1886_v61  ;;  %v2336_v1 = vadd.f32 %v4574_v53, %v2304_v36  ;;  %v2306_v14 = vmul.f32 %v4557_v44, %v2267_v50 }
 0x1b9   : > { %v2339_v18 = vadd.f32 %v4574_v53, %v2307_v27  ;;  %v1470_v56 = vmax.f32 %v1020_v49, %v1438_v48  ;;  %2431 = vst.msk [vmem:[%s4961_s15 + $0xd0] sm:$0xff] %vm2404_vm2, %v2398_v60  ;;  %v1921_v57 = vmax.f32 %v1471_v15, %v1889_v28  ;;  %v1888_v17 = vadd.f32 %v4574_v53, %v1856_v24 }
 0x1ba   : > { %v2401_v37 = vmax.f32 %v2369_v59, 0.0  ;;  %v2368_v41 = vmax.f32 %v1918_v34, %v2336_v1  ;;  %v2338_v4 = vadd.f32 %v4574_v53, %v2306_v14 }
 0x1bb   : > { %v2371_v58 = vmax.f32 %v1921_v57, %v2339_v18  ;;  %v1920_v21 = vmax.f32 %v1470_v56, %v1888_v17 }
 0x1bc   : > { %2434 = vst.msk [vmem:[%s4961_s15 + $0xe8] sm:$0xff] %vm2404_vm2, %v2401_v37  ;;  %v2400_v12 = vmax.f32 %v2368_v41, 0.0 }
 0x1bd   : > { %v2403_v38 = vmax.f32 %v2371_v58, 0.0  ;;  %v2370_v5 = vmax.f32 %v1920_v21, %v2338_v4  ;;  %2443 = sbr.rel (!%p3905_p5) target bundleno = 498 (0x1f2), region = 92 }
 0x1be   : > { %2433 = vst.msk [vmem:[%s4961_s15 + $0xe0] sm:$0xff] %vm2404_vm2, %v2400_v12 }
 0x1bf   : > { %2436 = vst.msk [vmem:[%s4961_s15 + $0xf8] sm:$0xff] %vm2404_vm2, %v2403_v38  ;;  %v2402_v44 = vmax.f32 %v2370_v5, 0.0 }
 0x1c1   : > { %2435 = vst.msk [vmem:[%s4961_s15 + $0xf0] sm:$0xff] %vm2404_vm2, %v2402_v44 }
 0x1c2   : > { %s5520_s24 = smov (!%p2446_p4, %s2445_s24), 32 }
 0x1c3   : > { %s3084_s29 = sshll.u32 %s5520_s24, 7 }
 0x1c4   : > { %p3087_p6 = scmp.eq.s32.totalorder %s3084_s29, 0 }
 0x1c5   : > { %s5290_s23 = sshrl.u32 (!%p3087_p6), %s5520_s24, 5 }
 0x1c6   : > { %2454 = sbr.rel (%p3087_p6) target bundleno = 498 (0x1f2), region = 96  ;;  %p3088_p5 = scmp.le.s32.totalorder (!%p3087_p6), %s5290_s23, 0 }
 0x1cb   : > { %2787 = sbr.rel (%p3088_p5) target bundleno = 481 (0x1e1), region = 210  ;;  %s5505_s18 = smov (!%p3088_p5), %s5284_s28 }
 0x1cc   : > { %s5506_s30 = smov (!%p3088_p5), %s4961_s15  ;;  %s5299_s6 = smov (!%p3088_p5), 0  }
 0x1cd   : > { %s5301_s9 = smov (!%p3088_p5), 0  }
 0x1d0 LB: >> { %v2579_v53 = vld [vmem:[%s3823_s30] sm:$0xff]  ;;  %v2581_v51 = vld [vmem:[%s3823_s30 + $0x8] sm:$0xff]  ;;  %v2583_v29 = vld [vmem:[%s3823_s30 + $0x10] sm:$0xff]  ;;  %s2643_s27 = sadd.s32 1, %s3827_s6  ;;  %s2573_s9 = sadd.s32 1, %s3831_s9   ;;  %s3831_s9 = sphi %s5301_s9, %s2573_s9   ;;  %s3827_s6 = sphi %s5299_s6, %s5509_s6   ;;  %s3823_s30 = sphi %s5506_s30, %s5508_s30   ;;  %s3819_s18 = sphi %s5505_s18, %s5507_s18  }
 0x1d1   : >> { %2580 = vst [vmem:[%s3819_s18] sm:$0xff] %v2579_v53  ;;  %2582 = vst [vmem:[%s3819_s18 + $0x8] sm:$0xff] %v2581_v51  ;;  %v2585_v42 = vld [vmem:[%s3823_s30 + $0x18] sm:$0xff]  ;;  %v2587_v8 = vld [vmem:[%s3823_s30 + $0x20] sm:$0xff]  ;;  %p2644_p7 = scmp.ge.s32.totalorder %s2643_s27, %s5290_s23  ;;  %p2572_p8 = scmp.ge.s32.totalorder %s2573_s9, %s5290_s23 }
 0x1d2   : >> { %2584 = vst [vmem:[%s3819_s18 + $0x10] sm:$0xff] %v2583_v29  ;;  %v2589_v13 = vld [vmem:[%s3823_s30 + $0x28] sm:$0xff]  ;;  %2586 = vst [vmem:[%s3819_s18 + $0x18] sm:$0xff] %v2585_v42  ;;  %v2591_v39 = vld [vmem:[%s3823_s30 + $0x30] sm:$0xff] }
 0x1d3   : >> { %2588 = vst [vmem:[%s3819_s18 + $0x20] sm:$0xff] %v2587_v8  ;;  %2590 = vst [vmem:[%s3819_s18 + $0x28] sm:$0xff] %v2589_v13  ;;  %v2593_v9 = vld [vmem:[%s3823_s30 + $0x38] sm:$0xff]  ;;  %v2595_v0 = vld [vmem:[%s3823_s30 + $0x40] sm:$0xff]  ;;  %s5522_s27 = smov (%p2644_p7, %s2643_s27), 0 }
 0x1d4   : >> { %2592 = vst [vmem:[%s3819_s18 + $0x30] sm:$0xff] %v2591_v39  ;;  %2594 = vst [vmem:[%s3819_s18 + $0x38] sm:$0xff] %v2593_v9  ;;  %v2597_v47 = vld [vmem:[%s3823_s30 + $0x48] sm:$0xff]  ;;  %v2599_v20 = vld [vmem:[%s3823_s30 + $0x50] sm:$0xff]  ;;  %s3089_s5 = sshll.u32 %s5522_s27, 8  ;;  %s5509_s6 = smov %s5522_s27 }
 0x1d5   : >> { %2596 = vst [vmem:[%s3819_s18 + $0x40] sm:$0xff] %v2595_v0  ;;  %v2601_v55 = vld [vmem:[%s3823_s30 + $0x58] sm:$0xff]  ;;  %2598 = vst [vmem:[%s3819_s18 + $0x48] sm:$0xff] %v2597_v47  ;;  %v2603_v54 = vld [vmem:[%s3823_s30 + $0x60] sm:$0xff]  ;;  %s5357_s7 = scalar_lea.vmem %s4961_s15, %s3089_s5 [#allocation3]   ;;  %s2649_s8 = scalar_lea.vmem %s5284_s28, %s3089_s5  }
 0x1d6   : >> { %2600 = vst [vmem:[%s3819_s18 + $0x50] sm:$0xff] %v2599_v20  ;;  %2602 = vst [vmem:[%s3819_s18 + $0x58] sm:$0xff] %v2601_v55  ;;  %v2605_v45 = vld [vmem:[%s3823_s30 + $0x68] sm:$0xff]  ;;  %v2607_v46 = vld [vmem:[%s3823_s30 + $0x70] sm:$0xff] }
 0x1d7   : >> { %2604 = vst [vmem:[%s3819_s18 + $0x60] sm:$0xff] %v2603_v54  ;;  %2606 = vst [vmem:[%s3819_s18 + $0x68] sm:$0xff] %v2605_v45  ;;  %v2609_v52 = vld [vmem:[%s3823_s30 + $0x78] sm:$0xff]  ;;  %v2611_v19 = vld [vmem:[%s3823_s30 + $0x80] sm:$0xff] }
 0x1d8   : >> { %2608 = vst [vmem:[%s3819_s18 + $0x70] sm:$0xff] %v2607_v46  ;;  %v2613_v33 = vld [vmem:[%s3823_s30 + $0x88] sm:$0xff]  ;;  %2610 = vst [vmem:[%s3819_s18 + $0x78] sm:$0xff] %v2609_v52  ;;  %v2615_v49 = vld [vmem:[%s3823_s30 + $0x90] sm:$0xff] }
 0x1d9   : >> { %2612 = vst [vmem:[%s3819_s18 + $0x80] sm:$0xff] %v2611_v19  ;;  %2614 = vst [vmem:[%s3819_s18 + $0x88] sm:$0xff] %v2613_v33  ;;  %v2617_v11 = vld [vmem:[%s3823_s30 + $0x98] sm:$0xff]  ;;  %v2619_v31 = vld [vmem:[%s3823_s30 + $0xa0] sm:$0xff] }
 0x1da   : >> { %2616 = vst [vmem:[%s3819_s18 + $0x90] sm:$0xff] %v2615_v49  ;;  %2618 = vst [vmem:[%s3819_s18 + $0x98] sm:$0xff] %v2617_v11  ;;  %v2621_v43 = vld [vmem:[%s3823_s30 + $0xa8] sm:$0xff]  ;;  %v2623_v23 = vld [vmem:[%s3823_s30 + $0xb0] sm:$0xff] }
 0x1db   : >> { %2620 = vst [vmem:[%s3819_s18 + $0xa0] sm:$0xff] %v2619_v31  ;;  %v2625_v10 = vld [vmem:[%s3823_s30 + $0xb8] sm:$0xff]  ;;  %2622 = vst [vmem:[%s3819_s18 + $0xa8] sm:$0xff] %v2621_v43  ;;  %v2627_v2 = vld [vmem:[%s3823_s30 + $0xc0] sm:$0xff] }
 0x1dc   : >> { %2624 = vst [vmem:[%s3819_s18 + $0xb0] sm:$0xff] %v2623_v23  ;;  %2626 = vst [vmem:[%s3819_s18 + $0xb8] sm:$0xff] %v2625_v10  ;;  %v2629_v16 = vld [vmem:[%s3823_s30 + $0xc8] sm:$0xff]  ;;  %v2631_v22 = vld [vmem:[%s3823_s30 + $0xd0] sm:$0xff]  ;;  %2575 = sbr.rel (!%p2572_p8) target bundleno = 464 (0x1d0), region = 216 }
 0x1dd   : >> { %2628 = vst [vmem:[%s3819_s18 + $0xc0] sm:$0xff] %v2627_v2  ;;  %2630 = vst [vmem:[%s3819_s18 + $0xc8] sm:$0xff] %v2629_v16  ;;  %v2633_v35 = vld [vmem:[%s3823_s30 + $0xd8] sm:$0xff]  ;;  %v2635_v48 = vld [vmem:[%s3823_s30 + $0xe0] sm:$0xff] }
 0x1de   : >> { %2632 = vst [vmem:[%s3819_s18 + $0xd0] sm:$0xff] %v2631_v22  ;;  %v2637_v25 = vld [vmem:[%s3823_s30 + $0xe8] sm:$0xff]  ;;  %2634 = vst [vmem:[%s3819_s18 + $0xd8] sm:$0xff] %v2633_v35  ;;  %v2639_v32 = vld [vmem:[%s3823_s30 + $0xf0] sm:$0xff] }
 0x1df   : >> { %2636 = vst [vmem:[%s3819_s18 + $0xe0] sm:$0xff] %v2635_v48  ;;  %2638 = vst [vmem:[%s3819_s18 + $0xe8] sm:$0xff] %v2637_v25  ;;  %v2641_v36 = vld [vmem:[%s3823_s30 + $0xf8] sm:$0xff]  ;;  %s5508_s30 = smov %s5357_s7 }
 0x1e0   : >> { %2640 = vst [vmem:[%s3819_s18 + $0xf0] sm:$0xff] %v2639_v32  ;;  %2642 = vst [vmem:[%s3819_s18 + $0xf8] sm:$0xff] %v2641_v36  ;;  %s5507_s18 = smov %s2649_s8 }
 0x1e1 PF: > { %s5398_s10 = sand.u32 31, %s5520_s24   ;;  %s3103_s11 = sshll.u32 %s5290_s23, 8 }
 0x1e2   : > { %s2654_s17 = scalar_lea.vmem %s4961_s15, %s3103_s11 [#allocation3]   ;;  %s2656_s12 = scalar_lea.vmem %s5284_s28, %s3103_s11  }
 0x1e3   : > { %p3094_p9 = scmp.le.s32.totalorder %s5398_s10, 0 }
 0x1e4   : > { %s3833_s13 = smov (!%p3094_p9), %s2656_s12   ;;  %s3837_s14 = smov (!%p3094_p9), %s2654_s17  }
 0x1e5   : > { %2801 = sbr.rel (%p3094_p9) target bundleno = 498 (0x1f2), region = 221  ;;  %s3841_s20 = smov (!%p3094_p9), 0  }
 0x1e6   : > { %s3845_s21 = smov (!%p3094_p9), 0  }
 0x1ea LB: >> { %v2666_v62 = vld [vmem:[%s3839_s14] sm:$0xff]  ;;  %s2668_s24 = sadd.s32 1, %s3843_s20  ;;  %s2660_s21 = sadd.s32 1, %s3847_s21   ;;  %s3847_s21 = sphi %s3845_s21, %s2660_s21   ;;  %s3843_s20 = sphi %s3841_s20, %s3842_s20   ;;  %s3839_s14 = sphi %s3837_s14, %s2673_s14   ;;  %s3835_s13 = sphi %s3833_s13, %s2674_s13  }
 0x1eb   : >> { %2667 = vst [vmem:[%s3835_s13] sm:$0xff] %v2666_v62  ;;  %p2669_p10 = scmp.ge.s32.totalorder %s2668_s24, %s5398_s10  ;;  %p2659_p11 = scmp.ge.s32.totalorder %s2660_s21, %s5398_s10 }
 0x1ed   : >> { %s5524_s24 = smov (%p2669_p10, %s2668_s24), 0  ;;  %2662 = sbr.rel (!%p2659_p11) target bundleno = 490 (0x1ea), region = 227 }
 0x1ee   : >> { %s3095_s15 = sshll.u32 %s5524_s24, 3  ;;  %s3842_s20 = smov %s5524_s24  }
 0x1ef   : >> { %s2673_s14 = scalar_lea.vmem %s2654_s17, %s3095_s15 [#allocation3]   ;;  %s2674_s13 = scalar_lea.vmem %s2656_s12, %s3095_s15  }
 0x1f2 PF: > { %p11_p12 = scmp.ge.s32.totalorder %s3893_s19, 4   ;;  %s5510_s15 = smov %s3779_s16 }
 0x1f3   : > { %s5511_s16 = smov %s3903_s22  ;;  %s5512_s17 = smov %s3893_s19 }
 0x1f4   :  { %13 = sbr.rel (!%p11_p12) target bundleno = 2 (0x2), region = 238 }

// kernel: cifarnet_forward.5
= control target key start
LH: loop header
LB: loop body
LE: loop exit
PB: predicated region body
PF: predicated region fallthrough
CT: control target
= control target key end

     0   :  { %s4710_s0 = inlined_call_operand.vmem [shape: f32[2,1600], index: 0, kind: input, shape index: {}]   ;;  %s4711_s1 = inlined_call_operand.vmem [shape: f32[1600,384], index: 1, kind: input, shape index: {}]   ;;  %s4712_s2 = inlined_call_operand.vmem [shape: f32[1,384], index: 2, kind: input, shape index: {}]   ;;  %s4713_s3 = inlined_call_operand.vmem [shape: f32[384,192], index: 3, kind: input, shape index: {}]   ;;  %s4714_s4 = inlined_call_operand.vmem [shape: f32[1,192], index: 4, kind: input, shape index: {}]   ;;  %s4715_s5 = inlined_call_operand.vmem [shape: f32[192,128], index: 5, kind: input, shape index: {}]   ;;  %s4716_s6 = inlined_call_operand.vmem [shape: f32[1,128], index: 6, kind: input, shape index: {}]   ;;  %s4717_s7 = inlined_call_operand.hbm [shape: f32[2,128], index: 7, kind: output, shape index: {}]  }
   0x1   :  { %v77_v0 = vld [vmem:[%s4711_s1 + $0x170] sm:$0xff]  ;;  %v76_v2 = vld [vmem:[%s4711_s1 + $0x168] sm:$0xff]  ;;  %v74_v4 = vld [vmem:[%s4711_s1 + $0x158] sm:$0xff] }
   0x2   :  { %v173_v1 = vld [vmem:[%s4711_s1 + $0x470] sm:$0xff]  ;;  %725 = vmatprep.subr.mxu0 %v77_v0  ;;  %v172_v3 = vld [vmem:[%s4711_s1 + $0x468] sm:$0xff]  ;;  %v170_v5 = vld [vmem:[%s4711_s1 + $0x458] sm:$0xff] }
   0x3   :  { %796 = vmatprep.subr.mxu1 %v173_v1  ;;  %726 = vmatpush1.msra.mxu0 %v76_v2  ;;  %v73_v6 = vld [vmem:[%s4711_s1 + $0x150] sm:$0xff]  ;;  %v71_v8 = vld [vmem:[%s4711_s1 + $0x140] sm:$0xff]  ;;  %v70_v10 = vld [vmem:[%s4711_s1 + $0x138] sm:$0xff] }
   0x4   :  { %797 = vmatpush1.msra.mxu1 %v172_v3  ;;  %v169_v7 = vld [vmem:[%s4711_s1 + $0x450] sm:$0xff]  ;;  %727 = vmatprep.subr.mxu0 %v74_v4  ;;  %v167_v9 = vld [vmem:[%s4711_s1 + $0x440] sm:$0xff]  ;;  %v166_v11 = vld [vmem:[%s4711_s1 + $0x438] sm:$0xff] }
   0x5   :  { %798 = vmatprep.subr.mxu1 %v170_v5  ;;  %728 = vmatpush1.msra.mxu0 %v73_v6  ;;  %v68_v12 = vld [vmem:[%s4711_s1 + $0x128] sm:$0xff]  ;;  %v67_v14 = vld [vmem:[%s4711_s1 + $0x120] sm:$0xff]  ;;  %v65_v16 = vld [vmem:[%s4711_s1 + $0x110] sm:$0xff] }
   0x6   :  { %799 = vmatpush1.msra.mxu1 %v169_v7  ;;  %v164_v13 = vld [vmem:[%s4711_s1 + $0x428] sm:$0xff]  ;;  %729 = vmatprep.subr.mxu0 %v71_v8  ;;  %v163_v15 = vld [vmem:[%s4711_s1 + $0x420] sm:$0xff]  ;;  %v161_v17 = vld [vmem:[%s4711_s1 + $0x410] sm:$0xff] }
   0x7   :  { %800 = vmatprep.subr.mxu1 %v167_v9  ;;  %730 = vmatpush1.msra.mxu0 %v70_v10  ;;  %v64_v18 = vld [vmem:[%s4711_s1 + $0x108] sm:$0xff]  ;;  %v62_v20 = vld [vmem:[%s4711_s1 + $0xf8] sm:$0xff]  ;;  %v61_v22 = vld [vmem:[%s4711_s1 + $0xf0] sm:$0xff] }
   0x8   :  { %801 = vmatpush1.msra.mxu1 %v166_v11  ;;  %731 = vmatprep.subr.mxu0 %v68_v12  ;;  %v160_v19 = vld [vmem:[%s4711_s1 + $0x408] sm:$0xff]  ;;  %v158_v21 = vld [vmem:[%s4711_s1 + $0x3f8] sm:$0xff]  ;;  %v157_v23 = vld [vmem:[%s4711_s1 + $0x3f0] sm:$0xff] }
   0x9   :  { %802 = vmatprep.subr.mxu1 %v164_v13  ;;  %732 = vmatpush1.msra.mxu0 %v67_v14  ;;  %v59_v24 = vld [vmem:[%s4711_s1 + $0xe0] sm:$0xff]  ;;  %v58_v26 = vld [vmem:[%s4711_s1 + $0xd8] sm:$0xff]  ;;  %v56_v28 = vld [vmem:[%s4711_s1 + $0xc8] sm:$0xff] }
   0xa   :  { %803 = vmatpush1.msra.mxu1 %v163_v15  ;;  %733 = vmatprep.subr.mxu0 %v65_v16  ;;  %v155_v25 = vld [vmem:[%s4711_s1 + $0x3e0] sm:$0xff]  ;;  %v154_v27 = vld [vmem:[%s4711_s1 + $0x3d8] sm:$0xff]  ;;  %v152_v29 = vld [vmem:[%s4711_s1 + $0x3c8] sm:$0xff] }
   0xb   :  { %804 = vmatprep.subr.mxu1 %v161_v17  ;;  %734 = vmatpush1.msra.mxu0 %v64_v18  ;;  %v55_v30 = vld [vmem:[%s4711_s1 + $0xc0] sm:$0xff]  ;;  %v53_v32 = vld [vmem:[%s4711_s1 + $0xb0] sm:$0xff]  ;;  %v52_v34 = vld [vmem:[%s4711_s1 + $0xa8] sm:$0xff] }
   0xc   :  { %805 = vmatpush1.msra.mxu1 %v160_v19  ;;  %735 = vmatprep.subr.mxu0 %v62_v20  ;;  %v151_v31 = vld [vmem:[%s4711_s1 + $0x3c0] sm:$0xff]  ;;  %v149_v33 = vld [vmem:[%s4711_s1 + $0x3b0] sm:$0xff]  ;;  %v148_v35 = vld [vmem:[%s4711_s1 + $0x3a8] sm:$0xff] }
   0xd   :  { %806 = vmatprep.subr.mxu1 %v158_v21  ;;  %736 = vmatpush1.msra.mxu0 %v61_v22  ;;  %v50_v36 = vld [vmem:[%s4711_s1 + $0x98] sm:$0xff]  ;;  %v49_v38 = vld [vmem:[%s4711_s1 + $0x90] sm:$0xff]  ;;  %v47_v40 = vld [vmem:[%s4711_s1 + $0x80] sm:$0xff] }
   0xe   :  { %807 = vmatpush1.msra.mxu1 %v157_v23  ;;  %737 = vmatprep.subr.mxu0 %v59_v24  ;;  %v146_v37 = vld [vmem:[%s4711_s1 + $0x398] sm:$0xff]  ;;  %v145_v39 = vld [vmem:[%s4711_s1 + $0x390] sm:$0xff]  ;;  %v143_v41 = vld [vmem:[%s4711_s1 + $0x380] sm:$0xff] }
   0xf   :  { %808 = vmatprep.subr.mxu1 %v155_v25  ;;  %738 = vmatpush1.msra.mxu0 %v58_v26  ;;  %v46_v42 = vld [vmem:[%s4711_s1 + $0x78] sm:$0xff]  ;;  %v44_v44 = vld [vmem:[%s4711_s1 + $0x68] sm:$0xff]  ;;  %v43_v46 = vld [vmem:[%s4711_s1 + $0x60] sm:$0xff] }
  0x10   :  { %809 = vmatpush1.msra.mxu1 %v154_v27  ;;  %739 = vmatprep.subr.mxu0 %v56_v28  ;;  %v142_v43 = vld [vmem:[%s4711_s1 + $0x378] sm:$0xff]  ;;  %v140_v45 = vld [vmem:[%s4711_s1 + $0x368] sm:$0xff]  ;;  %v139_v47 = vld [vmem:[%s4711_s1 + $0x360] sm:$0xff] }
  0x11   :  { %810 = vmatprep.subr.mxu1 %v152_v29  ;;  %740 = vmatpush1.msra.mxu0 %v55_v30  ;;  %v41_v48 = vld [vmem:[%s4711_s1 + $0x50] sm:$0xff]  ;;  %v40_v50 = vld [vmem:[%s4711_s1 + $0x48] sm:$0xff]  ;;  %v38_v52 = vld [vmem:[%s4711_s1 + $0x38] sm:$0xff]  ;;  %v633_v30 = vlaneseq }
  0x12   :  { %811 = vmatpush1.msra.mxu1 %v151_v31  ;;  %741 = vmatprep.subr.mxu0 %v53_v32  ;;  %v137_v49 = vld [vmem:[%s4711_s1 + $0x350] sm:$0xff]  ;;  %v136_v51 = vld [vmem:[%s4711_s1 + $0x348] sm:$0xff]  ;;  %v134_v53 = vld [vmem:[%s4711_s1 + $0x338] sm:$0xff]  ;;  %v2358_v31 = vmov 1983009808  }
  0x13   :  { %812 = vmatprep.subr.mxu1 %v149_v33  ;;  %742 = vmatpush1.msra.mxu0 %v52_v34  ;;  %v37_v54 = vld [vmem:[%s4711_s1 + $0x30] sm:$0xff]  ;;  %v35_v56 = vld [vmem:[%s4711_s1 + $0x20] sm:$0xff]  ;;  %v34_v58 = vld [vmem:[%s4711_s1 + $0x18] sm:$0xff]  ;;  %v654_v32 = vunpack.c.l.s4 %v2358_v31 }
  0x14   :  { %813 = vmatpush1.msra.mxu1 %v148_v35  ;;  %743 = vmatprep.subr.mxu0 %v50_v36  ;;  %v133_v55 = vld [vmem:[%s4711_s1 + $0x330] sm:$0xff]  ;;  %v131_v57 = vld [vmem:[%s4711_s1 + $0x320] sm:$0xff]  ;;  %v130_v59 = vld [vmem:[%s4711_s1 + $0x318] sm:$0xff] }
  0x15   :  { %814 = vmatprep.subr.mxu1 %v146_v37  ;;  %744 = vmatpush1.msra.mxu0 %v49_v38  ;;  %v32_v60 = vld [vmem:[%s4711_s1 + $0x8] sm:$0xff]  ;;  %v31_v62 = vld [vmem:[%s4711_s1] sm:$0xff]  ;;  %v125_v0 = vld [vmem:[%s4711_s1 + $0x2f0] sm:$0xff] }
  0x16   :  { %815 = vmatpush1.msra.mxu1 %v145_v39  ;;  %745 = vmatprep.subr.mxu0 %v47_v40  ;;  %v128_v61 = vld [vmem:[%s4711_s1 + $0x308] sm:$0xff]  ;;  %v127_v63 = vld [vmem:[%s4711_s1 + $0x300] sm:$0xff]  ;;  %v221_v1 = vld [vmem:[%s4711_s1 + $0x5f0] sm:$0xff] }
  0x17   :  { %816 = vmatprep.subr.mxu1 %v143_v41  ;;  %746 = vmatpush1.msra.mxu0 %v46_v42  ;;  %v124_v2 = vld [vmem:[%s4711_s1 + $0x2e8] sm:$0xff]  ;;  %v122_v4 = vld [vmem:[%s4711_s1 + $0x2d8] sm:$0xff]  ;;  %v121_v6 = vld [vmem:[%s4711_s1 + $0x2d0] sm:$0xff]  ;;  %v2708_v41 = vshrl.u32 %v633_v30, 7  ;;  %v655_v42 = vunpack.c.0.s8 %v654_v32 }
  0x18   :  { %817 = vmatpush1.msra.mxu1 %v142_v43  ;;  %747 = vmatprep.subr.mxu0 %v44_v44  ;;  %v220_v3 = vld [vmem:[%s4711_s1 + $0x5e8] sm:$0xff]  ;;  %v218_v5 = vld [vmem:[%s4711_s1 + $0x5d8] sm:$0xff]  ;;  %v217_v7 = vld [vmem:[%s4711_s1 + $0x5d0] sm:$0xff] }
  0x19   :  { %818 = vmatprep.subr.mxu1 %v140_v45  ;;  %748 = vmatpush1.msra.mxu0 %v43_v46  ;;  %v119_v8 = vld [vmem:[%s4711_s1 + $0x2c0] sm:$0xff]  ;;  %v118_v10 = vld [vmem:[%s4711_s1 + $0x2b8] sm:$0xff]  ;;  %v116_v12 = vld [vmem:[%s4711_s1 + $0x2a8] sm:$0xff] }
  0x1a   :  { %819 = vmatpush1.msra.mxu1 %v139_v47  ;;  %749 = vmatprep.subr.mxu0 %v41_v48  ;;  %v215_v9 = vld [vmem:[%s4711_s1 + $0x5c0] sm:$0xff]  ;;  %v214_v11 = vld [vmem:[%s4711_s1 + $0x5b8] sm:$0xff]  ;;  %v212_v13 = vld [vmem:[%s4711_s1 + $0x5a8] sm:$0xff] }
  0x1b   :  { %820 = vmatprep.subr.mxu1 %v137_v49  ;;  %750 = vmatpush1.msra.mxu0 %v40_v50  ;;  %v115_v14 = vld [vmem:[%s4711_s1 + $0x2a0] sm:$0xff]  ;;  %v113_v16 = vld [vmem:[%s4711_s1 + $0x290] sm:$0xff]  ;;  %v112_v18 = vld [vmem:[%s4711_s1 + $0x288] sm:$0xff] }
  0x1c   :  { %821 = vmatpush1.msra.mxu1 %v136_v51  ;;  %751 = vmatprep.subr.mxu0 %v38_v52  ;;  %v211_v15 = vld [vmem:[%s4711_s1 + $0x5a0] sm:$0xff]  ;;  %v209_v17 = vld [vmem:[%s4711_s1 + $0x590] sm:$0xff]  ;;  %v208_v19 = vld [vmem:[%s4711_s1 + $0x588] sm:$0xff]  ;;  %v2738_v52 = vsub.s32 %v655_v42, %v2708_v41 }
  0x1d   :  { %822 = vmatprep.subr.mxu1 %v134_v53  ;;  %752 = vmatpush1.msra.mxu0 %v37_v54  ;;  %v110_v20 = vld [vmem:[%s4711_s1 + $0x278] sm:$0xff]  ;;  %v109_v22 = vld [vmem:[%s4711_s1 + $0x270] sm:$0xff]  ;;  %v107_v24 = vld [vmem:[%s4711_s1 + $0x260] sm:$0xff] }
  0x1e   :  { %823 = vmatpush1.msra.mxu1 %v133_v55  ;;  %753 = vmatprep.subr.mxu0 %v35_v56  ;;  %v206_v21 = vld [vmem:[%s4711_s1 + $0x578] sm:$0xff]  ;;  %v205_v23 = vld [vmem:[%s4711_s1 + $0x570] sm:$0xff]  ;;  %v203_v25 = vld [vmem:[%s4711_s1 + $0x560] sm:$0xff] }
  0x1f   :  { %824 = vmatprep.subr.mxu1 %v131_v57  ;;  %754 = vmatpush1.msra.mxu0 %v34_v58  ;;  %v106_v26 = vld [vmem:[%s4711_s1 + $0x258] sm:$0xff]  ;;  %v104_v28 = vld [vmem:[%s4711_s1 + $0x248] sm:$0xff]  ;;  %v103_v33 = vld [vmem:[%s4711_s1 + $0x240] sm:$0xff] }
  0x20   :  { %825 = vmatpush1.msra.mxu1 %v130_v59  ;;  %755 = vmatprep.subr.mxu0 %v32_v60  ;;  %v202_v27 = vld [vmem:[%s4711_s1 + $0x558] sm:$0xff]  ;;  %v200_v29 = vld [vmem:[%s4711_s1 + $0x548] sm:$0xff]  ;;  %v199_v34 = vld [vmem:[%s4711_s1 + $0x540] sm:$0xff] }
  0x21   :  { %826 = vmatprep.subr.mxu1 %v128_v61  ;;  %756 = vmatpush1.msra.mxu0 %v31_v62  ;;  %v101_v35 = vld [vmem:[%s4711_s1 + $0x230] sm:$0xff]  ;;  %v100_v37 = vld [vmem:[%s4711_s1 + $0x228] sm:$0xff]  ;;  %v98_v39 = vld [vmem:[%s4711_s1 + $0x218] sm:$0xff] }
  0x22   :  { %827 = vmatpush1.msra.mxu1 %v127_v63  ;;  %757 = vmatprep.subr.mxu0 %v125_v0  ;;  %v197_v36 = vld [vmem:[%s4711_s1 + $0x530] sm:$0xff]  ;;  %v196_v38 = vld [vmem:[%s4711_s1 + $0x528] sm:$0xff]  ;;  %v194_v40 = vld [vmem:[%s4711_s1 + $0x518] sm:$0xff] }
  0x23   :  { %828 = vmatprep.subr.mxu1 %v221_v1  ;;  %758 = vmatpush2.msra.mxu0 %v124_v2  ;;  %v97_v43 = vld [vmem:[%s4711_s1 + $0x210] sm:$0xff]  ;;  %v95_v45 = vld [vmem:[%s4711_s1 + $0x200] sm:$0xff]  ;;  %v94_v47 = vld [vmem:[%s4711_s1 + $0x1f8] sm:$0xff] }
  0x24   :  { %829 = vmatpush2.msra.mxu1 %v220_v3  ;;  %759 = vmatprep.subr.mxu0 %v122_v4  ;;  %v193_v44 = vld [vmem:[%s4711_s1 + $0x510] sm:$0xff]  ;;  %v191_v46 = vld [vmem:[%s4711_s1 + $0x500] sm:$0xff]  ;;  %v190_v48 = vld [vmem:[%s4711_s1 + $0x4f8] sm:$0xff] }
  0x25   :  { %830 = vmatprep.subr.mxu1 %v218_v5  ;;  %760 = vmatpush2.msra.mxu0 %v121_v6  ;;  %v27_v49 = vld [vmem:[%s4710_s0] sm:$0xff]  ;;  %v92_v50 = vld [vmem:[%s4711_s1 + $0x1e8] sm:$0xff]  ;;  %v89_v55 = vld [vmem:[%s4711_s1 + $0x1d0] sm:$0xff] }
  0x26   :  { %831 = vmatpush2.msra.mxu1 %v217_v7  ;;  %761 = vmatprep.subr.mxu0 %v119_v8  ;;  %v188_v51 = vld [vmem:[%s4711_s1 + $0x4e8] sm:$0xff]  ;;  %v91_v53 = vld [vmem:[%s4711_s1 + $0x1e0] sm:$0xff]  ;;  %v185_v56 = vld [vmem:[%s4711_s1 + $0x4d0] sm:$0xff]  ;;  %v652_v57 = vcombine.high %v27_v49, %v27_v49  ;;  %v2765_v62 = vrot.slane %v27_v49, %v2738_v52 }
  0x27   :  { %832 = vmatprep.subr.mxu1 %v215_v9  ;;  %762 = vmatpush2.msra.mxu0 %v118_v10  ;;  %v187_v54 = vld [vmem:[%s4711_s1 + $0x4e0] sm:$0xff]  ;;  %v88_v58 = vld [vmem:[%s4711_s1 + $0x1c8] sm:$0xff]  ;;  %v86_v60 = vld [vmem:[%s4711_s1 + $0x1b8] sm:$0xff] }
  0x28   :  { %833 = vmatpush2.msra.mxu1 %v214_v11  ;;  %763 = vmatprep.subr.mxu0 %v116_v12  ;;  %v184_v59 = vld [vmem:[%s4711_s1 + $0x4c8] sm:$0xff]  ;;  %v182_v61 = vld [vmem:[%s4711_s1 + $0x4b8] sm:$0xff]  ;;  %v85_v63 = vld [vmem:[%s4711_s1 + $0x1b0] sm:$0xff]  ;;  %v2780_v3 = vrot.slane %v652_v57, %v2738_v52  ;;  %v2796_v8 = vcombine.high %v2765_v62, %v2765_v62 }
  0x29   :  { %834 = vmatprep.subr.mxu1 %v212_v13  ;;  %764 = vmatpush2.msra.mxu0 %v115_v14  ;;  %v181_v0 = vld [vmem:[%s4711_s1 + $0x4b0] sm:$0xff]  ;;  %v83_v1 = vld [vmem:[%s4711_s1 + $0x1a0] sm:$0xff]  ;;  %v82_v4 = vld [vmem:[%s4711_s1 + $0x198] sm:$0xff] }
  0x2a   :  { %835 = vmatpush2.msra.mxu1 %v211_v15  ;;  %765 = vmatprep.subr.mxu0 %v113_v16  ;;  %v179_v2 = vld [vmem:[%s4711_s1 + $0x4a0] sm:$0xff]  ;;  %v178_v5 = vld [vmem:[%s4711_s1 + $0x498] sm:$0xff]  ;;  %v80_v6 = vld [vmem:[%s4711_s1 + $0x188] sm:$0xff]  ;;  %v2806_v11 = vcombine.high %v2780_v3, %v2780_v3 }
  0x2b   :  { %836 = vmatprep.subr.mxu1 %v209_v17  ;;  %766 = vmatpush2.msra.mxu0 %v112_v18  ;;  %v176_v7 = vld [vmem:[%s4711_s1 + $0x488] sm:$0xff]  ;;  %v79_v9 = vld [vmem:[%s4711_s1 + $0x180] sm:$0xff]  ;;  %v269_v12 = vld [vmem:[%s4711_s1 + $0x770] sm:$0xff] }
  0x2c   :  { %837 = vmatpush2.msra.mxu1 %v208_v19  ;;  %767 = vmatprep.subr.mxu0 %v110_v20  ;;  %v175_v10 = vld [vmem:[%s4711_s1 + $0x480] sm:$0xff]  ;;  %v365_v13 = vld [vmem:[%s4711_s1 + $0xa70] sm:$0xff]  ;;  %v268_v14 = vld [vmem:[%s4711_s1 + $0x768] sm:$0xff] }
  0x2d   :  { %838 = vmatprep.subr.mxu1 %v206_v21  ;;  %768 = vmatpush2.msra.mxu0 %v109_v22  ;;  %v364_v15 = vld [vmem:[%s4711_s1 + $0xa68] sm:$0xff]  ;;  %v266_v16 = vld [vmem:[%s4711_s1 + $0x758] sm:$0xff]  ;;  %v265_v18 = vld [vmem:[%s4711_s1 + $0x750] sm:$0xff] }
  0x2e   :  { %839 = vmatpush2.msra.mxu1 %v205_v23  ;;  %769 = vmatprep.subr.mxu0 %v107_v24  ;;  %v362_v17 = vld [vmem:[%s4711_s1 + $0xa58] sm:$0xff]  ;;  %v361_v19 = vld [vmem:[%s4711_s1 + $0xa50] sm:$0xff]  ;;  %v263_v20 = vld [vmem:[%s4711_s1 + $0x740] sm:$0xff] }
  0x2f   :  { %840 = vmatprep.subr.mxu1 %v203_v25  ;;  %770 = vmatpush2.msra.mxu0 %v106_v26  ;;  %v359_v21 = vld [vmem:[%s4711_s1 + $0xa40] sm:$0xff]  ;;  %v262_v22 = vld [vmem:[%s4711_s1 + $0x738] sm:$0xff]  ;;  %v260_v24 = vld [vmem:[%s4711_s1 + $0x728] sm:$0xff] }
  0x30   :  { %841 = vmatpush2.msra.mxu1 %v202_v27  ;;  %771 = vmatprep.subr.mxu0 %v104_v28  ;;  %v358_v23 = vld [vmem:[%s4711_s1 + $0xa38] sm:$0xff]  ;;  %v356_v25 = vld [vmem:[%s4711_s1 + $0xa28] sm:$0xff]  ;;  %v259_v26 = vld [vmem:[%s4711_s1 + $0x720] sm:$0xff] }
  0x31   :  { %842 = vmatprep.subr.mxu1 %v200_v29  ;;  %772 = vmatpush2.msra.mxu0 %v103_v33  ;;  %v355_v27 = vld [vmem:[%s4711_s1 + $0xa20] sm:$0xff]  ;;  %v257_v28 = vld [vmem:[%s4711_s1 + $0x710] sm:$0xff]  ;;  %v256_v30 = vld [vmem:[%s4711_s1 + $0x708] sm:$0xff] }
  0x32   :  { %843 = vmatpush2.msra.mxu1 %v199_v34  ;;  %773 = vmatprep.subr.mxu0 %v101_v35  ;;  %v353_v29 = vld [vmem:[%s4711_s1 + $0xa10] sm:$0xff]  ;;  %v352_v31 = vld [vmem:[%s4711_s1 + $0xa08] sm:$0xff]  ;;  %v254_v32 = vld [vmem:[%s4711_s1 + $0x6f8] sm:$0xff] }
  0x33   :  { %844 = vmatprep.subr.mxu1 %v197_v36  ;;  %774 = vmatpush2.msra.mxu0 %v100_v37  ;;  %v350_v33 = vld [vmem:[%s4711_s1 + $0x9f8] sm:$0xff]  ;;  %v253_v34 = vld [vmem:[%s4711_s1 + $0x6f0] sm:$0xff]  ;;  %v251_v36 = vld [vmem:[%s4711_s1 + $0x6e0] sm:$0xff] }
  0x34   :  { %845 = vmatpush2.msra.mxu1 %v196_v38  ;;  %775 = vmatprep.subr.mxu0 %v98_v39  ;;  %v349_v35 = vld [vmem:[%s4711_s1 + $0x9f0] sm:$0xff]  ;;  %v347_v37 = vld [vmem:[%s4711_s1 + $0x9e0] sm:$0xff]  ;;  %v250_v38 = vld [vmem:[%s4711_s1 + $0x6d8] sm:$0xff] }
  0x35   :  { %846 = vmatprep.subr.mxu1 %v194_v40  ;;  %776 = vmatpush2.msra.mxu0 %v97_v43  ;;  %v346_v39 = vld [vmem:[%s4711_s1 + $0x9d8] sm:$0xff]  ;;  %v248_v40 = vld [vmem:[%s4711_s1 + $0x6c8] sm:$0xff]  ;;  %v247_v43 = vld [vmem:[%s4711_s1 + $0x6c0] sm:$0xff] }
  0x36   :  { %847 = vmatpush2.msra.mxu1 %v193_v44  ;;  %777 = vmatprep.subr.mxu0 %v95_v45  ;;  %v344_v42 = vld [vmem:[%s4711_s1 + $0x9c8] sm:$0xff]  ;;  %v343_v44 = vld [vmem:[%s4711_s1 + $0x9c0] sm:$0xff]  ;;  %v245_v45 = vld [vmem:[%s4711_s1 + $0x6b0] sm:$0xff] }
  0x37   :  { %848 = vmatprep.subr.mxu1 %v191_v46  ;;  %778 = vmatpush2.msra.mxu0 %v94_v47  ;;  %v341_v46 = vld [vmem:[%s4711_s1 + $0x9b0] sm:$0xff]  ;;  %v244_v47 = vld [vmem:[%s4711_s1 + $0x6a8] sm:$0xff]  ;;  %v242_v49 = vld [vmem:[%s4711_s1 + $0x698] sm:$0xff] }
  0x38   :  { %849 = vmatpush2.msra.mxu1 %v190_v48  ;;  %779 = vmatprep.subr.mxu0 %v92_v50  ;;  %v340_v48 = vld [vmem:[%s4711_s1 + $0x9a8] sm:$0xff]  ;;  %v338_v50 = vld [vmem:[%s4711_s1 + $0x998] sm:$0xff] }
  0x39   :  { %850 = vmatprep.subr.mxu1 %v188_v51  ;;  %780 = vmatpush2.msra.mxu0 %v91_v53  ;;  %v241_v51 = vld [vmem:[%s4711_s1 + $0x690] sm:$0xff]  ;;  %v334_v57 = vld [vmem:[%s4711_s1 + $0x978] sm:$0xff] }
  0x3a   :  { %851 = vmatpush2.msra.mxu1 %v187_v54  ;;  %781 = vmatprep.subr.mxu0 %v89_v55  ;;  %v337_v53 = vld [vmem:[%s4711_s1 + $0x990] sm:$0xff]  ;;  %v239_v54 = vld [vmem:[%s4711_s1 + $0x680] sm:$0xff] }
  0x3b   :  { %852 = vmatprep.subr.mxu1 %v185_v56  ;;  %782 = vmatpush2.msra.mxu0 %v88_v58  ;;  %v335_v55 = vld [vmem:[%s4711_s1 + $0x980] sm:$0xff]  ;;  %v238_v56 = vld [vmem:[%s4711_s1 + $0x678] sm:$0xff]  ;;  %v236_v58 = vld [vmem:[%s4711_s1 + $0x668] sm:$0xff] }
  0x3c   :  { %853 = vmatpush2.msra.mxu1 %v184_v59  ;;  %783 = vmatprep.subr.mxu0 %v86_v60  ;;  %v332_v59 = vld [vmem:[%s4711_s1 + $0x968] sm:$0xff]  ;;  %v235_v60 = vld [vmem:[%s4711_s1 + $0x660] sm:$0xff] }
  0x3d   :  { %854 = vmatprep.subr.mxu1 %v182_v61  ;;  %784 = vmatpush2.msra.mxu0 %v85_v63  ;;  %v331_v61 = vld [vmem:[%s4711_s1 + $0x960] sm:$0xff]  ;;  %v233_v63 = vld [vmem:[%s4711_s1 + $0x650] sm:$0xff] }
  0x3e   :  { %855 = vmatpush2.msra.mxu1 %v181_v0  ;;  %785 = vmatprep.subr.mxu0 %v83_v1  ;;  %v329_v0 = vld [vmem:[%s4711_s1 + $0x950] sm:$0xff]  ;;  %v232_v1 = vld [vmem:[%s4711_s1 + $0x648] sm:$0xff] }
  0x3f   :  { %856 = vmatprep.subr.mxu1 %v179_v2  ;;  %786 = vmatpush2.msra.mxu0 %v82_v4  ;;  %v328_v2 = vld [vmem:[%s4711_s1 + $0x948] sm:$0xff]  ;;  %v230_v4 = vld [vmem:[%s4711_s1 + $0x638] sm:$0xff] }
  0x40   :  { %857 = vmatpush2.msra.mxu1 %v178_v5  ;;  %787 = vmatprep.subr.mxu0 %v80_v6  ;;  %v326_v5 = vld [vmem:[%s4711_s1 + $0x938] sm:$0xff]  ;;  %v229_v6 = vld [vmem:[%s4711_s1 + $0x630] sm:$0xff] }
  0x41   :  { %858 = vmatprep.subr.mxu1 %v176_v7  ;;  %788 = vmatpush2.msra.mxu0 %v79_v9  ;;  %v325_v7 = vld [vmem:[%s4711_s1 + $0x930] sm:$0xff]  ;;  %v227_v9 = vld [vmem:[%s4711_s1 + $0x620] sm:$0xff] }
  0x42   :  { %789 = vmatprep.mubr.f32.mxu0 %v2796_v8  ;;  %859 = vmatpush2.msra.mxu1 %v175_v10  ;;  %v323_v10 = vld [vmem:[%s4711_s1 + $0x920] sm:$0xff] }
  0x43   :  { %790 = vmatmul.mubr.f32.vlgmr.msra.gmra.mxu0 %v2765_v62  ;;  %860 = vmatprep.mubr.f32.mxu1 %v2806_v11 }
  0x44   :  { %867 = vmatprep.subr.mxu0 %v269_v12  ;;  %938 = vmatprep.subr.mxu1 %v365_v13  ;;  %v226_v12 = vld [vmem:[%s4711_s1 + $0x618] sm:$0xff] }
  0x45   :  { %861 = vmatmul.mubr.f32.vlgmr.msra.gmra.mxu1 %v2780_v3  ;;  %868 = vmatpush1.msra.mxu0 %v268_v14  ;;  %v322_v13 = vld [vmem:[%s4711_s1 + $0x918] sm:$0xff]  ;;  %v224_v14 = vld [vmem:[%s4711_s1 + $0x608] sm:$0xff] }
  0x46   :  { %939 = vmatpush1.msra.mxu1 %v364_v15  ;;  %869 = vmatprep.subr.mxu0 %v266_v16  ;;  %v320_v15 = vld [vmem:[%s4711_s1 + $0x908] sm:$0xff]  ;;  %v223_v16 = vld [vmem:[%s4711_s1 + $0x600] sm:$0xff] }
  0x47   :  { %940 = vmatprep.subr.mxu1 %v362_v17  ;;  %870 = vmatpush1.msra.mxu0 %v265_v18  ;;  %v319_v17 = vld [vmem:[%s4711_s1 + $0x900] sm:$0xff]  ;;  %v317_v18 = vld [vmem:[%s4711_s1 + $0x8f0] sm:$0xff] }
  0x48   :  { %941 = vmatpush1.msra.mxu1 %v361_v19  ;;  %871 = vmatprep.subr.mxu0 %v263_v20  ;;  %v413_v19 = vld [vmem:[%s4711_s1 + $0xbf0] sm:$0xff]  ;;  %v316_v20 = vld [vmem:[%s4711_s1 + $0x8e8] sm:$0xff] }
  0x49   :  { %942 = vmatprep.subr.mxu1 %v359_v21  ;;  %872 = vmatpush1.msra.mxu0 %v262_v22  ;;  %v412_v21 = vld [vmem:[%s4711_s1 + $0xbe8] sm:$0xff]  ;;  %v314_v22 = vld [vmem:[%s4711_s1 + $0x8d8] sm:$0xff] }
  0x4a   :  { %943 = vmatpush1.msra.mxu1 %v358_v23  ;;  %873 = vmatprep.subr.mxu0 %v260_v24  ;;  %v410_v23 = vld [vmem:[%s4711_s1 + $0xbd8] sm:$0xff]  ;;  %v313_v24 = vld [vmem:[%s4711_s1 + $0x8d0] sm:$0xff] }
  0x4b   :  { %944 = vmatprep.subr.mxu1 %v356_v25  ;;  %874 = vmatpush1.msra.mxu0 %v259_v26  ;;  %v409_v25 = vld [vmem:[%s4711_s1 + $0xbd0] sm:$0xff]  ;;  %v311_v26 = vld [vmem:[%s4711_s1 + $0x8c0] sm:$0xff] }
  0x4c   :  { %945 = vmatpush1.msra.mxu1 %v355_v27  ;;  %875 = vmatprep.subr.mxu0 %v257_v28  ;;  %v407_v27 = vld [vmem:[%s4711_s1 + $0xbc0] sm:$0xff]  ;;  %v310_v28 = vld [vmem:[%s4711_s1 + $0x8b8] sm:$0xff] }
  0x4d   :  { %946 = vmatprep.subr.mxu1 %v353_v29  ;;  %876 = vmatpush1.msra.mxu0 %v256_v30  ;;  %v406_v29 = vld [vmem:[%s4711_s1 + $0xbb8] sm:$0xff]  ;;  %v308_v30 = vld [vmem:[%s4711_s1 + $0x8a8] sm:$0xff] }
  0x4e   :  { %947 = vmatpush1.msra.mxu1 %v352_v31  ;;  %877 = vmatprep.subr.mxu0 %v254_v32  ;;  %v404_v31 = vld [vmem:[%s4711_s1 + $0xba8] sm:$0xff]  ;;  %v307_v32 = vld [vmem:[%s4711_s1 + $0x8a0] sm:$0xff] }
  0x4f   :  { %948 = vmatprep.subr.mxu1 %v350_v33  ;;  %878 = vmatpush1.msra.mxu0 %v253_v34  ;;  %v403_v33 = vld [vmem:[%s4711_s1 + $0xba0] sm:$0xff]  ;;  %v305_v34 = vld [vmem:[%s4711_s1 + $0x890] sm:$0xff] }
  0x50   :  { %949 = vmatpush1.msra.mxu1 %v349_v35  ;;  %879 = vmatprep.subr.mxu0 %v251_v36  ;;  %v401_v35 = vld [vmem:[%s4711_s1 + $0xb90] sm:$0xff]  ;;  %v304_v36 = vld [vmem:[%s4711_s1 + $0x888] sm:$0xff] }
  0x51   :  { %950 = vmatprep.subr.mxu1 %v347_v37  ;;  %880 = vmatpush1.msra.mxu0 %v250_v38  ;;  %v400_v37 = vld [vmem:[%s4711_s1 + $0xb88] sm:$0xff]  ;;  %v302_v38 = vld [vmem:[%s4711_s1 + $0x878] sm:$0xff] }
  0x52   :  { %951 = vmatpush1.msra.mxu1 %v346_v39  ;;  %881 = vmatprep.subr.mxu0 %v248_v40  ;;  %v398_v39 = vld [vmem:[%s4711_s1 + $0xb78] sm:$0xff]  ;;  %v301_v40 = vld [vmem:[%s4711_s1 + $0x870] sm:$0xff] }
  0x53   :  { %952 = vmatprep.subr.mxu1 %v344_v42  ;;  %882 = vmatpush1.msra.mxu0 %v247_v43  ;;  %v397_v42 = vld [vmem:[%s4711_s1 + $0xb70] sm:$0xff]  ;;  %v299_v43 = vld [vmem:[%s4711_s1 + $0x860] sm:$0xff] }
  0x54   :  { %953 = vmatpush1.msra.mxu1 %v343_v44  ;;  %883 = vmatprep.subr.mxu0 %v245_v45  ;;  %v395_v44 = vld [vmem:[%s4711_s1 + $0xb60] sm:$0xff]  ;;  %v298_v45 = vld [vmem:[%s4711_s1 + $0x858] sm:$0xff] }
  0x55   :  { %954 = vmatprep.subr.mxu1 %v341_v46  ;;  %884 = vmatpush1.msra.mxu0 %v244_v47  ;;  %v394_v46 = vld [vmem:[%s4711_s1 + $0xb58] sm:$0xff]  ;;  %v296_v47 = vld [vmem:[%s4711_s1 + $0x848] sm:$0xff] }
  0x56   :  { %955 = vmatpush1.msra.mxu1 %v340_v48  ;;  %885 = vmatprep.subr.mxu0 %v242_v49  ;;  %v392_v48 = vld [vmem:[%s4711_s1 + $0xb48] sm:$0xff]  ;;  %v295_v49 = vld [vmem:[%s4711_s1 + $0x840] sm:$0xff] }
  0x57   :  { %956 = vmatprep.subr.mxu1 %v338_v50  ;;  %886 = vmatpush1.msra.mxu0 %v241_v51  ;;  %v391_v50 = vld [vmem:[%s4711_s1 + $0xb40] sm:$0xff]  ;;  %v293_v51 = vld [vmem:[%s4711_s1 + $0x830] sm:$0xff] }
  0x58   :  { %957 = vmatpush1.msra.mxu1 %v337_v53  ;;  %887 = vmatprep.subr.mxu0 %v239_v54  ;;  %v389_v53 = vld [vmem:[%s4711_s1 + $0xb30] sm:$0xff]  ;;  %v292_v54 = vld [vmem:[%s4711_s1 + $0x828] sm:$0xff] }
  0x59   :  { %958 = vmatprep.subr.mxu1 %v335_v55  ;;  %888 = vmatpush1.msra.mxu0 %v238_v56  ;;  %v388_v55 = vld [vmem:[%s4711_s1 + $0xb28] sm:$0xff]  ;;  %v290_v56 = vld [vmem:[%s4711_s1 + $0x818] sm:$0xff] }
  0x5a   :  { %959 = vmatpush1.msra.mxu1 %v334_v57  ;;  %889 = vmatprep.subr.mxu0 %v236_v58  ;;  %v386_v57 = vld [vmem:[%s4711_s1 + $0xb18] sm:$0xff]  ;;  %v289_v58 = vld [vmem:[%s4711_s1 + $0x810] sm:$0xff] }
  0x5b   :  { %960 = vmatprep.subr.mxu1 %v332_v59  ;;  %890 = vmatpush1.msra.mxu0 %v235_v60  ;;  %v385_v59 = vld [vmem:[%s4711_s1 + $0xb10] sm:$0xff]  ;;  %v287_v60 = vld [vmem:[%s4711_s1 + $0x800] sm:$0xff] }
  0x5c   :  { %961 = vmatpush1.msra.mxu1 %v331_v61  ;;  %891 = vmatprep.subr.mxu0 %v233_v63  ;;  %v383_v61 = vld [vmem:[%s4711_s1 + $0xb00] sm:$0xff]  ;;  %v286_v63 = vld [vmem:[%s4711_s1 + $0x7f8] sm:$0xff] }
  0x5d   :  { %962 = vmatprep.subr.mxu1 %v329_v0  ;;  %892 = vmatpush1.msra.mxu0 %v232_v1  ;;  %v382_v0 = vld [vmem:[%s4711_s1 + $0xaf8] sm:$0xff]  ;;  %v28_v1 = vld [vmem:[%s4710_s0 + $0x8] sm:$0xff] }
  0x5e   :  { %963 = vmatpush1.msra.mxu1 %v328_v2  ;;  %893 = vmatprep.subr.mxu0 %v230_v4  ;;  %v284_v2 = vld [vmem:[%s4711_s1 + $0x7e8] sm:$0xff] }
  0x5f   :  { %964 = vmatprep.subr.mxu1 %v326_v5  ;;  %894 = vmatpush1.msra.mxu0 %v229_v6  ;;  %v380_v4 = vld [vmem:[%s4711_s1 + $0xae8] sm:$0xff]  ;;  %v283_v5 = vld [vmem:[%s4711_s1 + $0x7e0] sm:$0xff] }
  0x60   :  { %965 = vmatpush1.msra.mxu1 %v325_v7  ;;  %895 = vmatprep.subr.mxu0 %v227_v9  ;;  %v379_v6 = vld [vmem:[%s4711_s1 + $0xae0] sm:$0xff]  ;;  %v281_v7 = vld [vmem:[%s4711_s1 + $0x7d0] sm:$0xff] }
  0x61   :  { %966 = vmatprep.subr.mxu1 %v323_v10  ;;  %896 = vmatpush1.msra.mxu0 %v226_v12  ;;  %v377_v9 = vld [vmem:[%s4711_s1 + $0xad0] sm:$0xff]  ;;  %v669_v10 = vcombine.high %v28_v1, %v28_v1  ;;  %v280_v12 = vld [vmem:[%s4711_s1 + $0x7c8] sm:$0xff] }
  0x62   :  { %967 = vmatpush1.msra.mxu1 %v322_v13  ;;  %897 = vmatprep.subr.mxu0 %v224_v14  ;;  %v376_v13 = vld [vmem:[%s4711_s1 + $0xac8] sm:$0xff]  ;;  %v278_v14 = vld [vmem:[%s4711_s1 + $0x7b8] sm:$0xff] }
  0x63   :  { %968 = vmatprep.subr.mxu1 %v320_v15  ;;  %898 = vmatpush1.msra.mxu0 %v223_v16  ;;  %v374_v15 = vld [vmem:[%s4711_s1 + $0xab8] sm:$0xff]  ;;  %v3170_v16 = vrot.slane %v28_v1, %v2738_v52  ;;  %v437_v1 = vld [vmem:[%s4711_s1 + $0xcb0] sm:$0xff] }
  0x64   :  { %969 = vmatpush1.msra.mxu1 %v319_v17  ;;  %899 = vmatprep.subr.mxu0 %v317_v18  ;;  %v277_v17 = vld [vmem:[%s4711_s1 + $0x7b0] sm:$0xff] }
  0x65   :  { %970 = vmatprep.subr.mxu1 %v413_v19  ;;  %900 = vmatpush2.msra.mxu0 %v316_v20  ;;  %v373_v18 = vld [vmem:[%s4711_s1 + $0xab0] sm:$0xff]  ;;  %v275_v19 = vld [vmem:[%s4711_s1 + $0x7a0] sm:$0xff] }
  0x66   :  { %971 = vmatpush2.msra.mxu1 %v412_v21  ;;  %901 = vmatprep.subr.mxu0 %v314_v22  ;;  %v371_v20 = vld [vmem:[%s4711_s1 + $0xaa0] sm:$0xff]  ;;  %v3185_v21 = vrot.slane %v669_v10, %v2738_v52  ;;  %v274_v22 = vld [vmem:[%s4711_s1 + $0x798] sm:$0xff]  ;;  %v529_v10 = vld [vmem:[%s4711_s1 + $0xf90] sm:$0xff] }
  0x67   :  { %972 = vmatprep.subr.mxu1 %v410_v23  ;;  %902 = vmatpush2.msra.mxu0 %v313_v24  ;;  %v370_v23 = vld [vmem:[%s4711_s1 + $0xa98] sm:$0xff]  ;;  %v272_v24 = vld [vmem:[%s4711_s1 + $0x788] sm:$0xff] }
  0x68   :  { %973 = vmatpush2.msra.mxu1 %v409_v25  ;;  %903 = vmatprep.subr.mxu0 %v311_v26  ;;  %v368_v25 = vld [vmem:[%s4711_s1 + $0xa88] sm:$0xff]  ;;  %v3201_v26 = vcombine.high %v3170_v16, %v3170_v16 }
  0x69   :  { %974 = vmatprep.subr.mxu1 %v407_v27  ;;  %904 = vmatpush2.msra.mxu0 %v310_v28  ;;  %v271_v27 = vld [vmem:[%s4711_s1 + $0x780] sm:$0xff] }
  0x6a   :  { %975 = vmatpush2.msra.mxu1 %v406_v29  ;;  %905 = vmatprep.subr.mxu0 %v308_v30  ;;  %v367_v28 = vld [vmem:[%s4711_s1 + $0xa80] sm:$0xff]  ;;  %v3211_v29 = vcombine.high %v3185_v21, %v3185_v21  ;;  %v461_v30 = vld [vmem:[%s4711_s1 + $0xd70] sm:$0xff] }
  0x6b   :  { %976 = vmatprep.subr.mxu1 %v404_v31  ;;  %906 = vmatpush2.msra.mxu0 %v307_v32  ;;  %v557_v31 = vld [vmem:[%s4711_s1 + $0x1070] sm:$0xff]  ;;  %v460_v32 = vld [vmem:[%s4711_s1 + $0xd68] sm:$0xff] }
  0x6c   :  { %977 = vmatpush2.msra.mxu1 %v403_v33  ;;  %907 = vmatprep.subr.mxu0 %v305_v34  ;;  %v556_v33 = vld [vmem:[%s4711_s1 + $0x1068] sm:$0xff]  ;;  %v458_v34 = vld [vmem:[%s4711_s1 + $0xd58] sm:$0xff] }
  0x6d   :  { %978 = vmatprep.subr.mxu1 %v401_v35  ;;  %908 = vmatpush2.msra.mxu0 %v304_v36  ;;  %v554_v35 = vld [vmem:[%s4711_s1 + $0x1058] sm:$0xff]  ;;  %v457_v36 = vld [vmem:[%s4711_s1 + $0xd50] sm:$0xff] }
  0x6e   :  { %979 = vmatpush2.msra.mxu1 %v400_v37  ;;  %909 = vmatprep.subr.mxu0 %v302_v38  ;;  %v553_v37 = vld [vmem:[%s4711_s1 + $0x1050] sm:$0xff]  ;;  %v455_v38 = vld [vmem:[%s4711_s1 + $0xd40] sm:$0xff] }
  0x6f   :  { %980 = vmatprep.subr.mxu1 %v398_v39  ;;  %910 = vmatpush2.msra.mxu0 %v301_v40  ;;  %v551_v39 = vld [vmem:[%s4711_s1 + $0x1040] sm:$0xff]  ;;  %v454_v40 = vld [vmem:[%s4711_s1 + $0xd38] sm:$0xff] }
  0x70   :  { %981 = vmatpush2.msra.mxu1 %v397_v42  ;;  %911 = vmatprep.subr.mxu0 %v299_v43  ;;  %v550_v42 = vld [vmem:[%s4711_s1 + $0x1038] sm:$0xff]  ;;  %v452_v43 = vld [vmem:[%s4711_s1 + $0xd28] sm:$0xff] }
  0x71   :  { %982 = vmatprep.subr.mxu1 %v395_v44  ;;  %912 = vmatpush2.msra.mxu0 %v298_v45  ;;  %v548_v44 = vld [vmem:[%s4711_s1 + $0x1028] sm:$0xff]  ;;  %v451_v45 = vld [vmem:[%s4711_s1 + $0xd20] sm:$0xff] }
  0x72   :  { %983 = vmatpush2.msra.mxu1 %v394_v46  ;;  %913 = vmatprep.subr.mxu0 %v296_v47  ;;  %v547_v46 = vld [vmem:[%s4711_s1 + $0x1020] sm:$0xff]  ;;  %v449_v47 = vld [vmem:[%s4711_s1 + $0xd10] sm:$0xff] }
  0x73   :  { %984 = vmatprep.subr.mxu1 %v392_v48  ;;  %914 = vmatpush2.msra.mxu0 %v295_v49  ;;  %v545_v48 = vld [vmem:[%s4711_s1 + $0x1010] sm:$0xff]  ;;  %v448_v49 = vld [vmem:[%s4711_s1 + $0xd08] sm:$0xff] }
  0x74   :  { %985 = vmatpush2.msra.mxu1 %v391_v50  ;;  %915 = vmatprep.subr.mxu0 %v293_v51  ;;  %v544_v50 = vld [vmem:[%s4711_s1 + $0x1008] sm:$0xff]  ;;  %v446_v51 = vld [vmem:[%s4711_s1 + $0xcf8] sm:$0xff] }
  0x75   :  { %986 = vmatprep.subr.mxu1 %v389_v53  ;;  %916 = vmatpush2.msra.mxu0 %v292_v54  ;;  %v542_v53 = vld [vmem:[%s4711_s1 + $0xff8] sm:$0xff]  ;;  %v445_v54 = vld [vmem:[%s4711_s1 + $0xcf0] sm:$0xff] }
  0x76   :  { %987 = vmatpush2.msra.mxu1 %v388_v55  ;;  %917 = vmatprep.subr.mxu0 %v290_v56  ;;  %v541_v55 = vld [vmem:[%s4711_s1 + $0xff0] sm:$0xff]  ;;  %v443_v56 = vld [vmem:[%s4711_s1 + $0xce0] sm:$0xff] }
  0x77   :  { %988 = vmatprep.subr.mxu1 %v386_v57  ;;  %918 = vmatpush2.msra.mxu0 %v289_v58  ;;  %v539_v57 = vld [vmem:[%s4711_s1 + $0xfe0] sm:$0xff]  ;;  %v442_v58 = vld [vmem:[%s4711_s1 + $0xcd8] sm:$0xff] }
  0x78   :  { %989 = vmatpush2.msra.mxu1 %v385_v59  ;;  %919 = vmatprep.subr.mxu0 %v287_v60  ;;  %v538_v59 = vld [vmem:[%s4711_s1 + $0xfd8] sm:$0xff]  ;;  %v440_v60 = vld [vmem:[%s4711_s1 + $0xcc8] sm:$0xff] }
  0x79   :  { %990 = vmatprep.subr.mxu1 %v383_v61  ;;  %920 = vmatpush2.msra.mxu0 %v286_v63  ;;  %v536_v61 = vld [vmem:[%s4711_s1 + $0xfc8] sm:$0xff]  ;;  %v439_v63 = vld [vmem:[%s4711_s1 + $0xcc0] sm:$0xff] }
  0x7a   :  { %991 = vmatpush2.msra.mxu1 %v382_v0  ;;  %921 = vmatprep.subr.mxu0 %v284_v2  ;;  %v535_v0 = vld [vmem:[%s4711_s1 + $0xfc0] sm:$0xff]  ;;  %v533_v2 = vld [vmem:[%s4711_s1 + $0xfb0] sm:$0xff] }
  0x7b   :  { %992 = vmatprep.subr.mxu1 %v380_v4  ;;  %922 = vmatpush2.msra.mxu0 %v283_v5  ;;  %v436_v4 = vld [vmem:[%s4711_s1 + $0xca8] sm:$0xff] }
  0x7c   :  { %993 = vmatpush2.msra.mxu1 %v379_v6  ;;  %923 = vmatprep.subr.mxu0 %v281_v7  ;;  %v532_v5 = vld [vmem:[%s4711_s1 + $0xfa8] sm:$0xff]  ;;  %v434_v6 = vld [vmem:[%s4711_s1 + $0xc98] sm:$0xff] }
  0x7d   :  { %994 = vmatprep.subr.mxu1 %v377_v9  ;;  %924 = vmatpush2.msra.mxu0 %v280_v12  ;;  %v530_v7 = vld [vmem:[%s4711_s1 + $0xf98] sm:$0xff]  ;;  %v433_v9 = vld [vmem:[%s4711_s1 + $0xc90] sm:$0xff]  ;;  %v431_v12 = vld [vmem:[%s4711_s1 + $0xc80] sm:$0xff] }
  0x7e   :  { %995 = vmatpush2.msra.mxu1 %v376_v13  ;;  %925 = vmatprep.subr.mxu0 %v278_v14  ;;  %v527_v13 = vld [vmem:[%s4711_s1 + $0xf80] sm:$0xff]  ;;  %v430_v14 = vld [vmem:[%s4711_s1 + $0xc78] sm:$0xff] }
  0x7f   :  { %996 = vmatprep.subr.mxu1 %v374_v15  ;;  %926 = vmatpush2.msra.mxu0 %v277_v17  ;;  %v526_v15 = vld [vmem:[%s4711_s1 + $0xf78] sm:$0xff]  ;;  %v428_v17 = vld [vmem:[%s4711_s1 + $0xc68] sm:$0xff] }
  0x80   :  { %997 = vmatpush2.msra.mxu1 %v373_v18  ;;  %927 = vmatprep.subr.mxu0 %v275_v19  ;;  %v524_v18 = vld [vmem:[%s4711_s1 + $0xf68] sm:$0xff]  ;;  %v427_v19 = vld [vmem:[%s4711_s1 + $0xc60] sm:$0xff] }
  0x81   :  { %998 = vmatprep.subr.mxu1 %v371_v20  ;;  %928 = vmatpush2.msra.mxu0 %v274_v22  ;;  %v523_v20 = vld [vmem:[%s4711_s1 + $0xf60] sm:$0xff]  ;;  %v425_v22 = vld [vmem:[%s4711_s1 + $0xc50] sm:$0xff] }
  0x82   :  { %999 = vmatpush2.msra.mxu1 %v370_v23  ;;  %929 = vmatprep.subr.mxu0 %v272_v24  ;;  %v521_v23 = vld [vmem:[%s4711_s1 + $0xf50] sm:$0xff]  ;;  %v424_v24 = vld [vmem:[%s4711_s1 + $0xc48] sm:$0xff] }
  0x83   :  { %1000 = vmatprep.subr.mxu1 %v368_v25  ;;  %930 = vmatpush2.msra.mxu0 %v271_v27  ;;  %v520_v25 = vld [vmem:[%s4711_s1 + $0xf48] sm:$0xff]  ;;  %v422_v27 = vld [vmem:[%s4711_s1 + $0xc38] sm:$0xff] }
  0x84   :  { %931 = vmatprep.mubr.f32.mxu0 %v3201_v26  ;;  %1001 = vmatpush2.msra.mxu1 %v367_v28  ;;  %v518_v28 = vld [vmem:[%s4711_s1 + $0xf38] sm:$0xff] }
  0x85   :  { %932 = vmatmul.mubr.f32.vlgmr.msra.gmra.mxu0 %v3170_v16  ;;  %1002 = vmatprep.mubr.f32.mxu1 %v3211_v29 }
  0x86   :  { %1009 = vmatprep.subr.mxu0 %v461_v30  ;;  %1080 = vmatprep.subr.mxu1 %v557_v31  ;;  %v421_v30 = vld [vmem:[%s4711_s1 + $0xc30] sm:$0xff] }
  0x87   :  { %1003 = vmatmul.mubr.f32.vlgmr.msra.gmra.mxu1 %v3185_v21  ;;  %1010 = vmatpush1.msra.mxu0 %v460_v32  ;;  %v517_v31 = vld [vmem:[%s4711_s1 + $0xf30] sm:$0xff]  ;;  %v419_v32 = vld [vmem:[%s4711_s1 + $0xc20] sm:$0xff] }
  0x88   :  { %1081 = vmatpush1.msra.mxu1 %v556_v33  ;;  %1011 = vmatprep.subr.mxu0 %v458_v34  ;;  %v515_v33 = vld [vmem:[%s4711_s1 + $0xf20] sm:$0xff]  ;;  %v418_v34 = vld [vmem:[%s4711_s1 + $0xc18] sm:$0xff] }
  0x89   :  { %1082 = vmatprep.subr.mxu1 %v554_v35  ;;  %1012 = vmatpush1.msra.mxu0 %v457_v36  ;;  %v514_v35 = vld [vmem:[%s4711_s1 + $0xf18] sm:$0xff]  ;;  %v416_v36 = vld [vmem:[%s4711_s1 + $0xc08] sm:$0xff] }
  0x8a   :  { %1083 = vmatpush1.msra.mxu1 %v553_v37  ;;  %1013 = vmatprep.subr.mxu0 %v455_v38  ;;  %v512_v37 = vld [vmem:[%s4711_s1 + $0xf08] sm:$0xff]  ;;  %v415_v38 = vld [vmem:[%s4711_s1 + $0xc00] sm:$0xff] }
  0x8b   :  { %1084 = vmatprep.subr.mxu1 %v551_v39  ;;  %1014 = vmatpush1.msra.mxu0 %v454_v40  ;;  %v511_v39 = vld [vmem:[%s4711_s1 + $0xf00] sm:$0xff]  ;;  %v509_v40 = vld [vmem:[%s4711_s1 + $0xef0] sm:$0xff] }
  0x8c   :  { %1085 = vmatpush1.msra.mxu1 %v550_v42  ;;  %1015 = vmatprep.subr.mxu0 %v452_v43  ;;  %v605_v42 = vld [vmem:[%s4711_s1 + $0x11f0] sm:$0xff]  ;;  %v508_v43 = vld [vmem:[%s4711_s1 + $0xee8] sm:$0xff] }
  0x8d   :  { %1086 = vmatprep.subr.mxu1 %v548_v44  ;;  %1016 = vmatpush1.msra.mxu0 %v451_v45  ;;  %v604_v44 = vld [vmem:[%s4711_s1 + $0x11e8] sm:$0xff]  ;;  %v506_v45 = vld [vmem:[%s4711_s1 + $0xed8] sm:$0xff] }
  0x8e   :  { %1087 = vmatpush1.msra.mxu1 %v547_v46  ;;  %1017 = vmatprep.subr.mxu0 %v449_v47  ;;  %v602_v46 = vld [vmem:[%s4711_s1 + $0x11d8] sm:$0xff]  ;;  %v505_v47 = vld [vmem:[%s4711_s1 + $0xed0] sm:$0xff] }
  0x8f   :  { %1088 = vmatprep.subr.mxu1 %v545_v48  ;;  %1018 = vmatpush1.msra.mxu0 %v448_v49  ;;  %v601_v48 = vld [vmem:[%s4711_s1 + $0x11d0] sm:$0xff]  ;;  %v503_v49 = vld [vmem:[%s4711_s1 + $0xec0] sm:$0xff] }
  0x90   :  { %1089 = vmatpush1.msra.mxu1 %v544_v50  ;;  %1019 = vmatprep.subr.mxu0 %v446_v51  ;;  %v599_v50 = vld [vmem:[%s4711_s1 + $0x11c0] sm:$0xff]  ;;  %v502_v51 = vld [vmem:[%s4711_s1 + $0xeb8] sm:$0xff] }
  0x91   :  { %1090 = vmatprep.subr.mxu1 %v542_v53  ;;  %1020 = vmatpush1.msra.mxu0 %v445_v54  ;;  %v598_v53 = vld [vmem:[%s4711_s1 + $0x11b8] sm:$0xff]  ;;  %v500_v54 = vld [vmem:[%s4711_s1 + $0xea8] sm:$0xff] }
  0x92   :  { %1091 = vmatpush1.msra.mxu1 %v541_v55  ;;  %1021 = vmatprep.subr.mxu0 %v443_v56  ;;  %v596_v55 = vld [vmem:[%s4711_s1 + $0x11a8] sm:$0xff]  ;;  %v499_v56 = vld [vmem:[%s4711_s1 + $0xea0] sm:$0xff] }
  0x93   :  { %1092 = vmatprep.subr.mxu1 %v539_v57  ;;  %1022 = vmatpush1.msra.mxu0 %v442_v58  ;;  %v595_v57 = vld [vmem:[%s4711_s1 + $0x11a0] sm:$0xff]  ;;  %v497_v58 = vld [vmem:[%s4711_s1 + $0xe90] sm:$0xff] }
  0x94   :  { %1093 = vmatpush1.msra.mxu1 %v538_v59  ;;  %1023 = vmatprep.subr.mxu0 %v440_v60  ;;  %v593_v59 = vld [vmem:[%s4711_s1 + $0x1190] sm:$0xff]  ;;  %v496_v60 = vld [vmem:[%s4711_s1 + $0xe88] sm:$0xff] }
  0x95   :  { %1094 = vmatprep.subr.mxu1 %v536_v61  ;;  %1024 = vmatpush1.msra.mxu0 %v439_v63  ;;  %v592_v61 = vld [vmem:[%s4711_s1 + $0x1188] sm:$0xff]  ;;  %v494_v63 = vld [vmem:[%s4711_s1 + $0xe78] sm:$0xff] }
  0x96   :  { %1095 = vmatpush1.msra.mxu1 %v535_v0  ;;  %1025 = vmatprep.subr.mxu0 %v437_v1  ;;  %v590_v0 = vld [vmem:[%s4711_s1 + $0x1178] sm:$0xff]  ;;  %v493_v1 = vld [vmem:[%s4711_s1 + $0xe70] sm:$0xff] }
  0x97   :  { %1096 = vmatprep.subr.mxu1 %v533_v2  ;;  %1026 = vmatpush1.msra.mxu0 %v436_v4  ;;  %v589_v2 = vld [vmem:[%s4711_s1 + $0x1170] sm:$0xff]  ;;  %v491_v4 = vld [vmem:[%s4711_s1 + $0xe60] sm:$0xff] }
  0x98   :  { %1097 = vmatpush1.msra.mxu1 %v532_v5  ;;  %1027 = vmatprep.subr.mxu0 %v434_v6  ;;  %v587_v5 = vld [vmem:[%s4711_s1 + $0x1160] sm:$0xff]  ;;  %v490_v6 = vld [vmem:[%s4711_s1 + $0xe58] sm:$0xff] }
  0x99   :  { %1098 = vmatprep.subr.mxu1 %v530_v7  ;;  %1028 = vmatpush1.msra.mxu0 %v433_v9  ;;  %v586_v7 = vld [vmem:[%s4711_s1 + $0x1158] sm:$0xff]  ;;  %v488_v9 = vld [vmem:[%s4711_s1 + $0xe48] sm:$0xff] }
  0x9a   :  { %1099 = vmatpush1.msra.mxu1 %v529_v10  ;;  %1029 = vmatprep.subr.mxu0 %v431_v12  ;;  %v584_v10 = vld [vmem:[%s4711_s1 + $0x1148] sm:$0xff]  ;;  %v487_v12 = vld [vmem:[%s4711_s1 + $0xe40] sm:$0xff] }
  0x9b   :  { %1100 = vmatprep.subr.mxu1 %v527_v13  ;;  %1030 = vmatpush1.msra.mxu0 %v430_v14  ;;  %v583_v13 = vld [vmem:[%s4711_s1 + $0x1140] sm:$0xff]  ;;  %v485_v14 = vld [vmem:[%s4711_s1 + $0xe30] sm:$0xff] }
  0x9c   :  { %1101 = vmatpush1.msra.mxu1 %v526_v15  ;;  %1031 = vmatprep.subr.mxu0 %v428_v17  ;;  %v581_v15 = vld [vmem:[%s4711_s1 + $0x1130] sm:$0xff]  ;;  %v484_v17 = vld [vmem:[%s4711_s1 + $0xe28] sm:$0xff] }
  0x9d   :  { %1102 = vmatprep.subr.mxu1 %v524_v18  ;;  %1032 = vmatpush1.msra.mxu0 %v427_v19  ;;  %v580_v18 = vld [vmem:[%s4711_s1 + $0x1128] sm:$0xff]  ;;  %v482_v19 = vld [vmem:[%s4711_s1 + $0xe18] sm:$0xff] }
  0x9e   :  { %1103 = vmatpush1.msra.mxu1 %v523_v20  ;;  %1033 = vmatprep.subr.mxu0 %v425_v22  ;;  %v578_v20 = vld [vmem:[%s4711_s1 + $0x1118] sm:$0xff]  ;;  %v481_v22 = vld [vmem:[%s4711_s1 + $0xe10] sm:$0xff] }
  0x9f   :  { %1104 = vmatprep.subr.mxu1 %v521_v23  ;;  %1034 = vmatpush1.msra.mxu0 %v424_v24  ;;  %v577_v23 = vld [vmem:[%s4711_s1 + $0x1110] sm:$0xff]  ;;  %v479_v24 = vld [vmem:[%s4711_s1 + $0xe00] sm:$0xff] }
  0xa0   :  { %1105 = vmatpush1.msra.mxu1 %v520_v25  ;;  %1035 = vmatprep.subr.mxu0 %v422_v27  ;;  %v575_v25 = vld [vmem:[%s4711_s1 + $0x1100] sm:$0xff]  ;;  %v478_v27 = vld [vmem:[%s4711_s1 + $0xdf8] sm:$0xff] }
  0xa1   :  { %1106 = vmatprep.subr.mxu1 %v518_v28  ;;  %1036 = vmatpush1.msra.mxu0 %v421_v30  ;;  %v574_v28 = vld [vmem:[%s4711_s1 + $0x10f8] sm:$0xff]  ;;  %v29_v30 = vld [vmem:[%s4710_s0 + $0x10] sm:$0xff] }
  0xa2   :  { %1107 = vmatpush1.msra.mxu1 %v517_v31  ;;  %1037 = vmatprep.subr.mxu0 %v419_v32  ;;  %v476_v31 = vld [vmem:[%s4711_s1 + $0xde8] sm:$0xff] }
  0xa3   :  { %1108 = vmatprep.subr.mxu1 %v515_v33  ;;  %1038 = vmatpush1.msra.mxu0 %v418_v34  ;;  %v572_v32 = vld [vmem:[%s4711_s1 + $0x10e8] sm:$0xff]  ;;  %v475_v33 = vld [vmem:[%s4711_s1 + $0xde0] sm:$0xff] }
  0xa4   :  { %1109 = vmatpush1.msra.mxu1 %v514_v35  ;;  %1039 = vmatprep.subr.mxu0 %v416_v36  ;;  %v571_v34 = vld [vmem:[%s4711_s1 + $0x10e0] sm:$0xff]  ;;  %v473_v35 = vld [vmem:[%s4711_s1 + $0xdd0] sm:$0xff] }
  0xa5   :  { %1110 = vmatprep.subr.mxu1 %v512_v37  ;;  %1040 = vmatpush1.msra.mxu0 %v415_v38  ;;  %v569_v36 = vld [vmem:[%s4711_s1 + $0x10d0] sm:$0xff]  ;;  %v686_v37 = vcombine.high %v29_v30, %v29_v30  ;;  %v472_v38 = vld [vmem:[%s4711_s1 + $0xdc8] sm:$0xff] }
  0xa6   :  { %1111 = vmatpush1.msra.mxu1 %v511_v39  ;;  %1041 = vmatprep.subr.mxu0 %v509_v40  ;;  %v568_v39 = vld [vmem:[%s4711_s1 + $0x10c8] sm:$0xff]  ;;  %v470_v40 = vld [vmem:[%s4711_s1 + $0xdb8] sm:$0xff] }
  0xa7   :  { %1112 = vmatprep.subr.mxu1 %v605_v42  ;;  %1042 = vmatpush2.msra.mxu0 %v508_v43  ;;  %v566_v42 = vld [vmem:[%s4711_s1 + $0x10b8] sm:$0xff]  ;;  %v3575_v43 = vrot.slane %v29_v30, %v2738_v52 }
  0xa8   :  { %1113 = vmatpush2.msra.mxu1 %v604_v44  ;;  %1043 = vmatprep.subr.mxu0 %v506_v45  ;;  %v469_v44 = vld [vmem:[%s4711_s1 + $0xdb0] sm:$0xff] }
  0xa9   :  { %1114 = vmatprep.subr.mxu1 %v602_v46  ;;  %1044 = vmatpush2.msra.mxu0 %v505_v47  ;;  %v565_v45 = vld [vmem:[%s4711_s1 + $0x10b0] sm:$0xff]  ;;  %v467_v46 = vld [vmem:[%s4711_s1 + $0xda0] sm:$0xff] }
  0xaa   :  { %1115 = vmatpush2.msra.mxu1 %v601_v48  ;;  %1045 = vmatprep.subr.mxu0 %v503_v49  ;;  %v563_v47 = vld [vmem:[%s4711_s1 + $0x10a0] sm:$0xff]  ;;  %v3590_v48 = vrot.slane %v686_v37, %v2738_v52  ;;  %v466_v49 = vld [vmem:[%s4711_s1 + $0xd98] sm:$0xff]  ;;  %v560_v52 = vld [vmem:[%s4711_s1 + $0x1088] sm:$0xff] }
  0xab   :  { %1116 = vmatprep.subr.mxu1 %v599_v50  ;;  %1046 = vmatpush2.msra.mxu0 %v502_v51  ;;  %v562_v50 = vld [vmem:[%s4711_s1 + $0x1098] sm:$0xff]  ;;  %v464_v51 = vld [vmem:[%s4711_s1 + $0xd88] sm:$0xff] }
  0xac   :  { %1117 = vmatpush2.msra.mxu1 %v598_v53  ;;  %1047 = vmatprep.subr.mxu0 %v500_v54  ;;  %v3606_v53 = vcombine.high %v3575_v43, %v3575_v43  ;;  %v463_v54 = vld [vmem:[%s4711_s1 + $0xd80] sm:$0xff] }
  0xad   :  { %1118 = vmatprep.subr.mxu1 %v596_v55  ;;  %1048 = vmatpush2.msra.mxu0 %v499_v56  ;;  %v559_v55 = vld [vmem:[%s4711_s1 + $0x1080] sm:$0xff]  ;;  %v3616_v56 = vcombine.high %v3590_v48, %v3590_v48 }
  0xae   :  { %1119 = vmatpush2.msra.mxu1 %v595_v57  ;;  %1049 = vmatprep.subr.mxu0 %v497_v58  ;;  %v629_v57 = vld [vmem:[%s4711_s1 + $0x12b0] sm:$0xff]  ;;  %v126_v58 = vld [vmem:[%s4711_s1 + $0x2f8] sm:$0xff] }
  0xaf   :  { %1120 = vmatprep.subr.mxu1 %v593_v59  ;;  %1050 = vmatpush2.msra.mxu0 %v496_v60  ;;  %v628_v59 = vld [vmem:[%s4711_s1 + $0x12a8] sm:$0xff]  ;;  %v78_v60 = vld [vmem:[%s4711_s1 + $0x178] sm:$0xff] }
  0xb0   :  { %1121 = vmatpush2.msra.mxu1 %v592_v61  ;;  %1051 = vmatprep.subr.mxu0 %v494_v63  ;;  %v626_v61 = vld [vmem:[%s4711_s1 + $0x1298] sm:$0xff]  ;;  %v123_v63 = vld [vmem:[%s4711_s1 + $0x2e0] sm:$0xff] }
  0xb1   :  { %1122 = vmatprep.subr.mxu1 %v590_v0  ;;  %1052 = vmatpush2.msra.mxu0 %v493_v1  ;;  %v625_v0 = vld [vmem:[%s4711_s1 + $0x1290] sm:$0xff]  ;;  %v75_v1 = vld [vmem:[%s4711_s1 + $0x160] sm:$0xff] }
  0xb2   :  { %1123 = vmatpush2.msra.mxu1 %v589_v2  ;;  %1053 = vmatprep.subr.mxu0 %v491_v4  ;;  %v623_v2 = vld [vmem:[%s4711_s1 + $0x1280] sm:$0xff]  ;;  %v120_v4 = vld [vmem:[%s4711_s1 + $0x2c8] sm:$0xff] }
  0xb3   :  { %1124 = vmatprep.subr.mxu1 %v587_v5  ;;  %1054 = vmatpush2.msra.mxu0 %v490_v6  ;;  %v622_v5 = vld [vmem:[%s4711_s1 + $0x1278] sm:$0xff]  ;;  %v72_v6 = vld [vmem:[%s4711_s1 + $0x148] sm:$0xff] }
  0xb4   :  { %1125 = vmatpush2.msra.mxu1 %v586_v7  ;;  %1055 = vmatprep.subr.mxu0 %v488_v9  ;;  %v620_v7 = vld [vmem:[%s4711_s1 + $0x1268] sm:$0xff]  ;;  %v117_v9 = vld [vmem:[%s4711_s1 + $0x2b0] sm:$0xff] }
  0xb5   :  { %1126 = vmatprep.subr.mxu1 %v584_v10  ;;  %1056 = vmatpush2.msra.mxu0 %v487_v12  ;;  %v619_v10 = vld [vmem:[%s4711_s1 + $0x1260] sm:$0xff]  ;;  %v69_v12 = vld [vmem:[%s4711_s1 + $0x130] sm:$0xff] }
  0xb6   :  { %1127 = vmatpush2.msra.mxu1 %v583_v13  ;;  %1057 = vmatprep.subr.mxu0 %v485_v14  ;;  %v617_v13 = vld [vmem:[%s4711_s1 + $0x1250] sm:$0xff]  ;;  %v114_v14 = vld [vmem:[%s4711_s1 + $0x298] sm:$0xff] }
  0xb7   :  { %1128 = vmatprep.subr.mxu1 %v581_v15  ;;  %1058 = vmatpush2.msra.mxu0 %v484_v17  ;;  %v616_v15 = vld [vmem:[%s4711_s1 + $0x1248] sm:$0xff]  ;;  %v66_v17 = vld [vmem:[%s4711_s1 + $0x118] sm:$0xff] }
  0xb8   :  { %1129 = vmatpush2.msra.mxu1 %v580_v18  ;;  %1059 = vmatprep.subr.mxu0 %v482_v19  ;;  %v614_v18 = vld [vmem:[%s4711_s1 + $0x1238] sm:$0xff]  ;;  %v111_v19 = vld [vmem:[%s4711_s1 + $0x280] sm:$0xff] }
  0xb9   :  { %1130 = vmatprep.subr.mxu1 %v578_v20  ;;  %1060 = vmatpush2.msra.mxu0 %v481_v22  ;;  %v613_v20 = vld [vmem:[%s4711_s1 + $0x1230] sm:$0xff]  ;;  %v63_v22 = vld [vmem:[%s4711_s1 + $0x100] sm:$0xff] }
  0xba   :  { %1131 = vmatpush2.msra.mxu1 %v577_v23  ;;  %1061 = vmatprep.subr.mxu0 %v479_v24  ;;  %v611_v23 = vld [vmem:[%s4711_s1 + $0x1220] sm:$0xff]  ;;  %v108_v24 = vld [vmem:[%s4711_s1 + $0x268] sm:$0xff] }
  0xbb   :  { %1132 = vmatprep.subr.mxu1 %v575_v25  ;;  %1062 = vmatpush2.msra.mxu0 %v478_v27 }
  0xbc   :  { %1133 = vmatpush2.msra.mxu1 %v574_v28  ;;  %1063 = vmatprep.subr.mxu0 %v476_v31 }
  0xbd   :  { %1134 = vmatprep.subr.mxu1 %v572_v32  ;;  %1064 = vmatpush2.msra.mxu0 %v475_v33 }
  0xbe   :  { %1135 = vmatpush2.msra.mxu1 %v571_v34  ;;  %1065 = vmatprep.subr.mxu0 %v473_v35 }
  0xbf   :  { %1136 = vmatprep.subr.mxu1 %v569_v36  ;;  %1066 = vmatpush2.msra.mxu0 %v472_v38 }
  0xc0   :  { %1137 = vmatpush2.msra.mxu1 %v568_v39  ;;  %1067 = vmatprep.subr.mxu0 %v470_v40 }
  0xc1   :  { %1138 = vmatprep.subr.mxu1 %v566_v42  ;;  %1068 = vmatpush2.msra.mxu0 %v469_v44 }
  0xc2   :  { %1139 = vmatpush2.msra.mxu1 %v565_v45  ;;  %1069 = vmatprep.subr.mxu0 %v467_v46 }
  0xc3   :  { %1140 = vmatprep.subr.mxu1 %v563_v47  ;;  %1070 = vmatpush2.msra.mxu0 %v466_v49 }
  0xc4   :  { %1141 = vmatpush2.msra.mxu1 %v562_v50  ;;  %1071 = vmatprep.subr.mxu0 %v464_v51 }
  0xc5   :  { %1142 = vmatprep.subr.mxu1 %v560_v52  ;;  %1072 = vmatpush2.msra.mxu0 %v463_v54 }
  0xc6   :  { %1073 = vmatprep.mubr.f32.mxu0 %v3606_v53  ;;  %1143 = vmatpush2.msra.mxu1 %v559_v55 }
  0xc7   :  { %1074 = vmatmul.mubr.f32.vlgmr.msra.gmra.mxu0 %v3575_v43  ;;  %1144 = vmatprep.mubr.f32.mxu1 %v3616_v56 }
  0xc8   :  { %1167 = vmatprep.subr.mxu0 %v629_v57  ;;  %2091 = vmatprep.subr.mxu1 %v126_v58 }
  0xc9   :  { %1145 = vmatmul.mubr.f32.vlgmr.msra.gmra.mxu1 %v3590_v48  ;;  %1168 = vmatpush1.msra.mxu0 %v628_v59 }
  0xca   :  { %2092 = vmatpush3.msra.mxu1 %v78_v60  ;;  %1169 = vmatprep.subr.mxu0 %v626_v61 }
  0xcb   :  { %2093 = vmatprep.subr.mxu1 %v123_v63  ;;  %1170 = vmatpush1.msra.mxu0 %v625_v0 }
  0xcc   :  { %2094 = vmatpush3.msra.mxu1 %v75_v1  ;;  %1171 = vmatprep.subr.mxu0 %v623_v2 }
  0xcd   :  { %2095 = vmatprep.subr.mxu1 %v120_v4  ;;  %1172 = vmatpush1.msra.mxu0 %v622_v5 }
  0xce   :  { %2096 = vmatpush3.msra.mxu1 %v72_v6  ;;  %1173 = vmatprep.subr.mxu0 %v620_v7 }
  0xcf   :  { %2097 = vmatprep.subr.mxu1 %v117_v9  ;;  %1174 = vmatpush1.msra.mxu0 %v619_v10 }
  0xd0   :  { %2098 = vmatpush3.msra.mxu1 %v69_v12  ;;  %1175 = vmatprep.subr.mxu0 %v617_v13 }
  0xd1   :  { %2099 = vmatprep.subr.mxu1 %v114_v14  ;;  %1176 = vmatpush1.msra.mxu0 %v616_v15 }
  0xd2   :  { %2100 = vmatpush3.msra.mxu1 %v66_v17 }
  0xd3   :  { %12 = vsyncpa [#allocation3], 0  ;;  %1177 = vmatprep.subr.mxu0 %v614_v18  ;;  %2101 = vmatprep.subr.mxu1 %v111_v19  ;;  %v610_v25 = vld [vmem:[%s4711_s1 + $0x1218] sm:$0xff]  ;;  %v60_v27 = vld [vmem:[%s4711_s1 + $0xe8] sm:$0xff]  ;;  %vm722_vm0 = vcmask 523264   ;;  %v2359_v36 = vmov 0.0  }
  0xd4   :  { %1178 = vmatpush1.msra.mxu0 %v613_v20  ;;  %2102 = vmatpush3.msra.mxu1 %v63_v22  ;;  %v608_v28 = vld [vmem:[%s4711_s1 + $0x1208] sm:$0xff]  ;;  %v105_v30 = vld [vmem:[%s4711_s1 + $0x250] sm:$0xff]  ;;  %v607_v31 = vld [vmem:[%s4711_s1 + $0x1200] sm:$0xff]  ;;  %vm2360_vm1 = vmmov 0   ;;  %s2361_s10 = smov [#allocation2]  }
  0xd5   :  { %1179 = vmatprep.subr.mxu0 %v611_v23  ;;  %2103 = vmatprep.subr.mxu1 %v108_v24  ;;  %v57_v32 = vld [vmem:[%s4711_s1 + $0xd0] sm:$0xff]  ;;  %v3721_v33 = vld.sshfl [vmem:[%s4710_s0 + $0x18] sm:$0x3 pattern:$0x76325410]  ;;  %v99_v39 = vld [vmem:[%s4711_s1 + $0x220] sm:$0xff] }
  0xd6   :  { %1180 = vmatpush1.msra.mxu0 %v610_v25  ;;  %2104 = vmatpush3.msra.mxu1 %v60_v27  ;;  %v102_v34 = vld [vmem:[%s4711_s1 + $0x238] sm:$0xff]  ;;  %v219_v40 = vld [vmem:[%s4711_s1 + $0x5e0] sm:$0xff]  ;;  %v96_v45 = vld [vmem:[%s4711_s1 + $0x208] sm:$0xff]  ;;  %s2078_s11 = sshll.u32 %s2361_s10, 4  ;;  %s2079_s11 = int_to_ptr.vmem [resolvable:$true] %s2078_s11 }
  0xd7   :  { %1181 = vmatprep.subr.mxu0 %v608_v28  ;;  %2105 = vmatprep.subr.mxu1 %v105_v30  ;;  %v222_v35 = vld [vmem:[%s4711_s1 + $0x5f8] sm:$0xff]  ;;  %v51_v42 = vld [vmem:[%s4711_s1 + $0xa0] sm:$0xff]  ;;  %v216_v46 = vld [vmem:[%s4711_s1 + $0x5c8] sm:$0xff]  ;;  %s2336_s12 = scalar_lea.vmem %s2079_s11, 32  ;;  %p2341_p1 = scmp.lt.s32.totalorder %s2079_s11, %s2079_s11 }
  0xd8   :  { %1182 = vmatpush1.msra.mxu0 %v607_v31  ;;  %1215 = vmatprep.mubr.f32.mxu0 %v2359_v36  ;;  %v54_v37 = vld [vmem:[%s4711_s1 + $0xb8] sm:$0xff]  ;;  %v171_v44 = vld [vmem:[%s4711_s1 + $0x460] sm:$0xff]  ;;  %v48_v47 = vld [vmem:[%s4711_s1 + $0x88] sm:$0xff]  ;;  %p2337_p0 = scmp.ne.s32.totalorder %s2079_s11, %s2336_s12  ;;  %p2342_p2 = scmp.lt.s32.totalorder %s2336_s12, %s2336_s12 }
  0xd9   :  { %v174_v38 = vld [vmem:[%s4711_s1 + $0x478] sm:$0xff]  ;;  %2106 = vmatpush3.msra.mxu1 %v57_v32  ;;  %2087 = vmatmul.mubr.msk.f32.vlgmr.msra.gmra.mxu0 %vm722_vm0, %v3721_v33  ;;  %v168_v49 = vld [vmem:[%s4711_s1 + $0x448] sm:$0xff]  ;;  %v93_v50 = vld [vmem:[%s4711_s1 + $0x1f0] sm:$0xff] }
  0xda   :  { %2107 = vmatprep.subr.mxu1 %v102_v34  ;;  %2126 = vmatprep.subr.mxu0 %v222_v35  ;;  %v213_v51 = vld [vmem:[%s4711_s1 + $0x5b0] sm:$0xff]  ;;  %v90_v55 = vld [vmem:[%s4711_s1 + $0x1d8] sm:$0xff]  ;;  %v87_v60 = vld [vmem:[%s4711_s1 + $0x1c0] sm:$0xff]  ;;  %p2343_p3 = por %p2342_p2, %p2341_p1 }
  0xdb   :  { %2108 = vmatpush3.msra.mxu1 %v54_v37  ;;  %2127 = vmatpush3.msra.mxu0 %v174_v38  ;;  %v45_v52 = vld [vmem:[%s4711_s1 + $0x70] sm:$0xff]  ;;  %v210_v57 = vld [vmem:[%s4711_s1 + $0x598] sm:$0xff]  ;;  %v207_v61 = vld [vmem:[%s4711_s1 + $0x580] sm:$0xff] }
  0xdc   :  { %2109 = vmatprep.subr.mxu1 %v99_v39  ;;  %2128 = vmatprep.subr.mxu0 %v219_v40  ;;  %v165_v54 = vld [vmem:[%s4711_s1 + $0x430] sm:$0xff]  ;;  %v42_v58 = vld [vmem:[%s4711_s1 + $0x58] sm:$0xff]  ;;  %v39_v63 = vld [vmem:[%s4711_s1 + $0x40] sm:$0xff]  ;;  %p2344_p4 = pnand %p2343_p3, %p2337_p0 }
  0xdd   :  { %2110 = vmatpush3.msra.mxu1 %v51_v42  ;;  %2129 = vmatpush3.msra.mxu0 %v171_v44  ;;  %v162_v59 = vld [vmem:[%s4711_s1 + $0x418] sm:$0xff]  ;;  %v159_v0 = vld [vmem:[%s4711_s1 + $0x400] sm:$0xff]  ;;  %v84_v1 = vld [vmem:[%s4711_s1 + $0x1a8] sm:$0xff] }
  0xde   :  { %2111 = vmatprep.subr.mxu1 %v96_v45  ;;  %2130 = vmatprep.subr.mxu0 %v216_v46  ;;  %v204_v2 = vld [vmem:[%s4711_s1 + $0x568] sm:$0xff]  ;;  %v81_v6 = vld [vmem:[%s4711_s1 + $0x190] sm:$0xff]  ;;  %v198_v12 = vld [vmem:[%s4711_s1 + $0x538] sm:$0xff] }
  0xdf   :  { %2112 = vmatpush3.msra.mxu1 %v48_v47  ;;  %2131 = vmatpush3.msra.mxu0 %v168_v49  ;;  %v36_v4 = vld [vmem:[%s4711_s1 + $0x28] sm:$0xff]  ;;  %v201_v7 = vld [vmem:[%s4711_s1 + $0x550] sm:$0xff]  ;;  %v318_v13 = vld [vmem:[%s4711_s1 + $0x8f8] sm:$0xff] }
  0xe0   :  { %2113 = vmatprep.subr.mxu1 %v93_v50  ;;  %2132 = vmatprep.subr.mxu0 %v213_v51  ;;  %v156_v5 = vld [vmem:[%s4711_s1 + $0x3e8] sm:$0xff]  ;;  %v33_v9 = vld [vmem:[%s4711_s1 + $0x10] sm:$0xff]  ;;  %v150_v14 = vld [vmem:[%s4711_s1 + $0x3b8] sm:$0xff] }
  0xe1   :  { %2114 = vmatpush3.msra.mxu1 %v45_v52  ;;  %2133 = vmatpush3.msra.mxu0 %v165_v54  ;;  %v153_v10 = vld [vmem:[%s4711_s1 + $0x3d0] sm:$0xff]  ;;  %v270_v15 = vld [vmem:[%s4711_s1 + $0x778] sm:$0xff]  ;;  %v195_v17 = vld [vmem:[%s4711_s1 + $0x520] sm:$0xff] }
  0xe2   :  { %2115 = vmatprep.subr.mxu1 %v90_v55  ;;  %2134 = vmatprep.subr.mxu0 %v210_v57  ;;  %v315_v18 = vld [vmem:[%s4711_s1 + $0x8e0] sm:$0xff]  ;;  %v192_v20 = vld [vmem:[%s4711_s1 + $0x508] sm:$0xff]  ;;  %v189_v24 = vld [vmem:[%s4711_s1 + $0x4f0] sm:$0xff] }
  0xe3   :  { %2116 = vmatpush3.msra.mxu1 %v42_v58  ;;  %2135 = vmatpush3.msra.mxu0 %v162_v59  ;;  %v147_v19 = vld [vmem:[%s4711_s1 + $0x3a0] sm:$0xff]  ;;  %v312_v22 = vld [vmem:[%s4711_s1 + $0x8c8] sm:$0xff]  ;;  %v309_v25 = vld [vmem:[%s4711_s1 + $0x8b0] sm:$0xff] }
  0xe4   :  { %2117 = vmatprep.subr.mxu1 %v87_v60  ;;  %2136 = vmatprep.subr.mxu0 %v207_v61  ;;  %v264_v23 = vld [vmem:[%s4711_s1 + $0x748] sm:$0xff]  ;;  %v141_v27 = vld [vmem:[%s4711_s1 + $0x370] sm:$0xff]  ;;  %v186_v30 = vld [vmem:[%s4711_s1 + $0x4d8] sm:$0xff] }
  0xe5   :  { %2118 = vmatpush3.msra.mxu1 %v39_v63  ;;  %2137 = vmatpush3.msra.mxu0 %v159_v0  ;;  %v261_v28 = vld [vmem:[%s4711_s1 + $0x730] sm:$0xff]  ;;  %v306_v31 = vld [vmem:[%s4711_s1 + $0x898] sm:$0xff]  ;;  %v183_v35 = vld [vmem:[%s4711_s1 + $0x4c0] sm:$0xff] }
  0xe6   :  { %2119 = vmatprep.subr.mxu1 %v84_v1  ;;  %2138 = vmatprep.subr.mxu0 %v204_v2  ;;  %v138_v32 = vld [vmem:[%s4711_s1 + $0x358] sm:$0xff]  ;;  %v303_v37 = vld [vmem:[%s4711_s1 + $0x880] sm:$0xff]  ;;  %v180_v40 = vld [vmem:[%s4711_s1 + $0x4a8] sm:$0xff] }
  0xe7   :  { %2120 = vmatpush3.msra.mxu1 %v36_v4  ;;  %2139 = vmatpush3.msra.mxu0 %v156_v5  ;;  %v258_v34 = vld [vmem:[%s4711_s1 + $0x718] sm:$0xff]  ;;  %v135_v38 = vld [vmem:[%s4711_s1 + $0x340] sm:$0xff]  ;;  %v300_v42 = vld [vmem:[%s4711_s1 + $0x868] sm:$0xff] }
  0xe8   :  { %2121 = vmatprep.subr.mxu1 %v81_v6  ;;  %2140 = vmatprep.subr.mxu0 %v201_v7  ;;  %v255_v39 = vld [vmem:[%s4711_s1 + $0x700] sm:$0xff]  ;;  %v132_v44 = vld [vmem:[%s4711_s1 + $0x328] sm:$0xff]  ;;  %v177_v46 = vld [vmem:[%s4711_s1 + $0x490] sm:$0xff] }
  0xe9   :  { %2122 = vmatpush3.msra.mxu1 %v33_v9  ;;  %2141 = vmatpush3.msra.mxu0 %v153_v10  ;;  %v252_v45 = vld [vmem:[%s4711_s1 + $0x6e8] sm:$0xff]  ;;  %v297_v47 = vld [vmem:[%s4711_s1 + $0x850] sm:$0xff]  ;;  %v294_v51 = vld [vmem:[%s4711_s1 + $0x838] sm:$0xff] }
  0xea   :  { %1286 = vmatprep.mubr.f32.mxu1 %v2796_v8  ;;  %2142 = vmatprep.subr.mxu0 %v198_v12  ;;  %v267_v8 = vld [vmem:[%s4711_s1 + $0x760] sm:$0xff]  ;;  %v129_v49 = vld [vmem:[%s4711_s1 + $0x310] sm:$0xff]  ;;  %v414_v52 = vld [vmem:[%s4711_s1 + $0xbf8] sm:$0xff] }
  0xeb   :  { %2161 = vmatprep.subr.mxu1 %v318_v13  ;;  %1287 = vmatmul.mubr.f32.vlgmr.msra.gmra.mxu1 %v2765_v62  ;;  %v144_v62 = vld [vmem:[%s4711_s1 + $0x388] sm:$0xff]  ;;  %v249_v50 = vld [vmem:[%s4711_s1 + $0x6d0] sm:$0xff]  ;;  %v246_v54 = vld [vmem:[%s4711_s1 + $0x6b8] sm:$0xff] }
  0xec   :  { %2143 = vmatpush3.msra.mxu0 %v150_v14  ;;  %2162 = vmatpush3.msra.mxu1 %v270_v15  ;;  %v366_v55 = vld [vmem:[%s4711_s1 + $0xa78] sm:$0xff]  ;;  %v291_v57 = vld [vmem:[%s4711_s1 + $0x820] sm:$0xff]  ;;  %v408_v60 = vld [vmem:[%s4711_s1 + $0xbc8] sm:$0xff] }
  0xed   :  { %2144 = vmatprep.subr.mxu0 %v195_v17  ;;  %2163 = vmatprep.subr.mxu1 %v315_v18  ;;  %v411_v58 = vld [vmem:[%s4711_s1 + $0xbe0] sm:$0xff]  ;;  %v240_v61 = vld [vmem:[%s4711_s1 + $0x688] sm:$0xff]  ;;  %v285_v0 = vld [vmem:[%s4711_s1 + $0x7f0] sm:$0xff] }
  0xee   :  { %2145 = vmatpush3.msra.mxu0 %v147_v19  ;;  %2164 = vmatpush3.msra.mxu1 %v267_v8  ;;  %v363_v59 = vld [vmem:[%s4711_s1 + $0xa60] sm:$0xff]  ;;  %v360_v63 = vld [vmem:[%s4711_s1 + $0xa48] sm:$0xff]  ;;  %v405_v1 = vld [vmem:[%s4711_s1 + $0xbb0] sm:$0xff] }
  0xef   :  { %2146 = vmatprep.subr.mxu0 %v192_v20  ;;  %2165 = vmatprep.subr.mxu1 %v312_v22  ;;  %v237_v2 = vld [vmem:[%s4711_s1 + $0x670] sm:$0xff]  ;;  %v282_v5 = vld [vmem:[%s4711_s1 + $0x7d8] sm:$0xff]  ;;  %v279_v10 = vld [vmem:[%s4711_s1 + $0x7c0] sm:$0xff] }
  0xf0   :  { %2147 = vmatpush3.msra.mxu0 %v144_v62  ;;  %2166 = vmatpush3.msra.mxu1 %v264_v23  ;;  %v357_v4 = vld [vmem:[%s4711_s1 + $0xa30] sm:$0xff]  ;;  %v402_v6 = vld [vmem:[%s4711_s1 + $0xb98] sm:$0xff]  ;;  %v399_v12 = vld [vmem:[%s4711_s1 + $0xb80] sm:$0xff] }
  0xf1   :  { %2148 = vmatprep.subr.mxu0 %v189_v24  ;;  %2167 = vmatprep.subr.mxu1 %v309_v25  ;;  %v234_v7 = vld [vmem:[%s4711_s1 + $0x658] sm:$0xff]  ;;  %v231_v13 = vld [vmem:[%s4711_s1 + $0x640] sm:$0xff]  ;;  %v276_v15 = vld [vmem:[%s4711_s1 + $0x7a8] sm:$0xff] }
  0xf2   :  { %2149 = vmatpush3.msra.mxu0 %v141_v27  ;;  %2168 = vmatpush3.msra.mxu1 %v261_v28  ;;  %v354_v9 = vld [vmem:[%s4711_s1 + $0xa18] sm:$0xff]  ;;  %v351_v14 = vld [vmem:[%s4711_s1 + $0xa00] sm:$0xff]  ;;  %v396_v17 = vld [vmem:[%s4711_s1 + $0xb68] sm:$0xff] }
  0xf3   :  { %2150 = vmatprep.subr.mxu0 %v186_v30  ;;  %2169 = vmatprep.subr.mxu1 %v306_v31  ;;  %v228_v18 = vld [vmem:[%s4711_s1 + $0x628] sm:$0xff]  ;;  %v273_v8 = vld [vmem:[%s4711_s1 + $0x790] sm:$0xff]  ;;  %v390_v23 = vld [vmem:[%s4711_s1 + $0xb38] sm:$0xff] }
  0xf4   :  { %2151 = vmatpush3.msra.mxu0 %v138_v32  ;;  %2170 = vmatpush3.msra.mxu1 %v258_v34  ;;  %v348_v19 = vld [vmem:[%s4711_s1 + $0x9e8] sm:$0xff]  ;;  %v393_v20 = vld [vmem:[%s4711_s1 + $0xb50] sm:$0xff]  ;;  %v510_v24 = vld [vmem:[%s4711_s1 + $0xef8] sm:$0xff] }
  0xf5   :  { %2152 = vmatprep.subr.mxu0 %v183_v35  ;;  %2171 = vmatprep.subr.mxu1 %v303_v37  ;;  %v225_v22 = vld [vmem:[%s4711_s1 + $0x610] sm:$0xff]  ;;  %v342_v25 = vld [vmem:[%s4711_s1 + $0x9b8] sm:$0xff]  ;;  %v387_v28 = vld [vmem:[%s4711_s1 + $0xb20] sm:$0xff] }
  0xf6   :  { %2153 = vmatpush3.msra.mxu0 %v135_v38  ;;  %2172 = vmatpush3.msra.mxu1 %v255_v39  ;;  %v345_v62 = vld [vmem:[%s4711_s1 + $0x9d0] sm:$0xff]  ;;  %v462_v27 = vld [vmem:[%s4711_s1 + $0xd78] sm:$0xff]  ;;  %v507_v30 = vld [vmem:[%s4711_s1 + $0xee0] sm:$0xff] }
  0xf7   :  { %2154 = vmatprep.subr.mxu0 %v180_v40  ;;  %2173 = vmatprep.subr.mxu1 %v300_v42  ;;  %v459_v31 = vld [vmem:[%s4711_s1 + $0xd60] sm:$0xff]  ;;  %v504_v32 = vld [vmem:[%s4711_s1 + $0xec8] sm:$0xff]  ;;  %v381_v37 = vld [vmem:[%s4711_s1 + $0xaf0] sm:$0xff] }
  0xf8   :  { %2155 = vmatpush3.msra.mxu0 %v132_v44  ;;  %2174 = vmatpush3.msra.mxu1 %v252_v45  ;;  %v336_v34 = vld [vmem:[%s4711_s1 + $0x988] sm:$0xff]  ;;  %v501_v38 = vld [vmem:[%s4711_s1 + $0xeb0] sm:$0xff]  ;;  %v378_v42 = vld [vmem:[%s4711_s1 + $0xad8] sm:$0xff] }
  0xf9   :  { %2156 = vmatprep.subr.mxu0 %v177_v46  ;;  %2175 = vmatprep.subr.mxu1 %v297_v47  ;;  %v456_v35 = vld [vmem:[%s4711_s1 + $0xd48] sm:$0xff]  ;;  %v333_v39 = vld [vmem:[%s4711_s1 + $0x970] sm:$0xff]  ;;  %v498_v44 = vld [vmem:[%s4711_s1 + $0xe98] sm:$0xff] }
  0xfa   :  { %2157 = vmatpush3.msra.mxu0 %v129_v49  ;;  %1356 = vmatprep.mubr.f32.mxu0 %v2806_v11  ;;  %v243_v11 = vld [vmem:[%s4711_s1 + $0x6a0] sm:$0xff]  ;;  %v453_v40 = vld [vmem:[%s4711_s1 + $0xd30] sm:$0xff]  ;;  %v330_v45 = vld [vmem:[%s4711_s1 + $0x958] sm:$0xff] }
  0xfb   :  { %2176 = vmatpush3.msra.mxu1 %v249_v50  ;;  %1357 = vmatmul.mubr.f32.vlgmr.msra.gmra.mxu0 %v2780_v3  ;;  %v288_v3 = vld [vmem:[%s4711_s1 + $0x808] sm:$0xff]  ;;  %v450_v46 = vld [vmem:[%s4711_s1 + $0xd18] sm:$0xff]  ;;  %v375_v47 = vld [vmem:[%s4711_s1 + $0xac0] sm:$0xff] }
  0xfc   :  { %2177 = vmatprep.subr.mxu1 %v294_v51  ;;  %2196 = vmatprep.subr.mxu0 %v414_v52  ;;  %v495_v49 = vld [vmem:[%s4711_s1 + $0xe80] sm:$0xff]  ;;  %v372_v52 = vld [vmem:[%s4711_s1 + $0xaa8] sm:$0xff] }
  0xfd   :  { %2178 = vmatpush3.msra.mxu1 %v246_v54  ;;  %2197 = vmatpush3.msra.mxu0 %v366_v55  ;;  %v327_v50 = vld [vmem:[%s4711_s1 + $0x940] sm:$0xff]  ;;  %v492_v54 = vld [vmem:[%s4711_s1 + $0xe68] sm:$0xff] }
  0xfe   :  { %2179 = vmatprep.subr.mxu1 %v291_v57  ;;  %2198 = vmatprep.subr.mxu0 %v411_v58  ;;  %v447_v51 = vld [vmem:[%s4711_s1 + $0xd00] sm:$0xff]  ;;  %v324_v55 = vld [vmem:[%s4711_s1 + $0x928] sm:$0xff]  ;;  %v369_v58 = vld [vmem:[%s4711_s1 + $0xa90] sm:$0xff] }
  0xff   :  { %2180 = vmatpush3.msra.mxu1 %v243_v11  ;;  %2199 = vmatpush3.msra.mxu0 %v363_v59  ;;  %v444_v57 = vld [vmem:[%s4711_s1 + $0xce8] sm:$0xff]  ;;  %v489_v11 = vld [vmem:[%s4711_s1 + $0xe50] sm:$0xff] }
 0x100   :  { %2181 = vmatprep.subr.mxu1 %v288_v3  ;;  %2200 = vmatprep.subr.mxu0 %v408_v60  ;;  %v321_v59 = vld [vmem:[%s4711_s1 + $0x910] sm:$0xff]  ;;  %v486_v60 = vld [vmem:[%s4711_s1 + $0xe38] sm:$0xff] }
 0x101   :  { %2182 = vmatpush3.msra.mxu1 %v240_v61  ;;  %2201 = vmatpush3.msra.mxu0 %v360_v63  ;;  %v441_v3 = vld [vmem:[%s4711_s1 + $0xcd0] sm:$0xff]  ;;  %v606_v61 = vld [vmem:[%s4711_s1 + $0x11f8] sm:$0xff] }
 0x102   :  { %2183 = vmatprep.subr.mxu1 %v285_v0  ;;  %2202 = vmatprep.subr.mxu0 %v405_v1  ;;  %v438_v63 = vld [vmem:[%s4711_s1 + $0xcb8] sm:$0xff]  ;;  %v483_v1 = vld [vmem:[%s4711_s1 + $0xe20] sm:$0xff] }
 0x103   :  { %2184 = vmatpush3.msra.mxu1 %v237_v2  ;;  %2203 = vmatpush3.msra.mxu0 %v357_v4  ;;  %v558_v0 = vld [vmem:[%s4711_s1 + $0x1078] sm:$0xff]  ;;  %v603_v2 = vld [vmem:[%s4711_s1 + $0x11e0] sm:$0xff] }
 0x104   :  { %2185 = vmatprep.subr.mxu1 %v282_v5  ;;  %2204 = vmatprep.subr.mxu0 %v402_v6  ;;  %v555_v4 = vld [vmem:[%s4711_s1 + $0x1060] sm:$0xff]  ;;  %v600_v5 = vld [vmem:[%s4711_s1 + $0x11c8] sm:$0xff] }
 0x105   :  { %2186 = vmatpush3.msra.mxu1 %v234_v7  ;;  %2205 = vmatpush3.msra.mxu0 %v354_v9  ;;  %v432_v6 = vld [vmem:[%s4711_s1 + $0xc88] sm:$0xff]  ;;  %v477_v9 = vld [vmem:[%s4711_s1 + $0xdf0] sm:$0xff] }
 0x106   :  { %2187 = vmatprep.subr.mxu1 %v279_v10  ;;  %2206 = vmatprep.subr.mxu0 %v399_v12  ;;  %v552_v7 = vld [vmem:[%s4711_s1 + $0x1048] sm:$0xff]  ;;  %v597_v10 = vld [vmem:[%s4711_s1 + $0x11b0] sm:$0xff] }
 0x107   :  { %2188 = vmatpush3.msra.mxu1 %v231_v13  ;;  %2207 = vmatpush3.msra.mxu0 %v351_v14  ;;  %v429_v12 = vld [vmem:[%s4711_s1 + $0xc70] sm:$0xff]  ;;  %v474_v14 = vld [vmem:[%s4711_s1 + $0xdd8] sm:$0xff] }
 0x108   :  { %2189 = vmatprep.subr.mxu1 %v276_v15  ;;  %2208 = vmatprep.subr.mxu0 %v396_v17  ;;  %v549_v13 = vld [vmem:[%s4711_s1 + $0x1030] sm:$0xff]  ;;  %v594_v15 = vld [vmem:[%s4711_s1 + $0x1198] sm:$0xff] }
 0x109   :  { %2190 = vmatpush3.msra.mxu1 %v228_v18  ;;  %2209 = vmatpush3.msra.mxu0 %v348_v19  ;;  %v426_v17 = vld [vmem:[%s4711_s1 + $0xc58] sm:$0xff]  ;;  %v471_v19 = vld [vmem:[%s4711_s1 + $0xdc0] sm:$0xff] }
 0x10a   :  { %2191 = vmatprep.subr.mxu1 %v273_v8  ;;  %2210 = vmatprep.subr.mxu0 %v393_v20  ;;  %v546_v18 = vld [vmem:[%s4711_s1 + $0x1018] sm:$0xff]  ;;  %v591_v8 = vld [vmem:[%s4711_s1 + $0x1180] sm:$0xff] }
 0x10b   :  { %2192 = vmatpush3.msra.mxu1 %v225_v22  ;;  %1426 = vmatprep.mubr.f32.mxu1 %v3201_v26  ;;  %v339_v26 = vld [vmem:[%s4711_s1 + $0x9a0] sm:$0xff] }
 0x10c   :  { %2211 = vmatpush3.msra.mxu0 %v345_v62  ;;  %1427 = vmatmul.mubr.f32.vlgmr.msra.gmra.mxu1 %v3170_v16  ;;  %v384_v16 = vld [vmem:[%s4711_s1 + $0xb08] sm:$0xff]  ;;  %v423_v20 = vld [vmem:[%s4711_s1 + $0xc40] sm:$0xff] }
 0x10d   :  { %2212 = vmatprep.subr.mxu0 %v390_v23  ;;  %2231 = vmatprep.subr.mxu1 %v510_v24  ;;  %v543_v22 = vld [vmem:[%s4711_s1 + $0x1000] sm:$0xff]  ;;  %v468_v62 = vld [vmem:[%s4711_s1 + $0xda8] sm:$0xff] }
 0x10e   :  { %2213 = vmatpush3.msra.mxu0 %v342_v25  ;;  %2232 = vmatpush3.msra.mxu1 %v462_v27  ;;  %v588_v23 = vld [vmem:[%s4711_s1 + $0x1168] sm:$0xff]  ;;  %v465_v27 = vld [vmem:[%s4711_s1 + $0xd90] sm:$0xff] }
 0x10f   :  { %2214 = vmatprep.subr.mxu0 %v387_v28  ;;  %2233 = vmatprep.subr.mxu1 %v507_v30  ;;  %v420_v24 = vld [vmem:[%s4711_s1 + $0xc28] sm:$0xff]  ;;  %v585_v28 = vld [vmem:[%s4711_s1 + $0x1150] sm:$0xff] }
 0x110   :  { %2215 = vmatpush3.msra.mxu0 %v339_v26  ;;  %2234 = vmatpush3.msra.mxu1 %v459_v31  ;;  %v540_v25 = vld [vmem:[%s4711_s1 + $0xfe8] sm:$0xff]  ;;  %v417_v30 = vld [vmem:[%s4711_s1 + $0xc10] sm:$0xff]  ;;  %v582_v31 = vld [vmem:[%s4711_s1 + $0x1138] sm:$0xff] }
 0x111   :  { %2216 = vmatprep.subr.mxu0 %v384_v16  ;;  %2235 = vmatprep.subr.mxu1 %v504_v32  ;;  %v537_v26 = vld [vmem:[%s4711_s1 + $0xfd0] sm:$0xff]  ;;  %v534_v16 = vld [vmem:[%s4711_s1 + $0xfb8] sm:$0xff] }
 0x112   :  { %2217 = vmatpush3.msra.mxu0 %v336_v34  ;;  %2236 = vmatpush3.msra.mxu1 %v456_v35  ;;  %v630_v32 = vld [vmem:[%s4711_s1 + $0x12b8] sm:$0xff]  ;;  %v579_v34 = vld [vmem:[%s4711_s1 + $0x1120] sm:$0xff] }
 0x113   :  { %2218 = vmatprep.subr.mxu0 %v381_v37  ;;  %2237 = vmatprep.subr.mxu1 %v501_v38  ;;  %v627_v35 = vld [vmem:[%s4711_s1 + $0x12a0] sm:$0xff]  ;;  %v528_v37 = vld [vmem:[%s4711_s1 + $0xf88] sm:$0xff] }
 0x114   :  { %2219 = vmatpush3.msra.mxu0 %v333_v39  ;;  %2238 = vmatpush3.msra.mxu1 %v453_v40  ;;  %v624_v38 = vld [vmem:[%s4711_s1 + $0x1288] sm:$0xff]  ;;  %v573_v39 = vld [vmem:[%s4711_s1 + $0x10f0] sm:$0xff] }
 0x115   :  { %2220 = vmatprep.subr.mxu0 %v378_v42  ;;  %2239 = vmatprep.subr.mxu1 %v498_v44  ;;  %v525_v40 = vld [vmem:[%s4711_s1 + $0xf70] sm:$0xff]  ;;  %v570_v44 = vld [vmem:[%s4711_s1 + $0x10d8] sm:$0xff] }
 0x116   :  { %2221 = vmatpush3.msra.mxu0 %v330_v45  ;;  %2240 = vmatpush3.msra.mxu1 %v450_v46  ;;  %v621_v42 = vld [vmem:[%s4711_s1 + $0x1270] sm:$0xff]  ;;  %v522_v45 = vld [vmem:[%s4711_s1 + $0xf58] sm:$0xff] }
 0x117   :  { %2222 = vmatprep.subr.mxu0 %v375_v47  ;;  %2241 = vmatprep.subr.mxu1 %v495_v49  ;;  %v618_v46 = vld [vmem:[%s4711_s1 + $0x1258] sm:$0xff]  ;;  %v567_v47 = vld [vmem:[%s4711_s1 + $0x10c0] sm:$0xff] }
 0x118   :  { %2223 = vmatpush3.msra.mxu0 %v327_v50  ;;  %2242 = vmatpush3.msra.mxu1 %v447_v51  ;;  %v519_v49 = vld [vmem:[%s4711_s1 + $0xf40] sm:$0xff]  ;;  %v564_v50 = vld [vmem:[%s4711_s1 + $0x10a8] sm:$0xff] }
 0x119   :  { %2224 = vmatprep.subr.mxu0 %v372_v52  ;;  %2243 = vmatprep.subr.mxu1 %v492_v54  ;;  %v615_v51 = vld [vmem:[%s4711_s1 + $0x1240] sm:$0xff]  ;;  %v516_v52 = vld [vmem:[%s4711_s1 + $0xf28] sm:$0xff]  ;;  %v561_v54 = vld [vmem:[%s4711_s1 + $0x1090] sm:$0xff] }
 0x11a   :  { %2225 = vmatpush3.msra.mxu0 %v324_v55  ;;  %2244 = vmatpush3.msra.mxu1 %v444_v57  ;;  %v612_v55 = vld [vmem:[%s4711_s1 + $0x1228] sm:$0xff]  ;;  %v513_v57 = vld [vmem:[%s4711_s1 + $0xf10] sm:$0xff] }
 0x11b   :  { %2226 = vmatprep.subr.mxu0 %v369_v58  ;;  %2245 = vmatprep.subr.mxu1 %v489_v11  ;;  %v609_v58 = vld [vmem:[%s4711_s1 + $0x1210] sm:$0xff] }
 0x11c   :  { %2227 = vmatpush3.msra.mxu0 %v321_v59  ;;  %1496 = vmatprep.mubr.f32.mxu0 %v3211_v29  ;;  %v435_v29 = vld [vmem:[%s4711_s1 + $0xca0] sm:$0xff]  ;;  %v1745_v11 = vld [vmem:[%s4713_s3 + $0xf0] sm:$0xff]  ;;  %v1744_v59 = vld [vmem:[%s4713_s3 + $0xe8] sm:$0xff] }
 0x11d   :  { %2246 = vmatpush3.msra.mxu1 %v441_v3  ;;  %1497 = vmatmul.mubr.f32.vlgmr.msra.gmra.mxu0 %v3185_v21  ;;  %v480_v21 = vld [vmem:[%s4711_s1 + $0xe08] sm:$0xff]  ;;  %v1743_v3 = vld [vmem:[%s4713_s3 + $0xe0] sm:$0xff] }
 0x11e   :  { %2247 = vmatprep.subr.mxu1 %v486_v60  ;;  %2266 = vmatprep.subr.mxu0 %v606_v61  ;;  %v1741_v60 = vld [vmem:[%s4713_s3 + $0xd0] sm:$0xff]  ;;  %v1740_v61 = vld [vmem:[%s4713_s3 + $0xc8] sm:$0xff] }
 0x11f   :  { %2248 = vmatpush3.msra.mxu1 %v438_v63  ;;  %2267 = vmatpush3.msra.mxu0 %v558_v0  ;;  %v1738_v63 = vld [vmem:[%s4713_s3 + $0xb8] sm:$0xff]  ;;  %v1737_v0 = vld [vmem:[%s4713_s3 + $0xb0] sm:$0xff] }
 0x120   :  { %2249 = vmatprep.subr.mxu1 %v483_v1  ;;  %2268 = vmatprep.subr.mxu0 %v603_v2  ;;  %v1736_v1 = vld [vmem:[%s4713_s3 + $0xa8] sm:$0xff]  ;;  %v1735_v2 = vld [vmem:[%s4713_s3 + $0xa0] sm:$0xff] }
 0x121   :  { %2250 = vmatpush3.msra.mxu1 %v435_v29  ;;  %2269 = vmatpush3.msra.mxu0 %v555_v4  ;;  %v1734_v29 = vld [vmem:[%s4713_s3 + $0x98] sm:$0xff]  ;;  %v1733_v4 = vld [vmem:[%s4713_s3 + $0x90] sm:$0xff] }
 0x122   :  { %2251 = vmatprep.subr.mxu1 %v480_v21  ;;  %2270 = vmatprep.subr.mxu0 %v600_v5  ;;  %v1732_v21 = vld [vmem:[%s4713_s3 + $0x88] sm:$0xff]  ;;  %v1731_v5 = vld [vmem:[%s4713_s3 + $0x80] sm:$0xff] }
 0x123   :  { %2252 = vmatpush3.msra.mxu1 %v432_v6  ;;  %2271 = vmatpush3.msra.mxu0 %v552_v7  ;;  %v1730_v6 = vld [vmem:[%s4713_s3 + $0x78] sm:$0xff]  ;;  %v1729_v7 = vld [vmem:[%s4713_s3 + $0x70] sm:$0xff] }
 0x124   :  { %2253 = vmatprep.subr.mxu1 %v477_v9  ;;  %2272 = vmatprep.subr.mxu0 %v597_v10  ;;  %v1728_v9 = vld [vmem:[%s4713_s3 + $0x68] sm:$0xff]  ;;  %v1727_v10 = vld [vmem:[%s4713_s3 + $0x60] sm:$0xff] }
 0x125   :  { %2254 = vmatpush3.msra.mxu1 %v429_v12  ;;  %2273 = vmatpush3.msra.mxu0 %v549_v13  ;;  %v1726_v12 = vld [vmem:[%s4713_s3 + $0x58] sm:$0xff]  ;;  %v1725_v13 = vld [vmem:[%s4713_s3 + $0x50] sm:$0xff] }
 0x126   :  { %2255 = vmatprep.subr.mxu1 %v474_v14  ;;  %2274 = vmatprep.subr.mxu0 %v594_v15  ;;  %v1724_v14 = vld [vmem:[%s4713_s3 + $0x48] sm:$0xff]  ;;  %v1723_v15 = vld [vmem:[%s4713_s3 + $0x40] sm:$0xff] }
 0x127   :  { %2256 = vmatpush3.msra.mxu1 %v426_v17  ;;  %2275 = vmatpush3.msra.mxu0 %v546_v18  ;;  %v1722_v17 = vld [vmem:[%s4713_s3 + $0x38] sm:$0xff]  ;;  %v1721_v18 = vld [vmem:[%s4713_s3 + $0x30] sm:$0xff] }
 0x128   :  { %2257 = vmatprep.subr.mxu1 %v471_v19  ;;  %2276 = vmatprep.subr.mxu0 %v591_v8  ;;  %v1720_v19 = vld [vmem:[%s4713_s3 + $0x28] sm:$0xff]  ;;  %v1719_v8 = vld [vmem:[%s4713_s3 + $0x20] sm:$0xff] }
 0x129   :  { %2258 = vmatpush3.msra.mxu1 %v423_v20  ;;  %2277 = vmatpush3.msra.mxu0 %v543_v22  ;;  %v1718_v20 = vld [vmem:[%s4713_s3 + $0x18] sm:$0xff]  ;;  %v1717_v22 = vld [vmem:[%s4713_s3 + $0x10] sm:$0xff] }
 0x12a   :  { %2259 = vmatprep.subr.mxu1 %v468_v62  ;;  %2278 = vmatprep.subr.mxu0 %v588_v23  ;;  %v1716_v62 = vld [vmem:[%s4713_s3 + $0x8] sm:$0xff]  ;;  %v1715_v23 = vld [vmem:[%s4713_s3] sm:$0xff] }
 0x12b   :  { %2260 = vmatpush3.msra.mxu1 %v420_v24  ;;  %2279 = vmatpush3.msra.mxu0 %v540_v25  ;;  %v1778_v24 = vld [vmem:[%s4713_s3 + $0x1f8] sm:$0xff]  ;;  %v1777_v25 = vld [vmem:[%s4713_s3 + $0x1f0] sm:$0xff] }
 0x12c   :  { %2261 = vmatprep.subr.mxu1 %v465_v27  ;;  %2280 = vmatprep.subr.mxu0 %v585_v28  ;;  %v1776_v27 = vld [vmem:[%s4713_s3 + $0x1e8] sm:$0xff]  ;;  %v1775_v28 = vld [vmem:[%s4713_s3 + $0x1e0] sm:$0xff] }
 0x12d   :  { %2262 = vmatpush3.msra.mxu1 %v417_v30  ;;  %1566 = vmatprep.mubr.f32.mxu1 %v3606_v53  ;;  %v531_v53 = vld [vmem:[%s4711_s1 + $0xfa0] sm:$0xff]  ;;  %v1774_v30 = vld [vmem:[%s4713_s3 + $0x1d8] sm:$0xff] }
 0x12e   :  { %2281 = vmatpush3.msra.mxu0 %v537_v26  ;;  %1567 = vmatmul.mubr.f32.vlgmr.msra.gmra.mxu1 %v3575_v43  ;;  %v576_v43 = vld [vmem:[%s4711_s1 + $0x1108] sm:$0xff]  ;;  %v1773_v26 = vld [vmem:[%s4713_s3 + $0x1d0] sm:$0xff] }
 0x12f   :  { %2282 = vmatprep.subr.mxu0 %v582_v31  ;;  %2310 = vmatprep.subr.mxu1 %v2359_v36  ;;  %v1810_v31 = vld [vmem:[%s4713_s3 + $0x2f8] sm:$0xff] }
 0x130   :  { %2283 = vmatpush3.msra.mxu0 %v534_v16  ;;  %2311 = vmatpush3.msra.mxu1 %v630_v32  ;;  %v1809_v16 = vld [vmem:[%s4713_s3 + $0x2f0] sm:$0xff]  ;;  %v1808_v32 = vld [vmem:[%s4713_s3 + $0x2e8] sm:$0xff] }
 0x131   :  { %2284 = vmatprep.subr.mxu0 %v579_v34  ;;  %2312 = vmatprep.subr.mxu1 %v2359_v36  ;;  %v1772_v34 = vld [vmem:[%s4713_s3 + $0x1c8] sm:$0xff] }
 0x132   :  { %2285 = vmatpush3.msra.mxu0 %v531_v53  ;;  %2313 = vmatpush3.msra.mxu1 %v627_v35  ;;  %v1807_v53 = vld [vmem:[%s4713_s3 + $0x2e0] sm:$0xff] }
 0x133   :  { %2286 = vmatprep.subr.mxu0 %v576_v43  ;;  %2314 = vmatprep.subr.mxu1 %v2359_v36  ;;  %v1771_v35 = vld [vmem:[%s4713_s3 + $0x1c0] sm:$0xff]  ;;  %v1806_v43 = vld [vmem:[%s4713_s3 + $0x2d8] sm:$0xff] }
 0x134   :  { %2287 = vmatpush3.msra.mxu0 %v528_v37  ;;  %2315 = vmatpush3.msra.mxu1 %v624_v38  ;;  %v1770_v37 = vld [vmem:[%s4713_s3 + $0x1b8] sm:$0xff]  ;;  %v1769_v38 = vld [vmem:[%s4713_s3 + $0x1b0] sm:$0xff] }
 0x135   :  { %2288 = vmatprep.subr.mxu0 %v573_v39  ;;  %2316 = vmatprep.subr.mxu1 %v2359_v36  ;;  %v1768_v39 = vld [vmem:[%s4713_s3 + $0x1a8] sm:$0xff] }
 0x136   :  { %2289 = vmatpush3.msra.mxu0 %v525_v40  ;;  %2317 = vmatpush3.msra.mxu1 %v621_v42  ;;  %v1767_v40 = vld [vmem:[%s4713_s3 + $0x1a0] sm:$0xff]  ;;  %v1766_v42 = vld [vmem:[%s4713_s3 + $0x198] sm:$0xff] }
 0x137   :  { %2290 = vmatprep.subr.mxu0 %v570_v44  ;;  %2318 = vmatprep.subr.mxu1 %v2359_v36  ;;  %v1765_v44 = vld [vmem:[%s4713_s3 + $0x190] sm:$0xff] }
 0x138   :  { %2291 = vmatpush3.msra.mxu0 %v522_v45  ;;  %2319 = vmatpush3.msra.mxu1 %v618_v46  ;;  %v1764_v45 = vld [vmem:[%s4713_s3 + $0x188] sm:$0xff]  ;;  %v1763_v46 = vld [vmem:[%s4713_s3 + $0x180] sm:$0xff] }
 0x139   :  { %2292 = vmatprep.subr.mxu0 %v567_v47  ;;  %2320 = vmatprep.subr.mxu1 %v2359_v36  ;;  %v1762_v47 = vld [vmem:[%s4713_s3 + $0x178] sm:$0xff] }
 0x13a   :  { %2293 = vmatpush3.msra.mxu0 %v519_v49  ;;  %1636 = vmatprep.mubr.f32.mxu0 %v3616_v56  ;;  %v1746_v56 = vld [vmem:[%s4713_s3 + $0xf8] sm:$0xff]  ;;  %v1761_v49 = vld [vmem:[%s4713_s3 + $0x170] sm:$0xff] }
 0x13b   :  { %2294 = vmatprep.subr.mxu0 %v564_v50  ;;  %2321 = vmatpush3.msra.mxu1 %v615_v51  ;;  %v1805_v50 = vld [vmem:[%s4713_s3 + $0x2d0] sm:$0xff]  ;;  %v1804_v51 = vld [vmem:[%s4713_s3 + $0x2c8] sm:$0xff] }
 0x13c   :  { %2295 = vmatpush3.msra.mxu0 %v516_v52  ;;  %2322 = vmatprep.subr.mxu1 %v2359_v36  ;;  %v1760_v52 = vld [vmem:[%s4713_s3 + $0x168] sm:$0xff] }
 0x13d   :  { %2296 = vmatprep.subr.mxu0 %v561_v54  ;;  %2323 = vmatpush3.msra.mxu1 %v612_v55  ;;  %v1759_v54 = vld [vmem:[%s4713_s3 + $0x160] sm:$0xff] }
 0x13e   :  { %2297 = vmatpush3.msra.mxu0 %v513_v57  ;;  %2324 = vmatprep.subr.mxu1 %v2359_v36  ;;  %v1803_v55 = vld [vmem:[%s4713_s3 + $0x2c0] sm:$0xff]  ;;  %v1758_v57 = vld [vmem:[%s4713_s3 + $0x158] sm:$0xff] }
 0x13f   :  { %1637 = vmatmul.mubr.f32.vlgmr.msra.gmra.mxu0 %v3590_v48  ;;  %2325 = vmatpush3.msra.mxu1 %v609_v58  ;;  %v1742_v48 = vld [vmem:[%s4713_s3 + $0xd8] sm:$0xff] }
 0x140   :  { %2326 = vmatprep.mubr.msk.f32.mxu1 %vm2360_vm1, %v2359_v36  ;;  %1823 = vmatprep.subr.mxu0 %v1746_v56  ;;  %v1802_v58 = vld [vmem:[%s4713_s3 + $0x2b8] sm:$0xff]  ;;  %v1757_v56 = vld [vmem:[%s4713_s3 + $0x150] sm:$0xff] }
 0x141   :  { %2327 = vmatmul.mubr.msk.f32.vlgmr.msra.gmra.mxu1 %vm722_vm0, %v3721_v33  ;;  %1824 = vmatpush1.msra.mxu0 %v1745_v11  ;;  %v1739_v33 = vld [vmem:[%s4713_s3 + $0xc0] sm:$0xff]  ;;  %v1756_v11 = vld [vmem:[%s4713_s3 + $0x148] sm:$0xff] }
 0x142   :  { %1825 = vmatprep.subr.mxu0 %v1744_v59  ;;  %1958 = vmatprep.mubr.f32.mxu1 %v2359_v36  ;;  %v1801_v59 = vld [vmem:[%s4713_s3 + $0x2b0] sm:$0xff] }
 0x143   :  { %1826 = vmatpush1.msra.mxu0 %v1743_v3  ;;  %1894 = vmatprep.subr.mxu1 %v1810_v31  ;;  %v1800_v3 = vld [vmem:[%s4713_s3 + $0x2a8] sm:$0xff] }
 0x144   :  { %1827 = vmatprep.subr.mxu0 %v1742_v48  ;;  %1895 = vmatpush1.msra.mxu1 %v1809_v16  ;;  %v1799_v48 = vld [vmem:[%s4713_s3 + $0x2a0] sm:$0xff]  ;;  %v862_v16 = vpop.f32.mrf.mxu1 }
 0x145   :  { %1828 = vmatpush1.msra.mxu0 %v1741_v60  ;;  %1896 = vmatprep.subr.mxu1 %v1808_v32  ;;  %v1798_v60 = vld [vmem:[%s4713_s3 + $0x298] sm:$0xff]  ;;  %v1780_v32 = vld [vmem:[%s4713_s3 + $0x208] sm:$0xff] }
 0x146   :  { %1829 = vmatprep.subr.mxu0 %v1740_v61  ;;  %1897 = vmatpush1.msra.mxu1 %v1807_v53  ;;  %v1755_v61 = vld [vmem:[%s4713_s3 + $0x140] sm:$0xff] }
 0x147   :  { %1830 = vmatpush1.msra.mxu0 %v1739_v33  ;;  %1898 = vmatprep.subr.mxu1 %v1806_v43  ;;  %v1797_v33 = vld [vmem:[%s4713_s3 + $0x290] sm:$0xff] }
 0x148   :  { %1831 = vmatprep.subr.mxu0 %v1738_v63  ;;  %1899 = vmatpush1.msra.mxu1 %v1805_v50  ;;  %v1754_v63 = vld [vmem:[%s4713_s3 + $0x138] sm:$0xff] }
 0x149   :  { %1832 = vmatpush1.msra.mxu0 %v1737_v0  ;;  %1900 = vmatprep.subr.mxu1 %v1804_v51  ;;  %v1796_v0 = vld [vmem:[%s4713_s3 + $0x288] sm:$0xff] }
 0x14a   :  { %1833 = vmatprep.subr.mxu0 %v1736_v1  ;;  %1901 = vmatpush1.msra.mxu1 %v1803_v55  ;;  %v1753_v1 = vld [vmem:[%s4713_s3 + $0x130] sm:$0xff] }
 0x14b   :  { %1834 = vmatpush1.msra.mxu0 %v1735_v2  ;;  %1902 = vmatprep.subr.mxu1 %v1802_v58  ;;  %v1795_v2 = vld [vmem:[%s4713_s3 + $0x280] sm:$0xff] }
 0x14c   :  { %1835 = vmatprep.subr.mxu0 %v1734_v29  ;;  %1903 = vmatpush1.msra.mxu1 %v1801_v59  ;;  %v1752_v29 = vld [vmem:[%s4713_s3 + $0x128] sm:$0xff] }
 0x14d   :  { %1836 = vmatpush1.msra.mxu0 %v1733_v4  ;;  %1904 = vmatprep.subr.mxu1 %v1800_v3  ;;  %v1794_v4 = vld [vmem:[%s4713_s3 + $0x278] sm:$0xff] }
 0x14e   :  { %1837 = vmatprep.subr.mxu0 %v1732_v21  ;;  %1905 = vmatpush1.msra.mxu1 %v1799_v48  ;;  %v1751_v21 = vld [vmem:[%s4713_s3 + $0x120] sm:$0xff] }
 0x14f   :  { %1838 = vmatpush1.msra.mxu0 %v1731_v5  ;;  %1906 = vmatprep.subr.mxu1 %v1798_v60  ;;  %v1793_v5 = vld [vmem:[%s4713_s3 + $0x270] sm:$0xff] }
 0x150   :  { %1839 = vmatprep.subr.mxu0 %v1730_v6  ;;  %1907 = vmatpush1.msra.mxu1 %v1797_v33  ;;  %v1750_v6 = vld [vmem:[%s4713_s3 + $0x118] sm:$0xff] }
 0x151   :  { %1840 = vmatpush1.msra.mxu0 %v1729_v7  ;;  %1908 = vmatprep.subr.mxu1 %v1796_v0  ;;  %v1792_v7 = vld [vmem:[%s4713_s3 + $0x268] sm:$0xff] }
 0x152   :  { %1841 = vmatprep.subr.mxu0 %v1728_v9  ;;  %1909 = vmatpush1.msra.mxu1 %v1795_v2  ;;  %v1749_v9 = vld [vmem:[%s4713_s3 + $0x110] sm:$0xff]  ;;  %v643_v2 = vsub.s32 2, %v2708_v41 }
 0x153   :  { %1842 = vmatpush1.msra.mxu0 %v1727_v10  ;;  %1910 = vmatprep.subr.mxu1 %v1794_v4  ;;  %v1791_v10 = vld [vmem:[%s4713_s3 + $0x260] sm:$0xff] }
 0x154   :  { %1843 = vmatprep.subr.mxu0 %v1726_v12  ;;  %v1748_v12 = vld [vmem:[%s4713_s3 + $0x108] sm:$0xff]  ;;  %1911 = vmatpush1.msra.mxu1 %v1793_v5 }
 0x155   :  { %1844 = vmatpush1.msra.mxu0 %v1725_v13  ;;  %v1790_v13 = vld [vmem:[%s4713_s3 + $0x258] sm:$0xff]  ;;  %1912 = vmatprep.subr.mxu1 %v1792_v7 }
 0x156   :  { %1845 = vmatprep.subr.mxu0 %v1724_v14  ;;  %v1747_v14 = vld [vmem:[%s4713_s3 + $0x100] sm:$0xff]  ;;  %1913 = vmatpush1.msra.mxu1 %v1791_v10 }
 0x157   :  { %1846 = vmatpush1.msra.mxu0 %v1723_v15  ;;  %1914 = vmatprep.subr.mxu1 %v1790_v13  ;;  %v1789_v15 = vld [vmem:[%s4713_s3 + $0x250] sm:$0xff] }
 0x158   :  { %1847 = vmatprep.subr.mxu0 %v1722_v17  ;;  %1915 = vmatpush1.msra.mxu1 %v1789_v15  ;;  %v1788_v17 = vld [vmem:[%s4713_s3 + $0x248] sm:$0xff] }
 0x159   :  { %1848 = vmatpush1.msra.mxu0 %v1721_v18  ;;  %1916 = vmatprep.subr.mxu1 %v1788_v17  ;;  %v1787_v18 = vld [vmem:[%s4713_s3 + $0x240] sm:$0xff] }
 0x15a   :  { %1849 = vmatprep.subr.mxu0 %v1720_v19  ;;  %v635_v19 = vsub.s32 0, %v2708_v41  ;;  %1917 = vmatpush1.msra.mxu1 %v1787_v18 }
 0x15b   :  { %1850 = vmatpush1.msra.mxu0 %v1719_v8  ;;  %v1786_v8 = vld [vmem:[%s4713_s3 + $0x238] sm:$0xff] }
 0x15c   :  { %1851 = vmatprep.subr.mxu0 %v1718_v20  ;;  %v631_v20 = vld [vmem:[%s4712_s2] sm:$0x7]  ;;  %1918 = vmatprep.subr.mxu1 %v1786_v8 }
 0x15d   :  { %1852 = vmatpush1.msra.mxu0 %v1717_v22  ;;  %v639_v22 = vsub.s32 1, %v2708_v41  ;;  %v644_v5 = vrot.slane %v631_v20, %v643_v2 }
 0x15e   :  { %1853 = vmatprep.subr.mxu0 %v1716_v62  ;;  %v1785_v62 = vld [vmem:[%s4713_s3 + $0x230] sm:$0xff] }
 0x15f   :  { %1854 = vmatpush1.msra.mxu0 %v1715_v23  ;;  %v791_v23 = vpop.f32.mrf.mxu0  ;;  %1919 = vmatpush1.msra.mxu1 %v1785_v62 }
 0x160   :  { %1855 = vmatprep.subr.mxu0 %v1778_v24  ;;  %v1784_v24 = vld [vmem:[%s4713_s3 + $0x228] sm:$0xff] }
 0x161   :  { %1856 = vmatpush2.msra.mxu0 %v1777_v25  ;;  %1920 = vmatprep.subr.mxu1 %v1784_v24  ;;  %v1783_v25 = vld [vmem:[%s4713_s3 + $0x220] sm:$0xff]  ;;  %v793_v31 = vpop.f32.mrf.mxu0 }
 0x162   :  { %1857 = vmatprep.subr.mxu0 %v1776_v27  ;;  %v636_v27 = vrot.slane %v631_v20, %v635_v19  ;;  %1921 = vmatpush1.msra.mxu1 %v1783_v25 }
 0x163   :  { %1858 = vmatpush2.msra.mxu0 %v1775_v28  ;;  %v1782_v28 = vld [vmem:[%s4713_s3 + $0x218] sm:$0xff] }
 0x164   :  { %1859 = vmatprep.subr.mxu0 %v1774_v30  ;;  %v640_v30 = vrot.slane %v631_v20, %v639_v22  ;;  %1922 = vmatprep.subr.mxu1 %v1782_v28  ;;  %v792_v53 = vadd.f32 %v791_v23, %v636_v27 }
 0x165   :  { %1860 = vmatpush2.msra.mxu0 %v1773_v26  ;;  %v1781_v26 = vld [vmem:[%s4713_s3 + $0x210] sm:$0xff] }
 0x166   :  { %1861 = vmatprep.subr.mxu0 %v1772_v34  ;;  %1923 = vmatpush1.msra.mxu1 %v1781_v26  ;;  %v1779_v34 = vld [vmem:[%s4713_s3 + $0x200] sm:$0xff]  ;;  %v794_v43 = vadd.f32 %v793_v31, %v640_v30 }
 0x167   :  { %1862 = vmatpush2.msra.mxu0 %v1771_v35  ;;  %1924 = vmatprep.subr.mxu1 %v1780_v32  ;;  %v933_v35 = vpop.f32.mrf.mxu0  ;;  %v1981_v32 = vld [vmem:[%s4715_s5 + $0x70] sm:$0xff] }
 0x168   :  { %1863 = vmatprep.subr.mxu0 %v1770_v37  ;;  %1925 = vmatpush1.msra.mxu1 %v1779_v34  ;;  %v864_v37 = vpop.f32.mrf.mxu1  ;;  %v1980_v34 = vld [vmem:[%s4715_s5 + $0x68] sm:$0xff] }
 0x169   :  { %1864 = vmatpush2.msra.mxu0 %v1769_v38  ;;  %2001 = vmatprep.subr.mxu1 %v2359_v36  ;;  %v863_v38 = vadd.f32 %v862_v16, %v792_v53  ;;  %v1982_v16 = vld [vmem:[%s4715_s5 + $0x78] sm:$0xff]  ;;  %v1979_v53 = vld [vmem:[%s4715_s5 + $0x60] sm:$0xff] }
 0x16a   :  { %1865 = vmatprep.subr.mxu0 %v1768_v39  ;;  %v935_v39 = vpop.f32.mrf.mxu0 }
 0x16b   :  { %1866 = vmatpush2.msra.mxu0 %v1767_v40  ;;  %v1004_v40 = vpop.f32.mrf.mxu1 }
 0x16c   :  { %1867 = vmatprep.subr.mxu0 %v1766_v42  ;;  %v865_v42 = vadd.f32 %v864_v37, %v794_v43  ;;  %v1977_v43 = vld [vmem:[%s4715_s5 + $0x50] sm:$0xff]  ;;  %v1976_v37 = vld [vmem:[%s4715_s5 + $0x48] sm:$0xff] }
 0x16d   :  { %1868 = vmatpush2.msra.mxu0 %v1765_v44  ;;  %v934_v44 = vadd.f32 %v933_v35, %v863_v38  ;;  %v1978_v35 = vld [vmem:[%s4715_s5 + $0x58] sm:$0xff]  ;;  %v1975_v38 = vld [vmem:[%s4715_s5 + $0x40] sm:$0xff] }
 0x16e   :  { %1869 = vmatprep.subr.mxu0 %v1764_v45 }
 0x16f   :  { %1870 = vmatpush2.msra.mxu0 %v1763_v46  ;;  %v936_v46 = vadd.f32 %v935_v39, %v865_v42  ;;  %v1974_v39 = vld [vmem:[%s4715_s5 + $0x38] sm:$0xff]  ;;  %v1972_v42 = vld [vmem:[%s4715_s5 + $0x28] sm:$0xff] }
 0x170   :  { %1871 = vmatprep.subr.mxu0 %v1762_v47  ;;  %v1006_v47 = vpop.f32.mrf.mxu1 }
 0x171   :  { %1872 = vmatpush2.msra.mxu0 %v1761_v49  ;;  %v1005_v49 = vadd.f32 %v1004_v40, %v934_v44  ;;  %v1973_v40 = vld [vmem:[%s4715_s5 + $0x30] sm:$0xff]  ;;  %v1971_v44 = vld [vmem:[%s4715_s5 + $0x20] sm:$0xff] }
 0x172   :  { %1873 = vmatprep.subr.mxu0 %v1760_v52  ;;  %v1007_v52 = vadd.f32 %v1006_v47, %v936_v46  ;;  %v1969_v46 = vld [vmem:[%s4715_s5 + $0x10] sm:$0xff]  ;;  %v1968_v47 = vld [vmem:[%s4715_s5 + $0x8] sm:$0xff] }
 0x173   :  { %1874 = vmatpush2.msra.mxu0 %v1759_v54 }
 0x174   :  { %1875 = vmatprep.subr.mxu0 %v1758_v57 }
 0x175   :  { %1876 = vmatpush2.msra.mxu0 %v1757_v56 }
 0x176   :  { %1877 = vmatprep.subr.mxu0 %v1756_v11 }
 0x177   :  { %1878 = vmatpush2.msra.mxu0 %v1755_v61 }
 0x178   :  { %1879 = vmatprep.subr.mxu0 %v1754_v63 }
 0x179   :  { %1880 = vmatpush2.msra.mxu0 %v1753_v1 }
 0x17a   :  { %1881 = vmatprep.subr.mxu0 %v1752_v29 }
 0x17b   :  { %1882 = vmatpush2.msra.mxu0 %v1751_v21 }
 0x17c   :  { %1883 = vmatprep.subr.mxu0 %v1750_v6 }
 0x17d   :  { %1884 = vmatpush2.msra.mxu0 %v1749_v9 }
 0x17e   :  { %1885 = vmatprep.subr.mxu0 %v1748_v12 }
 0x17f   :  { %1886 = vmatpush2.msra.mxu0 %v1747_v14 }
 0x187   :  { %v1075_v45 = vpop.f32.mrf.mxu0 }
 0x188   :  { %v1076_v54 = vadd.f32 %v1075_v45, %v1005_v49  ;;  %v1970_v45 = vld [vmem:[%s4715_s5 + $0x18] sm:$0xff]  ;;  %v1967_v49 = vld [vmem:[%s4715_s5] sm:$0xff] }
 0x189   :  { %v1077_v50 = vpop.f32.mrf.mxu0  ;;  %v1146_v51 = vpop.f32.mrf.mxu1 }
 0x18a   :  { %v1078_v55 = vadd.f32 %v1077_v50, %v1007_v52  ;;  %v1147_v58 = vadd.f32 %v1146_v51, %v1076_v54  ;;  %v1990_v50 = vld [vmem:[%s4715_s5 + $0xb8] sm:$0xff]  ;;  %v1989_v51 = vld [vmem:[%s4715_s5 + $0xb0] sm:$0xff]  ;;  %v1988_v52 = vld [vmem:[%s4715_s5 + $0xa8] sm:$0xff] }
 0x18b   :  { %v1148_v57 = vpop.f32.mrf.mxu1  ;;  %v1987_v54 = vld [vmem:[%s4715_s5 + $0xa0] sm:$0xff] }
 0x18c   :  { %v1149_v11 = vadd.f32 %v1148_v57, %v1078_v55  ;;  %v1986_v55 = vld [vmem:[%s4715_s5 + $0x98] sm:$0xff]  ;;  %v1985_v57 = vld [vmem:[%s4715_s5 + $0x90] sm:$0xff] }
 0x199   :  { %v1217_v56 = vpop.f32.mrf.mxu0 }
 0x19a   :  { %v1218_v59 = vadd.f32 %v1217_v56, %v1147_v58  ;;  %v1984_v58 = vld [vmem:[%s4715_s5 + $0x88] sm:$0xff]  ;;  %v1983_v56 = vld [vmem:[%s4715_s5 + $0x80] sm:$0xff] }
 0x19b   :  { %v1219_v3 = vpop.f32.mrf.mxu0 }
 0x19c   :  { %v1220_v48 = vadd.f32 %v1219_v3, %v1149_v11  ;;  %v1712_v61 = vmax.f32 %v1218_v59, 0.0  ;;  %v1811_v11 = vld [vmem:[%s4714_s4] sm:$0x3] }
 0x19d   :  { %v1816_v3 = vrot.slane %v1811_v11, %v635_v19 }
 0x19e   :  { %v1713_v60 = vmax.f32 %v1220_v48, 0.0  ;;  %v1820_v48 = vrot.slane %v1811_v11, %v639_v22 }
 0x1a0   :  { %1887 = vmatprep.mubr.f32.mxu0 %v1713_v60 }
 0x1a1   :  { %1888 = vmatmul.mubr.f32.vlgmr.msra.gmra.mxu0 %v1712_v61 }
 0x1ab   :  { %v2123_v33 = vpop.f32.mrf.mxu1 }
 0x1ad   :  { %v2124_v63 = vpop.f32.mrf.mxu1 }
 0x1ae   :  { %v2125_v6 = vadd.f32 %v2124_v63, %v2123_v33 }
 0x1b0   :  { %v1289_v12 = vadd.f32 %v2125_v6, %v644_v5 }
 0x1bb   :  { %v2158_v0 = vpop.f32.mrf.mxu0 }
 0x1bd   :  { %v2159_v29 = vpop.f32.mrf.mxu0 }
 0x1be   :  { %v2160_v9 = vadd.f32 %v2159_v29, %v2158_v0 }
 0x1c0   :  { %v1359_v15 = vadd.f32 %v2160_v9, %v1289_v12 }
 0x1cc   :  { %v2193_v1 = vpop.f32.mrf.mxu1 }
 0x1ce   :  { %v2194_v4 = vpop.f32.mrf.mxu1 }
 0x1cf   :  { %v2195_v13 = vadd.f32 %v2194_v4, %v2193_v1  ;;  %v2089_v4 = vld [vmem:[%s4716_s6] ss:$0 sm:$0xff] }
 0x1d1   :  { %v1429_v18 = vadd.f32 %v2195_v13, %v1359_v15 }
 0x1dd   :  { %v2228_v21 = vpop.f32.mrf.mxu0 }
 0x1df   :  { %v2229_v10 = vpop.f32.mrf.mxu0 }
 0x1e0   :  { %v2230_v17 = vadd.f32 %v2229_v10, %v2228_v21 }
 0x1e2   :  { %v1499_v23 = vadd.f32 %v2230_v17, %v1429_v18 }
 0x1ee   :  { %v2263_v7 = vpop.f32.mrf.mxu1 }
 0x1f0   :  { %v2264_v14 = vpop.f32.mrf.mxu1 }
 0x1f1   :  { %v2265_v8 = vadd.f32 %v2264_v14, %v2263_v7 }
 0x1f3   :  { %v1569_v27 = vadd.f32 %v2265_v8, %v1499_v23 }
 0x1ff   :  { %v2298_v62 = vpop.f32.mrf.mxu0 }
 0x201   :  { %v2299_v24 = vpop.f32.mrf.mxu0  ;;  %v1708_v25 = vpop.f32.mrf.mxu1 }
 0x202   :  { %v2300_v28 = vadd.f32 %v2299_v24, %v2298_v62 }
 0x203   :  { %v2328_v30 = vpop.f32.mrf.mxu1 }
 0x204   :  { %v1639_v26 = vadd.f32 %v2300_v28, %v1569_v27 }
 0x206   :  { %v1709_v20 = vadd.f32 %v1708_v25, %v1639_v26 }
 0x208   :  { %v1714_v31 = vmax.f32 %v1709_v20, 0.0 }
 0x20a   :  { %1959 = vmatmul.mubr.f32.vlgmr.msra.gmra.mxu1 %v1714_v31 }
 0x20b   :  { %2002 = vmatpush1.msra.mxu1 %v1982_v16 }
 0x20c   :  { %2003 = vmatprep.subr.mxu1 %v2359_v36 }
 0x20d   :  { %2004 = vmatpush1.msra.mxu1 %v1981_v32 }
 0x20e   :  { %2005 = vmatprep.subr.mxu1 %v2359_v36 }
 0x20f   :  { %2006 = vmatpush1.msra.mxu1 %v1980_v34 }
 0x210   :  { %2007 = vmatprep.subr.mxu1 %v2359_v36 }
 0x211   :  { %2008 = vmatpush1.msra.mxu1 %v1979_v53 }
 0x212   :  { %2009 = vmatprep.subr.mxu1 %v2359_v36 }
 0x213   :  { %2010 = vmatpush1.msra.mxu1 %v1978_v35 }
 0x214   :  { %2011 = vmatprep.subr.mxu1 %v2359_v36 }
 0x215   :  { %2012 = vmatpush1.msra.mxu1 %v1977_v43 }
 0x216   :  { %2013 = vmatprep.subr.mxu1 %v2359_v36 }
 0x217   :  { %2014 = vmatpush1.msra.mxu1 %v1976_v37 }
 0x218   :  { %2015 = vmatprep.subr.mxu1 %v2359_v36 }
 0x219   :  { %2016 = vmatpush1.msra.mxu1 %v1975_v38 }
 0x21a   :  { %2017 = vmatprep.subr.mxu1 %v2359_v36 }
 0x21b   :  { %2018 = vmatpush1.msra.mxu1 %v1974_v39 }
 0x21c   :  { %2019 = vmatprep.subr.mxu1 %v2359_v36 }
 0x21d   :  { %2020 = vmatpush1.msra.mxu1 %v1973_v40 }
 0x21e   :  { %2021 = vmatprep.subr.mxu1 %v2359_v36 }
 0x21f   :  { %2022 = vmatpush1.msra.mxu1 %v1972_v42 }
 0x220   :  { %2023 = vmatprep.subr.mxu1 %v2359_v36 }
 0x221   :  { %2024 = vmatpush1.msra.mxu1 %v1971_v44 }
 0x222   :  { %2025 = vmatprep.subr.mxu1 %v2359_v36 }
 0x223   :  { %2026 = vmatpush1.msra.mxu1 %v1970_v45 }
 0x224   :  { %2027 = vmatprep.subr.mxu1 %v2359_v36 }
 0x225   :  { %2028 = vmatpush1.msra.mxu1 %v1969_v46 }
 0x226   :  { %2029 = vmatprep.subr.mxu1 %v2359_v36 }
 0x227   :  { %2030 = vmatpush1.msra.mxu1 %v1968_v47 }
 0x228   :  { %2031 = vmatprep.subr.mxu1 %v2359_v36 }
 0x229   :  { %2032 = vmatpush1.msra.mxu1 %v1967_v49 }
 0x22a   :  { %2049 = vmatprep.subr.mxu1 %v2359_v36 }
 0x22b   :  { %2050 = vmatpush2.msra.mxu1 %v1990_v50 }
 0x22c   :  { %2051 = vmatprep.subr.mxu1 %v2359_v36 }
 0x22d   :  { %2052 = vmatpush2.msra.mxu1 %v1989_v51 }
 0x22e   :  { %2053 = vmatprep.subr.mxu1 %v2359_v36 }
 0x22f   :  { %2054 = vmatpush2.msra.mxu1 %v1988_v52 }
 0x230   :  { %2055 = vmatprep.subr.mxu1 %v2359_v36 }
 0x231   :  { %2056 = vmatpush2.msra.mxu1 %v1987_v54 }
 0x232   :  { %2057 = vmatprep.subr.mxu1 %v2359_v36 }
 0x233   :  { %2058 = vmatpush2.msra.mxu1 %v1986_v55 }
 0x234   :  { %2059 = vmatprep.subr.mxu1 %v2359_v36 }
 0x235   :  { %2060 = vmatpush2.msra.mxu1 %v1985_v57 }
 0x236   :  { %2061 = vmatprep.subr.mxu1 %v2359_v36 }
 0x237   :  { %2062 = vmatpush2.msra.mxu1 %v1984_v58 }
 0x238   :  { %2063 = vmatprep.subr.mxu1 %v2359_v36 }
 0x239   :  { %2064 = vmatpush2.msra.mxu1 %v1983_v56 }
 0x261   :  { %v1889_v59 = vpop.f32.mrf.mxu0 }
 0x262   :  { %v1890_v61 = vadd.f32 %v1889_v59, %v1816_v3 }
 0x263   :  { %v1891_v60 = vpop.f32.mrf.mxu0 }
 0x264   :  { %v1892_v63 = vadd.f32 %v1891_v60, %v1820_v48 }
 0x2ca   :  { %v1960_v33 = vpop.f32.mrf.mxu1 }
 0x2cb   :  { %v1961_v0 = vadd.f32 %v1960_v33, %v1890_v61 }
 0x2cc   :  { %v1962_v1 = vpop.f32.mrf.mxu1 }
 0x2cd   :  { %v1963_v2 = vadd.f32 %v1962_v1, %v1892_v63  ;;  %v1965_v29 = vmax.f32 %v1961_v0, 0.0 }
 0x2cf   :  { %v1966_v36 = vmax.f32 %v1963_v2, 0.0 }
 0x2d1   :  { %2090 = vmatprep.mubr.msk.f32.mxu1 %vm722_vm0, %v1966_v36 }
 0x2d2   :  { %2066 = vmatmul.mubr.f32.vlgmr.msra.gmra.mxu1 %v1965_v29 }
 0x392   :  { %v2067_v41 = vpop.f32.mrf.mxu1 }
 0x393   :  { %v2068_v19 = vadd.f32 %v2089_v4, %v2067_v41 }
 0x394   :  { %v2069_v22 = vpop.f32.mrf.mxu1 }
 0x395   :  { %2071 = vst [vmem:[#allocation2] sm:$0x3] %v2068_v19 }
 0x396   :  { %2347 = shalt.err (!%p2344_p4)
}
 0x397   :  { %2081 = dma.vmem_to_hbm [thread:$0]  %s2079_s11, 32, %s4717_s7, [#allocation3]  }
 0x398   :  { %2356 = dma.done.wait [#allocation3], 32  }
 0x399   :  { %2357 = vsyncadd [#allocation3], 4294967264 }
 0x39a   :  { %2085 = vsyncpa [#allocation3], 1 }

// kernel: cifarnet_forward.4
= control target key start
LH: loop header
LB: loop body
LE: loop exit
PB: predicated region body
PF: predicated region fallthrough
CT: control target
= control target key end

     0   :  { %vm310_vm0 = vcmask 523264   ;;  %vm5779_vm1 = vmmov 0   ;;  %vm3573_vm2 = vcmask 517120   ;;  %s10097_s1 = inlined_call_operand.vmem [shape: f32[1600,64], index: 1, kind: input, shape index: {}]   ;;  %s10098_s0 = inlined_call_operand.vmem [shape: f32[4,50,1600], index: 0, kind: input, shape index: {}]   ;;  %s10099_s2 = inlined_call_operand.vmem [shape: f32[1,64], index: 2, kind: input, shape index: {}]   ;;  %s10100_s3 = inlined_call_operand.vmem [shape: f32[1,64], index: 3, kind: input, shape index: {}]   ;;  %s10101_s4 = inlined_call_operand.vmem [shape: f32[50,64], index: 4, kind: output, shape index: {}]  }
   0x1   :  { %v5808_v0 = vld [vmem:[%s10097_s1 + $0xf8] sm:$0xff]  ;;  %v5825_v4 = vld [vmem:[%s10097_s1 + $0xf0] sm:$0xff]  ;;  %v5842_v8 = vld [vmem:[%s10097_s1 + $0xe8] sm:$0xff] }
   0x2   :  { %v80_v1 = vld [vmem:[%s10097_s1 + $0x1f8] sm:$0xff]  ;;  %3882 = vmatprep.subr.mxu0 %v5808_v0  ;;  %v79_v5 = vld [vmem:[%s10097_s1 + $0x1f0] sm:$0xff]  ;;  %v78_v9 = vld [vmem:[%s10097_s1 + $0x1e8] sm:$0xff] }
   0x3   :  { %v5816_v2 = vld [vmem:[%s10097_s1 + $0x78] sm:$0xff]  ;;  %3935 = vmatprep.subr.mxu1 %v80_v1  ;;  %v5834_v6 = vld [vmem:[%s10097_s1 + $0x70] sm:$0xff]  ;;  %v5851_v10 = vld [vmem:[%s10097_s1 + $0x68] sm:$0xff] }
   0x4   :  { %v64_v3 = vld [vmem:[%s10097_s1 + $0x178] sm:$0xff]  ;;  %3883 = vmatpush3.msra.mxu0 %v5816_v2  ;;  %v63_v7 = vld [vmem:[%s10097_s1 + $0x170] sm:$0xff]  ;;  %v62_v11 = vld [vmem:[%s10097_s1 + $0x168] sm:$0xff] }
   0x5   :  { %3936 = vmatpush3.msra.mxu1 %v64_v3  ;;  %3884 = vmatprep.subr.mxu0 %v5825_v4  ;;  %v5860_v12 = vld [vmem:[%s10097_s1 + $0xe0] sm:$0xff]  ;;  %v5878_v16 = vld [vmem:[%s10097_s1 + $0xd8] sm:$0xff]  ;;  %v5896_v20 = vld [vmem:[%s10097_s1 + $0xd0] sm:$0xff] }
   0x6   :  { %3937 = vmatprep.subr.mxu1 %v79_v5  ;;  %3885 = vmatpush3.msra.mxu0 %v5834_v6  ;;  %v77_v13 = vld [vmem:[%s10097_s1 + $0x1e0] sm:$0xff]  ;;  %v76_v17 = vld [vmem:[%s10097_s1 + $0x1d8] sm:$0xff]  ;;  %v75_v21 = vld [vmem:[%s10097_s1 + $0x1d0] sm:$0xff] }
   0x7   :  { %3938 = vmatpush3.msra.mxu1 %v63_v7  ;;  %3886 = vmatprep.subr.mxu0 %v5842_v8  ;;  %v5869_v14 = vld [vmem:[%s10097_s1 + $0x60] sm:$0xff]  ;;  %v5887_v18 = vld [vmem:[%s10097_s1 + $0x58] sm:$0xff]  ;;  %v5905_v22 = vld [vmem:[%s10097_s1 + $0x50] sm:$0xff] }
   0x8   :  { %3939 = vmatprep.subr.mxu1 %v78_v9  ;;  %v61_v15 = vld [vmem:[%s10097_s1 + $0x160] sm:$0xff]  ;;  %3887 = vmatpush3.msra.mxu0 %v5851_v10  ;;  %v60_v19 = vld [vmem:[%s10097_s1 + $0x158] sm:$0xff]  ;;  %v59_v23 = vld [vmem:[%s10097_s1 + $0x150] sm:$0xff] }
   0x9   :  { %3940 = vmatpush3.msra.mxu1 %v62_v11  ;;  %3888 = vmatprep.subr.mxu0 %v5860_v12  ;;  %v5914_v24 = vld [vmem:[%s10097_s1 + $0xc8] sm:$0xff]  ;;  %v5932_v28 = vld [vmem:[%s10097_s1 + $0xc0] sm:$0xff]  ;;  %v5950_v32 = vld [vmem:[%s10097_s1 + $0xb8] sm:$0xff] }
   0xa   :  { %3941 = vmatprep.subr.mxu1 %v77_v13  ;;  %3889 = vmatpush3.msra.mxu0 %v5869_v14  ;;  %v74_v25 = vld [vmem:[%s10097_s1 + $0x1c8] sm:$0xff]  ;;  %v73_v29 = vld [vmem:[%s10097_s1 + $0x1c0] sm:$0xff]  ;;  %v72_v33 = vld [vmem:[%s10097_s1 + $0x1b8] sm:$0xff] }
   0xb   :  { %3942 = vmatpush3.msra.mxu1 %v61_v15  ;;  %3890 = vmatprep.subr.mxu0 %v5878_v16  ;;  %v5923_v26 = vld [vmem:[%s10097_s1 + $0x48] sm:$0xff]  ;;  %v5941_v30 = vld [vmem:[%s10097_s1 + $0x40] sm:$0xff]  ;;  %v5959_v34 = vld [vmem:[%s10097_s1 + $0x38] sm:$0xff] }
   0xc   :  { %3943 = vmatprep.subr.mxu1 %v76_v17  ;;  %3891 = vmatpush3.msra.mxu0 %v5887_v18  ;;  %v58_v27 = vld [vmem:[%s10097_s1 + $0x148] sm:$0xff]  ;;  %v57_v31 = vld [vmem:[%s10097_s1 + $0x140] sm:$0xff]  ;;  %v56_v35 = vld [vmem:[%s10097_s1 + $0x138] sm:$0xff] }
   0xd   :  { %3944 = vmatpush3.msra.mxu1 %v60_v19  ;;  %3892 = vmatprep.subr.mxu0 %v5896_v20  ;;  %v5968_v36 = vld [vmem:[%s10097_s1 + $0xb0] sm:$0xff]  ;;  %v5986_v40 = vld [vmem:[%s10097_s1 + $0xa8] sm:$0xff]  ;;  %v6004_v44 = vld [vmem:[%s10097_s1 + $0xa0] sm:$0xff] }
   0xe   :  { %3945 = vmatprep.subr.mxu1 %v75_v21  ;;  %3893 = vmatpush3.msra.mxu0 %v5905_v22  ;;  %v71_v37 = vld [vmem:[%s10097_s1 + $0x1b0] sm:$0xff]  ;;  %v70_v41 = vld [vmem:[%s10097_s1 + $0x1a8] sm:$0xff]  ;;  %v69_v45 = vld [vmem:[%s10097_s1 + $0x1a0] sm:$0xff] }
   0xf   :  { %3946 = vmatpush3.msra.mxu1 %v59_v23  ;;  %3894 = vmatprep.subr.mxu0 %v5914_v24  ;;  %v5977_v38 = vld [vmem:[%s10097_s1 + $0x30] sm:$0xff]  ;;  %v5995_v42 = vld [vmem:[%s10097_s1 + $0x28] sm:$0xff]  ;;  %v6013_v46 = vld [vmem:[%s10097_s1 + $0x20] sm:$0xff] }
  0x10   :  { %3947 = vmatprep.subr.mxu1 %v74_v25  ;;  %3895 = vmatpush3.msra.mxu0 %v5923_v26  ;;  %v55_v39 = vld [vmem:[%s10097_s1 + $0x130] sm:$0xff]  ;;  %v54_v43 = vld [vmem:[%s10097_s1 + $0x128] sm:$0xff]  ;;  %v53_v47 = vld [vmem:[%s10097_s1 + $0x120] sm:$0xff] }
  0x11   :  { %3948 = vmatpush3.msra.mxu1 %v58_v27  ;;  %3896 = vmatprep.subr.mxu0 %v5932_v28  ;;  %v6022_v48 = vld [vmem:[%s10097_s1 + $0x98] sm:$0xff]  ;;  %v6040_v52 = vld [vmem:[%s10097_s1 + $0x90] sm:$0xff]  ;;  %v6058_v56 = vld [vmem:[%s10097_s1 + $0x88] sm:$0xff] }
  0x12   :  { %3949 = vmatprep.subr.mxu1 %v73_v29  ;;  %3897 = vmatpush3.msra.mxu0 %v5941_v30  ;;  %v68_v49 = vld [vmem:[%s10097_s1 + $0x198] sm:$0xff]  ;;  %v67_v53 = vld [vmem:[%s10097_s1 + $0x190] sm:$0xff]  ;;  %v66_v57 = vld [vmem:[%s10097_s1 + $0x188] sm:$0xff] }
  0x13   :  { %3950 = vmatpush3.msra.mxu1 %v57_v31  ;;  %3898 = vmatprep.subr.mxu0 %v5950_v32  ;;  %v6031_v50 = vld [vmem:[%s10097_s1 + $0x18] sm:$0xff]  ;;  %v6049_v54 = vld [vmem:[%s10097_s1 + $0x10] sm:$0xff]  ;;  %v6067_v58 = vld [vmem:[%s10097_s1 + $0x8] sm:$0xff] }
  0x14   :  { %3951 = vmatprep.subr.mxu1 %v72_v33  ;;  %3899 = vmatpush3.msra.mxu0 %v5959_v34  ;;  %v52_v51 = vld [vmem:[%s10097_s1 + $0x118] sm:$0xff]  ;;  %v51_v55 = vld [vmem:[%s10097_s1 + $0x110] sm:$0xff]  ;;  %v50_v59 = vld [vmem:[%s10097_s1 + $0x108] sm:$0xff] }
  0x15   :  { %3952 = vmatpush3.msra.mxu1 %v56_v35  ;;  %3900 = vmatprep.subr.mxu0 %v5968_v36  ;;  %v6076_v60 = vld [vmem:[%s10097_s1 + $0x80] sm:$0xff]  ;;  %v220_v63 = vld [vmem:[%s10098_s0 + $0x8] sm:$0xff]  ;;  %v222_v3 = vld [vmem:[%s10098_s0 + $0x18] sm:$0xff] }
  0x16   :  { %3953 = vmatprep.subr.mxu1 %v71_v37  ;;  %3901 = vmatpush3.msra.mxu0 %v5977_v38  ;;  %v65_v61 = vld [vmem:[%s10097_s1 + $0x180] sm:$0xff]  ;;  %v221_v7 = vld [vmem:[%s10098_s0 + $0x10] sm:$0xff]  ;;  %v6108_v9 = vld [vmem:[%s10097_s1 + $0x2f8] sm:$0xff] }
  0x17   :  { %3954 = vmatpush3.msra.mxu1 %v55_v39  ;;  %3902 = vmatprep.subr.mxu0 %v5986_v40  ;;  %v6085_v62 = vld [vmem:[%s10097_s1] sm:$0xff]  ;;  %v144_v11 = vld [vmem:[%s10097_s1 + $0x3f8] sm:$0xff]  ;;  %v6124_v17 = vld [vmem:[%s10097_s1 + $0x2f0] sm:$0xff] }
  0x18   :  { %3955 = vmatprep.subr.mxu1 %v70_v41  ;;  %3903 = vmatpush3.msra.mxu0 %v5995_v42  ;;  %v49_v1 = vld [vmem:[%s10097_s1 + $0x100] sm:$0xff]  ;;  %v6116_v13 = vld [vmem:[%s10097_s1 + $0x278] sm:$0xff]  ;;  %v143_v19 = vld [vmem:[%s10097_s1 + $0x3f0] sm:$0xff] }
  0x19   :  { %3956 = vmatpush3.msra.mxu1 %v54_v43  ;;  %3904 = vmatprep.subr.mxu0 %v6004_v44  ;;  %v219_v5 = vld [vmem:[%s10098_s0] sm:$0xff]  ;;  %v128_v15 = vld [vmem:[%s10097_s1 + $0x378] sm:$0xff]  ;;  %v6133_v21 = vld [vmem:[%s10097_s1 + $0x270] sm:$0xff] }
  0x1a   :  { %3957 = vmatprep.subr.mxu1 %v69_v45  ;;  %3905 = vmatpush3.msra.mxu0 %v6013_v46  ;;  %v127_v23 = vld [vmem:[%s10097_s1 + $0x370] sm:$0xff]  ;;  %v6142_v25 = vld [vmem:[%s10097_s1 + $0x2e8] sm:$0xff]  ;;  %v235_v35 = vld [vmem:[%s10098_s0 + $0x80] sm:$0xff] }
  0x1b   :  { %3958 = vmatpush3.msra.mxu1 %v53_v47  ;;  %3906 = vmatprep.subr.mxu0 %v6022_v48  ;;  %v142_v27 = vld [vmem:[%s10097_s1 + $0x3e8] sm:$0xff]  ;;  %v233_v33 = vld [vmem:[%s10098_s0 + $0x70] sm:$0xff]  ;;  %v6167_v37 = vld [vmem:[%s10097_s1 + $0x2e0] sm:$0xff] }
  0x1c   :  { %3959 = vmatprep.subr.mxu1 %v68_v49  ;;  %3907 = vmatpush3.msra.mxu0 %v6031_v50  ;;  %v6151_v29 = vld [vmem:[%s10097_s1 + $0x268] sm:$0xff]  ;;  %v141_v39 = vld [vmem:[%s10097_s1 + $0x3e0] sm:$0xff]  ;;  %v234_v43 = vld [vmem:[%s10098_s0 + $0x78] sm:$0xff] }
  0x1d   :  { %3960 = vmatpush3.msra.mxu1 %v52_v51  ;;  %3908 = vmatprep.subr.mxu0 %v6040_v52  ;;  %v126_v31 = vld [vmem:[%s10097_s1 + $0x368] sm:$0xff]  ;;  %v6182_v45 = vld [vmem:[%s10097_s1 + $0x260] sm:$0xff]  ;;  %v6191_v49 = vld [vmem:[%s10097_s1 + $0x2d8] sm:$0xff] }
  0x1e   :  { %3961 = vmatprep.subr.mxu1 %v67_v53  ;;  %3909 = vmatpush3.msra.mxu0 %v6049_v54  ;;  %v232_v41 = vld [vmem:[%s10098_s0 + $0x68] sm:$0xff]  ;;  %v125_v47 = vld [vmem:[%s10097_s1 + $0x360] sm:$0xff]  ;;  %v140_v51 = vld [vmem:[%s10097_s1 + $0x3d8] sm:$0xff] }
  0x1f   :  { %3962 = vmatpush3.msra.mxu1 %v51_v55  ;;  %3910 = vmatprep.subr.mxu0 %v6058_v56  ;;  %v6199_v53 = vld [vmem:[%s10097_s1 + $0x258] sm:$0xff] }
  0x20   :  { %3963 = vmatprep.subr.mxu1 %v66_v57  ;;  %3911 = vmatpush3.msra.mxu0 %v6067_v58  ;;  %v124_v55 = vld [vmem:[%s10097_s1 + $0x358] sm:$0xff] }
  0x21   :  { %3964 = vmatpush3.msra.mxu1 %v50_v59  ;;  %3912 = vmatprep.subr.mxu0 %v6076_v60  ;;  %v246_v57 = vld [vmem:[%s10098_s0 + $0xd8] sm:$0xff]  ;;  %v248_v59 = vld [vmem:[%s10098_s0 + $0xe8] sm:$0xff] }
  0x22   :  { %3965 = vmatprep.subr.mxu1 %v65_v61  ;;  %3913 = vmatpush3.msra.mxu0 %v6085_v62  ;;  %v6215_v61 = vld [vmem:[%s10097_s1 + $0x2d0] sm:$0xff] }
  0x23   :  { %396 = vmatprep.mubr.f32.mxu0 %v220_v63  ;;  %3966 = vmatpush3.msra.mxu1 %v49_v1  ;;  %v139_v63 = vld [vmem:[%s10097_s1 + $0x3d0] sm:$0xff] }
  0x24   :  { %496 = vmatprep.mubr.f32.mxu1 %v222_v3  ;;  %397 = vmatmul.mubr.f32.vlgmr.msra.gmra.mxu0 %v219_v5  ;;  %v245_v1 = vld [vmem:[%s10098_s0 + $0xd0] sm:$0xff]  ;;  %v247_v3 = vld [vmem:[%s10098_s0 + $0xe0] sm:$0xff] }
  0x25   :  { %497 = vmatmul.mubr.f32.vlgmr.msra.gmra.mxu1 %v221_v7  ;;  %3988 = vmatprep.subr.mxu0 %v6108_v9  ;;  %v6230_v5 = vld [vmem:[%s10097_s1 + $0x250] sm:$0xff] }
  0x26   :  { %4041 = vmatprep.subr.mxu1 %v144_v11  ;;  %3989 = vmatpush3.msra.mxu0 %v6116_v13  ;;  %v123_v7 = vld [vmem:[%s10097_s1 + $0x350] sm:$0xff]  ;;  %v6239_v11 = vld [vmem:[%s10097_s1 + $0x2c8] sm:$0xff] }
  0x27   :  { %4042 = vmatpush3.msra.mxu1 %v128_v15  ;;  %3990 = vmatprep.subr.mxu0 %v6124_v17  ;;  %v138_v15 = vld [vmem:[%s10097_s1 + $0x3c8] sm:$0xff] }
  0x28   :  { %4043 = vmatprep.subr.mxu1 %v143_v19  ;;  %3991 = vmatpush3.msra.mxu0 %v6133_v21  ;;  %v6247_v19 = vld [vmem:[%s10097_s1 + $0x248] sm:$0xff] }
  0x29   :  { %4044 = vmatpush3.msra.mxu1 %v127_v23  ;;  %3992 = vmatprep.subr.mxu0 %v6142_v25  ;;  %v122_v23 = vld [vmem:[%s10097_s1 + $0x348] sm:$0xff] }
  0x2a   :  { %4045 = vmatprep.subr.mxu1 %v142_v27  ;;  %3993 = vmatpush3.msra.mxu0 %v6151_v29  ;;  %v259_v27 = vld [vmem:[%s10098_s0 + $0x140] sm:$0xff] }
  0x2b   :  { %4046 = vmatpush3.msra.mxu1 %v126_v31  ;;  %401 = vmatprep.mubr.f32.mxu0 %v233_v33  ;;  %v261_v31 = vld [vmem:[%s10098_s0 + $0x150] sm:$0xff]  ;;  %v6263_v33 = vld [vmem:[%s10097_s1 + $0x2c0] sm:$0xff] }
  0x2c   :  { %501 = vmatprep.mubr.f32.mxu1 %v235_v35  ;;  %3994 = vmatprep.subr.mxu0 %v6167_v37  ;;  %v137_v35 = vld [vmem:[%s10097_s1 + $0x3c0] sm:$0xff] }
  0x2d   :  { %4047 = vmatprep.subr.mxu1 %v141_v39  ;;  %402 = vmatmul.mubr.f32.gmra.mxu0 %v232_v41  ;;  %v258_v39 = vld [vmem:[%s10098_s0 + $0x138] sm:$0xff]  ;;  %v260_v41 = vld [vmem:[%s10098_s0 + $0x148] sm:$0xff] }
  0x2e   :  { %502 = vmatmul.mubr.f32.gmra.mxu1 %v234_v43  ;;  %3995 = vmatpush3.msra.mxu0 %v6182_v45  ;;  %v6278_v43 = vld [vmem:[%s10097_s1 + $0x240] sm:$0xff] }
  0x2f   :  { %4048 = vmatpush3.msra.mxu1 %v125_v47  ;;  %3996 = vmatprep.subr.mxu0 %v6191_v49  ;;  %v121_v47 = vld [vmem:[%s10097_s1 + $0x340] sm:$0xff] }
  0x30   :  { %4049 = vmatprep.subr.mxu1 %v140_v51  ;;  %3997 = vmatpush3.msra.mxu0 %v6199_v53  ;;  %v6287_v51 = vld [vmem:[%s10097_s1 + $0x2b8] sm:$0xff] }
  0x31   :  { %4050 = vmatpush3.msra.mxu1 %v124_v55  ;;  %406 = vmatprep.mubr.f32.mxu0 %v246_v57  ;;  %v136_v55 = vld [vmem:[%s10097_s1 + $0x3b8] sm:$0xff] }
  0x32   :  { %506 = vmatprep.mubr.f32.mxu1 %v248_v59  ;;  %3998 = vmatprep.subr.mxu0 %v6215_v61  ;;  %v6295_v57 = vld [vmem:[%s10097_s1 + $0x238] sm:$0xff] }
  0x33   :  { %4051 = vmatprep.subr.mxu1 %v139_v63  ;;  %407 = vmatmul.mubr.f32.gmra.mxu0 %v245_v1  ;;  %v120_v59 = vld [vmem:[%s10097_s1 + $0x338] sm:$0xff]  ;;  %v272_v63 = vld [vmem:[%s10098_s0 + $0x1a8] sm:$0xff] }
  0x34   :  { %507 = vmatmul.mubr.f32.gmra.mxu1 %v247_v3  ;;  %3999 = vmatpush3.msra.mxu0 %v6230_v5  ;;  %v274_v1 = vld [vmem:[%s10098_s0 + $0x1b8] sm:$0xff]  ;;  %v6311_v3 = vld [vmem:[%s10097_s1 + $0x2b0] sm:$0xff] }
  0x35   :  { %4052 = vmatpush3.msra.mxu1 %v123_v7  ;;  %4000 = vmatprep.subr.mxu0 %v6239_v11  ;;  %v135_v7 = vld [vmem:[%s10097_s1 + $0x3b0] sm:$0xff] }
  0x36   :  { %4053 = vmatprep.subr.mxu1 %v138_v15  ;;  %4001 = vmatpush3.msra.mxu0 %v6247_v19  ;;  %v271_v15 = vld [vmem:[%s10098_s0 + $0x1a0] sm:$0xff] }
  0x37   :  { %4054 = vmatpush3.msra.mxu1 %v122_v23  ;;  %411 = vmatprep.mubr.f32.mxu0 %v259_v27  ;;  %v273_v23 = vld [vmem:[%s10098_s0 + $0x1b0] sm:$0xff] }
  0x38   :  { %511 = vmatprep.mubr.f32.mxu1 %v261_v31  ;;  %4002 = vmatprep.subr.mxu0 %v6263_v33  ;;  %v6326_v27 = vld [vmem:[%s10097_s1 + $0x230] sm:$0xff] }
  0x39   :  { %4055 = vmatprep.subr.mxu1 %v137_v35  ;;  %412 = vmatmul.mubr.f32.gmra.mxu0 %v258_v39  ;;  %v119_v31 = vld [vmem:[%s10097_s1 + $0x330] sm:$0xff]  ;;  %v6335_v35 = vld [vmem:[%s10097_s1 + $0x2a8] sm:$0xff] }
  0x3a   :  { %512 = vmatmul.mubr.f32.gmra.mxu1 %v260_v41  ;;  %4003 = vmatpush3.msra.mxu0 %v6278_v43  ;;  %v134_v39 = vld [vmem:[%s10097_s1 + $0x3a8] sm:$0xff] }
  0x3b   :  { %4056 = vmatpush3.msra.mxu1 %v121_v47  ;;  %4004 = vmatprep.subr.mxu0 %v6287_v51  ;;  %v6343_v41 = vld [vmem:[%s10097_s1 + $0x228] sm:$0xff] }
  0x3c   :  { %4057 = vmatprep.subr.mxu1 %v136_v55  ;;  %4005 = vmatpush3.msra.mxu0 %v6295_v57  ;;  %v118_v47 = vld [vmem:[%s10097_s1 + $0x328] sm:$0xff]  ;;  %v285_v55 = vld [vmem:[%s10098_s0 + $0x210] sm:$0xff] }
  0x3d   :  { %4058 = vmatpush3.msra.mxu1 %v120_v59  ;;  %416 = vmatprep.mubr.f32.mxu0 %v272_v63  ;;  %v287_v59 = vld [vmem:[%s10098_s0 + $0x220] sm:$0xff] }
  0x3e   :  { %516 = vmatprep.mubr.f32.mxu1 %v274_v1  ;;  %4006 = vmatprep.subr.mxu0 %v6311_v3  ;;  %v6359_v63 = vld [vmem:[%s10097_s1 + $0x2a0] sm:$0xff] }
  0x3f   :  { %4059 = vmatprep.subr.mxu1 %v135_v7  ;;  %417 = vmatmul.mubr.f32.gmra.mxu0 %v271_v15  ;;  %v133_v1 = vld [vmem:[%s10097_s1 + $0x3a0] sm:$0xff]  ;;  %v284_v7 = vld [vmem:[%s10098_s0 + $0x208] sm:$0xff]  ;;  %v286_v15 = vld [vmem:[%s10098_s0 + $0x218] sm:$0xff] }
  0x40   :  { %517 = vmatmul.mubr.f32.gmra.mxu1 %v273_v23  ;;  %4007 = vmatpush3.msra.mxu0 %v6326_v27  ;;  %v6374_v23 = vld [vmem:[%s10097_s1 + $0x220] sm:$0xff] }
  0x41   :  { %4060 = vmatpush3.msra.mxu1 %v119_v31  ;;  %4008 = vmatprep.subr.mxu0 %v6335_v35  ;;  %10186 = vst [vmem:[#allocation2_spill] sm:$0xff] %v6374_v23  ;;  %v117_v31 = vld [vmem:[%s10097_s1 + $0x320] sm:$0xff] }
  0x42   :  { %4061 = vmatprep.subr.mxu1 %v134_v39  ;;  %4009 = vmatpush3.msra.mxu0 %v6343_v41  ;;  %v6383_v39 = vld [vmem:[%s10097_s1 + $0x298] sm:$0xff] }
  0x43   :  { %4062 = vmatpush3.msra.mxu1 %v118_v47  ;;  %421 = vmatprep.mubr.f32.mxu0 %v285_v55  ;;  %10187 = vst [vmem:[#allocation3_spill] sm:$0xff] %v6383_v39  ;;  %v132_v47 = vld [vmem:[%s10097_s1 + $0x398] sm:$0xff] }
  0x44   :  { %521 = vmatprep.mubr.f32.mxu1 %v287_v59  ;;  %4010 = vmatprep.subr.mxu0 %v6359_v63  ;;  %v6391_v55 = vld [vmem:[%s10097_s1 + $0x218] sm:$0xff] }
  0x45   :  { %4063 = vmatprep.subr.mxu1 %v133_v1  ;;  %422 = vmatmul.mubr.f32.gmra.mxu0 %v284_v7  ;;  %10188 = vst [vmem:[#allocation4_spill] sm:$0xff] %v6391_v55  ;;  %v116_v59 = vld [vmem:[%s10097_s1 + $0x318] sm:$0xff]  ;;  %v300_v7 = vld [vmem:[%s10098_s0 + $0x288] sm:$0x3] }
  0x46   :  { %522 = vmatmul.mubr.f32.gmra.mxu1 %v286_v15  ;;  %4011 = vmatpush3.msra.mxu0 %v6374_v23  ;;  %v298_v1 = vld [vmem:[%s10098_s0 + $0x278] sm:$0x3]  ;;  %v6407_v15 = vld [vmem:[%s10097_s1 + $0x290] sm:$0xff] }
  0x47   :  { %4064 = vmatpush3.msra.mxu1 %v117_v31  ;;  %4012 = vmatprep.subr.mxu0 %v6383_v39  ;;  %10189 = vst [vmem:[#allocation5_spill] sm:$0xff] %v6407_v15  ;;  %v131_v31 = vld [vmem:[%s10097_s1 + $0x390] sm:$0xff] }
  0x48   :  { %4065 = vmatprep.subr.mxu1 %v132_v47  ;;  %4013 = vmatpush3.msra.mxu0 %v6391_v55  ;;  %v297_v23 = vld [vmem:[%s10098_s0 + $0x270] sm:$0x3]  ;;  %v299_v47 = vld [vmem:[%s10098_s0 + $0x280] sm:$0x3] }
  0x49   :  { %4066 = vmatpush3.msra.mxu1 %v116_v59  ;;  %426 = vmatprep.mubr.f32.mxu0 %v298_v1  ;;  %v6422_v39 = vld [vmem:[%s10097_s1 + $0x210] sm:$0xff]  ;;  %v6431_v59 = vld [vmem:[%s10097_s1 + $0x288] sm:$0xff] }
  0x4a   :  { %526 = vmatprep.mubr.f32.mxu1 %v300_v7  ;;  %10190 = vst [vmem:[#allocation6_spill] sm:$0xff] %v6422_v39  ;;  %v115_v55 = vld [vmem:[%s10097_s1 + $0x310] sm:$0xff]  ;;  %4014 = vmatprep.subr.mxu0 %v6407_v15  ;;  %10191 = vst [vmem:[#allocation7_spill] sm:$0xff] %v6431_v59  ;;  %v130_v1 = vld [vmem:[%s10097_s1 + $0x388] sm:$0xff] }
  0x4b   :  { %4067 = vmatprep.subr.mxu1 %v131_v31  ;;  %427 = vmatmul.mubr.f32.gmra.mxu0 %v297_v23  ;;  %v6439_v7 = vld [vmem:[%s10097_s1 + $0x208] sm:$0xff]  ;;  %v6448_v15 = vld [vmem:[%s10097_s1 + $0x280] sm:$0xff] }
  0x4c   :  { %527 = vmatmul.mubr.f32.gmra.mxu1 %v299_v47  ;;  %10192 = vst [vmem:[#allocation8_spill] sm:$0xff] %v6439_v7  ;;  %v114_v31 = vld [vmem:[%s10097_s1 + $0x308] sm:$0xff]  ;;  %4015 = vmatpush3.msra.mxu0 %v6422_v39  ;;  %10193 = vst [vmem:[#allocation9_spill] sm:$0xff] %v6448_v15  ;;  %v129_v23 = vld [vmem:[%s10097_s1 + $0x380] sm:$0xff] }
  0x4d   :  { %4068 = vmatpush3.msra.mxu1 %v115_v55  ;;  %4016 = vmatprep.subr.mxu0 %v6431_v59  ;;  %v6457_v47 = vld [vmem:[%s10097_s1 + $0x200] sm:$0xff]  ;;  %v224_v55 = vld [vmem:[%s10098_s0 + $0x28] sm:$0xff]  ;;  %v226_v59 = vld [vmem:[%s10098_s0 + $0x38] sm:$0xff] }
  0x4e   :  { %4069 = vmatprep.subr.mxu1 %v130_v1  ;;  %10194 = vst [vmem:[#allocation10_spill] sm:$0xff] %v6457_v47  ;;  %4017 = vmatpush3.msra.mxu0 %v6439_v7  ;;  %v113_v39 = vld [vmem:[%s10097_s1 + $0x300] sm:$0xff]  ;;  %v6476_v7 = vld [vmem:[%s10097_s1 + $0x4f8] sm:$0xff] }
  0x4f   :  { %4070 = vmatpush3.msra.mxu1 %v114_v31  ;;  %v223_v1 = vld [vmem:[%s10098_s0 + $0x20] sm:$0xff]  ;;  %4018 = vmatprep.subr.mxu0 %v6448_v15  ;;  %10195 = vst [vmem:[#allocation11_spill] sm:$0xff] %v6476_v7  ;;  %v208_v31 = vld [vmem:[%s10097_s1 + $0x5f8] sm:$0xff] }
  0x50   :  { %4071 = vmatprep.subr.mxu1 %v129_v23  ;;  %4019 = vmatpush3.msra.mxu0 %v6457_v47  ;;  %v225_v23 = vld [vmem:[%s10098_s0 + $0x30] sm:$0xff]  ;;  %v6488_v15 = vld [vmem:[%s10097_s1 + $0x478] sm:$0xff] }
  0x51   :  { %596 = vmatprep.mubr.f32.mxu0 %v224_v55  ;;  %4072 = vmatpush3.msra.mxu1 %v113_v39  ;;  %10196 = vst [vmem:[#allocation12_spill] sm:$0xff] %v6488_v15  ;;  %v192_v47 = vld [vmem:[%s10097_s1 + $0x578] sm:$0xff]  ;;  %v6497_v55 = vld [vmem:[%s10097_s1 + $0x4f0] sm:$0xff] }
  0x52   :  { %597 = vmatmul.mubr.f32.vlgmr.msra.gmra.mxu0 %v223_v1  ;;  %696 = vmatprep.mubr.f32.mxu1 %v226_v59  ;;  %10197 = vst [vmem:[#allocation13_spill] sm:$0xff] %v6497_v55  ;;  %v207_v39 = vld [vmem:[%s10097_s1 + $0x5f0] sm:$0xff] }
  0x53   :  { %4094 = vmatprep.subr.mxu0 %v6476_v7  ;;  %4147 = vmatprep.subr.mxu1 %v208_v31  ;;  %v237_v1 = vld [vmem:[%s10098_s0 + $0x90] sm:$0xff]  ;;  %v236_v31 = vld [vmem:[%s10098_s0 + $0x88] sm:$0xff] }
  0x54   :  { %697 = vmatmul.mubr.f32.vlgmr.msra.gmra.mxu1 %v225_v23  ;;  %v6508_v59 = vld [vmem:[%s10097_s1 + $0x470] sm:$0xff]  ;;  %4095 = vmatpush3.msra.mxu0 %v6488_v15  ;;  %v6521_v23 = vld [vmem:[%s10097_s1 + $0x4e8] sm:$0xff]  ;;  %v239_v15 = vld [vmem:[%s10098_s0 + $0xa0] sm:$0xff] }
  0x55   :  { %10198 = vst [vmem:[#allocation14_spill] sm:$0xff] %v6508_v59  ;;  %4148 = vmatpush3.msra.mxu1 %v192_v47  ;;  %v191_v7 = vld [vmem:[%s10097_s1 + $0x570] sm:$0xff]  ;;  %4096 = vmatprep.subr.mxu0 %v6497_v55  ;;  %10199 = vst [vmem:[#allocation15_spill] sm:$0xff] %v6521_v23  ;;  %v206_v47 = vld [vmem:[%s10097_s1 + $0x5e8] sm:$0xff] }
  0x56   :  { %4149 = vmatprep.subr.mxu1 %v207_v39  ;;  %601 = vmatprep.mubr.f32.mxu0 %v237_v1  ;;  %v6533_v39 = vld [vmem:[%s10097_s1 + $0x468] sm:$0xff]  ;;  %v6541_v1 = vld [vmem:[%s10097_s1 + $0x4e0] sm:$0xff] }
  0x57   :  { %4097 = vmatpush3.msra.mxu0 %v6508_v59  ;;  %10200 = vst [vmem:[#allocation16_spill] sm:$0xff] %v6533_v39  ;;  %4150 = vmatpush3.msra.mxu1 %v191_v7  ;;  %v190_v55 = vld [vmem:[%s10097_s1 + $0x568] sm:$0xff]  ;;  %10201 = vst [vmem:[#allocation17_spill] sm:$0xff] %v6541_v1  ;;  %v238_v59 = vld [vmem:[%s10098_s0 + $0x98] sm:$0xff] }
  0x58   :  { %602 = vmatmul.mubr.f32.gmra.mxu0 %v236_v31  ;;  %4098 = vmatprep.subr.mxu0 %v6521_v23  ;;  %v205_v7 = vld [vmem:[%s10097_s1 + $0x5e0] sm:$0xff]  ;;  %v250_v31 = vld [vmem:[%s10098_s0 + $0xf8] sm:$0xff] }
  0x59   :  { %4151 = vmatprep.subr.mxu1 %v206_v47  ;;  %701 = vmatprep.mubr.f32.mxu1 %v239_v15  ;;  %v6557_v23 = vld [vmem:[%s10097_s1 + $0x460] sm:$0xff]  ;;  %v249_v15 = vld [vmem:[%s10098_s0 + $0xf0] sm:$0xff] }
  0x5a   :  { %4099 = vmatpush3.msra.mxu0 %v6533_v39  ;;  %10202 = vst [vmem:[#allocation18_spill] sm:$0xff] %v6557_v23  ;;  %4152 = vmatpush3.msra.mxu1 %v190_v55  ;;  %v189_v47 = vld [vmem:[%s10097_s1 + $0x560] sm:$0xff]  ;;  %v6569_v39 = vld [vmem:[%s10097_s1 + $0x4d8] sm:$0xff] }
  0x5b   :  { %4100 = vmatprep.subr.mxu0 %v6541_v1  ;;  %702 = vmatmul.mubr.f32.gmra.mxu1 %v238_v59  ;;  %10203 = vst [vmem:[#allocation19_spill] sm:$0xff] %v6569_v39  ;;  %v204_v55 = vld [vmem:[%s10097_s1 + $0x5d8] sm:$0xff]  ;;  %v252_v1 = vld [vmem:[%s10098_s0 + $0x108] sm:$0xff] }
  0x5c   :  { %4153 = vmatprep.subr.mxu1 %v205_v7  ;;  %606 = vmatprep.mubr.f32.mxu0 %v250_v31  ;;  %v6581_v59 = vld [vmem:[%s10097_s1 + $0x458] sm:$0xff]  ;;  %v6589_v31 = vld [vmem:[%s10097_s1 + $0x4d0] sm:$0xff] }
  0x5d   :  { %4101 = vmatpush3.msra.mxu0 %v6557_v23  ;;  %10204 = vst [vmem:[#allocation20_spill] sm:$0xff] %v6581_v59  ;;  %4154 = vmatpush3.msra.mxu1 %v189_v47  ;;  %v188_v7 = vld [vmem:[%s10097_s1 + $0x558] sm:$0xff]  ;;  %10205 = vst [vmem:[#allocation21_spill] sm:$0xff] %v6589_v31  ;;  %v251_v23 = vld [vmem:[%s10098_s0 + $0x100] sm:$0xff] }
  0x5e   :  { %607 = vmatmul.mubr.f32.gmra.mxu0 %v249_v15  ;;  %4102 = vmatprep.subr.mxu0 %v6569_v39  ;;  %v203_v47 = vld [vmem:[%s10097_s1 + $0x5d0] sm:$0xff]  ;;  %v263_v15 = vld [vmem:[%s10098_s0 + $0x160] sm:$0xff] }
  0x5f   :  { %4155 = vmatprep.subr.mxu1 %v204_v55  ;;  %706 = vmatprep.mubr.f32.mxu1 %v252_v1  ;;  %v6605_v39 = vld [vmem:[%s10097_s1 + $0x450] sm:$0xff]  ;;  %v262_v1 = vld [vmem:[%s10098_s0 + $0x158] sm:$0xff] }
  0x60   :  { %4103 = vmatpush3.msra.mxu0 %v6581_v59  ;;  %10206 = vst [vmem:[#allocation22_spill] sm:$0xff] %v6605_v39  ;;  %4156 = vmatpush3.msra.mxu1 %v188_v7  ;;  %v187_v55 = vld [vmem:[%s10097_s1 + $0x550] sm:$0xff]  ;;  %v6617_v59 = vld [vmem:[%s10097_s1 + $0x4c8] sm:$0xff] }
  0x61   :  { %4104 = vmatprep.subr.mxu0 %v6589_v31  ;;  %707 = vmatmul.mubr.f32.gmra.mxu1 %v251_v23  ;;  %10207 = vst [vmem:[#allocation23_spill] sm:$0xff] %v6617_v59  ;;  %v202_v7 = vld [vmem:[%s10097_s1 + $0x5c8] sm:$0xff]  ;;  %v265_v31 = vld [vmem:[%s10098_s0 + $0x170] sm:$0xff] }
  0x62   :  { %4157 = vmatprep.subr.mxu1 %v203_v47  ;;  %611 = vmatprep.mubr.f32.mxu0 %v263_v15  ;;  %v6629_v23 = vld [vmem:[%s10097_s1 + $0x448] sm:$0xff]  ;;  %v6637_v15 = vld [vmem:[%s10097_s1 + $0x4c0] sm:$0xff] }
  0x63   :  { %4105 = vmatpush3.msra.mxu0 %v6605_v39  ;;  %10208 = vst [vmem:[#allocation24_spill] sm:$0xff] %v6629_v23  ;;  %4158 = vmatpush3.msra.mxu1 %v187_v55  ;;  %v186_v47 = vld [vmem:[%s10097_s1 + $0x548] sm:$0xff]  ;;  %10209 = vst [vmem:[#allocation25_spill] sm:$0xff] %v6637_v15  ;;  %v201_v55 = vld [vmem:[%s10097_s1 + $0x5c0] sm:$0xff] }
  0x64   :  { %612 = vmatmul.mubr.f32.gmra.mxu0 %v262_v1  ;;  %4106 = vmatprep.subr.mxu0 %v6617_v59  ;;  %v264_v39 = vld [vmem:[%s10098_s0 + $0x168] sm:$0xff]  ;;  %v6653_v59 = vld [vmem:[%s10097_s1 + $0x440] sm:$0xff] }
  0x65   :  { %4159 = vmatprep.subr.mxu1 %v202_v7  ;;  %711 = vmatprep.mubr.f32.mxu1 %v265_v31  ;;  %v276_v1 = vld [vmem:[%s10098_s0 + $0x1c8] sm:$0xff]  ;;  %10210 = vst [vmem:[#allocation26_spill] sm:$0xff] %v6653_v59  ;;  %v185_v7 = vld [vmem:[%s10097_s1 + $0x540] sm:$0xff] }
  0x66   :  { %4107 = vmatpush3.msra.mxu0 %v6629_v23  ;;  %4160 = vmatpush3.msra.mxu1 %v186_v47  ;;  %v275_v31 = vld [vmem:[%s10098_s0 + $0x1c0] sm:$0xff]  ;;  %v6665_v23 = vld [vmem:[%s10097_s1 + $0x4b8] sm:$0xff] }
  0x67   :  { %4108 = vmatprep.subr.mxu0 %v6637_v15  ;;  %712 = vmatmul.mubr.f32.gmra.mxu1 %v264_v39  ;;  %10211 = vst [vmem:[#allocation27_spill] sm:$0xff] %v6665_v23  ;;  %v200_v47 = vld [vmem:[%s10097_s1 + $0x5b8] sm:$0xff] }
  0x68   :  { %4161 = vmatprep.subr.mxu1 %v201_v55  ;;  %616 = vmatprep.mubr.f32.mxu0 %v276_v1  ;;  %v278_v15 = vld [vmem:[%s10098_s0 + $0x1d8] sm:$0xff]  ;;  %v6685_v1 = vld [vmem:[%s10097_s1 + $0x4b0] sm:$0xff] }
  0x69   :  { %4109 = vmatpush3.msra.mxu0 %v6653_v59  ;;  %v6677_v39 = vld [vmem:[%s10097_s1 + $0x438] sm:$0xff]  ;;  %4162 = vmatpush3.msra.mxu1 %v185_v7  ;;  %10213 = vst [vmem:[#allocation29_spill] sm:$0xff] %v6685_v1  ;;  %v277_v59 = vld [vmem:[%s10098_s0 + $0x1d0] sm:$0xff] }
  0x6a   :  { %10212 = vst [vmem:[#allocation28_spill] sm:$0xff] %v6677_v39  ;;  %617 = vmatmul.mubr.f32.gmra.mxu0 %v275_v31  ;;  %v184_v55 = vld [vmem:[%s10097_s1 + $0x538] sm:$0xff]  ;;  %4110 = vmatprep.subr.mxu0 %v6665_v23  ;;  %v199_v7 = vld [vmem:[%s10097_s1 + $0x5b0] sm:$0xff] }
  0x6b   :  { %4163 = vmatprep.subr.mxu1 %v200_v47  ;;  %716 = vmatprep.mubr.f32.mxu1 %v278_v15  ;;  %v289_v31 = vld [vmem:[%s10098_s0 + $0x230] sm:$0xff]  ;;  %v288_v15 = vld [vmem:[%s10098_s0 + $0x228] sm:$0xff] }
  0x6c   :  { %4111 = vmatpush3.msra.mxu0 %v6677_v39  ;;  %v6701_v23 = vld [vmem:[%s10097_s1 + $0x430] sm:$0xff]  ;;  %4164 = vmatpush3.msra.mxu1 %v184_v55  ;;  %v6713_v39 = vld [vmem:[%s10097_s1 + $0x4a8] sm:$0xff] }
  0x6d   :  { %10214 = vst [vmem:[#allocation30_spill] sm:$0xff] %v6701_v23  ;;  %4112 = vmatprep.subr.mxu0 %v6685_v1  ;;  %v183_v47 = vld [vmem:[%s10097_s1 + $0x530] sm:$0xff]  ;;  %717 = vmatmul.mubr.f32.gmra.mxu1 %v277_v59  ;;  %10215 = vst [vmem:[#allocation31_spill] sm:$0xff] %v6713_v39  ;;  %v198_v55 = vld [vmem:[%s10097_s1 + $0x5a8] sm:$0xff] }
  0x6e   :  { %4165 = vmatprep.subr.mxu1 %v199_v7  ;;  %621 = vmatprep.mubr.f32.mxu0 %v289_v31  ;;  %v291_v1 = vld [vmem:[%s10098_s0 + $0x240] sm:$0xff]  ;;  %v6725_v59 = vld [vmem:[%s10097_s1 + $0x428] sm:$0xff] }
  0x6f   :  { %4113 = vmatpush3.msra.mxu0 %v6701_v23  ;;  %10216 = vst [vmem:[#allocation32_spill] sm:$0xff] %v6725_v59  ;;  %4166 = vmatpush3.msra.mxu1 %v183_v47  ;;  %v182_v7 = vld [vmem:[%s10097_s1 + $0x528] sm:$0xff]  ;;  %v6733_v31 = vld [vmem:[%s10097_s1 + $0x4a0] sm:$0xff]  ;;  %v290_v23 = vld [vmem:[%s10098_s0 + $0x238] sm:$0xff] }
  0x70   :  { %622 = vmatmul.mubr.f32.gmra.mxu0 %v288_v15  ;;  %10217 = vst [vmem:[#allocation33_spill] sm:$0xff] %v6733_v31  ;;  %4114 = vmatprep.subr.mxu0 %v6713_v39  ;;  %v197_v47 = vld [vmem:[%s10097_s1 + $0x5a0] sm:$0xff]  ;;  %v302_v15 = vld [vmem:[%s10098_s0 + $0x298] sm:$0x3] }
  0x71   :  { %4167 = vmatprep.subr.mxu1 %v198_v55  ;;  %721 = vmatprep.mubr.f32.mxu1 %v291_v1  ;;  %v6749_v39 = vld [vmem:[%s10097_s1 + $0x420] sm:$0xff]  ;;  %v301_v1 = vld [vmem:[%s10098_s0 + $0x290] sm:$0x3] }
  0x72   :  { %4115 = vmatpush3.msra.mxu0 %v6725_v59  ;;  %10218 = vst [vmem:[#allocation34_spill] sm:$0xff] %v6749_v39  ;;  %4168 = vmatpush3.msra.mxu1 %v182_v7  ;;  %v181_v55 = vld [vmem:[%s10097_s1 + $0x520] sm:$0xff]  ;;  %v6761_v59 = vld [vmem:[%s10097_s1 + $0x498] sm:$0xff] }
  0x73   :  { %4116 = vmatprep.subr.mxu0 %v6733_v31  ;;  %722 = vmatmul.mubr.f32.gmra.mxu1 %v290_v23  ;;  %10219 = vst [vmem:[#allocation35_spill] sm:$0xff] %v6761_v59  ;;  %v196_v7 = vld [vmem:[%s10097_s1 + $0x598] sm:$0xff]  ;;  %v304_v31 = vld [vmem:[%s10098_s0 + $0x2a8] sm:$0x3] }
  0x74   :  { %4169 = vmatprep.subr.mxu1 %v197_v47  ;;  %626 = vmatprep.mubr.f32.mxu0 %v302_v15  ;;  %v6773_v23 = vld [vmem:[%s10097_s1 + $0x418] sm:$0xff]  ;;  %v6781_v15 = vld [vmem:[%s10097_s1 + $0x490] sm:$0xff] }
  0x75   :  { %4117 = vmatpush3.msra.mxu0 %v6749_v39  ;;  %10220 = vst [vmem:[#allocation36_spill] sm:$0xff] %v6773_v23  ;;  %4170 = vmatpush3.msra.mxu1 %v181_v55  ;;  %v180_v47 = vld [vmem:[%s10097_s1 + $0x518] sm:$0xff]  ;;  %10221 = vst [vmem:[#allocation37_spill] sm:$0xff] %v6781_v15  ;;  %v303_v39 = vld [vmem:[%s10098_s0 + $0x2a0] sm:$0x3] }
  0x76   :  { %627 = vmatmul.mubr.f32.gmra.mxu0 %v301_v1  ;;  %4118 = vmatprep.subr.mxu0 %v6761_v59  ;;  %v195_v55 = vld [vmem:[%s10097_s1 + $0x590] sm:$0xff]  ;;  %v6803_v59 = vld [vmem:[%s10097_s1 + $0x488] sm:$0xff] }
  0x77   :  { %4171 = vmatprep.subr.mxu1 %v196_v7  ;;  %726 = vmatprep.mubr.f32.mxu1 %v304_v31  ;;  %v6794_v1 = vld [vmem:[%s10097_s1 + $0x410] sm:$0xff]  ;;  %10223 = vst [vmem:[#allocation39_spill] sm:$0xff] %v6803_v59  ;;  %v194_v31 = vld [vmem:[%s10097_s1 + $0x588] sm:$0xff] }
  0x78   :  { %4119 = vmatpush3.msra.mxu0 %v6773_v23  ;;  %10222 = vst [vmem:[#allocation38_spill] sm:$0xff] %v6794_v1  ;;  %v179_v7 = vld [vmem:[%s10097_s1 + $0x510] sm:$0xff]  ;;  %4172 = vmatpush3.msra.mxu1 %v180_v47  ;;  %v6811_v23 = vld [vmem:[%s10097_s1 + $0x408] sm:$0xff] }
  0x79   :  { %4120 = vmatprep.subr.mxu0 %v6781_v15  ;;  %727 = vmatmul.mubr.f32.gmra.mxu1 %v303_v39  ;;  %10224 = vst [vmem:[#allocation40_spill] sm:$0xff] %v6811_v23  ;;  %v178_v47 = vld [vmem:[%s10097_s1 + $0x508] sm:$0xff]  ;;  %v6820_v15 = vld [vmem:[%s10097_s1 + $0x480] sm:$0xff] }
  0x7a   :  { %4173 = vmatprep.subr.mxu1 %v195_v55  ;;  %4121 = vmatpush3.msra.mxu0 %v6794_v1  ;;  %v193_v39 = vld [vmem:[%s10097_s1 + $0x580] sm:$0xff] }
  0x7b   :  { %4174 = vmatpush3.msra.mxu1 %v179_v7  ;;  %4122 = vmatprep.subr.mxu0 %v6803_v59  ;;  %v6829_v55 = vld [vmem:[%s10097_s1 + $0x400] sm:$0xff]  ;;  %v228_v7 = vld [vmem:[%s10098_s0 + $0x48] sm:$0xff]  ;;  %v230_v59 = vld [vmem:[%s10098_s0 + $0x58] sm:$0xff] }
  0x7c   :  { %4175 = vmatprep.subr.mxu1 %v194_v31  ;;  %10225 = vst [vmem:[#allocation41_spill] sm:$0xff] %v6829_v55  ;;  %4123 = vmatpush3.msra.mxu0 %v6811_v23  ;;  %v177_v1 = vld [vmem:[%s10097_s1 + $0x500] sm:$0xff]  ;;  %v6852_v23 = vld [vmem:[%s10097_s1 + $0x638] sm:$0xff] }
  0x7d   :  { %4176 = vmatpush3.msra.mxu1 %v178_v47  ;;  %v227_v31 = vld [vmem:[%s10098_s0 + $0x40] sm:$0xff]  ;;  %4124 = vmatprep.subr.mxu0 %v6820_v15  ;;  %v229_v47 = vld [vmem:[%s10098_s0 + $0x50] sm:$0xff] }
  0x7e   :  { %4177 = vmatprep.subr.mxu1 %v193_v39  ;;  %4125 = vmatpush3.msra.mxu0 %v6829_v55  ;;  %v10142_v39 = vmov 0.0   ;;  %v241_v55 = vld [vmem:[%s10098_s0 + $0xb0] sm:$0xff] }
  0x7f   :  { %796 = vmatprep.mubr.f32.mxu0 %v228_v7  ;;  %4178 = vmatpush3.msra.mxu1 %v177_v1  ;;  %v240_v1 = vld [vmem:[%s10098_s0 + $0xa8] sm:$0xff]  ;;  %v254_v7 = vld [vmem:[%s10098_s0 + $0x118] sm:$0xff] }
  0x80   :  { %797 = vmatmul.mubr.f32.vlgmr.msra.gmra.mxu0 %v227_v31  ;;  %896 = vmatprep.mubr.f32.mxu1 %v230_v59  ;;  %v243_v59 = vld [vmem:[%s10098_s0 + $0xc0] sm:$0xff]  ;;  %v6932_v31 = vld [vmem:[%s10097_s1 + $0x618] sm:$0xff] }
  0x81   :  { %5214 = vmatprep.subr.mxu0 %v10142_v39  ;;  %4215 = vmatprep.subr.mxu1 %v5808_v0  ;;  %v6871_v0 = vld [vmem:[%s10097_s1 + $0x630] sm:$0xff] }
  0x82   :  { %897 = vmatmul.mubr.f32.vlgmr.msra.gmra.mxu1 %v229_v47  ;;  %5215 = vmatpush3.msra.mxu0 %v6852_v23  ;;  %v6955_v47 = vld [vmem:[%s10097_s1 + $0x610] sm:$0xff] }
  0x83   :  { %4216 = vmatpush3.msra.mxu1 %v5816_v2  ;;  %801 = vmatprep.mubr.f32.mxu0 %v241_v55  ;;  %v242_v2 = vld [vmem:[%s10098_s0 + $0xb8] sm:$0xff]  ;;  %v269_v55 = vld [vmem:[%s10098_s0 + $0x190] sm:$0xff] }
  0x84   :  { %4217 = vmatprep.subr.mxu1 %v5825_v4  ;;  %802 = vmatmul.mubr.f32.gmra.mxu0 %v240_v1  ;;  %v253_v4 = vld [vmem:[%s10098_s0 + $0x110] sm:$0xff]  ;;  %v6974_v1 = vld [vmem:[%s10097_s1 + $0x608] sm:$0xff] }
  0x85   :  { %4218 = vmatpush3.msra.mxu1 %v5834_v6  ;;  %5216 = vmatprep.subr.mxu0 %v10142_v39  ;;  %v6891_v6 = vld [vmem:[%s10097_s1 + $0x628] sm:$0xff] }
  0x86   :  { %4219 = vmatprep.subr.mxu1 %v5842_v8  ;;  %901 = vmatprep.mubr.f32.mxu1 %v243_v59  ;;  %v256_v8 = vld [vmem:[%s10098_s0 + $0x128] sm:$0xff]  ;;  %v6997_v59 = vld [vmem:[%s10097_s1 + $0x600] sm:$0xff] }
  0x87   :  { %5217 = vmatpush3.msra.mxu0 %v6871_v0  ;;  %4220 = vmatpush3.msra.mxu1 %v5851_v10  ;;  %v267_v10 = vld [vmem:[%s10098_s0 + $0x180] sm:$0xff] }
  0x88   :  { %806 = vmatprep.mubr.f32.mxu0 %v254_v7  ;;  %902 = vmatmul.mubr.f32.gmra.mxu1 %v242_v2  ;;  %v7060_v7 = vld [vmem:[%s10097_s1 + $0x168] sm:$0xff]  ;;  %v7074_v2 = vld [vmem:[%s10097_s1 + $0x160] sm:$0xff] }
  0x89   :  { %4221 = vmatprep.subr.mxu1 %v5860_v12  ;;  %5218 = vmatprep.subr.mxu0 %v10142_v39  ;;  %v255_v12 = vld [vmem:[%s10098_s0 + $0x120] sm:$0xff] }
  0x8a   :  { %4222 = vmatpush3.msra.mxu1 %v5869_v14  ;;  %807 = vmatmul.mubr.f32.gmra.mxu0 %v253_v4  ;;  %v266_v14 = vld [vmem:[%s10098_s0 + $0x178] sm:$0xff]  ;;  %v3602_v4 = vld [vmem:[%s10098_s0 + $0x348] sm:$0xff] }
  0x8b   :  { %4223 = vmatprep.subr.mxu1 %v5878_v16  ;;  %5219 = vmatpush3.msra.mxu0 %v6891_v6  ;;  %v6914_v16 = vld [vmem:[%s10097_s1 + $0x620] sm:$0xff] }
  0x8c   :  { %906 = vmatprep.mubr.f32.mxu1 %v256_v8  ;;  %4224 = vmatpush3.msra.mxu1 %v5887_v18  ;;  %v268_v18 = vld [vmem:[%s10098_s0 + $0x188] sm:$0xff]  ;;  %v3601_v8 = vld [vmem:[%s10098_s0 + $0x340] sm:$0xff] }
  0x8d   :  { %811 = vmatprep.mubr.f32.mxu0 %v267_v10  ;;  %907 = vmatmul.mubr.f32.gmra.mxu1 %v255_v12  ;;  %v7134_v10 = vld [vmem:[%s10097_s1 + $0x148] sm:$0xff]  ;;  %v7141_v12 = vld [vmem:[%s10097_s1 + $0x1c0] sm:$0xff] }
  0x8e   :  { %4225 = vmatprep.subr.mxu1 %v5896_v20  ;;  %5220 = vmatprep.subr.mxu0 %v10142_v39  ;;  %v280_v20 = vld [vmem:[%s10098_s0 + $0x1e8] sm:$0xff] }
  0x8f   :  { %4226 = vmatpush3.msra.mxu1 %v5905_v22  ;;  %812 = vmatmul.mubr.f32.gmra.mxu0 %v266_v14  ;;  %v279_v22 = vld [vmem:[%s10098_s0 + $0x1e0] sm:$0xff] }
  0x90   :  { %4227 = vmatprep.subr.mxu1 %v5914_v24  ;;  %5221 = vmatpush3.msra.mxu0 %v6914_v16  ;;  %v282_v24 = vld [vmem:[%s10098_s0 + $0x1f8] sm:$0xff]  ;;  %v7151_v14 = vld [vmem:[%s10097_s1 + $0x140] sm:$0xff] }
  0x91   :  { %911 = vmatprep.mubr.f32.mxu1 %v269_v55  ;;  %4228 = vmatpush3.msra.mxu1 %v5923_v26  ;;  %v281_v26 = vld [vmem:[%s10098_s0 + $0x1f0] sm:$0xff]  ;;  %v7166_v55 = vld [vmem:[%s10097_s1 + $0x1b8] sm:$0xff] }
  0x92   :  { %5222 = vmatprep.subr.mxu0 %v10142_v39  ;;  %912 = vmatmul.mubr.f32.gmra.mxu1 %v268_v18  ;;  %v7181_v18 = vld [vmem:[%s10097_s1 + $0x1b0] sm:$0xff] }
  0x93   :  { %4229 = vmatprep.subr.mxu1 %v5932_v28  ;;  %816 = vmatprep.mubr.f32.mxu0 %v280_v20  ;;  %v293_v28 = vld [vmem:[%s10098_s0 + $0x250] sm:$0xff] }
  0x94   :  { %5223 = vmatpush3.msra.mxu0 %v6932_v31  ;;  %4230 = vmatpush3.msra.mxu1 %v5941_v30  ;;  %v292_v30 = vld [vmem:[%s10098_s0 + $0x248] sm:$0xff]  ;;  %v7191_v20 = vld [vmem:[%s10097_s1 + $0x130] sm:$0xff] }
  0x95   :  { %817 = vmatmul.mubr.f32.gmra.mxu0 %v279_v22  ;;  %4231 = vmatprep.subr.mxu1 %v5950_v32  ;;  %v295_v32 = vld [vmem:[%s10098_s0 + $0x260] sm:$0xff]  ;;  %v7206_v22 = vld [vmem:[%s10097_s1 + $0x1a8] sm:$0xff] }
  0x96   :  { %916 = vmatprep.mubr.f32.mxu1 %v282_v24  ;;  %4232 = vmatpush3.msra.mxu1 %v5959_v34  ;;  %v294_v34 = vld [vmem:[%s10098_s0 + $0x258] sm:$0xff]  ;;  %v7221_v24 = vld [vmem:[%s10097_s1 + $0x1a0] sm:$0xff] }
  0x97   :  { %5224 = vmatprep.subr.mxu0 %v10142_v39  ;;  %917 = vmatmul.mubr.f32.gmra.mxu1 %v281_v26  ;;  %v7231_v26 = vld [vmem:[%s10097_s1 + $0x120] sm:$0xff] }
  0x98   :  { %4233 = vmatprep.subr.mxu1 %v5968_v36  ;;  %821 = vmatprep.mubr.f32.mxu0 %v293_v28  ;;  %v306_v36 = vld [vmem:[%s10098_s0 + $0x2b8] sm:$0x3] }
  0x99   :  { %5225 = vmatpush3.msra.mxu0 %v6955_v47  ;;  %4234 = vmatpush3.msra.mxu1 %v5977_v38  ;;  %v305_v38 = vld [vmem:[%s10098_s0 + $0x2b0] sm:$0x3]  ;;  %v7246_v28 = vld [vmem:[%s10097_s1 + $0x198] sm:$0xff] }
  0x9a   :  { %822 = vmatmul.mubr.f32.gmra.mxu0 %v292_v30  ;;  %4235 = vmatprep.subr.mxu1 %v5986_v40  ;;  %v308_v40 = vld [vmem:[%s10098_s0 + $0x2c8] sm:$0x3] }
  0x9b   :  { %921 = vmatprep.mubr.f32.mxu1 %v295_v32  ;;  %5226 = vmatprep.subr.mxu0 %v10142_v39  ;;  %v3654_v30 = vld [vmem:[%s10098_s0 + $0x4e8] sm:$0xff]  ;;  %v7271_v32 = vld [vmem:[%s10097_s1 + $0x110] sm:$0xff] }
  0x9c   :  { %4236 = vmatpush3.msra.mxu1 %v5995_v42  ;;  %5227 = vmatpush3.msra.mxu0 %v6974_v1  ;;  %v307_v42 = vld [vmem:[%s10098_s0 + $0x2c0] sm:$0x3] }
  0x9d   :  { %922 = vmatmul.mubr.f32.gmra.mxu1 %v294_v34  ;;  %4237 = vmatprep.subr.mxu1 %v6004_v44  ;;  %v231_v44 = vld [vmem:[%s10098_s0 + $0x60] sm:$0xff]  ;;  %v7281_v34 = vld [vmem:[%s10097_s1 + $0x188] sm:$0xff] }
  0x9e   :  { %826 = vmatprep.mubr.f32.mxu0 %v306_v36  ;;  %4238 = vmatpush3.msra.mxu1 %v6013_v46  ;;  %v7013_v46 = vld [vmem:[%s10097_s1 + $0x1f8] sm:$0xff]  ;;  %v7288_v36 = vld [vmem:[%s10097_s1 + $0x108] sm:$0xff] }
  0x9f   :  { %827 = vmatmul.mubr.f32.gmra.mxu0 %v305_v38  ;;  %4239 = vmatprep.subr.mxu1 %v6022_v48  ;;  %v7021_v48 = vld [vmem:[%s10097_s1 + $0x178] sm:$0xff]  ;;  %v10227_v38 = vld [vmem:[#allocation3_spill] sm:$0xff] }
  0xa0   :  { %926 = vmatprep.mubr.f32.mxu1 %v308_v40  ;;  %5228 = vmatprep.subr.mxu0 %v10142_v39  ;;  %v7298_v40 = vld [vmem:[%s10097_s1 + $0x180] sm:$0xff] }
  0xa1   :  { %4240 = vmatpush3.msra.mxu1 %v6031_v50  ;;  %5229 = vmatpush3.msra.mxu0 %v6997_v59  ;;  %v7028_v50 = vld [vmem:[%s10097_s1 + $0x1f0] sm:$0xff] }
  0xa2   :  { %927 = vmatmul.mubr.f32.gmra.mxu1 %v307_v42  ;;  %4241 = vmatprep.subr.mxu1 %v6040_v52  ;;  %v244_v52 = vld [vmem:[%s10098_s0 + $0xc8] sm:$0xff]  ;;  %v3667_v42 = vld [vmem:[%s10098_s0 + $0x550] sm:$0x3] }
  0xa3   :  { %5230 = vmatprep.mubr.msk.f32.mxu0 %vm5779_vm1, %v10142_v39  ;;  %4242 = vmatpush3.msra.mxu1 %v6049_v54  ;;  %v3589_v54 = vld [vmem:[%s10098_s0 + $0x2e0] sm:$0xff] }
  0xa4   :  { %4268 = vmatprep.subr.mxu0 %v7013_v46  ;;  %5231 = vmatmul.mubr.msk.f32.vlgmr.msra.gmra.mxu0 %vm310_vm0, %v231_v44  ;;  %v3590_v44 = vld [vmem:[%s10098_s0 + $0x2e8] sm:$0xff] }
  0xa5   :  { %4243 = vmatprep.subr.mxu1 %v6058_v56  ;;  %4269 = vmatpush3.msra.mxu0 %v7021_v48  ;;  %v7041_v56 = vld [vmem:[%s10097_s1 + $0x170] sm:$0xff] }
  0xa6   :  { %4244 = vmatpush3.msra.mxu1 %v6067_v58  ;;  %4270 = vmatprep.subr.mxu0 %v7028_v50  ;;  %v7050_v58 = vld [vmem:[%s10097_s1 + $0x1e8] sm:$0xff] }
  0xa7   :  { %4245 = vmatprep.subr.mxu1 %v6076_v60  ;;  %4271 = vmatpush3.msra.mxu0 %v7041_v56  ;;  %v3588_v60 = vld [vmem:[%s10098_s0 + $0x2d8] sm:$0xff] }
  0xa8   :  { %5233 = vmatprep.mubr.msk.f32.mxu0 %vm5779_vm1, %v10142_v39  ;;  %4246 = vmatpush3.msra.mxu1 %v6085_v62  ;;  %v7067_v62 = vld [vmem:[%s10097_s1 + $0x1e0] sm:$0xff] }
  0xa9   :  { %4272 = vmatprep.subr.mxu0 %v7050_v58  ;;  %5234 = vmatmul.mubr.msk.f32.gmra.mxu0 %vm310_vm0, %v244_v52  ;;  %v10228_v52 = vld [vmem:[#allocation4_spill] sm:$0xff] }
  0xaa   :  { %1235 = vmatprep.mubr.f32.mxu1 %v3589_v54  ;;  %4273 = vmatpush3.msra.mxu0 %v7060_v7  ;;  %v7311_v54 = vld [vmem:[%s10097_s1 + $0x100] sm:$0xff] }
  0xab   :  { %4321 = vmatprep.subr.mxu1 %v6108_v9  ;;  %1236 = vmatmul.mubr.f32.vlgmr.msra.gmra.mxu1 %v3588_v60  ;;  %v257_v9 = vld [vmem:[%s10098_s0 + $0x130] sm:$0xff]  ;;  %v10229_v60 = vld [vmem:[#allocation5_spill] sm:$0xff] }
  0xac   :  { %4274 = vmatprep.subr.mxu0 %v7067_v62  ;;  %4322 = vmatpush3.msra.mxu1 %v6116_v13  ;;  %v7086_v13 = vld [vmem:[%s10097_s1 + $0x1d8] sm:$0xff] }
  0xad   :  { %4275 = vmatpush3.msra.mxu0 %v7074_v2  ;;  %4323 = vmatprep.subr.mxu1 %v6124_v17  ;;  %v7095_v17 = vld [vmem:[%s10097_s1 + $0x158] sm:$0xff] }
  0xae   :  { %5236 = vmatprep.mubr.msk.f32.mxu0 %vm5779_vm1, %v10142_v39  ;;  %4276 = vmatprep.subr.mxu0 %v7086_v13 }
  0xaf   :  { %4324 = vmatpush3.msra.mxu1 %v6133_v21  ;;  %5237 = vmatmul.mubr.msk.f32.gmra.mxu0 %vm310_vm0, %v257_v9  ;;  %v7105_v21 = vld [vmem:[%s10097_s1 + $0x1d0] sm:$0xff]  ;;  %v3666_v9 = vld [vmem:[%s10098_s0 + $0x548] sm:$0x3] }
  0xb0   :  { %4325 = vmatprep.subr.mxu1 %v6142_v25  ;;  %4277 = vmatpush3.msra.mxu0 %v7095_v17  ;;  %v270_v25 = vld [vmem:[%s10098_s0 + $0x198] sm:$0xff] }
  0xb1   :  { %4326 = vmatpush3.msra.mxu1 %v6151_v29  ;;  %4278 = vmatprep.subr.mxu0 %v7105_v21  ;;  %v7115_v29 = vld [vmem:[%s10097_s1 + $0x150] sm:$0xff] }
  0xb2   :  { %4327 = vmatprep.subr.mxu1 %v6167_v37  ;;  %4279 = vmatpush3.msra.mxu0 %v7115_v29  ;;  %v7126_v37 = vld [vmem:[%s10097_s1 + $0x1c8] sm:$0xff] }
  0xb3   :  { %5239 = vmatprep.mubr.msk.f32.mxu0 %vm5779_vm1, %v10142_v39  ;;  %1240 = vmatprep.mubr.f32.mxu1 %v3602_v4  ;;  %v10230_v4 = vld [vmem:[#allocation6_spill] sm:$0xff] }
  0xb4   :  { %4280 = vmatprep.subr.mxu0 %v7126_v37  ;;  %4328 = vmatpush3.msra.mxu1 %v6182_v45  ;;  %v3615_v45 = vld [vmem:[%s10098_s0 + $0x3b0] sm:$0xff] }
  0xb5   :  { %5240 = vmatmul.mubr.msk.f32.gmra.mxu0 %vm310_vm0, %v270_v25  ;;  %1241 = vmatmul.mubr.f32.gmra.mxu1 %v3601_v8  ;;  %v7322_v25 = vld [vmem:[%s10097_s1 + $0x3f8] sm:$0xff] }
  0xb6   :  { %4281 = vmatpush3.msra.mxu0 %v7134_v10  ;;  %4329 = vmatprep.subr.mxu1 %v6191_v49  ;;  %v283_v49 = vld [vmem:[%s10098_s0 + $0x200] sm:$0xff]  ;;  %v3604_v8 = vld [vmem:[%s10098_s0 + $0x358] sm:$0xff] }
  0xb7   :  { %4282 = vmatprep.subr.mxu0 %v7141_v12  ;;  %4330 = vmatpush3.msra.mxu1 %v6199_v53  ;;  %v3614_v53 = vld [vmem:[%s10098_s0 + $0x3a8] sm:$0xff] }
  0xb8   :  { %4283 = vmatpush3.msra.mxu0 %v7151_v14  ;;  %4331 = vmatprep.subr.mxu1 %v6215_v61  ;;  %v7174_v61 = vld [vmem:[%s10097_s1 + $0x138] sm:$0xff] }
  0xb9   :  { %5242 = vmatprep.mubr.msk.f32.mxu0 %vm5779_vm1, %v10142_v39  ;;  %1245 = vmatprep.mubr.f32.mxu1 %v3615_v45  ;;  %v10231_v45 = vld [vmem:[#allocation7_spill] sm:$0xff] }
  0xba   :  { %4284 = vmatprep.subr.mxu0 %v7166_v55  ;;  %4332 = vmatpush3.msra.mxu1 %v6230_v5  ;;  %v3628_v5 = vld [vmem:[%s10098_s0 + $0x418] sm:$0xff] }
  0xbb   :  { %5243 = vmatmul.mubr.msk.f32.gmra.mxu0 %vm310_vm0, %v283_v49  ;;  %1246 = vmatmul.mubr.f32.gmra.mxu1 %v3614_v53  ;;  %v7332_v49 = vld [vmem:[%s10097_s1 + $0x378] sm:$0xff]  ;;  %v10232_v53 = vld [vmem:[#allocation8_spill] sm:$0xff] }
  0xbc   :  { %4285 = vmatpush3.msra.mxu0 %v7174_v61  ;;  %4333 = vmatprep.subr.mxu1 %v6239_v11  ;;  %v296_v11 = vld [vmem:[%s10098_s0 + $0x268] sm:$0xff] }
  0xbd   :  { %4286 = vmatprep.subr.mxu0 %v7181_v18  ;;  %4334 = vmatpush3.msra.mxu1 %v6247_v19  ;;  %v3627_v19 = vld [vmem:[%s10098_s0 + $0x410] sm:$0xff] }
  0xbe   :  { %4287 = vmatpush3.msra.mxu0 %v7191_v20  ;;  %4335 = vmatprep.subr.mxu1 %v6263_v33  ;;  %v7214_v33 = vld [vmem:[%s10097_s1 + $0x128] sm:$0xff] }
  0xbf   :  { %5245 = vmatprep.mubr.msk.f32.mxu0 %vm5779_vm1, %v10142_v39  ;;  %1250 = vmatprep.mubr.f32.mxu1 %v3628_v5  ;;  %v3603_v5 = vld [vmem:[%s10098_s0 + $0x350] sm:$0xff] }
  0xc0   :  { %4288 = vmatprep.subr.mxu0 %v7206_v22  ;;  %4336 = vmatpush3.msra.mxu1 %v6278_v43  ;;  %v3641_v43 = vld [vmem:[%s10098_s0 + $0x480] sm:$0xff] }
  0xc1   :  { %5246 = vmatmul.mubr.msk.f32.gmra.mxu0 %vm310_vm0, %v296_v11  ;;  %1251 = vmatmul.mubr.f32.gmra.mxu1 %v3627_v19  ;;  %v7342_v11 = vld [vmem:[%s10097_s1 + $0x3f0] sm:$0xff]  ;;  %v3593_v19 = vld [vmem:[%s10098_s0 + $0x300] sm:$0xff] }
  0xc2   :  { %4289 = vmatpush3.msra.mxu0 %v7214_v33  ;;  %4337 = vmatprep.subr.mxu1 %v6287_v51  ;;  %v309_v51 = vld [vmem:[%s10098_s0 + $0x2d0] sm:$0x3] }
  0xc3   :  { %4290 = vmatprep.subr.mxu0 %v7221_v24  ;;  %4338 = vmatpush3.msra.mxu1 %v6295_v57  ;;  %v3640_v57 = vld [vmem:[%s10098_s0 + $0x478] sm:$0xff] }
  0xc4   :  { %4291 = vmatpush3.msra.mxu0 %v7231_v26  ;;  %4339 = vmatprep.subr.mxu1 %v6311_v3  ;;  %v7254_v3 = vld [vmem:[%s10097_s1 + $0x118] sm:$0xff] }
  0xc5   :  { %5248 = vmatprep.mubr.msk.f32.mxu0 %vm5779_vm1, %v10142_v39  ;;  %1255 = vmatprep.mubr.f32.mxu1 %v3641_v43  ;;  %v10233_v43 = vld [vmem:[#allocation9_spill] sm:$0xff] }
  0xc6   :  { %4292 = vmatprep.subr.mxu0 %v7246_v28  ;;  %4340 = vmatpush3.msra.mxu1 %v6326_v27  ;;  %v7264_v27 = vld [vmem:[%s10097_s1 + $0x190] sm:$0xff] }
  0xc7   :  { %5249 = vmatmul.mubr.msk.f32.gmra.mxu0 %vm310_vm0, %v309_v51  ;;  %1256 = vmatmul.mubr.f32.gmra.mxu1 %v3640_v57  ;;  %v7352_v51 = vld [vmem:[%s10097_s1 + $0x370] sm:$0xff]  ;;  %v3592_v57 = vld [vmem:[%s10098_s0 + $0x2f8] sm:$0xff] }
  0xc8   :  { %4293 = vmatpush3.msra.mxu0 %v7254_v3  ;;  %4341 = vmatprep.subr.mxu1 %v6335_v35  ;;  %v3653_v35 = vld [vmem:[%s10098_s0 + $0x4e0] sm:$0xff] }
  0xc9   :  { %4294 = vmatprep.subr.mxu0 %v7264_v27  ;;  %4342 = vmatpush3.msra.mxu1 %v6343_v41  ;;  %v10226_v41 = vld [vmem:[#allocation2_spill] sm:$0xff] }
  0xca   :  { %4295 = vmatpush3.msra.mxu0 %v7271_v32  ;;  %4343 = vmatprep.subr.mxu1 %v6359_v63  ;;  %v3591_v63 = vld [vmem:[%s10098_s0 + $0x2f0] sm:$0xff] }
  0xcb   :  { %1260 = vmatprep.mubr.f32.mxu1 %v3654_v30  ;;  %4296 = vmatprep.subr.mxu0 %v7281_v34  ;;  %v10234_v30 = vld [vmem:[#allocation10_spill] sm:$0xff] }
  0xcc   :  { %4344 = vmatpush3.msra.mxu1 %v10226_v41  ;;  %4297 = vmatpush3.msra.mxu0 %v7288_v36  ;;  %v3617_v41 = vld [vmem:[%s10098_s0 + $0x3c0] sm:$0xff] }
  0xcd   :  { %1261 = vmatmul.mubr.f32.gmra.mxu1 %v3653_v35  ;;  %4345 = vmatprep.subr.mxu1 %v10227_v38  ;;  %v7362_v35 = vld [vmem:[%s10097_s1 + $0x3e8] sm:$0xff] }
  0xce   :  { %4298 = vmatprep.subr.mxu0 %v7298_v40  ;;  %4346 = vmatpush3.msra.mxu1 %v10228_v52  ;;  %v10235_v38 = vld [vmem:[#allocation11_spill] sm:$0xff] }
  0xcf   :  { %4299 = vmatpush3.msra.mxu0 %v7311_v54  ;;  %1335 = vmatprep.mubr.f32.mxu0 %v3591_v63  ;;  %v7371_v63 = vld [vmem:[%s10097_s1 + $0x368] sm:$0xff] }
  0xd0   :  { %4347 = vmatprep.subr.mxu1 %v10229_v60  ;;  %1265 = vmatprep.mubr.f32.mxu1 %v3667_v42  ;;  %v7378_v42 = vld [vmem:[%s10097_s1 + $0x3e0] sm:$0xff]  ;;  %v3606_v52 = vld [vmem:[%s10098_s0 + $0x368] sm:$0xff]  ;;  %v10237_v60 = vld [vmem:[#allocation12_spill] sm:$0xff] }
  0xd1   :  { %1336 = vmatmul.mubr.f32.vlgmr.msra.gmra.mxu0 %v3590_v44  ;;  %4348 = vmatpush3.msra.mxu1 %v10230_v4  ;;  %10236 = vst [vmem:[#allocation2_spill] sm:$0xff] %v7378_v42  ;;  %v3616_v44 = vld [vmem:[%s10098_s0 + $0x3b8] sm:$0xff] }
  0xd2   :  { %4374 = vmatprep.subr.mxu0 %v7322_v25  ;;  %1266 = vmatmul.mubr.f32.gmra.mxu1 %v3666_v9  ;;  %v7391_v9 = vld [vmem:[%s10097_s1 + $0x360] sm:$0xff]  ;;  %v10239_v4 = vld [vmem:[#allocation13_spill] sm:$0xff] }
  0xd3   :  { %4349 = vmatprep.subr.mxu1 %v10231_v45  ;;  %4375 = vmatpush3.msra.mxu0 %v7332_v49  ;;  %10238 = vst [vmem:[#allocation3_spill] sm:$0xff] %v7391_v9  ;;  %v7401_v45 = vld [vmem:[%s10097_s1 + $0x3d8] sm:$0xff] }
  0xd4   :  { %4350 = vmatpush3.msra.mxu1 %v10232_v53  ;;  %4376 = vmatprep.subr.mxu0 %v7342_v11  ;;  %10240 = vst [vmem:[#allocation4_spill] sm:$0xff] %v7401_v45  ;;  %v10241_v53 = vld [vmem:[#allocation14_spill] sm:$0xff] }
  0xd5   :  { %1340 = vmatprep.mubr.f32.mxu0 %v3604_v8  ;;  %4351 = vmatprep.subr.mxu1 %v10233_v43  ;;  %v3605_v8 = vld [vmem:[%s10098_s0 + $0x360] sm:$0xff]  ;;  %v10243_v43 = vld [vmem:[#allocation15_spill] sm:$0xff] }
  0xd6   :  { %4377 = vmatpush3.msra.mxu0 %v7352_v51  ;;  %4352 = vmatpush3.msra.mxu1 %v10234_v30  ;;  %v3629_v30 = vld [vmem:[%s10098_s0 + $0x420] sm:$0xff] }
  0xd7   :  { %1341 = vmatmul.mubr.f32.gmra.mxu0 %v3603_v5  ;;  %1435 = vmatprep.mubr.f32.mxu1 %v3593_v19  ;;  %v3630_v5 = vld [vmem:[%s10098_s0 + $0x428] sm:$0xff]  ;;  %v7411_v19 = vld [vmem:[%s10097_s1 + $0x358] sm:$0xff] }
  0xd8   :  { %4378 = vmatprep.subr.mxu0 %v7362_v35  ;;  %1436 = vmatmul.mubr.f32.vlgmr.msra.gmra.mxu1 %v3592_v57  ;;  %10242 = vst [vmem:[#allocation5_spill] sm:$0xff] %v7411_v19  ;;  %v7418_v57 = vld [vmem:[%s10097_s1 + $0x3d0] sm:$0xff] }
  0xd9   :  { %4379 = vmatpush3.msra.mxu0 %v7371_v63  ;;  %4427 = vmatprep.subr.mxu1 %v10235_v38  ;;  %10244 = vst [vmem:[#allocation6_spill] sm:$0xff] %v7418_v57  ;;  %v10245_v38 = vld [vmem:[#allocation16_spill] sm:$0xff] }
  0xda   :  { %4380 = vmatprep.subr.mxu0 %v7378_v42  ;;  %4428 = vmatpush3.msra.mxu1 %v10237_v60  ;;  %v3618_v60 = vld [vmem:[%s10098_s0 + $0x3c8] sm:$0xff] }
  0xdb   :  { %1345 = vmatprep.mubr.f32.mxu0 %v3617_v41  ;;  %4381 = vmatpush3.msra.mxu0 %v7391_v9  ;;  %v3619_v41 = vld [vmem:[%s10098_s0 + $0x3d0] sm:$0xff] }
  0xdc   :  { %4429 = vmatprep.subr.mxu1 %v10239_v4  ;;  %1346 = vmatmul.mubr.f32.gmra.mxu0 %v3616_v44  ;;  %v7431_v44 = vld [vmem:[%s10097_s1 + $0x350] sm:$0xff]  ;;  %v7441_v4 = vld [vmem:[%s10097_s1 + $0x3c8] sm:$0xff] }
  0xdd   :  { %1440 = vmatprep.mubr.f32.mxu1 %v3606_v52  ;;  %4382 = vmatprep.subr.mxu0 %v7401_v45  ;;  %10246 = vst [vmem:[#allocation7_spill] sm:$0xff] %v7431_v44  ;;  %v10247_v52 = vld [vmem:[#allocation17_spill] sm:$0xff]  ;;  %10248 = vst [vmem:[#allocation8_spill] sm:$0xff] %v7441_v4  ;;  %v7628_v45 = vld [vmem:[%s10097_s1 + $0x300] sm:$0xff] }
  0xde   :  { %4430 = vmatpush3.msra.mxu1 %v10241_v53  ;;  %4383 = vmatpush3.msra.mxu0 %v7411_v19  ;;  %v3643_v53 = vld [vmem:[%s10098_s0 + $0x490] sm:$0xff]  ;;  %v10275_v19 = vld [vmem:[#allocation31_spill] sm:$0xff] }
  0xdf   :  { %1441 = vmatmul.mubr.f32.gmra.mxu1 %v3605_v8  ;;  %4431 = vmatprep.subr.mxu1 %v10243_v43  ;;  %v10249_v8 = vld [vmem:[#allocation18_spill] sm:$0xff] }
  0xe0   :  { %4384 = vmatprep.subr.mxu0 %v7418_v57  ;;  %4432 = vmatpush3.msra.mxu1 %v10245_v38  ;;  %v7458_v38 = vld [vmem:[%s10097_s1 + $0x3c0] sm:$0xff] }
  0xe1   :  { %1350 = vmatprep.mubr.f32.mxu0 %v3630_v5  ;;  %4385 = vmatpush3.msra.mxu0 %v7431_v44  ;;  %v7451_v5 = vld [vmem:[%s10097_s1 + $0x348] sm:$0xff]  ;;  %10252 = vst [vmem:[#allocation10_spill] sm:$0xff] %v7458_v38 }
  0xe2   :  { %4433 = vmatprep.subr.mxu1 %v10247_v52  ;;  %1351 = vmatmul.mubr.f32.gmra.mxu0 %v3629_v30  ;;  %10250 = vst [vmem:[#allocation9_spill] sm:$0xff] %v7451_v5  ;;  %v3642_v52 = vld [vmem:[%s10098_s0 + $0x488] sm:$0xff] }
  0xe3   :  { %1445 = vmatprep.mubr.f32.mxu1 %v3619_v41  ;;  %4386 = vmatprep.subr.mxu0 %v7441_v4  ;;  %v10251_v41 = vld [vmem:[#allocation19_spill] sm:$0xff]  ;;  %v3631_v4 = vld [vmem:[%s10098_s0 + $0x430] sm:$0xff] }
  0xe4   :  { %4434 = vmatpush3.msra.mxu1 %v10249_v8  ;;  %4387 = vmatpush3.msra.mxu0 %v7451_v5  ;;  %v3914_v43 = vpop.f32.mrf.mxu0  ;;  %v10253_v8 = vld [vmem:[#allocation20_spill] sm:$0xff]  ;;  %v7471_v5 = vld [vmem:[%s10097_s1 + $0x340] sm:$0xff] }
  0xe5   :  { %1446 = vmatmul.mubr.f32.gmra.mxu1 %v3618_v60  ;;  %v3967_v30 = vpop.f32.mrf.mxu1  ;;  %4435 = vmatprep.subr.mxu1 %v10251_v41  ;;  %v3632_v60 = vld [vmem:[%s10098_s0 + $0x438] sm:$0xff]  ;;  %10254 = vst [vmem:[#allocation11_spill] sm:$0xff] %v7471_v5 }
  0xe6   :  { %4388 = vmatprep.subr.mxu0 %v7458_v38  ;;  %4436 = vmatpush3.msra.mxu1 %v10253_v8  ;;  %v3915_v39 = vpop.f32.mrf.mxu0  ;;  %v10255_v38 = vld [vmem:[#allocation21_spill] sm:$0xff]  ;;  %v10257_v8 = vld [vmem:[#allocation22_spill] sm:$0xff] }
  0xe7   :  { %1355 = vmatprep.mubr.f32.mxu0 %v3643_v53  ;;  %v3968_v41 = vpop.f32.mrf.mxu1  ;;  %4389 = vmatpush3.msra.mxu0 %v7471_v5  ;;  %v3916_v44 = vadd.f32 %v3915_v39, %v3914_v43  ;;  %v7481_v53 = vld [vmem:[%s10097_s1 + $0x3b8] sm:$0xff]  ;;  %v10259_v43 = vld [vmem:[#allocation23_spill] sm:$0xff] }
  0xe8   :  { %4437 = vmatprep.subr.mxu1 %v10255_v38  ;;  %v3969_v57 = vadd.f32 %v3968_v41, %v3967_v30  ;;  %1356 = vmatmul.mubr.f32.gmra.mxu0 %v3642_v52  ;;  %10256 = vst [vmem:[#allocation12_spill] sm:$0xff] %v7481_v53  ;;  %v3656_v38 = vld [vmem:[%s10098_s0 + $0x4f8] sm:$0xff]  ;;  %v7500_v30 = vld [vmem:[%s10097_s1 + $0x3b0] sm:$0xff] }
  0xe9   :  { %1450 = vmatprep.mubr.f32.mxu1 %v3632_v60  ;;  %4390 = vmatprep.subr.mxu0 %v7481_v53  ;;  %v7493_v39 = vld [vmem:[%s10097_s1 + $0x338] sm:$0xff]  ;;  %10260 = vst [vmem:[#allocation14_spill] sm:$0xff] %v7500_v30  ;;  %v7513_v52 = vld [vmem:[%s10097_s1 + $0x330] sm:$0xff]  ;;  %v10267_v53 = vld [vmem:[#allocation27_spill] sm:$0xff] }
  0xea   :  { %4438 = vmatpush3.msra.mxu1 %v10257_v8  ;;  %v7488_v5 = vadd.f32 %v3969_v57, %v3916_v44  ;;  %10258 = vst [vmem:[#allocation13_spill] sm:$0xff] %v7493_v39  ;;  %4391 = vmatpush3.msra.mxu0 %v7493_v39  ;;  %v3655_v57 = vld [vmem:[%s10098_s0 + $0x4f0] sm:$0xff]  ;;  %v3645_v44 = vld [vmem:[%s10098_s0 + $0x4a0] sm:$0xff]  ;;  %10262 = vst [vmem:[#allocation15_spill] sm:$0xff] %v7513_v52 }
  0xeb   :  { %1451 = vmatmul.mubr.f32.gmra.mxu1 %v3631_v4  ;;  %4439 = vmatprep.subr.mxu1 %v10259_v43  ;;  %v10261_v4 = vld [vmem:[#allocation24_spill] sm:$0xff]  ;;  %v10263_v60 = vld [vmem:[#allocation25_spill] sm:$0xff]  ;;  %10286 = vst [vmem:[#allocation27_spill] sm:$0xff] %v7628_v45 }
  0xec   :  { %4392 = vmatprep.subr.mxu0 %v7500_v30  ;;  %4440 = vmatpush3.msra.mxu1 %v10261_v4  ;;  %v3644_v41 = vld [vmem:[%s10098_s0 + $0x498] sm:$0xff]  ;;  %v10265_v4 = vld [vmem:[#allocation26_spill] sm:$0xff] }
  0xed   :  { %1360 = vmatprep.mubr.f32.mxu0 %v3656_v38  ;;  %4393 = vmatpush3.msra.mxu0 %v7513_v52  ;;  %v3917_v8 = vpop.f32.mrf.mxu0  ;;  %v7523_v38 = vld [vmem:[%s10097_s1 + $0x3a8] sm:$0xff] }
  0xee   :  { %4441 = vmatprep.subr.mxu1 %v10263_v60  ;;  %v3970_v43 = vpop.f32.mrf.mxu1  ;;  %1361 = vmatmul.mubr.f32.gmra.mxu0 %v3655_v57  ;;  %10264 = vst [vmem:[#allocation16_spill] sm:$0xff] %v7523_v38  ;;  %v3669_v60 = vld [vmem:[%s10098_s0 + $0x560] sm:$0x3]  ;;  %v7533_v57 = vld [vmem:[%s10097_s1 + $0x328] sm:$0xff] }
  0xef   :  { %1455 = vmatprep.mubr.f32.mxu1 %v3645_v44  ;;  %4394 = vmatprep.subr.mxu0 %v7523_v38  ;;  %v3918_v52 = vpop.f32.mrf.mxu0  ;;  %10266 = vst [vmem:[#allocation17_spill] sm:$0xff] %v7533_v57  ;;  %v3658_v38 = vld [vmem:[%s10098_s0 + $0x508] sm:$0xff] }
  0xf0   :  { %4442 = vmatpush3.msra.mxu1 %v10265_v4  ;;  %v3971_v30 = vpop.f32.mrf.mxu1  ;;  %4395 = vmatpush3.msra.mxu0 %v7533_v57  ;;  %v3919_v44 = vadd.f32 %v3918_v52, %v3917_v8  ;;  %v7540_v4 = vld [vmem:[%s10097_s1 + $0x3a0] sm:$0xff]  ;;  %v10269_v57 = vld [vmem:[#allocation28_spill] sm:$0xff]  ;;  %v10271_v52 = vld [vmem:[#allocation29_spill] sm:$0xff] }
  0xf1   :  { %1456 = vmatmul.mubr.f32.gmra.mxu1 %v3644_v41  ;;  %v3972_v39 = vadd.f32 %v3971_v30, %v3970_v43  ;;  %4443 = vmatprep.subr.mxu1 %v10267_v53  ;;  %10268 = vst [vmem:[#allocation18_spill] sm:$0xff] %v7540_v4  ;;  %v3668_v41 = vld [vmem:[%s10098_s0 + $0x558] sm:$0x3]  ;;  %v7555_v53 = vld [vmem:[%s10097_s1 + $0x320] sm:$0xff] }
  0xf2   :  { %4396 = vmatprep.subr.mxu0 %v7540_v4  ;;  %4444 = vmatpush3.msra.mxu1 %v10269_v57  ;;  %10270 = vst [vmem:[#allocation19_spill] sm:$0xff] %v7555_v53  ;;  %v3657_v8 = vld [vmem:[%s10098_s0 + $0x500] sm:$0xff] }
  0xf3   :  { %1365 = vmatprep.mubr.f32.mxu0 %v3669_v60  ;;  %v7550_v30 = vadd.f32 %v3972_v39, %v3919_v44  ;;  %4397 = vmatpush3.msra.mxu0 %v7555_v53  ;;  %v3920_v43 = vpop.f32.mrf.mxu0  ;;  %v7565_v39 = vld [vmem:[%s10097_s1 + $0x398] sm:$0xff]  ;;  %v10273_v60 = vld [vmem:[#allocation30_spill] sm:$0xff] }
  0xf4   :  { %4445 = vmatprep.subr.mxu1 %v10271_v52  ;;  %v3973_v4 = vpop.f32.mrf.mxu1  ;;  %1366 = vmatmul.mubr.f32.gmra.mxu0 %v3668_v41  ;;  %10272 = vst [vmem:[#allocation20_spill] sm:$0xff] %v7565_v39  ;;  %v7572_v52 = vld [vmem:[%s10097_s1 + $0x318] sm:$0xff] }
  0xf5   :  { %1460 = vmatprep.mubr.f32.mxu1 %v3658_v38  ;;  %4398 = vmatprep.subr.mxu0 %v7565_v39  ;;  %v3921_v57 = vpop.f32.mrf.mxu0  ;;  %10274 = vst [vmem:[#allocation21_spill] sm:$0xff] %v7572_v52  ;;  %v3671_v38 = vld [vmem:[%s10098_s0 + $0x570] sm:$0x3] }
  0xf6   :  { %4446 = vmatpush3.msra.mxu1 %v10273_v60  ;;  %v3974_v44 = vpop.f32.mrf.mxu1  ;;  %4399 = vmatpush3.msra.mxu0 %v7572_v52  ;;  %v3922_v41 = vadd.f32 %v3921_v57, %v3920_v43  ;;  %v7582_v60 = vld [vmem:[%s10097_s1 + $0x390] sm:$0xff]  ;;  %v10279_v43 = vld [vmem:[#allocation33_spill] sm:$0xff] }
  0xf7   :  { %1461 = vmatmul.mubr.f32.gmra.mxu1 %v3657_v8  ;;  %v3975_v53 = vadd.f32 %v3974_v44, %v3973_v4  ;;  %4447 = vmatprep.subr.mxu1 %v10275_v19  ;;  %10276 = vst [vmem:[#allocation22_spill] sm:$0xff] %v7582_v60  ;;  %v10277_v8 = vld [vmem:[#allocation32_spill] sm:$0xff]  ;;  %v3670_v19 = vld [vmem:[%s10098_s0 + $0x568] sm:$0x3] }
  0xf8   :  { %4400 = vmatprep.subr.mxu0 %v7582_v60  ;;  %4448 = vmatpush3.msra.mxu1 %v10277_v8  ;;  %v7589_v52 = vld [vmem:[%s10097_s1 + $0x310] sm:$0xff]  ;;  %v7601_v8 = vld [vmem:[%s10097_s1 + $0x388] sm:$0xff]  ;;  %v10281_v60 = vld [vmem:[#allocation34_spill] sm:$0xff] }
  0xf9   :  { %10278 = vst [vmem:[#allocation23_spill] sm:$0xff] %v7589_v52  ;;  %4401 = vmatpush3.msra.mxu0 %v7589_v52  ;;  %v7595_v4 = vadd.f32 %v3975_v53, %v3922_v41  ;;  %4449 = vmatprep.subr.mxu1 %v10279_v43  ;;  %v3923_v57 = vpop.f32.mrf.mxu0  ;;  %10280 = vst [vmem:[#allocation24_spill] sm:$0xff] %v7601_v8  ;;  %v7608_v53 = vld [vmem:[%s10097_s1 + $0x308] sm:$0xff]  ;;  %v10285_v39 = vld [vmem:[#allocation36_spill] sm:$0xff] }
  0xfa   :  { %1465 = vmatprep.mubr.f32.mxu1 %v3671_v38  ;;  %v3976_v44 = vpop.f32.mrf.mxu1  ;;  %4402 = vmatprep.subr.mxu0 %v7601_v8  ;;  %10282 = vst [vmem:[#allocation25_spill] sm:$0xff] %v7608_v53  ;;  %v3595_v38 = vld [vmem:[%s10098_s0 + $0x310] sm:$0xff]  ;;  %v10283_v52 = vld [vmem:[#allocation35_spill] sm:$0xff] }
  0xfb   :  { %4450 = vmatpush3.msra.mxu1 %v10281_v60  ;;  %4403 = vmatpush3.msra.mxu0 %v7608_v53  ;;  %v3924_v41 = vpop.f32.mrf.mxu0  ;;  %v7618_v60 = vld [vmem:[%s10097_s1 + $0x380] sm:$0xff] }
  0xfc   :  { %1466 = vmatmul.mubr.f32.gmra.mxu1 %v3670_v19  ;;  %v3977_v43 = vpop.f32.mrf.mxu1  ;;  %4451 = vmatprep.subr.mxu1 %v10283_v52  ;;  %10284 = vst [vmem:[#allocation26_spill] sm:$0xff] %v7618_v60  ;;  %v3594_v19 = vld [vmem:[%s10098_s0 + $0x308] sm:$0xff]  ;;  %v3925_v53 = vadd.f32 %v3924_v41, %v3923_v57  ;;  %v10287_v52 = vld [vmem:[#allocation37_spill] sm:$0xff] }
  0xfd   :  { %4404 = vmatprep.subr.mxu0 %v7618_v60  ;;  %v3978_v8 = vadd.f32 %v3977_v43, %v3976_v44  ;;  %4452 = vmatpush3.msra.mxu1 %v10285_v39  ;;  %v10288_v60 = vld [vmem:[#allocation38_spill] sm:$0xff]  ;;  %v3608_v57 = vld [vmem:[%s10098_s0 + $0x378] sm:$0xff]  ;;  %v3607_v43 = vld [vmem:[%s10098_s0 + $0x370] sm:$0xff] }
  0xfe   :  { %4405 = vmatpush3.msra.mxu0 %v7628_v45  ;;  %1535 = vmatprep.mubr.f32.mxu0 %v3595_v38  ;;  %v7641_v41 = vld [vmem:[%s10097_s1 + $0x5f8] sm:$0xff]  ;;  %v10290_v38 = vld [vmem:[#allocation39_spill] sm:$0xff] }
  0xff   :  { %4453 = vmatprep.subr.mxu1 %v10287_v52  ;;  %v7632_v9 = vadd.f32 %v3978_v8, %v3925_v53  ;;  %1536 = vmatmul.mubr.f32.vlgmr.msra.gmra.mxu0 %v3594_v19  ;;  %v3926_v39 = vpop.f32.mrf.mxu0  ;;  %10289 = vst [vmem:[#allocation28_spill] sm:$0xff] %v7641_v41  ;;  %v7648_v8 = vld [vmem:[%s10097_s1 + $0x578] sm:$0xff]  ;;  %v10292_v53 = vld [vmem:[#allocation40_spill] sm:$0xff] }
 0x100   :  { %4454 = vmatpush3.msra.mxu1 %v10288_v60  ;;  %v3979_v44 = vpop.f32.mrf.mxu1  ;;  %4480 = vmatprep.subr.mxu0 %v7641_v41  ;;  %10291 = vst [vmem:[#allocation29_spill] sm:$0xff] %v7648_v8  ;;  %v7658_v52 = vld [vmem:[%s10097_s1 + $0x5f0] sm:$0xff] }
 0x101   :  { %4455 = vmatprep.subr.mxu1 %v10290_v38  ;;  %4481 = vmatpush3.msra.mxu0 %v7648_v8  ;;  %v3927_v60 = vpop.f32.mrf.mxu0  ;;  %10293 = vst [vmem:[#allocation30_spill] sm:$0xff] %v7658_v52  ;;  %v3597_v38 = vld [vmem:[%s10098_s0 + $0x320] sm:$0xff]  ;;  %v7668_v41 = vld [vmem:[%s10097_s1 + $0x570] sm:$0xff] }
 0x102   :  { %4456 = vmatpush3.msra.mxu1 %v10292_v53  ;;  %v3980_v19 = vpop.f32.mrf.mxu1  ;;  %4482 = vmatprep.subr.mxu0 %v7658_v52  ;;  %v3928_v8 = vadd.f32 %v3927_v60, %v3926_v39  ;;  %10294 = vst [vmem:[#allocation31_spill] sm:$0xff] %v7668_v41  ;;  %v3596_v52 = vld [vmem:[%s10098_s0 + $0x318] sm:$0xff]  ;;  %v3621_v39 = vld [vmem:[%s10098_s0 + $0x3e0] sm:$0xff] }
 0x103   :  { %1540 = vmatprep.mubr.f32.mxu0 %v3608_v57  ;;  %v3981_v53 = vadd.f32 %v3980_v19, %v3979_v44  ;;  %4457 = vmatprep.subr.mxu1 %v6820_v15  ;;  %v10295_v57 = vld [vmem:[#allocation41_spill] sm:$0xff]  ;;  %v7683_v15 = vld [vmem:[%s10097_s1 + $0x5e8] sm:$0xff] }
 0x104   :  { %4483 = vmatpush3.msra.mxu0 %v7668_v41  ;;  %4458 = vmatpush3.msra.mxu1 %v10295_v57  ;;  %10296 = vst [vmem:[#allocation32_spill] sm:$0xff] %v7683_v15 }
 0x105   :  { %1541 = vmatmul.mubr.f32.gmra.mxu0 %v3607_v43  ;;  %v7678_v44 = vadd.f32 %v3981_v53, %v3928_v8  ;;  %1635 = vmatprep.mubr.f32.mxu1 %v3597_v38  ;;  %v3610_v43 = vld [vmem:[%s10098_s0 + $0x388] sm:$0xff]  ;;  %v3929_v60 = vpop.f32.mrf.mxu0  ;;  %v3620_v38 = vld [vmem:[%s10098_s0 + $0x3d8] sm:$0xff]  ;;  %v7701_v53 = vld [vmem:[%s10097_s1 + $0x5e0] sm:$0xff] }
 0x106   :  { %4484 = vmatprep.subr.mxu0 %v7683_v15  ;;  %v3982_v19 = vpop.f32.mrf.mxu1  ;;  %1636 = vmatmul.mubr.f32.vlgmr.msra.gmra.mxu1 %v3596_v52  ;;  %v7692_v8 = vld [vmem:[%s10097_s1 + $0x568] sm:$0xff]  ;;  %10298 = vst [vmem:[#allocation34_spill] sm:$0xff] %v7701_v53  ;;  %v3609_v52 = vld [vmem:[%s10098_s0 + $0x380] sm:$0xff] }
 0x107   :  { %10297 = vst [vmem:[#allocation33_spill] sm:$0xff] %v7692_v8  ;;  %4485 = vmatpush3.msra.mxu0 %v7692_v8  ;;  %1545 = vmatprep.mubr.f32.mxu0 %v3621_v39  ;;  %v3930_v57 = vpop.f32.mrf.mxu0  ;;  %v7710_v8 = vld [vmem:[%s10097_s1 + $0x560] sm:$0xff]  ;;  %v7716_v39 = vld [vmem:[%s10097_s1 + $0x5d8] sm:$0xff] }
 0x108   :  { %4486 = vmatprep.subr.mxu0 %v7701_v53  ;;  %v3983_v15 = vpop.f32.mrf.mxu1  ;;  %10299 = vst [vmem:[#allocation35_spill] sm:$0xff] %v7710_v8  ;;  %1640 = vmatprep.mubr.f32.mxu1 %v3610_v43  ;;  %v3931_v41 = vadd.f32 %v3930_v57, %v3929_v60  ;;  %10300 = vst [vmem:[#allocation36_spill] sm:$0xff] %v7716_v39  ;;  %v3634_v53 = vld [vmem:[%s10098_s0 + $0x448] sm:$0xff]  ;;  %v7736_v60 = vld [vmem:[%s10097_s1 + $0x5d0] sm:$0xff] }
 0x109   :  { %4487 = vmatpush3.msra.mxu0 %v7710_v8  ;;  %v3984_v45 = vadd.f32 %v3983_v15, %v3982_v19  ;;  %v7725_v8 = vld [vmem:[%s10097_s1 + $0x558] sm:$0xff]  ;;  %v3633_v15 = vld [vmem:[%s10098_s0 + $0x440] sm:$0xff]  ;;  %10302 = vst [vmem:[#allocation38_spill] sm:$0xff] %v7736_v60  ;;  %v10303_v19 = vmov 0.0  }
 0x10a   :  { %1546 = vmatmul.mubr.f32.gmra.mxu0 %v3620_v38  ;;  %4488 = vmatprep.subr.mxu0 %v7716_v39  ;;  %10301 = vst [vmem:[#allocation37_spill] sm:$0xff] %v7725_v8  ;;  %v3623_v38 = vld [vmem:[%s10098_s0 + $0x3f0] sm:$0xff] }
 0x10b   :  { %1641 = vmatmul.mubr.f32.gmra.mxu1 %v3609_v52  ;;  %4489 = vmatpush3.msra.mxu0 %v7725_v8  ;;  %v7731_v43 = vadd.f32 %v3984_v45, %v3931_v41  ;;  %v3932_v52 = vpop.f32.mrf.mxu0  ;;  %v7746_v45 = vld [vmem:[%s10097_s1 + $0x550] sm:$0xff]  ;;  %v3622_v41 = vld [vmem:[%s10098_s0 + $0x3e8] sm:$0xff] }
 0x10c   :  { %4490 = vmatprep.subr.mxu0 %v7736_v60  ;;  %5251 = vmatprep.subr.mxu1 %v10303_v19  ;;  %v3985_v57 = vpop.f32.mrf.mxu1  ;;  %10304 = vst [vmem:[#allocation39_spill] sm:$0xff] %v7746_v45 }
 0x10d   :  { %1550 = vmatprep.mubr.f32.mxu0 %v3634_v53  ;;  %4491 = vmatpush3.msra.mxu0 %v7746_v45  ;;  %v3933_v60 = vpop.f32.mrf.mxu0  ;;  %v7756_v53 = vld [vmem:[%s10097_s1 + $0x5c8] sm:$0xff]  ;;  %v3647_v45 = vld [vmem:[%s10098_s0 + $0x4b0] sm:$0xff] }
 0x10e   :  { %5252 = vmatpush3.msra.mxu1 %v6852_v23  ;;  %1551 = vmatmul.mubr.f32.gmra.mxu0 %v3633_v15  ;;  %v3986_v8 = vpop.f32.mrf.mxu1  ;;  %10305 = vst [vmem:[#allocation40_spill] sm:$0xff] %v7756_v53  ;;  %v3934_v39 = vadd.f32 %v3933_v60, %v3932_v52  ;;  %v7765_v23 = vld [vmem:[%s10097_s1 + $0x548] sm:$0xff]  ;;  %v5443_v52 = vld [vmem:[%s10097_s1 + $0x540] sm:$0xff] }
 0x10f   :  { %1645 = vmatprep.mubr.f32.mxu1 %v3623_v38  ;;  %4492 = vmatprep.subr.mxu0 %v7756_v53  ;;  %v3987_v42 = vadd.f32 %v3986_v8, %v3985_v57  ;;  %10306 = vst [vmem:[#allocation41_spill] sm:$0xff] %v7765_v23  ;;  %v3646_v15 = vld [vmem:[%s10098_s0 + $0x4a8] sm:$0xff]  ;;  %v7774_v38 = vld [vmem:[%s10097_s1 + $0x5c0] sm:$0xff]  ;;  %v3636_v8 = vld [vmem:[%s10098_s0 + $0x458] sm:$0xff] }
 0x110   :  { %1646 = vmatmul.mubr.f32.gmra.mxu1 %v3622_v41  ;;  %4493 = vmatpush3.msra.mxu0 %v7765_v23  ;;  %10307 = vst [vmem:[#allocation42_spill] sm:$0xff] %v7774_v38  ;;  %v3635_v57 = vld [vmem:[%s10098_s0 + $0x450] sm:$0xff] }
 0x111   :  { %4494 = vmatprep.subr.mxu0 %v7774_v38  ;;  %5253 = vmatprep.subr.mxu1 %v10303_v19  ;;  %v7781_v60 = vadd.f32 %v3987_v42, %v3934_v39  ;;  %v7793_v42 = vld [vmem:[%s10097_s1 + $0x5b8] sm:$0xff]  ;;  %v5447_v23 = vld [vmem:[%s10097_s1 + $0x530] sm:$0xff] }
 0x112   :  { %1555 = vmatprep.mubr.f32.mxu0 %v3647_v45  ;;  %4495 = vmatpush3.msra.mxu0 %v5443_v52  ;;  %v4020_v41 = vpop.f32.mrf.mxu0  ;;  %10308 = vst [vmem:[#allocation43_spill] sm:$0xff] %v7793_v42  ;;  %v3660_v39 = vld [vmem:[%s10098_s0 + $0x518] sm:$0xff] }
 0x113   :  { %5254 = vmatpush3.msra.mxu1 %v6871_v0  ;;  %1556 = vmatmul.mubr.f32.gmra.mxu0 %v3646_v15  ;;  %v5445_v0 = vld [vmem:[%s10097_s1 + $0x538] sm:$0xff]  ;;  %v3649_v15 = vld [vmem:[%s10098_s0 + $0x4c0] sm:$0xff] }
 0x114   :  { %1650 = vmatprep.mubr.f32.mxu1 %v3636_v8  ;;  %4496 = vmatprep.subr.mxu0 %v7793_v42  ;;  %v4021_v45 = vpop.f32.mrf.mxu0  ;;  %v4073_v52 = vpop.f32.mrf.mxu1  ;;  %v5446_v42 = vld [vmem:[%s10097_s1 + $0x5b0] sm:$0xff] }
 0x115   :  { %1651 = vmatmul.mubr.f32.gmra.mxu1 %v3635_v57  ;;  %4497 = vmatpush3.msra.mxu0 %v5445_v0  ;;  %v4022_v8 = vadd.f32 %v4021_v45, %v4020_v41  ;;  %v3659_v57 = vld [vmem:[%s10098_s0 + $0x510] sm:$0xff]  ;;  %v3648_v0 = vld [vmem:[%s10098_s0 + $0x4b8] sm:$0xff] }
 0x116   :  { %5255 = vmatprep.subr.mxu1 %v10303_v19  ;;  %4498 = vmatprep.subr.mxu0 %v5446_v42  ;;  %v4074_v38 = vpop.f32.mrf.mxu1 }
 0x117   :  { %5256 = vmatpush3.msra.mxu1 %v6891_v6  ;;  %1560 = vmatprep.mubr.f32.mxu0 %v3660_v39  ;;  %v599_v41 = vadd.f32 %v4022_v8, %v7488_v5  ;;  %v4075_v45 = vadd.f32 %v4074_v38, %v4073_v52  ;;  %v5448_v6 = vld [vmem:[%s10097_s1 + $0x5a8] sm:$0xff]  ;;  %v3673_v39 = vld [vmem:[%s10098_s0 + $0x580] sm:$0x3] }
 0x118   :  { %4499 = vmatpush3.msra.mxu0 %v5447_v23  ;;  %1655 = vmatprep.mubr.f32.mxu1 %v3649_v15  ;;  %v4023_v42 = vpop.f32.mrf.mxu0  ;;  %v5449_v5 = vld [vmem:[%s10097_s1 + $0x528] sm:$0xff]  ;;  %v5450_v52 = vld [vmem:[%s10097_s1 + $0x5a0] sm:$0xff]  ;;  %v3672_v15 = vld [vmem:[%s10098_s0 + $0x578] sm:$0x3] }
 0x119   :  { %1561 = vmatmul.mubr.f32.gmra.mxu0 %v3659_v57  ;;  %4500 = vmatprep.subr.mxu0 %v5448_v6  ;;  %v7826_v53 = vadd.f32 %v4075_v45, %v599_v41  ;;  %v3662_v23 = vld [vmem:[%s10098_s0 + $0x528] sm:$0xff]  ;;  %v3661_v57 = vld [vmem:[%s10098_s0 + $0x520] sm:$0xff] }
 0x11a   :  { %1656 = vmatmul.mubr.f32.gmra.mxu1 %v3648_v0  ;;  %4501 = vmatpush3.msra.mxu0 %v5449_v5  ;;  %v4024_v38 = vpop.f32.mrf.mxu0  ;;  %v5451_v41 = vld [vmem:[%s10097_s1 + $0x520] sm:$0xff]  ;;  %v5453_v5 = vld [vmem:[%s10097_s1 + $0x518] sm:$0xff] }
 0x11b   :  { %5257 = vmatprep.subr.mxu1 %v10303_v19  ;;  %4502 = vmatprep.subr.mxu0 %v5450_v52  ;;  %v4025_v8 = vadd.f32 %v4024_v38, %v4023_v42  ;;  %v4076_v0 = vpop.f32.mrf.mxu1  ;;  %v5452_v42 = vld [vmem:[%s10097_s1 + $0x598] sm:$0xff]  ;;  %v5454_v38 = vld [vmem:[%s10097_s1 + $0x590] sm:$0xff]  ;;  %v3674_v52 = vld [vmem:[%s10098_s0 + $0x588] sm:$0x3] }
 0x11c   :  { %5258 = vmatpush3.msra.mxu1 %v6914_v16  ;;  %1565 = vmatprep.mubr.f32.mxu0 %v3673_v39 }
 0x11d   :  { %4503 = vmatpush3.msra.mxu0 %v5451_v41  ;;  %1660 = vmatprep.mubr.f32.mxu1 %v3662_v23  ;;  %v604_v45 = vadd.f32 %v4025_v8, %v7550_v30  ;;  %v4077_v6 = vpop.f32.mrf.mxu1  ;;  %v3675_v30 = vld [vmem:[%s10098_s0 + $0x590] sm:$0x3] }
 0x11e   :  { %1566 = vmatmul.mubr.f32.gmra.mxu0 %v3672_v15  ;;  %4504 = vmatprep.subr.mxu0 %v5452_v42  ;;  %v4026_v16 = vpop.f32.mrf.mxu0  ;;  %v4078_v39 = vadd.f32 %v4077_v6, %v4076_v0  ;;  %v5456_v0 = vld [vmem:[%s10097_s1 + $0x588] sm:$0xff] }
 0x11f   :  { %5259 = vmatprep.subr.mxu1 %v10303_v19  ;;  %1661 = vmatmul.mubr.f32.gmra.mxu1 %v3661_v57 }
 0x120   :  { %4505 = vmatpush3.msra.mxu0 %v5453_v5  ;;  %5260 = vmatpush3.msra.mxu1 %v6932_v31  ;;  %v4027_v23 = vpop.f32.mrf.mxu0  ;;  %v7867_v15 = vadd.f32 %v4078_v39, %v604_v45  ;;  %v5455_v31 = vld [vmem:[%s10097_s1 + $0x510] sm:$0xff]  ;;  %v5458_v39 = vld [vmem:[%s10097_s1 + $0x580] sm:$0xff] }
 0x121   :  { %4506 = vmatprep.subr.mxu0 %v5454_v38  ;;  %5261 = vmatprep.subr.mxu1 %v10303_v19  ;;  %v4028_v8 = vadd.f32 %v4027_v23, %v4026_v16  ;;  %v4079_v57 = vpop.f32.mrf.mxu1  ;;  %v3599_v45 = vld [vmem:[%s10098_s0 + $0x330] sm:$0xff] }
 0x122   :  { %4507 = vmatpush3.msra.mxu0 %v5455_v31  ;;  %5262 = vmatpush3.msra.mxu1 %v6955_v47  ;;  %v5457_v47 = vld [vmem:[%s10097_s1 + $0x508] sm:$0xff] }
 0x123   :  { %1665 = vmatprep.mubr.f32.mxu1 %v3675_v30  ;;  %4508 = vmatprep.subr.mxu0 %v5456_v0  ;;  %v609_v41 = vadd.f32 %v4028_v8, %v7595_v4  ;;  %v4080_v16 = vpop.f32.mrf.mxu1  ;;  %v3598_v4 = vld [vmem:[%s10098_s0 + $0x328] sm:$0xff]  ;;  %v5459_v30 = vld [vmem:[%s10097_s1 + $0x500] sm:$0xff]  ;;  %v5460_v8 = vld [vmem:[%s10097_s1 + $0xf8] sm:$0xff] }
 0x124   :  { %5263 = vmatprep.subr.mxu1 %v10303_v19  ;;  %1666 = vmatmul.mubr.f32.gmra.mxu1 %v3674_v52  ;;  %v4029_v42 = vpop.f32.mrf.mxu0  ;;  %v4081_v6 = vadd.f32 %v4080_v16, %v4079_v57  ;;  %v5463_v16 = vld [vmem:[%s10097_s1 + $0x70] sm:$0xff] }
 0x125   :  { %4509 = vmatpush3.msra.mxu0 %v5457_v47  ;;  %5264 = vmatpush3.msra.mxu1 %v6974_v1  ;;  %v3600_v1 = vld [vmem:[%s10098_s0 + $0x338] sm:$0xff] }
 0x126   :  { %4510 = vmatprep.subr.mxu0 %v5458_v39  ;;  %5265 = vmatprep.subr.mxu1 %v10303_v19  ;;  %v4030_v5 = vpop.f32.mrf.mxu0  ;;  %v7898_v23 = vadd.f32 %v4081_v6, %v609_v41  ;;  %v5461_v41 = vld [vmem:[%s10097_s1 + $0x78] sm:$0xff]  ;;  %v5464_v6 = vld [vmem:[%s10097_s1 + $0xe8] sm:$0xff] }
 0x127   :  { %4511 = vmatpush3.msra.mxu0 %v5459_v30  ;;  %1735 = vmatprep.mubr.f32.mxu0 %v3599_v45  ;;  %v4031_v38 = vadd.f32 %v4030_v5, %v4029_v42  ;;  %v4082_v52 = vpop.f32.mrf.mxu1  ;;  %v5462_v45 = vld [vmem:[%s10097_s1 + $0xf0] sm:$0xff]  ;;  %v5465_v5 = vld [vmem:[%s10097_s1 + $0x68] sm:$0xff] }
 0x128   :  { %5266 = vmatpush3.msra.mxu1 %v6997_v59  ;;  %1736 = vmatmul.mubr.f32.vlgmr.msra.gmra.mxu0 %v3598_v4  ;;  %v3612_v59 = vld [vmem:[%s10098_s0 + $0x398] sm:$0xff] }
 0x129   :  { %5267 = vmatprep.mubr.msk.f32.mxu1 %vm5779_vm1, %v10303_v19  ;;  %4548 = vmatprep.subr.mxu0 %v5460_v8  ;;  %v614_v31 = vadd.f32 %v4031_v38, %v7632_v9  ;;  %v4083_v0 = vpop.f32.mrf.mxu1  ;;  %v3611_v9 = vld [vmem:[%s10098_s0 + $0x390] sm:$0xff] }
 0x12a   :  { %4601 = vmatprep.subr.mxu1 %v7013_v46  ;;  %5268 = vmatmul.mubr.msk.f32.vlgmr.msra.gmra.mxu1 %vm310_vm0, %v3600_v1  ;;  %v4032_v57 = vpop.f32.mrf.mxu0  ;;  %v4084_v46 = vadd.f32 %v4083_v0, %v4082_v52  ;;  %v5466_v1 = vld [vmem:[%s10097_s1 + $0xe0] sm:$0xff]  ;;  %v5469_v0 = vld [vmem:[%s10097_s1 + $0x58] sm:$0xff] }
 0x12b   :  { %4549 = vmatpush3.msra.mxu0 %v5461_v41  ;;  %4602 = vmatpush3.msra.mxu1 %v7021_v48  ;;  %v5467_v52 = vld [vmem:[%s10097_s1 + $0x60] sm:$0xff] }
 0x12c   :  { %4550 = vmatprep.subr.mxu0 %v5462_v45  ;;  %4603 = vmatprep.subr.mxu1 %v7028_v50  ;;  %v4033_v42 = vpop.f32.mrf.mxu0  ;;  %v7926_v48 = vadd.f32 %v4084_v46, %v614_v31  ;;  %v3625_v50 = vld [vmem:[%s10098_s0 + $0x400] sm:$0xff]  ;;  %v5470_v46 = vld [vmem:[%s10097_s1 + $0xd0] sm:$0xff] }
 0x12d   :  { %1740 = vmatprep.mubr.f32.mxu0 %v3612_v59  ;;  %4551 = vmatpush3.msra.mxu0 %v5463_v16  ;;  %v4034_v47 = vadd.f32 %v4033_v42, %v4032_v57  ;;  %v4085_v4 = vpop.f32.mrf.mxu1  ;;  %v5468_v59 = vld [vmem:[%s10097_s1 + $0xd8] sm:$0xff]  ;;  %v3638_v57 = vld [vmem:[%s10098_s0 + $0x468] sm:$0xff]  ;;  %v5471_v42 = vld [vmem:[%s10097_s1 + $0x50] sm:$0xff] }
 0x12e   :  { %4604 = vmatpush3.msra.mxu1 %v7041_v56  ;;  %1741 = vmatmul.mubr.f32.gmra.mxu0 %v3611_v9 }
 0x12f   :  { %4552 = vmatprep.subr.mxu0 %v5464_v6  ;;  %4605 = vmatprep.subr.mxu1 %v7050_v58  ;;  %v619_v39 = vadd.f32 %v4034_v47, %v7678_v44  ;;  %v4086_v30 = vpop.f32.mrf.mxu1  ;;  %v3624_v58 = vld [vmem:[%s10098_s0 + $0x3f8] sm:$0xff]  ;;  %v3613_v44 = vld [vmem:[%s10098_s0 + $0x3a0] sm:$0xff] }
 0x130   :  { %4553 = vmatpush3.msra.mxu0 %v5465_v5  ;;  %4606 = vmatpush3.msra.mxu1 %v7060_v7  ;;  %v4035_v56 = vpop.f32.mrf.mxu0  ;;  %v4087_v38 = vadd.f32 %v4086_v30, %v4085_v4  ;;  %v7994_v4 = vld [vmem:[%s10097_s1 + $0xc8] sm:$0xff]  ;;  %v5474_v5 = vld [vmem:[%s10097_s1 + $0xc0] sm:$0xff] }
 0x131   :  { %4554 = vmatprep.subr.mxu0 %v5466_v1  ;;  %4607 = vmatprep.subr.mxu1 %v7067_v62  ;;  %v5476_v1 = vld [vmem:[%s10097_s1 + $0xb8] sm:$0xff] }
 0x132   :  { %1745 = vmatprep.mubr.f32.mxu0 %v3625_v50  ;;  %5270 = vmatprep.mubr.msk.f32.mxu1 %vm5779_vm1, %v10303_v19  ;;  %v4036_v7 = vpop.f32.mrf.mxu0  ;;  %v7957_v62 = vadd.f32 %v4087_v38, %v619_v39  ;;  %v5473_v50 = vld [vmem:[%s10097_s1 + $0x48] sm:$0xff] }
 0x133   :  { %4555 = vmatpush3.msra.mxu0 %v5467_v52  ;;  %4608 = vmatpush3.msra.mxu1 %v7074_v2  ;;  %v4037_v8 = vadd.f32 %v4036_v7, %v4035_v56  ;;  %v4088_v31 = vpop.f32.mrf.mxu1  ;;  %v5478_v7 = vld [vmem:[%s10097_s1 + $0xb0] sm:$0xff]  ;;  %v3652_v52 = vld [vmem:[%s10098_s0 + $0x4d8] sm:$0xff] }
 0x134   :  { %1746 = vmatmul.mubr.f32.gmra.mxu0 %v3624_v58  ;;  %5271 = vmatmul.mubr.msk.f32.gmra.mxu1 %vm310_vm0, %v3613_v44  ;;  %v3664_v58 = vld [vmem:[%s10098_s0 + $0x538] sm:$0xff] }
 0x135   :  { %4556 = vmatprep.subr.mxu0 %v5468_v59  ;;  %4609 = vmatprep.subr.mxu1 %v7086_v13  ;;  %v624_v2 = vadd.f32 %v4037_v8, %v7731_v43  ;;  %v4089_v9 = vpop.f32.mrf.mxu1  ;;  %v3637_v13 = vld [vmem:[%s10098_s0 + $0x460] sm:$0xff]  ;;  %v3626_v43 = vld [vmem:[%s10098_s0 + $0x408] sm:$0xff] }
 0x136   :  { %4557 = vmatpush3.msra.mxu0 %v5469_v0  ;;  %4610 = vmatpush3.msra.mxu1 %v7095_v17  ;;  %v4038_v41 = vpop.f32.mrf.mxu0  ;;  %v4090_v45 = vadd.f32 %v4089_v9, %v4088_v31  ;;  %v5479_v31 = vld [vmem:[%s10097_s1 + $0x30] sm:$0xff]  ;;  %v3677_v0 = vld [vmem:[%s10098_s0 + $0x5a0] sm:$0x3] }
 0x137   :  { %4558 = vmatprep.subr.mxu0 %v5470_v46  ;;  %4611 = vmatprep.subr.mxu1 %v7105_v21  ;;  %v5482_v46 = vld [vmem:[%s10097_s1 + $0xa0] sm:$0xff] }
 0x138   :  { %1750 = vmatprep.mubr.f32.mxu0 %v3638_v57  ;;  %5273 = vmatprep.mubr.msk.f32.mxu1 %vm5779_vm1, %v10303_v19  ;;  %v4039_v17 = vpop.f32.mrf.mxu0  ;;  %v7988_v21 = vadd.f32 %v4090_v45, %v624_v2  ;;  %v5480_v2 = vld [vmem:[%s10097_s1 + $0xa8] sm:$0xff]  ;;  %v5483_v45 = vld [vmem:[%s10097_s1 + $0x20] sm:$0xff] }
 0x139   :  { %4559 = vmatpush3.msra.mxu0 %v5471_v42  ;;  %4612 = vmatpush3.msra.mxu1 %v7115_v29  ;;  %v4040_v16 = vadd.f32 %v4039_v17, %v4038_v41  ;;  %v4091_v47 = vpop.f32.mrf.mxu1  ;;  %v3651_v29 = vld [vmem:[%s10098_s0 + $0x4d0] sm:$0xff] }
 0x13a   :  { %1751 = vmatmul.mubr.f32.gmra.mxu0 %v3637_v13  ;;  %5274 = vmatmul.mubr.msk.f32.gmra.mxu1 %vm310_vm0, %v3626_v43  ;;  %v3665_v13 = vld [vmem:[%s10098_s0 + $0x540] sm:$0xff] }
 0x13b   :  { %4560 = vmatprep.subr.mxu0 %v7994_v4  ;;  %4613 = vmatprep.subr.mxu1 %v7126_v37  ;;  %v629_v6 = vadd.f32 %v4040_v16, %v7781_v60  ;;  %v4092_v39 = vpop.f32.mrf.mxu1  ;;  %v3650_v37 = vld [vmem:[%s10098_s0 + $0x4c8] sm:$0xff]  ;;  %v3639_v60 = vld [vmem:[%s10098_s0 + $0x470] sm:$0xff]  ;;  %v5484_v16 = vld [vmem:[%s10097_s1 + $0x98] sm:$0xff] }
 0x13c   :  { %4561 = vmatpush3.msra.mxu0 %v5473_v50  ;;  %4614 = vmatpush3.msra.mxu1 %v7134_v10  ;;  %v4093_v56 = vadd.f32 %v4092_v39, %v4091_v47  ;;  %v5475_v10 = vld [vmem:[%s10097_s1 + $0x40] sm:$0xff]  ;;  %v5485_v47 = vld [vmem:[%s10097_s1 + $0x18] sm:$0xff]  ;;  %v5486_v50 = vld [vmem:[%s10097_s1 + $0x90] sm:$0xff] }
 0x13d   :  { %4562 = vmatprep.subr.mxu0 %v5474_v5  ;;  %4615 = vmatprep.subr.mxu1 %v7141_v12 }
 0x13e   :  { %1755 = vmatprep.mubr.f32.mxu0 %v3651_v29  ;;  %5276 = vmatprep.mubr.msk.f32.mxu1 %vm5779_vm1, %v10303_v19  ;;  %v8022_v12 = vadd.f32 %v4093_v56, %v629_v6  ;;  %v3687_v56 = vld [vmem:[%s10098_s0 + $0x5b8] sm:$0xff] }
 0x13f   :  { %4563 = vmatpush3.msra.mxu0 %v5475_v10  ;;  %4616 = vmatpush3.msra.mxu1 %v7151_v14  ;;  %v5477_v14 = vld [vmem:[%s10097_s1 + $0x38] sm:$0xff] }
 0x140   :  { %1756 = vmatmul.mubr.f32.gmra.mxu0 %v3650_v37  ;;  %5277 = vmatmul.mubr.msk.f32.gmra.mxu1 %vm310_vm0, %v3639_v60  ;;  %v4126_v30 = vpop.f32.mrf.mxu0 }
 0x141   :  { %4564 = vmatprep.subr.mxu0 %v5476_v1  ;;  %4617 = vmatprep.subr.mxu1 %v7166_v55  ;;  %v3663_v55 = vld [vmem:[%s10098_s0 + $0x530] sm:$0xff] }
 0x142   :  { %4565 = vmatpush3.msra.mxu0 %v5477_v14  ;;  %4618 = vmatpush3.msra.mxu1 %v7174_v61  ;;  %v4127_v44 = vpop.f32.mrf.mxu0  ;;  %v4179_v38 = vpop.f32.mrf.mxu1  ;;  %v3688_v14 = vld [vmem:[%s10098_s0 + $0x5c0] sm:$0xff] }
 0x143   :  { %4566 = vmatprep.subr.mxu0 %v5478_v7  ;;  %4619 = vmatprep.subr.mxu1 %v7181_v18  ;;  %v4128_v8 = vadd.f32 %v4127_v44, %v4126_v30  ;;  %v5491_v44 = vld [vmem:[%s10097_s1] sm:$0xff] }
 0x144   :  { %1760 = vmatprep.mubr.f32.mxu0 %v3664_v58  ;;  %5279 = vmatprep.mubr.msk.f32.mxu1 %vm5779_vm1, %v10303_v19  ;;  %v4180_v61 = vpop.f32.mrf.mxu1  ;;  %v4129_v59 = vpop.f32.mrf.mxu0 }
 0x145   :  { %4567 = vmatpush3.msra.mxu0 %v5479_v31  ;;  %4620 = vmatpush3.msra.mxu1 %v7191_v20  ;;  %v799_v18 = vadd.f32 %v4128_v8, %v7826_v53  ;;  %v4181_v57 = vadd.f32 %v4180_v61, %v4179_v38  ;;  %v5481_v53 = vld [vmem:[%s10097_s1 + $0x28] sm:$0xff]  ;;  %v5492_v8 = vld [vmem:[%s10097_s1 + $0x2f8] sm:$0xff] }
 0x146   :  { %1761 = vmatmul.mubr.f32.gmra.mxu0 %v3663_v55  ;;  %5280 = vmatmul.mubr.msk.f32.gmra.mxu1 %vm310_vm0, %v3652_v52  ;;  %v4130_v41 = vpop.f32.mrf.mxu0 }
 0x147   :  { %4568 = vmatprep.subr.mxu0 %v5480_v2  ;;  %4621 = vmatprep.subr.mxu1 %v7206_v22  ;;  %v8061_v20 = vadd.f32 %v4181_v57, %v799_v18  ;;  %v4131_v9 = vadd.f32 %v4130_v41, %v4129_v59  ;;  %v3676_v22 = vld [vmem:[%s10098_s0 + $0x598] sm:$0x3]  ;;  %v5495_v2 = vld [vmem:[%s10097_s1 + $0x270] sm:$0xff] }
 0x148   :  { %4569 = vmatpush3.msra.mxu0 %v5481_v53  ;;  %4622 = vmatpush3.msra.mxu1 %v7214_v33  ;;  %v4182_v43 = vpop.f32.mrf.mxu1  ;;  %v3699_v53 = vld [vmem:[%s10098_s0 + $0x618] sm:$0xff] }
 0x149   :  { %4570 = vmatprep.subr.mxu0 %v5482_v46  ;;  %4623 = vmatprep.subr.mxu1 %v7221_v24  ;;  %v804_v33 = vadd.f32 %v4131_v9, %v7867_v15  ;;  %v3701_v9 = vld [vmem:[%s10098_s0 + $0x628] sm:$0xff] }
 0x14a   :  { %1765 = vmatprep.mubr.f32.mxu0 %v3677_v0  ;;  %5282 = vmatprep.mubr.msk.f32.mxu1 %vm5779_vm1, %v10303_v19  ;;  %v4132_v24 = vpop.f32.mrf.mxu0  ;;  %v4183_v17 = vpop.f32.mrf.mxu1  ;;  %v3702_v0 = vld [vmem:[%s10098_s0 + $0x630] sm:$0xff] }
 0x14b   :  { %4571 = vmatpush3.msra.mxu0 %v5483_v45  ;;  %4624 = vmatpush3.msra.mxu1 %v7231_v26  ;;  %v4184_v42 = vadd.f32 %v4183_v17, %v4182_v43  ;;  %v5499_v17 = vld [vmem:[%s10097_s1 + $0x260] sm:$0xff] }
 0x14c   :  { %1766 = vmatmul.mubr.f32.gmra.mxu0 %v3676_v22  ;;  %5283 = vmatmul.mubr.msk.f32.gmra.mxu1 %vm310_vm0, %v3665_v13  ;;  %v4133_v15 = vpop.f32.mrf.mxu0 }
 0x14d   :  { %4572 = vmatprep.subr.mxu0 %v5484_v16  ;;  %4625 = vmatprep.subr.mxu1 %v7246_v28  ;;  %v4134_v26 = vadd.f32 %v4133_v15, %v4132_v24  ;;  %v4185_v29 = vpop.f32.mrf.mxu1  ;;  %v8093_v6 = vadd.f32 %v4184_v42, %v804_v33  ;;  %v3678_v28 = vld [vmem:[%s10098_s0 + $0x5a8] sm:$0x3] }
 0x14e   :  { %4573 = vmatpush3.msra.mxu0 %v5485_v47  ;;  %4626 = vmatpush3.msra.mxu1 %v7254_v3  ;;  %v5487_v3 = vld [vmem:[%s10097_s1 + $0x10] sm:$0xff]  ;;  %v10310_v42 = vld [vmem:[#allocation3_spill] sm:$0xff]  ;;  %v5500_v47 = vld [vmem:[%s10097_s1 + $0x2d8] sm:$0xff] }
 0x14f   :  { %4574 = vmatprep.subr.mxu0 %v5486_v50  ;;  %4627 = vmatprep.subr.mxu1 %v7264_v27  ;;  %v809_v39 = vadd.f32 %v4134_v26, %v7898_v23  ;;  %v4135_v5 = vpop.f32.mrf.mxu0  ;;  %v4186_v37 = vpop.f32.mrf.mxu1  ;;  %v5488_v27 = vld [vmem:[%s10097_s1 + $0x88] sm:$0xff]  ;;  %v10311_v26 = vld [vmem:[#allocation4_spill] sm:$0xff] }
 0x150   :  { %5285 = vmatprep.mubr.msk.f32.mxu1 %vm5779_vm1, %v10303_v19  ;;  %4575 = vmatpush3.msra.mxu0 %v5487_v3  ;;  %v4187_v60 = vadd.f32 %v4186_v37, %v4185_v29  ;;  %v5489_v23 = vld [vmem:[%s10097_s1 + $0x8] sm:$0xff]  ;;  %v5501_v3 = vld [vmem:[%s10097_s1 + $0x258] sm:$0xff]  ;;  %v3714_v37 = vld [vmem:[%s10098_s0 + $0x690] sm:$0xff] }
 0x151   :  { %4628 = vmatpush3.msra.mxu1 %v7271_v32  ;;  %4576 = vmatprep.subr.mxu0 %v5488_v27  ;;  %v4136_v10 = vpop.f32.mrf.mxu0  ;;  %v3689_v32 = vld [vmem:[%s10098_s0 + $0x5c8] sm:$0xff] }
 0x152   :  { %5286 = vmatmul.mubr.msk.f32.gmra.mxu1 %vm310_vm0, %v3678_v28  ;;  %4629 = vmatprep.subr.mxu1 %v7281_v34  ;;  %v4137_v30 = vadd.f32 %v4136_v10, %v4135_v5  ;;  %v4188_v1 = vpop.f32.mrf.mxu1  ;;  %v8124_v58 = vadd.f32 %v4187_v60, %v809_v39  ;;  %v8129_v34 = vld [vmem:[%s10097_s1 + $0x80] sm:$0xff]  ;;  %v3713_v16 = vld [vmem:[%s10098_s0 + $0x688] sm:$0xff]  ;;  %v10312_v39 = vld [vmem:[#allocation5_spill] sm:$0xff] }
 0x153   :  { %4577 = vmatpush3.msra.mxu0 %v5489_v23  ;;  %4630 = vmatpush3.msra.mxu1 %v7288_v36  ;;  %v3686_v36 = vld [vmem:[%s10098_s0 + $0x5b0] sm:$0xff]  ;;  %v3712_v5 = vld [vmem:[%s10098_s0 + $0x680] sm:$0xff] }
 0x154   :  { %4578 = vmatprep.subr.mxu0 %v8129_v34  ;;  %4631 = vmatprep.subr.mxu1 %v7298_v40  ;;  %v814_v38 = vadd.f32 %v4137_v30, %v7926_v48  ;;  %v4189_v55 = vpop.f32.mrf.mxu1  ;;  %v5494_v48 = vld [vmem:[%s10097_s1 + $0x2f0] sm:$0xff]  ;;  %v10313_v10 = vld [vmem:[#allocation6_spill] sm:$0xff] }
 0x155   :  { %4579 = vmatpush3.msra.mxu0 %v5491_v44  ;;  %2069 = vmatprep.mubr.f32.mxu0 %v3687_v56  ;;  %v4138_v7 = vpop.f32.mrf.mxu0  ;;  %v4190_v40 = vadd.f32 %v4189_v55, %v4188_v1  ;;  %v8223_v56 = vld [vmem:[%s10097_s1 + $0x2d0] sm:$0xff]  ;;  %v10314_v1 = vld [vmem:[#allocation7_spill] sm:$0xff] }
 0x156   :  { %4632 = vmatpush3.msra.mxu1 %v7311_v54  ;;  %2169 = vmatprep.mubr.f32.mxu1 %v3689_v32  ;;  %v5493_v54 = vld [vmem:[%s10097_s1 + $0x278] sm:$0xff]  ;;  %v5505_v55 = vld [vmem:[%s10097_s1 + $0x248] sm:$0xff] }
 0x157   :  { %2070 = vmatmul.mubr.f32.vlgmr.msra.gmra.mxu0 %v3686_v36  ;;  %2170 = vmatmul.mubr.f32.vlgmr.msra.gmra.mxu1 %v3688_v14  ;;  %v4139_v52 = vpop.f32.mrf.mxu0  ;;  %v4191_v31 = vpop.f32.mrf.mxu1  ;;  %v8148_v18 = vadd.f32 %v4190_v40, %v814_v38  ;;  %v3726_v36 = vld [vmem:[%s10098_s0 + $0x6f0] sm:$0xff]  ;;  %v3728_v14 = vld [vmem:[%s10098_s0 + $0x700] sm:$0xff]  ;;  %v10316_v40 = vld [vmem:[#allocation9_spill] sm:$0xff] }
 0x158   :  { %4654 = vmatprep.subr.mxu0 %v5492_v8  ;;  %4707 = vmatprep.subr.mxu1 %v7322_v25  ;;  %v4140_v61 = vadd.f32 %v4139_v52, %v4138_v7  ;;  %v10315_v7 = vld [vmem:[#allocation8_spill] sm:$0xff]  ;;  %v3725_v52 = vld [vmem:[%s10098_s0 + $0x6e8] sm:$0xff]  ;;  %v3727_v8 = vld [vmem:[%s10098_s0 + $0x6f8] sm:$0xff] }
 0x159   :  { %4655 = vmatpush3.msra.mxu0 %v5493_v54  ;;  %4708 = vmatpush3.msra.mxu1 %v7332_v49  ;;  %v4192_v57 = vpop.f32.mrf.mxu1  ;;  %v3700_v49 = vld [vmem:[%s10098_s0 + $0x620] sm:$0xff] }
 0x15a   :  { %4656 = vmatprep.subr.mxu0 %v5494_v48  ;;  %4709 = vmatprep.subr.mxu1 %v7342_v11  ;;  %v819_v25 = vadd.f32 %v4140_v61, %v7957_v62  ;;  %v4141_v59 = vpop.f32.mrf.mxu0  ;;  %v4193_v11 = vadd.f32 %v4192_v57, %v4191_v31  ;;  %v5496_v62 = vld [vmem:[%s10097_s1 + $0x2e8] sm:$0xff]  ;;  %v5506_v31 = vld [vmem:[%s10097_s1 + $0x2c0] sm:$0xff] }
 0x15b   :  { %4657 = vmatpush3.msra.mxu0 %v5495_v2  ;;  %4710 = vmatpush3.msra.mxu1 %v7352_v51  ;;  %v5497_v51 = vld [vmem:[%s10097_s1 + $0x268] sm:$0xff]  ;;  %v10317_v54 = vld [vmem:[#allocation10_spill] sm:$0xff]  ;;  %v3739_v2 = vld [vmem:[%s10098_s0 + $0x758] sm:$0xff] }
 0x15c   :  { %4658 = vmatprep.subr.mxu0 %v5496_v62  ;;  %4711 = vmatprep.subr.mxu1 %v7362_v35  ;;  %v4142_v41 = vpop.f32.mrf.mxu0  ;;  %v8183_v13 = vadd.f32 %v4193_v11, %v819_v25  ;;  %v8188_v35 = vld [vmem:[%s10097_s1 + $0x2e0] sm:$0xff]  ;;  %v10318_v57 = vld [vmem:[#allocation11_spill] sm:$0xff]  ;;  %v5509_v62 = vld [vmem:[%s10097_s1 + $0x238] sm:$0xff] }
 0x15d   :  { %4659 = vmatpush3.msra.mxu0 %v5497_v51  ;;  %4712 = vmatpush3.msra.mxu1 %v7371_v63  ;;  %v4143_v46 = vadd.f32 %v4142_v41, %v4141_v59  ;;  %v4194_v22 = vpop.f32.mrf.mxu1  ;;  %v10309_v63 = vld [vmem:[#allocation2_spill] sm:$0xff]  ;;  %v10320_v41 = vld [vmem:[#allocation13_spill] sm:$0xff]  ;;  %v3738_v51 = vld [vmem:[%s10098_s0 + $0x750] sm:$0xff] }
 0x15e   :  { %2074 = vmatprep.mubr.f32.mxu0 %v3700_v49  ;;  %2174 = vmatprep.mubr.f32.mxu1 %v3702_v0  ;;  %v5507_v59 = vld [vmem:[%s10097_s1 + $0x240] sm:$0xff]  ;;  %v3741_v49 = vld [vmem:[%s10098_s0 + $0x768] sm:$0xff]  ;;  %v10319_v0 = vld [vmem:[#allocation12_spill] sm:$0xff] }
 0x15f   :  { %4660 = vmatprep.subr.mxu0 %v8188_v35  ;;  %4713 = vmatprep.subr.mxu1 %v10309_v63  ;;  %v824_v43 = vadd.f32 %v4143_v46, %v7988_v21  ;;  %v4144_v33 = vpop.f32.mrf.mxu0  ;;  %v4195_v45 = vpop.f32.mrf.mxu1  ;;  %v3715_v21 = vld [vmem:[%s10098_s0 + $0x698] sm:$0xff]  ;;  %v5510_v46 = vld [vmem:[%s10097_s1 + $0x2b0] sm:$0xff] }
 0x160   :  { %2075 = vmatmul.mubr.f32.gmra.mxu0 %v3699_v53  ;;  %2175 = vmatmul.mubr.f32.gmra.mxu1 %v3701_v9  ;;  %v4196_v24 = vadd.f32 %v4195_v45, %v4194_v22  ;;  %v3740_v53 = vld [vmem:[%s10098_s0 + $0x760] sm:$0xff]  ;;  %v5511_v45 = vld [vmem:[%s10097_s1 + $0x230] sm:$0xff] }
 0x161   :  { %4661 = vmatpush3.msra.mxu0 %v5499_v17  ;;  %4714 = vmatpush3.msra.mxu1 %v10310_v42  ;;  %v4145_v15 = vpop.f32.mrf.mxu0  ;;  %v10321_v22 = vld [vmem:[#allocation14_spill] sm:$0xff]  ;;  %v5512_v42 = vld [vmem:[%s10097_s1 + $0x2a8] sm:$0xff] }
 0x162   :  { %4662 = vmatprep.subr.mxu0 %v5500_v47  ;;  %4715 = vmatprep.subr.mxu1 %v10311_v26  ;;  %v4146_v29 = vadd.f32 %v4145_v15, %v4144_v33  ;;  %v4197_v50 = vpop.f32.mrf.mxu1  ;;  %v8207_v28 = vadd.f32 %v4196_v24, %v824_v43  ;;  %v10322_v24 = vld [vmem:[#allocation15_spill] sm:$0xff]  ;;  %v3752_v17 = vld [vmem:[%s10098_s0 + $0x7c0] sm:$0xff]  ;;  %v10324_v15 = vld [vmem:[#allocation17_spill] sm:$0xff] }
 0x163   :  { %4663 = vmatpush3.msra.mxu0 %v5501_v3  ;;  %4716 = vmatpush3.msra.mxu1 %v10312_v39  ;;  %v3751_v47 = vld [vmem:[%s10098_s0 + $0x7b8] sm:$0xff]  ;;  %v3753_v26 = vld [vmem:[%s10098_s0 + $0x7c8] sm:$0xff]  ;;  %v5514_v39 = vld [vmem:[%s10097_s1 + $0x2a0] sm:$0xff] }
 0x164   :  { %2079 = vmatprep.mubr.f32.mxu0 %v3713_v16  ;;  %2179 = vmatprep.mubr.f32.mxu1 %v3715_v21  ;;  %v829_v27 = vadd.f32 %v4146_v29, %v8022_v12  ;;  %v4198_v60 = vpop.f32.mrf.mxu1  ;;  %v998_v32 = vpop.f32.mrf.mxu0  ;;  %v5503_v12 = vld [vmem:[%s10097_s1 + $0x250] sm:$0xff]  ;;  %v5513_v21 = vld [vmem:[%s10097_s1 + $0x228] sm:$0xff] }
 0x165   :  { %4664 = vmatprep.subr.mxu0 %v8223_v56  ;;  %4717 = vmatprep.subr.mxu1 %v10313_v10  ;;  %v4199_v23 = vadd.f32 %v4198_v60, %v4197_v50  ;;  %v8228_v30 = vadd.f32 %v998_v32, %v8061_v20  ;;  %v5504_v20 = vld [vmem:[%s10097_s1 + $0x2c8] sm:$0xff]  ;;  %v10323_v16 = vld [vmem:[#allocation16_spill] sm:$0xff]  ;;  %v5515_v60 = vld [vmem:[%s10097_s1 + $0x220] sm:$0xff] }
 0x166   :  { %2080 = vmatmul.mubr.f32.gmra.mxu0 %v3712_v5  ;;  %2180 = vmatmul.mubr.f32.gmra.mxu1 %v3714_v37  ;;  %v5232_v44 = vpop.f32.mrf.mxu0  ;;  %v10325_v5 = vld [vmem:[#allocation18_spill] sm:$0xff]  ;;  %v3765_v10 = vld [vmem:[%s10098_s0 + $0x828] sm:$0x3]  ;;  %v5516_v32 = vld [vmem:[%s10097_s1 + $0x298] sm:$0xff] }
 0x167   :  { %4665 = vmatpush3.msra.mxu0 %v5503_v12  ;;  %4718 = vmatpush3.msra.mxu1 %v10314_v1  ;;  %v8240_v38 = vadd.f32 %v4199_v23, %v829_v27  ;;  %v3767_v23 = vld [vmem:[%s10098_s0 + $0x838] sm:$0x3]  ;;  %v10327_v12 = vld [vmem:[#allocation20_spill] sm:$0xff] }
 0x168   :  { %4666 = vmatprep.subr.mxu0 %v5504_v20  ;;  %4719 = vmatprep.subr.mxu1 %v10315_v7  ;;  %v5517_v1 = vld [vmem:[%s10097_s1 + $0x218] sm:$0xff]  ;;  %v3766_v44 = vld [vmem:[%s10098_s0 + $0x830] sm:$0x3] }
 0x169   :  { %4667 = vmatpush3.msra.mxu0 %v5505_v55  ;;  %4720 = vmatpush3.msra.mxu1 %v10316_v40  ;;  %v1003_v61 = vpop.f32.mrf.mxu0  ;;  %v5518_v40 = vld [vmem:[%s10097_s1 + $0x290] sm:$0xff] }
 0x16a   :  { %2084 = vmatprep.mubr.f32.mxu0 %v3726_v36  ;;  %2184 = vmatprep.mubr.f32.mxu1 %v3728_v14  ;;  %v8261_v48 = vadd.f32 %v1003_v61, %v8093_v6  ;;  %v5508_v6 = vld [vmem:[%s10097_s1 + $0x2b8] sm:$0xff]  ;;  %v3764_v14 = vld [vmem:[%s10098_s0 + $0x820] sm:$0x3] }
 0x16b   :  { %4668 = vmatprep.subr.mxu0 %v5506_v31  ;;  %4721 = vmatprep.subr.mxu1 %v10317_v54  ;;  %v5235_v25 = vpop.f32.mrf.mxu0  ;;  %v8277_v11 = vpop.f32.mrf.mxu1  ;;  %v10328_v36 = vld [vmem:[#allocation21_spill] sm:$0xff]  ;;  %v5519_v31 = vld [vmem:[%s10097_s1 + $0x210] sm:$0xff]  ;;  %v5520_v54 = vld [vmem:[%s10097_s1 + $0x288] sm:$0xff] }
 0x16c   :  { %2085 = vmatmul.mubr.f32.gmra.mxu0 %v3725_v52  ;;  %2185 = vmatmul.mubr.f32.gmra.mxu1 %v3727_v8  ;;  %v10329_v52 = vld [vmem:[#allocation22_spill] sm:$0xff]  ;;  %v10331_v25 = vld [vmem:[#allocation24_spill] sm:$0xff] }
 0x16d   :  { %4669 = vmatpush3.msra.mxu0 %v5507_v59  ;;  %4722 = vmatpush3.msra.mxu1 %v10318_v57  ;;  %v8296_v33 = vpop.f32.mrf.mxu1  ;;  %v3691_v59 = vld [vmem:[%s10098_s0 + $0x5d8] sm:$0xff]  ;;  %v5521_v57 = vld [vmem:[%s10097_s1 + $0x208] sm:$0xff] }
 0x16e   :  { %4670 = vmatprep.subr.mxu0 %v5508_v6  ;;  %4723 = vmatprep.subr.mxu1 %v10319_v0  ;;  %v5522_v0 = vld [vmem:[%s10097_s1 + $0x280] sm:$0xff] }
 0x16f   :  { %4671 = vmatpush3.msra.mxu0 %v5509_v62  ;;  %4724 = vmatpush3.msra.mxu1 %v10320_v41  ;;  %v1008_v9 = vpop.f32.mrf.mxu0  ;;  %v10333_v62 = vld [vmem:[#allocation26_spill] sm:$0xff]  ;;  %v3693_v41 = vld [vmem:[%s10098_s0 + $0x5e8] sm:$0xff] }
 0x170   :  { %2089 = vmatprep.mubr.f32.mxu0 %v3739_v2  ;;  %2189 = vmatprep.mubr.f32.mxu1 %v3741_v49  ;;  %v8294_v63 = vadd.f32 %v1008_v9, %v8124_v58  ;;  %v3754_v58 = vld [vmem:[%s10098_s0 + $0x7d0] sm:$0xff]  ;;  %v10332_v2 = vld [vmem:[#allocation25_spill] sm:$0xff]  ;;  %v5523_v9 = vld [vmem:[%s10097_s1 + $0x200] sm:$0xff] }
 0x171   :  { %4672 = vmatprep.subr.mxu0 %v5510_v46  ;;  %4725 = vmatprep.subr.mxu1 %v10321_v22  ;;  %v5238_v43 = vpop.f32.mrf.mxu0  ;;  %v3690_v49 = vld [vmem:[%s10098_s0 + $0x5d0] sm:$0xff]  ;;  %v3692_v46 = vld [vmem:[%s10098_s0 + $0x5e0] sm:$0xff] }
 0x172   :  { %2090 = vmatmul.mubr.f32.gmra.mxu0 %v3738_v51  ;;  %2190 = vmatmul.mubr.f32.gmra.mxu1 %v3740_v53  ;;  %v10334_v43 = vld [vmem:[#allocation27_spill] sm:$0xff] }
 0x173   :  { %4673 = vmatpush3.msra.mxu0 %v5511_v45  ;;  %4726 = vmatpush3.msra.mxu1 %v10322_v24  ;;  %v10335_v24 = vld [vmem:[#allocation28_spill] sm:$0xff] }
 0x174   :  { %4674 = vmatprep.subr.mxu0 %v5512_v42  ;;  %4727 = vmatprep.subr.mxu1 %v10323_v16  ;;  %v10336_v42 = vld [vmem:[#allocation29_spill] sm:$0xff] }
 0x175   :  { %4675 = vmatpush3.msra.mxu0 %v5513_v21  ;;  %4728 = vmatpush3.msra.mxu1 %v10324_v15  ;;  %v1013_v29 = vpop.f32.mrf.mxu0  ;;  %v8325_v3 = vpop.f32.mrf.mxu1  ;;  %v3703_v16 = vld [vmem:[%s10098_s0 + $0x638] sm:$0xff]  ;;  %v5526_v15 = vld [vmem:[%s10097_s1 + $0x4f0] sm:$0xff] }
 0x176   :  { %2094 = vmatprep.mubr.f32.mxu0 %v3752_v17  ;;  %2194 = vmatprep.mubr.f32.mxu1 %v3754_v58  ;;  %v8323_v50 = vadd.f32 %v1013_v29, %v8148_v18  ;;  %v10326_v18 = vld [vmem:[#allocation19_spill] sm:$0xff]  ;;  %v3704_v17 = vld [vmem:[%s10098_s0 + $0x640] sm:$0xff]  ;;  %v5525_v58 = vld [vmem:[%s10097_s1 + $0x478] sm:$0xff] }
 0x177   :  { %4676 = vmatprep.subr.mxu0 %v5514_v39  ;;  %4729 = vmatprep.subr.mxu1 %v10325_v5  ;;  %v5241_v37 = vpop.f32.mrf.mxu0  ;;  %v8331_v27 = vpop.f32.mrf.mxu1  ;;  %v5527_v39 = vld [vmem:[%s10097_s1 + $0x470] sm:$0xff] }
 0x178   :  { %2095 = vmatmul.mubr.f32.gmra.mxu0 %v3751_v47  ;;  %2195 = vmatmul.mubr.f32.gmra.mxu1 %v3753_v26  ;;  %v10337_v47 = vld [vmem:[#allocation30_spill] sm:$0xff]  ;;  %v3706_v5 = vld [vmem:[%s10098_s0 + $0x650] sm:$0xff] }
 0x179   :  { %4677 = vmatpush3.msra.mxu0 %v5515_v60  ;;  %4730 = vmatpush3.msra.mxu1 %v10326_v18  ;;  %v10338_v60 = vld [vmem:[#allocation31_spill] sm:$0xff] }
 0x17a   :  { %4678 = vmatprep.subr.mxu0 %v5516_v32  ;;  %4731 = vmatprep.subr.mxu1 %v10327_v12  ;;  %v5529_v32 = vld [vmem:[%s10097_s1 + $0x468] sm:$0xff] }
 0x17b   :  { %4679 = vmatpush3.msra.mxu0 %v5517_v1  ;;  %4732 = vmatpush3.msra.mxu1 %v10328_v36  ;;  %v1018_v20 = vpop.f32.mrf.mxu0  ;;  %v8360_v55 = vpop.f32.mrf.mxu1  ;;  %v3717_v12 = vld [vmem:[%s10098_s0 + $0x6a8] sm:$0xff]  ;;  %v10340_v1 = vld [vmem:[#allocation33_spill] sm:$0xff]  ;;  %v5530_v36 = vld [vmem:[%s10097_s1 + $0x4e0] sm:$0xff] }
 0x17c   :  { %2099 = vmatprep.mubr.f32.mxu0 %v3765_v10  ;;  %2199 = vmatprep.mubr.f32.mxu1 %v3767_v23  ;;  %v8358_v7 = vadd.f32 %v1018_v20, %v8183_v13  ;;  %v10330_v13 = vld [vmem:[#allocation23_spill] sm:$0xff]  ;;  %v10339_v10 = vld [vmem:[#allocation32_spill] sm:$0xff]  ;;  %v10341_v20 = vld [vmem:[#allocation34_spill] sm:$0xff] }
 0x17d   :  { %4680 = vmatprep.subr.mxu0 %v5518_v40  ;;  %4733 = vmatprep.subr.mxu1 %v10329_v52  ;;  %v5244_v8 = vpop.f32.mrf.mxu0  ;;  %v8366_v61 = vpop.f32.mrf.mxu1  ;;  %v3705_v23 = vld [vmem:[%s10098_s0 + $0x648] sm:$0xff]  ;;  %v5531_v40 = vld [vmem:[%s10097_s1 + $0x460] sm:$0xff]  ;;  %v3719_v52 = vld [vmem:[%s10098_s0 + $0x6b8] sm:$0xff] }
 0x17e   :  { %2100 = vmatmul.mubr.f32.gmra.mxu0 %v3764_v14  ;;  %2200 = vmatmul.mubr.f32.gmra.mxu1 %v3766_v44  ;;  %v3716_v14 = vld [vmem:[%s10098_s0 + $0x6a0] sm:$0xff] }
 0x17f   :  { %4681 = vmatpush3.msra.mxu0 %v5519_v31  ;;  %4734 = vmatpush3.msra.mxu1 %v10330_v13  ;;  %v10342_v31 = vld [vmem:[#allocation35_spill] sm:$0xff]  ;;  %v5532_v13 = vld [vmem:[%s10097_s1 + $0x4d8] sm:$0xff] }
 0x180   :  { %4682 = vmatprep.subr.mxu0 %v5520_v54  ;;  %4735 = vmatprep.subr.mxu1 %v10331_v25  ;;  %v10343_v54 = vld [vmem:[#allocation36_spill] sm:$0xff] }
 0x181   :  { %4683 = vmatpush3.msra.mxu0 %v5521_v57  ;;  %4736 = vmatpush3.msra.mxu1 %v10332_v2  ;;  %v1023_v6 = vpop.f32.mrf.mxu0  ;;  %v8396_v53 = vpop.f32.mrf.mxu1  ;;  %v3718_v25 = vld [vmem:[%s10098_s0 + $0x6b0] sm:$0xff]  ;;  %v5533_v57 = vld [vmem:[%s10097_s1 + $0x458] sm:$0xff] }
 0x182   :  { %4684 = vmatprep.subr.mxu0 %v5522_v0  ;;  %4737 = vmatprep.subr.mxu1 %v10333_v62  ;;  %v8394_v51 = vadd.f32 %v1023_v6, %v8207_v28  ;;  %v5524_v28 = vld [vmem:[%s10097_s1 + $0x4f8] sm:$0xff]  ;;  %v3730_v2 = vld [vmem:[%s10098_s0 + $0x710] sm:$0xff]  ;;  %v3729_v0 = vld [vmem:[%s10098_s0 + $0x708] sm:$0xff] }
 0x183   :  { %4685 = vmatpush3.msra.mxu0 %v5523_v9  ;;  %2269 = vmatprep.mubr.f32.mxu0 %v3691_v59  ;;  %v5247_v22 = vpop.f32.mrf.mxu0  ;;  %v8405_v45 = vpop.f32.mrf.mxu1  ;;  %v5534_v6 = vld [vmem:[%s10097_s1 + $0x4d0] sm:$0xff]  ;;  %v10345_v9 = vld [vmem:[#allocation38_spill] sm:$0xff] }
 0x184   :  { %4738 = vmatpush3.msra.mxu1 %v10334_v43  ;;  %2270 = vmatmul.mubr.f32.vlgmr.msra.gmra.mxu0 %v3690_v49  ;;  %v10344_v49 = vld [vmem:[#allocation37_spill] sm:$0xff]  ;;  %v5535_v43 = vld [vmem:[%s10097_s1 + $0x450] sm:$0xff] }
 0x185   :  { %2369 = vmatprep.mubr.f32.mxu1 %v3693_v41  ;;  %4760 = vmatprep.subr.mxu0 %v5524_v28  ;;  %v3732_v28 = vld [vmem:[%s10098_s0 + $0x720] sm:$0xff] }
 0x186   :  { %4813 = vmatprep.subr.mxu1 %v10335_v24  ;;  %2370 = vmatmul.mubr.f32.vlgmr.msra.gmra.mxu1 %v3692_v46  ;;  %v4249_v46 = vadd.f32 %v8296_v33, %v8277_v11  ;;  %v5536_v11 = vld [vmem:[%s10097_s1 + $0x4c8] sm:$0xff]  ;;  %v10347_v33 = vld [vmem:[#allocation40_spill] sm:$0xff] }
 0x187   :  { %4761 = vmatpush3.msra.mxu0 %v5525_v58  ;;  %4814 = vmatpush3.msra.mxu1 %v10336_v42  ;;  %v1028_v21 = vpop.f32.mrf.mxu0  ;;  %v8428_v29 = vpop.f32.mrf.mxu1  ;;  %v3731_v42 = vld [vmem:[%s10098_s0 + $0x718] sm:$0xff] }
 0x188   :  { %4762 = vmatprep.subr.mxu0 %v5526_v15  ;;  %4815 = vmatprep.subr.mxu1 %v10337_v47  ;;  %v8426_v26 = vadd.f32 %v1028_v21, %v8240_v38  ;;  %v5528_v38 = vld [vmem:[%s10097_s1 + $0x4e8] sm:$0xff]  ;;  %v3743_v15 = vld [vmem:[%s10098_s0 + $0x778] sm:$0xff] }
 0x189   :  { %2274 = vmatprep.mubr.f32.mxu0 %v3704_v17  ;;  %4763 = vmatpush3.msra.mxu0 %v5527_v39  ;;  %v5250_v37 = vpop.f32.mrf.mxu0  ;;  %v8437_v18 = vpop.f32.mrf.mxu1  ;;  %v10346_v17 = vld [vmem:[#allocation39_spill] sm:$0xff]  ;;  %v10348_v47 = vld [vmem:[#allocation41_spill] sm:$0xff]  ;;  %v5538_v39 = vld [vmem:[%s10097_s1 + $0x4c0] sm:$0xff] }
 0x18a   :  { %4816 = vmatpush3.msra.mxu1 %v10338_v60  ;;  %2275 = vmatmul.mubr.f32.gmra.mxu0 %v3703_v16  ;;  %v5537_v21 = vld [vmem:[%s10097_s1 + $0x448] sm:$0xff] }
 0x18b   :  { %4764 = vmatprep.subr.mxu0 %v5528_v38  ;;  %4817 = vmatprep.subr.mxu1 %v10339_v10  ;;  %v10349_v38 = vld [vmem:[#allocation42_spill] sm:$0xff]  ;;  %v4252_v10 = vadd.f32 %v8331_v27, %v8325_v3  ;;  %v5541_v27 = vld [vmem:[%s10097_s1 + $0x4b8] sm:$0xff] }
 0x18c   :  { %2374 = vmatprep.mubr.f32.mxu1 %v3706_v5  ;;  %4765 = vmatpush3.msra.mxu0 %v5529_v32  ;;  %v3742_v5 = vld [vmem:[%s10098_s0 + $0x770] sm:$0xff]  ;;  %v5539_v32 = vld [vmem:[%s10097_s1 + $0x440] sm:$0xff] }
 0x18d   :  { %4818 = vmatpush3.msra.mxu1 %v10340_v1  ;;  %4766 = vmatprep.subr.mxu0 %v5530_v36  ;;  %v8459_v44 = vpop.f32.mrf.mxu1  ;;  %v5540_v36 = vld [vmem:[%s10097_s1 + $0x540] sm:$0xff] }
 0x18e   :  { %2375 = vmatmul.mubr.f32.gmra.mxu1 %v3705_v23  ;;  %4819 = vmatprep.subr.mxu1 %v10341_v20  ;;  %v10350_v20 = vld [vmem:[#allocation43_spill] sm:$0xff] }
 0x18f   :  { %2279 = vmatprep.mubr.f32.mxu0 %v3717_v12  ;;  %4767 = vmatpush3.msra.mxu0 %v5531_v40  ;;  %v8468_v8 = vpop.f32.mrf.mxu1  ;;  %v3745_v12 = vld [vmem:[%s10098_s0 + $0x788] sm:$0xff]  ;;  %v3744_v40 = vld [vmem:[%s10098_s0 + $0x780] sm:$0xff] }
 0x190   :  { %4820 = vmatpush3.msra.mxu1 %v10342_v31  ;;  %2280 = vmatmul.mubr.f32.gmra.mxu0 %v3716_v14  ;;  %v5542_v31 = vld [vmem:[%s10097_s1 + $0x438] sm:$0xff] }
 0x191   :  { %4768 = vmatprep.subr.mxu0 %v5532_v13  ;;  %4821 = vmatprep.subr.mxu1 %v10343_v54  ;;  %v4300_v59 = vpop.f32.mrf.mxu0  ;;  %v3756_v13 = vld [vmem:[%s10098_s0 + $0x7e0] sm:$0xff] }
 0x192   :  { %2379 = vmatprep.mubr.f32.mxu1 %v3719_v52  ;;  %4769 = vmatpush3.msra.mxu0 %v5533_v57  ;;  %v8491_v62 = vpop.f32.mrf.mxu1  ;;  %v3755_v57 = vld [vmem:[%s10098_s0 + $0x7d8] sm:$0xff] }
 0x193   :  { %4822 = vmatpush3.msra.mxu1 %v10344_v49  ;;  %4770 = vmatprep.subr.mxu0 %v5534_v6  ;;  %v4301_v41 = vpop.f32.mrf.mxu0  ;;  %v5545_v6 = vld [vmem:[%s10097_s1 + $0x5b0] sm:$0xff] }
 0x194   :  { %2380 = vmatmul.mubr.f32.gmra.mxu1 %v3718_v25  ;;  %4823 = vmatprep.subr.mxu1 %v10345_v9  ;;  %v4302_v22 = vadd.f32 %v4301_v41, %v4300_v59  ;;  %v8502_v24 = vpop.f32.mrf.mxu1  ;;  %v5543_v25 = vld [vmem:[%s10097_s1 + $0x538] sm:$0xff]  ;;  %v5544_v59 = vld [vmem:[%s10097_s1 + $0x4b0] sm:$0xff] }
 0x195   :  { %2284 = vmatprep.mubr.f32.mxu0 %v3730_v2  ;;  %4771 = vmatpush3.msra.mxu0 %v5535_v43  ;;  %v5546_v9 = vld [vmem:[%s10097_s1 + $0x430] sm:$0xff] }
 0x196   :  { %4824 = vmatpush3.msra.mxu1 %v10346_v17  ;;  %2285 = vmatmul.mubr.f32.gmra.mxu0 %v3729_v0  ;;  %v1338_v58 = vadd.f32 %v4302_v22, %v4249_v46  ;;  %v4255_v0 = vadd.f32 %v8366_v61, %v8360_v55  ;;  %v3758_v46 = vld [vmem:[%s10098_s0 + $0x7f0] sm:$0xff]  ;;  %v5548_v61 = vld [vmem:[%s10097_s1 + $0x4a8] sm:$0xff] }
 0x197   :  { %4772 = vmatprep.subr.mxu0 %v5536_v11  ;;  %4825 = vmatprep.subr.mxu1 %v10347_v33  ;;  %v4303_v16 = vpop.f32.mrf.mxu0  ;;  %v5547_v43 = vld [vmem:[%s10097_s1 + $0x530] sm:$0xff]  ;;  %v5549_v17 = vld [vmem:[%s10097_s1 + $0x5a8] sm:$0xff] }
 0x198   :  { %2384 = vmatprep.mubr.f32.mxu1 %v3732_v28  ;;  %4773 = vmatpush3.msra.mxu0 %v5537_v21  ;;  %v4353_v37 = vpop.f32.mrf.mxu1  ;;  %v5550_v33 = vld [vmem:[%s10097_s1 + $0x428] sm:$0xff] }
 0x199   :  { %4826 = vmatpush3.msra.mxu1 %v10348_v47  ;;  %4774 = vmatprep.subr.mxu0 %v5538_v39  ;;  %v4304_v60 = vpop.f32.mrf.mxu0  ;;  %v5551_v21 = vld [vmem:[%s10097_s1 + $0x528] sm:$0xff]  ;;  %v3768_v47 = vld [vmem:[%s10098_s0 + $0x840] sm:$0x3] }
 0x19a   :  { %2385 = vmatmul.mubr.f32.gmra.mxu1 %v3731_v42  ;;  %4827 = vmatprep.subr.mxu1 %v10349_v38  ;;  %v4305_v23 = vadd.f32 %v4304_v60, %v4303_v16  ;;  %v4354_v1 = vpop.f32.mrf.mxu1  ;;  %v3769_v42 = vld [vmem:[%s10098_s0 + $0x848] sm:$0x3]  ;;  %v4258_v60 = vadd.f32 %v8405_v45, %v8396_v53  ;;  %v5556_v45 = vld [vmem:[%s10097_s1 + $0x498] sm:$0xff] }
 0x19b   :  { %2289 = vmatprep.mubr.f32.mxu0 %v3743_v15  ;;  %4775 = vmatpush3.msra.mxu0 %v5539_v32  ;;  %v4355_v3 = vadd.f32 %v4354_v1, %v4353_v37  ;;  %v5552_v15 = vld [vmem:[%s10097_s1 + $0x4a0] sm:$0xff] }
 0x19c   :  { %4828 = vmatpush3.msra.mxu1 %v5540_v36  ;;  %2290 = vmatmul.mubr.f32.gmra.mxu0 %v3742_v5  ;;  %v1343_v14 = vadd.f32 %v4305_v23, %v4252_v10  ;;  %v4306_v52 = vpop.f32.mrf.mxu0  ;;  %v5553_v37 = vld [vmem:[%s10097_s1 + $0x5a0] sm:$0xff]  ;;  %v3771_v23 = vld [vmem:[%s10098_s0 + $0x858] sm:$0x3] }
 0x19d   :  { %4776 = vmatprep.subr.mxu0 %v5541_v27  ;;  %4829 = vmatprep.subr.mxu1 %v10350_v20  ;;  %v8550_v54 = vadd.f32 %v4355_v3, %v1338_v58  ;;  %v3757_v58 = vld [vmem:[%s10098_s0 + $0x7e8] sm:$0xff]  ;;  %v5554_v10 = vld [vmem:[%s10097_s1 + $0x420] sm:$0xff]  ;;  %v5557_v36 = vld [vmem:[%s10097_s1 + $0x598] sm:$0xff] }
 0x19e   :  { %2389 = vmatprep.mubr.f32.mxu1 %v3745_v12  ;;  %4777 = vmatpush3.msra.mxu0 %v5542_v31  ;;  %v4307_v49 = vpop.f32.mrf.mxu0  ;;  %v5555_v12 = vld [vmem:[%s10097_s1 + $0x520] sm:$0xff]  ;;  %v5558_v27 = vld [vmem:[%s10097_s1 + $0x418] sm:$0xff] }
 0x19f   :  { %4830 = vmatpush3.msra.mxu1 %v5543_v25  ;;  %4778 = vmatprep.subr.mxu0 %v5544_v59  ;;  %v4356_v2 = vpop.f32.mrf.mxu1  ;;  %v4308_v41 = vadd.f32 %v4307_v49, %v4306_v52  ;;  %v5560_v52 = vld [vmem:[%s10097_s1 + $0x490] sm:$0xff]  ;;  %v4261_v59 = vadd.f32 %v8437_v18, %v8428_v29  ;;  %v5565_v29 = vld [vmem:[%s10097_s1 + $0x588] sm:$0xff]  ;;  %v3695_v18 = vld [vmem:[%s10098_s0 + $0x5f8] sm:$0xff] }
 0x1a0   :  { %2390 = vmatmul.mubr.f32.gmra.mxu1 %v3744_v40  ;;  %4831 = vmatprep.subr.mxu1 %v5545_v6  ;;  %v5559_v40 = vld [vmem:[%s10097_s1 + $0x518] sm:$0xff]  ;;  %v5561_v25 = vld [vmem:[%s10097_s1 + $0x590] sm:$0xff] }
 0x1a1   :  { %2294 = vmatprep.mubr.f32.mxu0 %v3756_v13  ;;  %4779 = vmatpush3.msra.mxu0 %v5546_v9  ;;  %v4357_v22 = vpop.f32.mrf.mxu1  ;;  %v1348_v28 = vadd.f32 %v4308_v41, %v4255_v0  ;;  %v5563_v49 = vld [vmem:[%s10097_s1 + $0x510] sm:$0xff]  ;;  %v5564_v0 = vld [vmem:[%s10097_s1 + $0x488] sm:$0xff] }
 0x1a2   :  { %4832 = vmatpush3.msra.mxu1 %v5547_v43  ;;  %2295 = vmatmul.mubr.f32.gmra.mxu0 %v3755_v57  ;;  %v4358_v55 = vadd.f32 %v4357_v22, %v4356_v2  ;;  %v4309_v11 = vpop.f32.mrf.mxu0  ;;  %v5562_v2 = vld [vmem:[%s10097_s1 + $0x410] sm:$0xff]  ;;  %v5567_v22 = vld [vmem:[%s10097_s1 + $0x508] sm:$0xff] }
 0x1a3   :  { %4780 = vmatprep.subr.mxu0 %v5548_v61  ;;  %4833 = vmatprep.subr.mxu1 %v5549_v17  ;;  %v3694_v43 = vld [vmem:[%s10098_s0 + $0x5f0] sm:$0xff]  ;;  %v5569_v61 = vld [vmem:[%s10097_s1 + $0x580] sm:$0xff]  ;;  %v3697_v17 = vld [vmem:[%s10098_s0 + $0x608] sm:$0xff] }
 0x1a4   :  { %2394 = vmatprep.mubr.f32.mxu1 %v3758_v46  ;;  %4781 = vmatpush3.msra.mxu0 %v5550_v33  ;;  %v8590_v16 = vadd.f32 %v4358_v55, %v1343_v14  ;;  %v4310_v5 = vpop.f32.mrf.mxu0  ;;  %v3770_v14 = vld [vmem:[%s10098_s0 + $0x850] sm:$0x3]  ;;  %v5566_v46 = vld [vmem:[%s10097_s1 + $0x408] sm:$0xff]  ;;  %v5568_v55 = vld [vmem:[%s10097_s1 + $0x480] sm:$0xff] }
 0x1a5   :  { %4834 = vmatpush3.msra.mxu1 %v5551_v21  ;;  %4782 = vmatprep.subr.mxu0 %v5552_v15  ;;  %v4359_v39 = vpop.f32.mrf.mxu1  ;;  %v4311_v38 = vadd.f32 %v4310_v5, %v4309_v11  ;;  %v5570_v11 = vld [vmem:[%s10097_s1 + $0x400] sm:$0xff] }
 0x1a6   :  { %2395 = vmatmul.mubr.f32.gmra.mxu1 %v3757_v58  ;;  %4835 = vmatprep.subr.mxu1 %v5553_v37  ;;  %v3696_v33 = vld [vmem:[%s10098_s0 + $0x600] sm:$0xff] }
 0x1a7   :  { %2299 = vmatprep.mubr.f32.mxu0 %v3769_v42  ;;  %4783 = vmatpush3.msra.mxu0 %v5554_v10  ;;  %v4360_v32 = vpop.f32.mrf.mxu1  ;;  %v1353_v1 = vadd.f32 %v4311_v38, %v4258_v60  ;;  %v5571_v15 = vld [vmem:[%s10097_s1 + $0x500] sm:$0xff]  ;;  %v5572_v60 = vld [vmem:[%s10097_s1 + $0xf8] sm:$0xff] }
 0x1a8   :  { %4836 = vmatpush3.msra.mxu1 %v5555_v12  ;;  %2300 = vmatmul.mubr.f32.gmra.mxu0 %v3768_v47  ;;  %v4361_v53 = vadd.f32 %v4360_v32, %v4359_v39  ;;  %v4312_v3 = vpop.f32.mrf.mxu0  ;;  %v4264_v47 = vadd.f32 %v8468_v8, %v8459_v44  ;;  %v3708_v5 = vld [vmem:[%s10098_s0 + $0x660] sm:$0xff]  ;;  %v3707_v38 = vld [vmem:[%s10098_s0 + $0x658] sm:$0xff]  ;;  %v5575_v12 = vld [vmem:[%s10097_s1 + $0xf0] sm:$0xff] }
 0x1a9   :  { %4784 = vmatprep.subr.mxu0 %v5556_v45  ;;  %4837 = vmatprep.subr.mxu1 %v5557_v36  ;;  %v5573_v10 = vld [vmem:[%s10097_s1 + $0x638] sm:$0xff]  ;;  %v5576_v45 = vld [vmem:[%s10097_s1 + $0x70] sm:$0xff]  ;;  %v3721_v36 = vld [vmem:[%s10098_s0 + $0x6c8] sm:$0xff] }
 0x1aa   :  { %2399 = vmatprep.mubr.f32.mxu1 %v3771_v23  ;;  %4785 = vmatpush3.msra.mxu0 %v5558_v27  ;;  %v8627_v20 = vadd.f32 %v4361_v53, %v1348_v28  ;;  %v4313_v13 = vpop.f32.mrf.mxu0  ;;  %v5574_v23 = vld [vmem:[%s10097_s1 + $0x78] sm:$0xff]  ;;  %v5577_v27 = vld [vmem:[%s10097_s1 + $0xe8] sm:$0xff] }
 0x1ab   :  { %4838 = vmatpush3.msra.mxu1 %v5559_v40  ;;  %4786 = vmatprep.subr.mxu0 %v5560_v52  ;;  %v4362_v31 = vpop.f32.mrf.mxu1  ;;  %v4314_v57 = vadd.f32 %v4313_v13, %v4312_v3  ;;  %v3709_v40 = vld [vmem:[%s10098_s0 + $0x668] sm:$0xff]  ;;  %v4267_v52 = vadd.f32 %v8502_v24, %v8491_v62  ;;  %v5578_v13 = vld [vmem:[%s10097_s1 + $0x630] sm:$0xff]  ;;  %v5580_v24 = vld [vmem:[%s10097_s1 + $0xe0] sm:$0xff] }
 0x1ac   :  { %2400 = vmatmul.mubr.f32.gmra.mxu1 %v3770_v14  ;;  %4839 = vmatprep.subr.mxu1 %v5561_v25 }
 0x1ad   :  { %4787 = vmatpush3.msra.mxu0 %v5562_v2  ;;  %4840 = vmatpush3.msra.mxu1 %v5563_v49  ;;  %v4363_v6 = vpop.f32.mrf.mxu1  ;;  %v1358_v41 = vadd.f32 %v4314_v57, %v4261_v59  ;;  %v5579_v59 = vld [vmem:[%s10097_s1 + $0x68] sm:$0xff]  ;;  %v3720_v57 = vld [vmem:[%s10098_s0 + $0x6c0] sm:$0xff]  ;;  %v3723_v49 = vld [vmem:[%s10098_s0 + $0x6d8] sm:$0xff] }
 0x1ae   :  { %4788 = vmatprep.subr.mxu0 %v5564_v0  ;;  %4841 = vmatprep.subr.mxu1 %v5565_v29  ;;  %v4364_v9 = vadd.f32 %v4363_v6, %v4362_v31  ;;  %v4315_v28 = vpop.f32.mrf.mxu0  ;;  %v5581_v6 = vld [vmem:[%s10097_s1 + $0x60] sm:$0xff]  ;;  %v3734_v0 = vld [vmem:[%s10098_s0 + $0x730] sm:$0xff] }
 0x1af   :  { %4789 = vmatpush3.msra.mxu0 %v5566_v46  ;;  %4842 = vmatpush3.msra.mxu1 %v5567_v22  ;;  %v5583_v46 = vld [vmem:[%s10097_s1 + $0x628] sm:$0xff] }
 0x1b0   :  { %4790 = vmatprep.subr.mxu0 %v5568_v55  ;;  %4843 = vmatprep.subr.mxu1 %v5569_v61  ;;  %v8673_v58 = vadd.f32 %v4364_v9, %v1353_v1  ;;  %v4316_v21 = vpop.f32.mrf.mxu0  ;;  %v3710_v1 = vld [vmem:[%s10098_s0 + $0x670] sm:$0xff] }
 0x1b1   :  { %4791 = vmatpush3.msra.mxu0 %v5570_v11  ;;  %2469 = vmatprep.mubr.f32.mxu0 %v3695_v18  ;;  %v4365_v42 = vpop.f32.mrf.mxu1  ;;  %v4317_v39 = vadd.f32 %v4316_v21, %v4315_v28  ;;  %v3722_v9 = vld [vmem:[%s10098_s0 + $0x6d0] sm:$0xff]  ;;  %v3733_v28 = vld [vmem:[%s10098_s0 + $0x728] sm:$0xff]  ;;  %v3735_v21 = vld [vmem:[%s10098_s0 + $0x738] sm:$0xff] }
 0x1b2   :  { %4844 = vmatpush3.msra.mxu1 %v5571_v15  ;;  %2470 = vmatmul.mubr.f32.vlgmr.msra.gmra.mxu0 %v3694_v43  ;;  %v5584_v43 = vld [vmem:[%s10097_s1 + $0x58] sm:$0xff]  ;;  %v5585_v61 = vld [vmem:[%s10097_s1 + $0xd0] sm:$0xff] }
 0x1b3   :  { %2569 = vmatprep.mubr.f32.mxu1 %v3697_v17  ;;  %5288 = vmatprep.subr.mxu0 %v10303_v19  ;;  %v4366_v37 = vpop.f32.mrf.mxu1  ;;  %v1363_v44 = vadd.f32 %v4317_v39, %v4264_v47  ;;  %v3736_v17 = vld [vmem:[%s10098_s0 + $0x740] sm:$0xff]  ;;  %v3747_v39 = vld [vmem:[%s10098_s0 + $0x798] sm:$0xff] }
 0x1b4   :  { %4881 = vmatprep.subr.mxu1 %v5572_v60  ;;  %2570 = vmatmul.mubr.f32.vlgmr.msra.gmra.mxu1 %v3696_v33  ;;  %v4367_v8 = vadd.f32 %v4366_v37, %v4365_v42  ;;  %v4318_v32 = vpop.f32.mrf.mxu0  ;;  %v5586_v33 = vld [vmem:[%s10097_s1 + $0x50] sm:$0xff]  ;;  %v5587_v47 = vld [vmem:[%s10097_s1 + $0x620] sm:$0xff] }
 0x1b5   :  { %5289 = vmatpush3.msra.mxu0 %v5573_v10  ;;  %4882 = vmatpush3.msra.mxu1 %v5574_v23  ;;  %v3746_v37 = vld [vmem:[%s10098_s0 + $0x790] sm:$0xff]  ;;  %v5589_v60 = vld [vmem:[%s10097_s1 + $0xc0] sm:$0xff]  ;;  %v5590_v10 = vld [vmem:[%s10097_s1 + $0x618] sm:$0xff] }
 0x1b6   :  { %4883 = vmatprep.subr.mxu1 %v5575_v12  ;;  %2474 = vmatprep.mubr.f32.mxu0 %v3708_v5  ;;  %v8708_v53 = vadd.f32 %v4367_v8, %v1358_v41  ;;  %v4319_v3 = vpop.f32.mrf.mxu0  ;;  %v5582_v41 = vld [vmem:[%s10097_s1 + $0xd8] sm:$0xff]  ;;  %v5591_v23 = vld [vmem:[%s10097_s1 + $0x40] sm:$0xff] }
 0x1b7   :  { %4884 = vmatpush3.msra.mxu1 %v5576_v45  ;;  %2475 = vmatmul.mubr.f32.gmra.mxu0 %v3707_v38  ;;  %v4368_v14 = vpop.f32.mrf.mxu1  ;;  %v4320_v31 = vadd.f32 %v4319_v3, %v4318_v32  ;;  %v3749_v38 = vld [vmem:[%s10098_s0 + $0x7a8] sm:$0xff]  ;;  %v3748_v32 = vld [vmem:[%s10098_s0 + $0x7a0] sm:$0xff]  ;;  %v3759_v3 = vld [vmem:[%s10098_s0 + $0x7f8] sm:$0xff] }
 0x1b8   :  { %5290 = vmatprep.subr.mxu0 %v10303_v19  ;;  %4885 = vmatprep.subr.mxu1 %v5577_v27  ;;  %v3760_v45 = vld [vmem:[%s10098_s0 + $0x800] sm:$0xff] }
 0x1b9   :  { %2574 = vmatprep.mubr.f32.mxu1 %v3710_v1  ;;  %5291 = vmatpush3.msra.mxu0 %v5578_v13  ;;  %v4369_v25 = vpop.f32.mrf.mxu1  ;;  %v1368_v2 = vadd.f32 %v4320_v31, %v4267_v52  ;;  %v3762_v52 = vld [vmem:[%s10098_s0 + $0x810] sm:$0xff] }
 0x1ba   :  { %4886 = vmatpush3.msra.mxu1 %v5579_v59  ;;  %2479 = vmatprep.mubr.f32.mxu0 %v3721_v36  ;;  %v4370_v62 = vadd.f32 %v4369_v25, %v4368_v14  ;;  %v5593_v14 = vld [vmem:[%s10097_s1 + $0x38] sm:$0xff]  ;;  %v5595_v59 = vld [vmem:[%s10097_s1 + $0x610] sm:$0xff] }
 0x1bb   :  { %2575 = vmatmul.mubr.f32.gmra.mxu1 %v3709_v40  ;;  %4887 = vmatprep.subr.mxu1 %v5580_v24  ;;  %v5594_v40 = vld [vmem:[%s10097_s1 + $0xb0] sm:$0xff] }
 0x1bc   :  { %5292 = vmatprep.subr.mxu0 %v10303_v19  ;;  %4888 = vmatpush3.msra.mxu1 %v5581_v6  ;;  %v8747_v29 = vadd.f32 %v4370_v62, %v1363_v44  ;;  %v4371_v18 = vpop.f32.mrf.mxu1  ;;  %v3761_v62 = vld [vmem:[%s10098_s0 + $0x808] sm:$0xff] }
 0x1bd   :  { %2480 = vmatmul.mubr.f32.gmra.mxu0 %v3720_v57  ;;  %4889 = vmatprep.subr.mxu1 %v5582_v41  ;;  %v3773_v6 = vld [vmem:[%s10098_s0 + $0x868] sm:$0x3] }
 0x1be   :  { %5293 = vmatpush3.msra.mxu0 %v5583_v46  ;;  %2579 = vmatprep.mubr.f32.mxu1 %v3723_v49  ;;  %v4372_v22 = vpop.f32.mrf.mxu1  ;;  %v5597_v49 = vld [vmem:[%s10097_s1 + $0xa8] sm:$0xff] }
 0x1bf   :  { %4890 = vmatpush3.msra.mxu1 %v5584_v43  ;;  %2484 = vmatprep.mubr.f32.mxu0 %v3734_v0  ;;  %v4373_v55 = vadd.f32 %v4372_v22, %v4371_v18  ;;  %v4406_v11 = vpop.f32.mrf.mxu0  ;;  %v5598_v41 = vld [vmem:[%s10097_s1 + $0x28] sm:$0xff] }
 0x1c0   :  { %2580 = vmatmul.mubr.f32.gmra.mxu1 %v3722_v9  ;;  %4891 = vmatprep.subr.mxu1 %v5585_v61  ;;  %v3772_v9 = vld [vmem:[%s10098_s0 + $0x860] sm:$0x3]  ;;  %v5599_v43 = vld [vmem:[%s10097_s1 + $0x608] sm:$0xff] }
 0x1c1   :  { %5294 = vmatprep.subr.mxu0 %v10303_v19  ;;  %4892 = vmatpush3.msra.mxu1 %v5586_v33  ;;  %v8774_v42 = vadd.f32 %v4373_v55, %v1368_v2  ;;  %v4407_v15 = vpop.f32.mrf.mxu0  ;;  %v5596_v2 = vld [vmem:[%s10097_s1 + $0x30] sm:$0xff]  ;;  %v5600_v61 = vld [vmem:[%s10097_s1 + $0xa0] sm:$0xff] }
 0x1c2   :  { %2485 = vmatmul.mubr.f32.gmra.mxu0 %v3733_v28  ;;  %4893 = vmatprep.subr.mxu1 %v7994_v4  ;;  %v4408_v5 = vadd.f32 %v4407_v15, %v4406_v11  ;;  %v5588_v4 = vld [vmem:[%s10097_s1 + $0x48] sm:$0xff]  ;;  %v3775_v28 = vld [vmem:[%s10098_s0 + $0x878] sm:$0x3] }
 0x1c3   :  { %5295 = vmatpush3.msra.mxu0 %v5587_v47  ;;  %2584 = vmatprep.mubr.f32.mxu1 %v3736_v17  ;;  %v5602_v47 = vld [vmem:[%s10097_s1 + $0x98] sm:$0xff] }
 0x1c4   :  { %4894 = vmatpush3.msra.mxu1 %v5588_v4  ;;  %5296 = vmatprep.subr.mxu0 %v10303_v19  ;;  %v1538_v44 = vadd.f32 %v4408_v5, %v8550_v54  ;;  %v5592_v54 = vld [vmem:[%s10097_s1 + $0xb8] sm:$0xff] }
 0x1c5   :  { %2585 = vmatmul.mubr.f32.gmra.mxu1 %v3735_v21  ;;  %4895 = vmatprep.subr.mxu1 %v5589_v60  ;;  %v4409_v8 = vpop.f32.mrf.mxu0  ;;  %v5601_v21 = vld [vmem:[%s10097_s1 + $0x20] sm:$0xff]  ;;  %v5603_v5 = vld [vmem:[%s10097_s1 + $0x18] sm:$0xff] }
 0x1c6   :  { %2489 = vmatprep.mubr.f32.mxu0 %v3747_v39  ;;  %5297 = vmatpush3.msra.mxu0 %v5590_v10  ;;  %v4459_v12 = vpop.f32.mrf.mxu1 }
 0x1c7   :  { %4896 = vmatpush3.msra.mxu1 %v5591_v23  ;;  %2490 = vmatmul.mubr.f32.gmra.mxu0 %v3746_v37  ;;  %v4410_v1 = vpop.f32.mrf.mxu0 }
 0x1c8   :  { %4897 = vmatprep.subr.mxu1 %v5592_v54  ;;  %2589 = vmatprep.mubr.f32.mxu1 %v3749_v38  ;;  %v4411_v36 = vadd.f32 %v4410_v1, %v4409_v8  ;;  %v4460_v27 = vpop.f32.mrf.mxu1  ;;  %v5604_v38 = vld [vmem:[%s10097_s1 + $0x600] sm:$0xff]  ;;  %v5605_v8 = vld [vmem:[%s10097_s1 + $0x90] sm:$0xff]  ;;  %v5608_v54 = vld [vmem:[%s10097_s1 + $0x88] sm:$0xff] }
 0x1c9   :  { %4898 = vmatpush3.msra.mxu1 %v5593_v14  ;;  %5298 = vmatprep.subr.mxu0 %v10303_v19  ;;  %v4461_v13 = vadd.f32 %v4460_v27, %v4459_v12  ;;  %v5607_v12 = vld [vmem:[%s10097_s1 + $0x1f8] sm:$0xff]  ;;  %v5610_v14 = vld [vmem:[%s10097_s1 + $0x8] sm:$0xff] }
 0x1ca   :  { %2590 = vmatmul.mubr.f32.gmra.mxu1 %v3748_v32  ;;  %4899 = vmatprep.subr.mxu1 %v5594_v40  ;;  %v1543_v31 = vadd.f32 %v4411_v36, %v8590_v16  ;;  %v4412_v25 = vpop.f32.mrf.mxu0  ;;  %v5606_v32 = vld [vmem:[%s10097_s1 + $0x10] sm:$0xff]  ;;  %v5609_v36 = vld [vmem:[%s10097_s1 + $0x178] sm:$0xff] }
 0x1cb   :  { %2494 = vmatprep.mubr.f32.mxu0 %v3760_v45  ;;  %5299 = vmatpush3.msra.mxu0 %v5595_v59  ;;  %v4462_v57 = vpop.f32.mrf.mxu1  ;;  %v8838_v16 = vadd.f32 %v4461_v13, %v1538_v44  ;;  %v3698_v44 = vld [vmem:[%s10098_s0 + $0x610] sm:$0xff]  ;;  %v5613_v59 = vld [vmem:[%s10097_s1] sm:$0xff] }
 0x1cc   :  { %4900 = vmatpush3.msra.mxu1 %v5596_v2  ;;  %2495 = vmatmul.mubr.f32.gmra.mxu0 %v3759_v3  ;;  %v4413_v24 = vpop.f32.mrf.mxu0  ;;  %v5611_v40 = vld [vmem:[%s10097_s1 + $0x1f0] sm:$0xff]  ;;  %v3784_v2 = vld [vmem:[%s10098_s0 + $0x888] sm:$0xff] }
 0x1cd   :  { %4901 = vmatprep.subr.mxu1 %v5597_v49  ;;  %2594 = vmatprep.mubr.f32.mxu1 %v3762_v52  ;;  %v4414_v0 = vadd.f32 %v4413_v24, %v4412_v25  ;;  %v4463_v18 = vpop.f32.mrf.mxu1  ;;  %v3711_v52 = vld [vmem:[%s10098_s0 + $0x678] sm:$0xff] }
 0x1ce   :  { %5300 = vmatprep.subr.mxu0 %v10303_v19  ;;  %4902 = vmatpush3.msra.mxu1 %v5598_v41  ;;  %v4464_v46 = vadd.f32 %v4463_v18, %v4462_v57  ;;  %v4415_v22 = vpop.f32.mrf.mxu0  ;;  %v5614_v57 = vld [vmem:[%s10097_s1 + $0x1e8] sm:$0xff]  ;;  %v5617_v41 = vld [vmem:[%s10097_s1 + $0x1e0] sm:$0xff] }
 0x1cf   :  { %2595 = vmatmul.mubr.f32.gmra.mxu1 %v3761_v62  ;;  %5301 = vmatpush3.msra.mxu0 %v5599_v43  ;;  %v1548_v55 = vadd.f32 %v4414_v0, %v8627_v20  ;;  %v3774_v20 = vld [vmem:[%s10098_s0 + $0x870] sm:$0x3]  ;;  %v5616_v0 = vld [vmem:[%s10097_s1 + $0x2f8] sm:$0xff]  ;;  %v5619_v43 = vld [vmem:[%s10097_s1 + $0x160] sm:$0xff] }
 0x1d0   :  { %4903 = vmatprep.subr.mxu1 %v5600_v61  ;;  %2499 = vmatprep.mubr.f32.mxu0 %v3773_v6  ;;  %v8863_v17 = vadd.f32 %v4464_v46, %v1543_v31  ;;  %v4465_v11 = vpop.f32.mrf.mxu1  ;;  %v4416_v33 = vpop.f32.mrf.mxu0  ;;  %v3785_v31 = vld [vmem:[%s10098_s0 + $0x890] sm:$0xff]  ;;  %v5615_v6 = vld [vmem:[%s10097_s1 + $0x168] sm:$0xff] }
 0x1d1   :  { %4904 = vmatpush3.msra.mxu1 %v5601_v21  ;;  %2500 = vmatmul.mubr.f32.gmra.mxu0 %v3772_v9  ;;  %v4417_v15 = vadd.f32 %v4416_v33, %v4415_v22  ;;  %v5618_v22 = vld [vmem:[%s10097_s1 + $0x278] sm:$0xff]  ;;  %v5622_v21 = vld [vmem:[%s10097_s1 + $0x270] sm:$0xff] }
 0x1d2   :  { %4905 = vmatprep.subr.mxu1 %v5602_v47  ;;  %2599 = vmatprep.mubr.f32.mxu1 %v3775_v28  ;;  %v4466_v39 = vpop.f32.mrf.mxu1  ;;  %v3724_v28 = vld [vmem:[%s10098_s0 + $0x6e0] sm:$0xff]  ;;  %v5621_v33 = vld [vmem:[%s10097_s1 + $0x1d8] sm:$0xff]  ;;  %v5623_v47 = vld [vmem:[%s10097_s1 + $0x2e8] sm:$0xff] }
 0x1d3   :  { %5302 = vmatprep.subr.mxu0 %v10303_v19  ;;  %4906 = vmatpush3.msra.mxu1 %v5603_v5  ;;  %v1553_v4 = vadd.f32 %v4417_v15, %v8673_v58  ;;  %v4467_v37 = vadd.f32 %v4466_v39, %v4465_v11  ;;  %v4418_v60 = vpop.f32.mrf.mxu0  ;;  %v5624_v5 = vld [vmem:[%s10097_s1 + $0x158] sm:$0xff] }
 0x1d4   :  { %2600 = vmatmul.mubr.f32.gmra.mxu1 %v3774_v20  ;;  %5303 = vmatpush3.msra.mxu0 %v5604_v38  ;;  %v5626_v38 = vld [vmem:[%s10097_s1 + $0x1d0] sm:$0xff] }
 0x1d5   :  { %4907 = vmatprep.subr.mxu1 %v5605_v8  ;;  %5304 = vmatprep.mubr.msk.f32.mxu0 %vm5779_vm1, %v10303_v19  ;;  %v8890_v58 = vadd.f32 %v4467_v37, %v1548_v55  ;;  %v4468_v10 = vpop.f32.mrf.mxu1  ;;  %v4419_v23 = vpop.f32.mrf.mxu0  ;;  %v3798_v37 = vld [vmem:[%s10098_s0 + $0x8f8] sm:$0xff] }
 0x1d6   :  { %4908 = vmatpush3.msra.mxu1 %v5606_v32  ;;  %4934 = vmatprep.subr.mxu0 %v5607_v12  ;;  %v4420_v1 = vadd.f32 %v4419_v23, %v4418_v60  ;;  %v5627_v23 = vld [vmem:[%s10097_s1 + $0x150] sm:$0xff]  ;;  %v5629_v12 = vld [vmem:[%s10097_s1 + $0x260] sm:$0xff] }
 0x1d7   :  { %5305 = vmatmul.mubr.msk.f32.vlgmr.msra.gmra.mxu0 %vm310_vm0, %v3698_v44  ;;  %4909 = vmatprep.subr.mxu1 %v5608_v54  ;;  %v4469_v45 = vpop.f32.mrf.mxu1  ;;  %v3737_v44 = vld [vmem:[%s10098_s0 + $0x748] sm:$0xff] }
 0x1d8   :  { %4935 = vmatpush3.msra.mxu0 %v5609_v36  ;;  %4910 = vmatpush3.msra.mxu1 %v5610_v14  ;;  %v1558_v3 = vadd.f32 %v4420_v1, %v8708_v53  ;;  %v4470_v27 = vadd.f32 %v4469_v45, %v4468_v10  ;;  %v5612_v53 = vld [vmem:[%s10097_s1 + $0x170] sm:$0xff]  ;;  %v5630_v54 = vld [vmem:[%s10097_s1 + $0x148] sm:$0xff]  ;;  %v5631_v36 = vld [vmem:[%s10097_s1 + $0x2d8] sm:$0xff] }
 0x1d9   :  { %4936 = vmatprep.subr.mxu0 %v5611_v40  ;;  %4911 = vmatprep.subr.mxu1 %v8129_v34  ;;  %v4421_v13 = vpop.f32.mrf.mxu0  ;;  %v5632_v14 = vld [vmem:[%s10097_s1 + $0x1c0] sm:$0xff]  ;;  %v5633_v40 = vld [vmem:[%s10097_s1 + $0x258] sm:$0xff] }
 0x1da   :  { %4937 = vmatpush3.msra.mxu0 %v5612_v53  ;;  %5307 = vmatprep.mubr.msk.f32.mxu0 %vm5779_vm1, %v10303_v19  ;;  %v8924_v25 = vadd.f32 %v4470_v27, %v1553_v4  ;;  %v4471_v34 = vpop.f32.mrf.mxu1  ;;  %v5625_v4 = vld [vmem:[%s10097_s1 + $0x268] sm:$0xff] }
 0x1db   :  { %4912 = vmatpush3.msra.mxu1 %v5613_v59  ;;  %4938 = vmatprep.subr.mxu0 %v5614_v57  ;;  %v4422_v62 = vpop.f32.mrf.mxu0  ;;  %v9038_v57 = vld [vmem:[%s10099_s2] ss:$0 sm:$0xff] }
 0x1dc   :  { %5308 = vmatmul.mubr.msk.f32.gmra.mxu0 %vm310_vm0, %v3711_v52  ;;  %2903 = vmatprep.mubr.f32.mxu1 %v3785_v31  ;;  %v4423_v24 = vadd.f32 %v4422_v62, %v4421_v13  ;;  %v4472_v49 = vpop.f32.mrf.mxu1  ;;  %v5634_v52 = vld [vmem:[%s10097_s1 + $0x140] sm:$0xff]  ;;  %v3750_v31 = vld [vmem:[%s10098_s0 + $0x7b0] sm:$0xff] }
 0x1dd   :  { %4939 = vmatpush3.msra.mxu0 %v5615_v6  ;;  %4987 = vmatprep.subr.mxu1 %v5616_v0  ;;  %v4473_v18 = vadd.f32 %v4472_v49, %v4471_v34  ;;  %v3810_v34 = vld [vmem:[%s10098_s0 + $0x958] sm:$0xff]  ;;  %v5636_v62 = vld [vmem:[%s10097_s1 + $0x250] sm:$0xff]  ;;  %v1038_v0 = vmul.f32 %v9038_v57, %v8228_v30  ;;  %v5640_v30 = vld [vmem:[%s10097_s1 + $0x248] sm:$0xff] }
 0x1de   :  { %2904 = vmatmul.mubr.f32.vlgmr.msra.gmra.mxu1 %v3784_v2  ;;  %4940 = vmatprep.subr.mxu0 %v5617_v41  ;;  %v1563_v9 = vadd.f32 %v4423_v24, %v8747_v29  ;;  %v4424_v46 = vpop.f32.mrf.mxu0  ;;  %v5620_v29 = vld [vmem:[%s10097_s1 + $0x2f0] sm:$0xff]  ;;  %v5635_v2 = vld [vmem:[%s10097_s1 + $0x1b8] sm:$0xff] }
 0x1df   :  { %4988 = vmatpush3.msra.mxu1 %v5618_v22  ;;  %4941 = vmatpush3.msra.mxu0 %v5619_v43  ;;  %v8955_v55 = vadd.f32 %v4473_v18, %v1558_v3  ;;  %v4474_v61 = vpop.f32.mrf.mxu1  ;;  %v3811_v3 = vld [vmem:[%s10098_s0 + $0x960] sm:$0xff]  ;;  %v5637_v49 = vld [vmem:[%s10097_s1 + $0x138] sm:$0xff]  ;;  %v5638_v18 = vld [vmem:[%s10097_s1 + $0x2c8] sm:$0xff] }
 0x1e0   :  { %4989 = vmatprep.subr.mxu1 %v5620_v29  ;;  %5310 = vmatprep.mubr.msk.f32.mxu0 %vm5779_vm1, %v10303_v19  ;;  %v4425_v11 = vpop.f32.mrf.mxu0  ;;  %v5639_v41 = vld [vmem:[%s10097_s1 + $0x1b0] sm:$0xff]  ;;  %v3763_v43 = vld [vmem:[%s10098_s0 + $0x818] sm:$0xff]  ;;  %v3823_v29 = vld [vmem:[%s10098_s0 + $0x9c0] sm:$0xff] }
 0x1e1   :  { %4942 = vmatprep.subr.mxu0 %v5621_v33  ;;  %4990 = vmatpush3.msra.mxu1 %v5622_v21  ;;  %v4426_v20 = vadd.f32 %v4425_v11, %v4424_v46  ;;  %v4475_v15 = vpop.f32.mrf.mxu1  ;;  %v9065_v46 = vld [vmem:[%s10100_s3] ss:$0 sm:$0xff]  ;;  %v5641_v22 = vld [vmem:[%s10097_s1 + $0x130] sm:$0xff]  ;;  %v5643_v21 = vld [vmem:[%s10097_s1 + $0x1a8] sm:$0xff] }
 0x1e2   :  { %5311 = vmatmul.mubr.msk.f32.gmra.mxu0 %vm310_vm0, %v3724_v28  ;;  %4991 = vmatprep.subr.mxu1 %v5623_v47  ;;  %v4476_v39 = vadd.f32 %v4475_v15, %v4474_v61  ;;  %v5642_v61 = vld [vmem:[%s10097_s1 + $0x2c0] sm:$0xff] }
 0x1e3   :  { %4943 = vmatpush3.msra.mxu0 %v5624_v5  ;;  %4992 = vmatpush3.msra.mxu1 %v5625_v4  ;;  %v1568_v60 = vadd.f32 %v4426_v20, %v8774_v42  ;;  %v3797_v42 = vld [vmem:[%s10098_s0 + $0x8f0] sm:$0xff]  ;;  %v9089_v20 = vadd.f32 %v9065_v46, %v1038_v0  ;;  %v5644_v15 = vld [vmem:[%s10097_s1 + $0x240] sm:$0xff]  ;;  %v5645_v5 = vld [vmem:[%s10097_s1 + $0x128] sm:$0xff] }
 0x1e4   :  { %4944 = vmatprep.subr.mxu0 %v5626_v38  ;;  %4993 = vmatprep.subr.mxu1 %v8188_v35  ;;  %v8989_v8 = vadd.f32 %v4476_v39, %v1563_v9  ;;  %v4477_v10 = vpop.f32.mrf.mxu1  ;;  %v5628_v35 = vld [vmem:[%s10097_s1 + $0x1c8] sm:$0xff]  ;;  %v5646_v38 = vld [vmem:[%s10097_s1 + $0x2b8] sm:$0xff] }
 0x1e5   :  { %4945 = vmatpush3.msra.mxu0 %v5627_v23  ;;  %5313 = vmatprep.mubr.msk.f32.mxu0 %vm5779_vm1, %v10303_v19 }
 0x1e6   :  { %2908 = vmatprep.mubr.f32.mxu1 %v3798_v37  ;;  %4946 = vmatprep.subr.mxu0 %v5628_v35  ;;  %v4478_v32 = vpop.f32.mrf.mxu1  ;;  %v3776_v35 = vld [vmem:[%s10098_s0 + $0x880] sm:$0x3] }
 0x1e7   :  { %4994 = vmatpush3.msra.mxu1 %v5629_v12  ;;  %5314 = vmatmul.mubr.msk.f32.gmra.mxu0 %vm310_vm0, %v3737_v44  ;;  %v4479_v1 = vadd.f32 %v4478_v32, %v4477_v10  ;;  %v3837_v44 = vld [vmem:[%s10098_s0 + $0xa30] sm:$0xff] }
 0x1e8   :  { %2909 = vmatmul.mubr.f32.gmra.mxu1 %v3797_v42  ;;  %4947 = vmatpush3.msra.mxu0 %v5630_v54  ;;  %v4512_v45 = vpop.f32.mrf.mxu0  ;;  %v5649_v42 = vld [vmem:[%s10097_s1 + $0x120] sm:$0xff]  ;;  %v3836_v54 = vld [vmem:[%s10098_s0 + $0xa28] sm:$0xff] }
 0x1e9   :  { %4995 = vmatprep.subr.mxu1 %v5631_v36  ;;  %4948 = vmatprep.subr.mxu0 %v5632_v14  ;;  %v9018_v27 = vadd.f32 %v4479_v1, %v1568_v60  ;;  %v1039_v60 = vmul.f32 %v9038_v57, %v8261_v48  ;;  %v5648_v48 = vld [vmem:[%s10097_s1 + $0x238] sm:$0xff]  ;;  %v5650_v1 = vld [vmem:[%s10097_s1 + $0x2b0] sm:$0xff] }
 0x1ea   :  { %4996 = vmatpush3.msra.mxu1 %v5633_v40  ;;  %4949 = vmatpush3.msra.mxu0 %v5634_v52  ;;  %v4513_v13 = vpop.f32.mrf.mxu0  ;;  %v1837_v53 = vpop.f32.mrf.mxu1  ;;  %v5651_v14 = vld [vmem:[%s10097_s1 + $0x198] sm:$0xff]  ;;  %v5652_v40 = vld [vmem:[%s10097_s1 + $0x230] sm:$0xff] }
 0x1eb   :  { %4997 = vmatprep.subr.mxu1 %v8223_v56  ;;  %5316 = vmatprep.mubr.msk.f32.mxu0 %vm5779_vm1, %v10303_v19  ;;  %v4514_v59 = vadd.f32 %v4513_v13, %v4512_v45  ;;  %v5653_v13 = vld [vmem:[%s10097_s1 + $0x118] sm:$0xff] }
 0x1ec   :  { %2913 = vmatprep.mubr.f32.mxu1 %v3811_v3  ;;  %4950 = vmatprep.subr.mxu0 %v5635_v2  ;;  %v5269_v56 = vpop.f32.mrf.mxu1  ;;  %v9137_v3 = vadd.f32 %v9065_v46, %v1039_v60  ;;  %v1040_v2 = vmul.f32 %v9038_v57, %v8294_v63  ;;  %v5657_v63 = vld [vmem:[%s10097_s1 + $0x110] sm:$0xff]  ;;  %v5665_v60 = vld [vmem:[%s10097_s1 + $0x100] sm:$0xff] }
 0x1ed   :  { %4998 = vmatpush3.msra.mxu1 %v5636_v62  ;;  %5317 = vmatmul.mubr.msk.f32.gmra.mxu0 %vm310_vm0, %v3750_v31  ;;  %v1738_v24 = vadd.f32 %v4514_v59, %v8838_v16  ;;  %v3824_v16 = vld [vmem:[%s10098_s0 + $0x9c8] sm:$0xff] }
 0x1ee   :  { %2914 = vmatmul.mubr.f32.gmra.mxu1 %v3810_v34  ;;  %4951 = vmatpush3.msra.mxu0 %v5637_v49  ;;  %v4515_v6 = vpop.f32.mrf.mxu0  ;;  %v5654_v56 = vld [vmem:[%s10097_s1 + $0x2a8] sm:$0xff] }
 0x1ef   :  { %4999 = vmatprep.subr.mxu1 %v5638_v18  ;;  %4952 = vmatprep.subr.mxu0 %v5639_v41  ;;  %v1838_v9 = vadd.f32 %v1837_v53, %v1738_v24  ;;  %v3850_v53 = vld [vmem:[%s10098_s0 + $0xa98] sm:$0xff]  ;;  %v5656_v49 = vld [vmem:[%s10097_s1 + $0x228] sm:$0xff]  ;;  %v5658_v41 = vld [vmem:[%s10097_s1 + $0x2a0] sm:$0xff] }
 0x1f0   :  { %5000 = vmatpush3.msra.mxu1 %v5640_v30  ;;  %4953 = vmatpush3.msra.mxu0 %v5641_v22  ;;  %v4516_v28 = vpop.f32.mrf.mxu0  ;;  %v5659_v30 = vld [vmem:[%s10097_s1 + $0x188] sm:$0xff]  ;;  %v5660_v22 = vld [vmem:[%s10097_s1 + $0x220] sm:$0xff] }
 0x1f1   :  { %5001 = vmatprep.subr.mxu1 %v5642_v61  ;;  %5319 = vmatprep.mubr.msk.f32.mxu0 %vm5779_vm1, %v10303_v19  ;;  %v1871_v11 = vmul.f32 %v9038_v57, %v1838_v9  ;;  %v4517_v33 = vadd.f32 %v4516_v28, %v4515_v6  ;;  %v3849_v6 = vld [vmem:[%s10098_s0 + $0xa90] sm:$0xff]  ;;  %v5661_v28 = vld [vmem:[%s10097_s1 + $0x108] sm:$0xff]  ;;  %v3787_v61 = vld [vmem:[%s10098_s0 + $0x8a0] sm:$0xff] }
 0x1f2   :  { %2918 = vmatprep.mubr.f32.mxu1 %v3824_v16  ;;  %4954 = vmatprep.subr.mxu0 %v5643_v21  ;;  %v5663_v21 = vld [vmem:[%s10097_s1 + $0x180] sm:$0xff] }
 0x1f3   :  { %5002 = vmatpush3.msra.mxu1 %v5644_v15  ;;  %5320 = vmatmul.mubr.msk.f32.gmra.mxu0 %vm310_vm0, %v3763_v43  ;;  %v9096_v47 = vadd.f32 %v9065_v46, %v1871_v11  ;;  %v1743_v39 = vadd.f32 %v4517_v33, %v8863_v17  ;;  %v5647_v17 = vld [vmem:[%s10097_s1 + $0x1a0] sm:$0xff]  ;;  %v9183_v43 = vadd.f32 %v9065_v46, %v1040_v2  ;;  %v5662_v33 = vld [vmem:[%s10097_s1 + $0x298] sm:$0xff]  ;;  %v3789_v2 = vld [vmem:[%s10098_s0 + $0x8b0] sm:$0xff] }
 0x1f4   :  { %2919 = vmatmul.mubr.f32.gmra.mxu1 %v3823_v29  ;;  %4955 = vmatpush3.msra.mxu0 %v5645_v5  ;;  %v4518_v4 = vpop.f32.mrf.mxu0  ;;  %v1842_v37 = vpop.f32.mrf.mxu1  ;;  %v3863_v15 = vld [vmem:[%s10098_s0 + $0xb00] sm:$0x3] }
 0x1f5   :  { %5003 = vmatprep.subr.mxu1 %v5646_v38  ;;  %4956 = vmatprep.subr.mxu0 %v5647_v17  ;;  %v1885_v10 = vmax.f32 %v9089_v20, %v9096_v47  ;;  %v1843_v23 = vadd.f32 %v1842_v37, %v1743_v39  ;;  %v3786_v39 = vld [vmem:[%s10098_s0 + $0x898] sm:$0xff] }
 0x1f6   :  { %5004 = vmatpush3.msra.mxu1 %v5648_v48  ;;  %4957 = vmatpush3.msra.mxu0 %v5649_v42  ;;  %v4519_v32 = vpop.f32.mrf.mxu0  ;;  %v5272_v12 = vpop.f32.mrf.mxu1  ;;  %v5664_v37 = vld [vmem:[%s10097_s1 + $0x218] sm:$0xff] }
 0x1f7   :  { %5005 = vmatprep.subr.mxu1 %v5650_v1  ;;  %5322 = vmatprep.mubr.msk.f32.mxu0 %vm5779_vm1, %v10303_v19  ;;  %v1872_v45 = vmul.f32 %v9038_v57, %v1843_v23  ;;  %v4520_v36 = vadd.f32 %v4519_v32, %v4518_v4  ;;  %v1041_v4 = vmul.f32 %v9038_v57, %v8323_v50  ;;  %v3862_v50 = vld [vmem:[%s10098_s0 + $0xaf8] sm:$0x3]  ;;  %v5667_v32 = vld [vmem:[%s10097_s1 + $0x210] sm:$0xff]  ;;  %v3800_v1 = vld [vmem:[%s10098_s0 + $0x908] sm:$0xff] }
 0x1f8   :  { %2923 = vmatprep.mubr.f32.mxu1 %v3837_v44  ;;  %4958 = vmatprep.subr.mxu0 %v5651_v14  ;;  %v5666_v44 = vld [vmem:[%s10097_s1 + $0x290] sm:$0xff]  ;;  %v5668_v12 = vld [vmem:[%s10097_s1 + $0x3f8] sm:$0xff] }
 0x1f9   :  { %5006 = vmatpush3.msra.mxu1 %v5652_v40  ;;  %5323 = vmatmul.mubr.msk.f32.gmra.mxu0 %vm310_vm0, %v3776_v35  ;;  %v9144_v52 = vadd.f32 %v9065_v46, %v1872_v45  ;;  %v1748_v31 = vadd.f32 %v4520_v36, %v8890_v58  ;;  %v5655_v58 = vld [vmem:[%s10097_s1 + $0x190] sm:$0xff]  ;;  %v5669_v45 = vld [vmem:[%s10097_s1 + $0x288] sm:$0xff]  ;;  %v5670_v40 = vld [vmem:[%s10097_s1 + $0x378] sm:$0xff] }
 0x1fa   :  { %2924 = vmatmul.mubr.f32.gmra.mxu1 %v3836_v54  ;;  %4959 = vmatpush3.msra.mxu0 %v5653_v13  ;;  %v4521_v34 = vpop.f32.mrf.mxu0  ;;  %v1847_v59 = vpop.f32.mrf.mxu1  ;;  %v9234_v54 = vadd.f32 %v9065_v46, %v1041_v4  ;;  %v3799_v13 = vld [vmem:[%s10098_s0 + $0x900] sm:$0xff] }
 0x1fb   :  { %5007 = vmatprep.subr.mxu1 %v5654_v56  ;;  %4960 = vmatprep.subr.mxu0 %v5655_v58  ;;  %v1886_v62 = vmax.f32 %v9137_v3, %v9144_v52  ;;  %v1848_v24 = vadd.f32 %v1847_v59, %v1748_v31  ;;  %v5671_v31 = vld [vmem:[%s10097_s1 + $0x208] sm:$0xff]  ;;  %v1042_v59 = vmul.f32 %v9038_v57, %v8358_v7  ;;  %v5674_v7 = vld [vmem:[%s10097_s1 + $0x370] sm:$0xff] }
 0x1fc   :  { %5008 = vmatpush3.msra.mxu1 %v5656_v49  ;;  %4961 = vmatpush3.msra.mxu0 %v5657_v63  ;;  %v4522_v0 = vpop.f32.mrf.mxu0  ;;  %v5275_v18 = vpop.f32.mrf.mxu1  ;;  %v3788_v49 = vld [vmem:[%s10098_s0 + $0x8a8] sm:$0xff] }
 0x1fd   :  { %5009 = vmatprep.subr.mxu1 %v5658_v41  ;;  %2928 = vmatprep.mubr.f32.mxu1 %v3850_v53  ;;  %v1873_v16 = vmul.f32 %v9038_v57, %v1848_v24  ;;  %v4523_v9 = vadd.f32 %v4522_v0, %v4521_v34  ;;  %v5673_v24 = vld [vmem:[%s10097_s1 + $0x280] sm:$0xff] }
 0x1fe   :  { %4962 = vmatprep.subr.mxu0 %v5659_v30  ;;  %5010 = vmatpush3.msra.mxu1 %v5660_v22  ;;  %v5675_v0 = vld [vmem:[%s10097_s1 + $0x200] sm:$0xff]  ;;  %v9282_v30 = vadd.f32 %v9065_v46, %v1042_v59  ;;  %v5677_v22 = vld [vmem:[%s10097_s1 + $0x368] sm:$0xff] }
 0x1ff   :  { %2929 = vmatmul.mubr.f32.gmra.mxu1 %v3849_v6  ;;  %4963 = vmatpush3.msra.mxu0 %v5661_v28  ;;  %v9192_v29 = vadd.f32 %v9065_v46, %v1873_v16  ;;  %v1753_v11 = vadd.f32 %v4523_v9, %v8924_v25  ;;  %v5676_v16 = vld [vmem:[%s10097_s1 + $0x3e8] sm:$0xff]  ;;  %v3813_v9 = vld [vmem:[%s10098_s0 + $0x970] sm:$0xff] }
 0x200   :  { %5011 = vmatprep.subr.mxu1 %v5662_v33  ;;  %4964 = vmatprep.subr.mxu0 %v5663_v21  ;;  %v4524_v5 = vpop.f32.mrf.mxu0  ;;  %v1852_v25 = vpop.f32.mrf.mxu1  ;;  %v5679_v33 = vld [vmem:[%s10097_s1 + $0x3e0] sm:$0xff]  ;;  %v3812_v21 = vld [vmem:[%s10098_s0 + $0x968] sm:$0xff] }
 0x201   :  { %5012 = vmatpush3.msra.mxu1 %v5664_v37  ;;  %4965 = vmatpush3.msra.mxu0 %v5665_v60  ;;  %v1887_v38 = vmax.f32 %v9183_v43, %v9192_v29  ;;  %v1853_v17 = vadd.f32 %v1852_v25, %v1753_v11  ;;  %v5678_v11 = vld [vmem:[%s10097_s1 + $0x4f8] sm:$0xff]  ;;  %v5681_v60 = vld [vmem:[%s10097_s1 + $0x360] sm:$0xff]  ;;  %v5688_v59 = vld [vmem:[%s10097_s1 + $0x468] sm:$0xff] }
 0x202   :  { %3003 = vmatprep.mubr.f32.mxu0 %v3787_v61  ;;  %5013 = vmatprep.subr.mxu1 %v5666_v44  ;;  %v4525_v23 = vpop.f32.mrf.mxu0  ;;  %v5278_v48 = vpop.f32.mrf.mxu1  ;;  %v5680_v25 = vld [vmem:[%s10097_s1 + $0x478] sm:$0xff] }
 0x203   :  { %2933 = vmatprep.mubr.f32.mxu1 %v3863_v15  ;;  %3004 = vmatmul.mubr.f32.vlgmr.msra.gmra.mxu0 %v3786_v39  ;;  %v1874_v42 = vmul.f32 %v9038_v57, %v1853_v17  ;;  %v4526_v35 = vadd.f32 %v4525_v23, %v4524_v5  ;;  %v3802_v15 = vld [vmem:[%s10098_s0 + $0x918] sm:$0xff]  ;;  %v1043_v5 = vmul.f32 %v9038_v57, %v8394_v51  ;;  %v5682_v17 = vld [vmem:[%s10097_s1 + $0x4f0] sm:$0xff] }
 0x204   :  { %5014 = vmatpush3.msra.mxu1 %v5667_v32  ;;  %5040 = vmatprep.subr.mxu0 %v5668_v12  ;;  %v3801_v51 = vld [vmem:[%s10098_s0 + $0x910] sm:$0xff]  ;;  %v3826_v32 = vld [vmem:[%s10098_s0 + $0x9d8] sm:$0xff] }
 0x205   :  { %2934 = vmatmul.mubr.f32.gmra.mxu1 %v3862_v50  ;;  %5015 = vmatprep.subr.mxu1 %v5669_v45  ;;  %v9240_v36 = vadd.f32 %v9065_v46, %v1874_v42  ;;  %v1758_v14 = vadd.f32 %v4526_v35, %v8955_v55  ;;  %v5672_v55 = vld [vmem:[%s10097_s1 + $0x3f0] sm:$0xff]  ;;  %v5683_v42 = vld [vmem:[%s10097_s1 + $0x3d8] sm:$0xff]  ;;  %v9330_v12 = vadd.f32 %v9065_v46, %v1043_v5 }
 0x206   :  { %5041 = vmatpush3.msra.mxu0 %v5670_v40  ;;  %5016 = vmatpush3.msra.mxu1 %v5671_v31  ;;  %v4527_v53 = vpop.f32.mrf.mxu0  ;;  %v1857_v34 = vpop.f32.mrf.mxu1  ;;  %v5684_v35 = vld [vmem:[%s10097_s1 + $0x470] sm:$0xff]  ;;  %v5686_v40 = vld [vmem:[%s10097_s1 + $0x4e8] sm:$0xff] }
 0x207   :  { %5042 = vmatprep.subr.mxu0 %v5672_v55  ;;  %3008 = vmatprep.mubr.f32.mxu0 %v3800_v1  ;;  %v1888_v56 = vmax.f32 %v9234_v54, %v9240_v36  ;;  %v1858_v58 = vadd.f32 %v1857_v34, %v1758_v14  ;;  %v5685_v1 = vld [vmem:[%s10097_s1 + $0x358] sm:$0xff]  ;;  %v5687_v31 = vld [vmem:[%s10097_s1 + $0x3d0] sm:$0xff] }
 0x208   :  { %5017 = vmatprep.subr.mxu1 %v5673_v24  ;;  %5043 = vmatpush3.msra.mxu0 %v5674_v7  ;;  %v4528_v63 = vpop.f32.mrf.mxu0  ;;  %v5281_v6 = vpop.f32.mrf.mxu1  ;;  %v5690_v24 = vld [vmem:[%s10097_s1 + $0x4e0] sm:$0xff]  ;;  %v5698_v5 = vld [vmem:[%s10097_s1 + $0x4d0] sm:$0xff] }
 0x209   :  { %3009 = vmatmul.mubr.f32.gmra.mxu0 %v3799_v13  ;;  %5018 = vmatpush3.msra.mxu1 %v5675_v0  ;;  %v1875_v18 = vmul.f32 %v9038_v57, %v1858_v58  ;;  %v4529_v41 = vadd.f32 %v4528_v63, %v4527_v53  ;;  %v3825_v13 = vld [vmem:[%s10098_s0 + $0x9d0] sm:$0xff]  ;;  %v3815_v53 = vld [vmem:[%s10098_s0 + $0x980] sm:$0xff]  ;;  %v5691_v63 = vld [vmem:[%s10097_s1 + $0x3c8] sm:$0xff] }
 0x20a   :  { %3103 = vmatprep.mubr.f32.mxu1 %v3789_v2  ;;  %5044 = vmatprep.subr.mxu0 %v5676_v16  ;;  %v5689_v58 = vld [vmem:[%s10097_s1 + $0x350] sm:$0xff]  ;;  %v5692_v6 = vld [vmem:[%s10097_s1 + $0x460] sm:$0xff] }
 0x20b   :  { %3104 = vmatmul.mubr.f32.vlgmr.msra.gmra.mxu1 %v3788_v49  ;;  %5045 = vmatpush3.msra.mxu0 %v5677_v22  ;;  %v9288_v28 = vadd.f32 %v9065_v46, %v1875_v18  ;;  %v1763_v61 = vadd.f32 %v4529_v41, %v8989_v8  ;;  %v3839_v0 = vld [vmem:[%s10098_s0 + $0xa40] sm:$0xff]  ;;  %v5694_v22 = vld [vmem:[%s10097_s1 + $0x4d8] sm:$0xff] }
 0x20c   :  { %5093 = vmatprep.subr.mxu1 %v5678_v11  ;;  %5046 = vmatprep.subr.mxu0 %v5679_v33  ;;  %v4530_v39 = vpop.f32.mrf.mxu0  ;;  %v1862_v8 = vpop.f32.mrf.mxu1  ;;  %v3838_v11 = vld [vmem:[%s10098_s0 + $0xa38] sm:$0xff] }
 0x20d   :  { %5094 = vmatpush3.msra.mxu1 %v5680_v25  ;;  %3013 = vmatprep.mubr.f32.mxu0 %v3813_v9  ;;  %v1889_v4 = vmax.f32 %v9282_v30, %v9288_v28  ;;  %v1863_v37 = vadd.f32 %v1862_v8, %v1763_v61  ;;  %v5695_v61 = vld [vmem:[%s10097_s1 + $0x3c0] sm:$0xff]  ;;  %v5696_v33 = vld [vmem:[%s10097_s1 + $0x458] sm:$0xff] }
 0x20e   :  { %5047 = vmatpush3.msra.mxu0 %v5681_v60  ;;  %5095 = vmatprep.subr.mxu1 %v5682_v17  ;;  %v4531_v44 = vpop.f32.mrf.mxu0  ;;  %v5284_v50 = vpop.f32.mrf.mxu1  ;;  %v5697_v8 = vld [vmem:[%s10097_s1 + $0x340] sm:$0xff]  ;;  %v5699_v17 = vld [vmem:[%s10097_s1 + $0x3b8] sm:$0xff] }
 0x20f   :  { %3014 = vmatmul.mubr.f32.gmra.mxu0 %v3812_v21  ;;  %3108 = vmatprep.mubr.f32.mxu1 %v3802_v15  ;;  %v1876_v23 = vmul.f32 %v9038_v57, %v1863_v37  ;;  %v4532_v48 = vadd.f32 %v4531_v44, %v4530_v39  ;;  %v3827_v25 = vld [vmem:[%s10098_s0 + $0x9e0] sm:$0xff]  ;;  %v3852_v44 = vld [vmem:[%s10098_s0 + $0xaa8] sm:$0xff] }
 0x210   :  { %5048 = vmatprep.subr.mxu0 %v5683_v42  ;;  %5096 = vmatpush3.msra.mxu1 %v5684_v35  ;;  %v5703_v42 = vld [vmem:[%s10097_s1 + $0x3b0] sm:$0xff]  ;;  %v3851_v35 = vld [vmem:[%s10098_s0 + $0xaa0] sm:$0xff] }
 0x211   :  { %3109 = vmatmul.mubr.f32.gmra.mxu1 %v3801_v51  ;;  %5049 = vmatpush3.msra.mxu0 %v5685_v1  ;;  %v9336_v45 = vadd.f32 %v9065_v46, %v1876_v23  ;;  %v1768_v14 = vadd.f32 %v4532_v48, %v9018_v27  ;;  %v1044_v27 = vmul.f32 %v9038_v57, %v8426_v26  ;;  %v3814_v26 = vld [vmem:[%s10098_s0 + $0x978] sm:$0xff]  ;;  %v5700_v51 = vld [vmem:[%s10097_s1 + $0x450] sm:$0xff]  ;;  %v5702_v48 = vld [vmem:[%s10097_s1 + $0x4c8] sm:$0xff] }
 0x212   :  { %5097 = vmatprep.subr.mxu1 %v5686_v40  ;;  %5050 = vmatprep.subr.mxu0 %v5687_v31  ;;  %v1867_v34 = vpop.f32.mrf.mxu1  ;;  %v5701_v23 = vld [vmem:[%s10097_s1 + $0x338] sm:$0xff]  ;;  %v5704_v1 = vld [vmem:[%s10097_s1 + $0x448] sm:$0xff]  ;;  %v5706_v40 = vld [vmem:[%s10097_s1 + $0x4c0] sm:$0xff] }
 0x213   :  { %5098 = vmatpush3.msra.mxu1 %v5688_v59  ;;  %3018 = vmatprep.mubr.f32.mxu0 %v3826_v32  ;;  %v1890_v55 = vmax.f32 %v9330_v12, %v9336_v45  ;;  %v1868_v2 = vadd.f32 %v1867_v34, %v1768_v14  ;;  %v9378_v18 = vadd.f32 %v9065_v46, %v1044_v27  ;;  %v3841_v32 = vld [vmem:[%s10098_s0 + $0xa50] sm:$0xff]  ;;  %v3840_v31 = vld [vmem:[%s10098_s0 + $0xa48] sm:$0xff]  ;;  %v5708_v27 = vld [vmem:[%s10097_s1 + $0x440] sm:$0xff] }
 0x214   :  { %5051 = vmatpush3.msra.mxu0 %v5689_v58  ;;  %5099 = vmatprep.subr.mxu1 %v5690_v24  ;;  %v5287_v7 = vpop.f32.mrf.mxu1  ;;  %v5705_v14 = vld [vmem:[%s10097_s1 + $0x330] sm:$0xff]  ;;  %v5707_v34 = vld [vmem:[%s10097_s1 + $0x3a8] sm:$0xff] }
 0x215   :  { %3019 = vmatmul.mubr.f32.gmra.mxu0 %v3825_v13  ;;  %3113 = vmatprep.mubr.f32.mxu1 %v3815_v53  ;;  %v1877_v49 = vmul.f32 %v9038_v57, %v1868_v2  ;;  %v5693_v57 = vld [vmem:[%s10097_s1 + $0x348] sm:$0xff]  ;;  %v3865_v59 = vld [vmem:[%s10098_s0 + $0xb10] sm:$0x3] }
 0x216   :  { %5052 = vmatprep.subr.mxu0 %v5691_v63  ;;  %5100 = vmatpush3.msra.mxu1 %v5692_v6  ;;  %v5709_v24 = vld [vmem:[%s10097_s1 + $0x328] sm:$0xff]  ;;  %v5711_v63 = vld [vmem:[%s10097_s1 + $0x3a0] sm:$0xff] }
 0x217   :  { %3114 = vmatmul.mubr.f32.gmra.mxu1 %v3814_v26  ;;  %5053 = vmatpush3.msra.mxu0 %v5693_v57  ;;  %v9384_v41 = vadd.f32 %v9065_v46, %v1877_v49  ;;  %v4580_v16 = vpop.f32.mrf.mxu0  ;;  %v4633_v9 = vpop.f32.mrf.mxu1  ;;  %v3828_v46 = vld [vmem:[%s10098_s0 + $0x9e8] sm:$0xff]  ;;  %v5710_v49 = vld [vmem:[%s10097_s1 + $0x4b8] sm:$0xff] }
 0x218   :  { %5101 = vmatprep.subr.mxu1 %v5694_v22  ;;  %5054 = vmatprep.subr.mxu0 %v5695_v61  ;;  %v3864_v6 = vld [vmem:[%s10098_s0 + $0xb08] sm:$0x3]  ;;  %v5712_v57 = vld [vmem:[%s10097_s1 + $0x438] sm:$0xff]  ;;  %v5714_v22 = vld [vmem:[%s10097_s1 + $0x4b0] sm:$0xff] }
 0x219   :  { %5102 = vmatpush3.msra.mxu1 %v5696_v33  ;;  %3023 = vmatprep.mubr.f32.mxu0 %v3839_v0  ;;  %v1891_v21 = vmax.f32 %v9378_v18, %v9384_v41  ;;  %v4581_v15 = vpop.f32.mrf.mxu0  ;;  %v4634_v39 = vpop.f32.mrf.mxu1  ;;  %v3854_v0 = vld [vmem:[%s10098_s0 + $0xab8] sm:$0xff]  ;;  %v3853_v61 = vld [vmem:[%s10098_s0 + $0xab0] sm:$0xff] }
 0x21a   :  { %5055 = vmatpush3.msra.mxu0 %v5697_v8  ;;  %5103 = vmatprep.subr.mxu1 %v5698_v5  ;;  %v4582_v37 = vadd.f32 %v4581_v15, %v4580_v16  ;;  %v4635_v60 = vadd.f32 %v4634_v39, %v4633_v9  ;;  %v5713_v9 = vld [vmem:[%s10097_s1 + $0x320] sm:$0xff]  ;;  %v5715_v33 = vld [vmem:[%s10097_s1 + $0x398] sm:$0xff]  ;;  %v5716_v15 = vld [vmem:[%s10097_s1 + $0x430] sm:$0xff] }
 0x21b   :  { %3024 = vmatmul.mubr.f32.gmra.mxu0 %v3838_v11  ;;  %3118 = vmatprep.mubr.f32.mxu1 %v3828_v46  ;;  %v5717_v5 = vld [vmem:[%s10097_s1 + $0x318] sm:$0xff] }
 0x21c   :  { %5056 = vmatprep.subr.mxu0 %v5699_v17  ;;  %5104 = vmatpush3.msra.mxu1 %v5700_v51  ;;  %v9421_v50 = vadd.f32 %v4635_v60, %v4582_v37  ;;  %v5718_v17 = vld [vmem:[%s10097_s1 + $0x4a8] sm:$0xff]  ;;  %v5719_v51 = vld [vmem:[%s10097_s1 + $0x390] sm:$0xff] }
 0x21d   :  { %3119 = vmatmul.mubr.f32.gmra.mxu1 %v3827_v25  ;;  %5057 = vmatpush3.msra.mxu0 %v5701_v23  ;;  %v3867_v25 = vld [vmem:[%s10098_s0 + $0xb20] sm:$0x3]  ;;  %v5721_v23 = vld [vmem:[%s10097_s1 + $0x310] sm:$0xff] }
 0x21e   :  { %5105 = vmatprep.subr.mxu1 %v5702_v48  ;;  %5058 = vmatprep.subr.mxu0 %v5703_v42  ;;  %v3866_v48 = vld [vmem:[%s10098_s0 + $0xb18] sm:$0x3] }
 0x21f   :  { %5106 = vmatpush3.msra.mxu1 %v5704_v1  ;;  %3028 = vmatprep.mubr.f32.mxu0 %v3852_v44  ;;  %v5720_v44 = vld [vmem:[%s10097_s1 + $0x428] sm:$0xff] }
 0x220   :  { %5059 = vmatpush3.msra.mxu0 %v5705_v14  ;;  %5107 = vmatprep.subr.mxu1 %v5706_v40  ;;  %v4583_v13 = vpop.f32.mrf.mxu0  ;;  %v4636_v53 = vpop.f32.mrf.mxu1  ;;  %v5723_v14 = vld [vmem:[%s10097_s1 + $0x388] sm:$0xff]  ;;  %v5724_v40 = vld [vmem:[%s10097_s1 + $0x420] sm:$0xff] }
 0x221   :  { %3029 = vmatmul.mubr.f32.gmra.mxu0 %v3851_v35  ;;  %3123 = vmatprep.mubr.f32.mxu1 %v3841_v32  ;;  %v5722_v35 = vld [vmem:[%s10097_s1 + $0x4a0] sm:$0xff] }
 0x222   :  { %5060 = vmatprep.subr.mxu0 %v5707_v34  ;;  %5108 = vmatpush3.msra.mxu1 %v5708_v27  ;;  %v4584_v2 = vpop.f32.mrf.mxu0  ;;  %v4637_v58 = vpop.f32.mrf.mxu1  ;;  %v5726_v27 = vld [vmem:[%s10097_s1 + $0x498] sm:$0xff] }
 0x223   :  { %3124 = vmatmul.mubr.f32.gmra.mxu1 %v3840_v31  ;;  %5061 = vmatpush3.msra.mxu0 %v5709_v24  ;;  %v4585_v26 = vadd.f32 %v4584_v2, %v4583_v13  ;;  %v4638_v7 = vadd.f32 %v4637_v58, %v4636_v53  ;;  %v5725_v31 = vld [vmem:[%s10097_s1 + $0x308] sm:$0xff]  ;;  %v3791_v13 = vld [vmem:[%s10098_s0 + $0x8c0] sm:$0xff]  ;;  %v3790_v2 = vld [vmem:[%s10098_s0 + $0x8b8] sm:$0xff] }
 0x224   :  { %5109 = vmatprep.subr.mxu1 %v5710_v49  ;;  %5062 = vmatprep.subr.mxu0 %v5711_v63  ;;  %v5730_v49 = vld [vmem:[%s10097_s1 + $0x490] sm:$0xff] }
 0x225   :  { %5110 = vmatpush3.msra.mxu1 %v5712_v57  ;;  %3033 = vmatprep.mubr.f32.mxu0 %v3865_v59  ;;  %v9477_v16 = vadd.f32 %v4638_v7, %v4585_v26  ;;  %v5727_v59 = vld [vmem:[%s10097_s1 + $0x380] sm:$0xff]  ;;  %v5728_v26 = vld [vmem:[%s10097_s1 + $0x418] sm:$0xff] }
 0x226   :  { %5063 = vmatpush3.msra.mxu0 %v5713_v9  ;;  %5111 = vmatprep.subr.mxu1 %v5714_v22  ;;  %v4586_v11 = vpop.f32.mrf.mxu0  ;;  %v4639_v46 = vpop.f32.mrf.mxu1  ;;  %v5729_v7 = vld [vmem:[%s10097_s1 + $0x300] sm:$0xff]  ;;  %v5732_v22 = vld [vmem:[%s10097_s1 + $0x5f8] sm:$0xff] }
 0x227   :  { %3034 = vmatmul.mubr.f32.gmra.mxu0 %v3864_v6  ;;  %3128 = vmatprep.mubr.f32.mxu1 %v3854_v0  ;;  %v5731_v6 = vld [vmem:[%s10097_s1 + $0x410] sm:$0xff]  ;;  %v3804_v0 = vld [vmem:[%s10098_s0 + $0x928] sm:$0xff] }
 0x228   :  { %5064 = vmatprep.subr.mxu0 %v5715_v33  ;;  %5112 = vmatpush3.msra.mxu1 %v5716_v15  ;;  %v4587_v39 = vpop.f32.mrf.mxu0  ;;  %v4640_v8 = vpop.f32.mrf.mxu1  ;;  %v3803_v33 = vld [vmem:[%s10098_s0 + $0x920] sm:$0xff] }
 0x229   :  { %3129 = vmatmul.mubr.f32.gmra.mxu1 %v3853_v61  ;;  %5065 = vmatpush3.msra.mxu0 %v5717_v5  ;;  %v4588_v37 = vadd.f32 %v4587_v39, %v4586_v11  ;;  %v4641_v60 = vadd.f32 %v4640_v8, %v4639_v46  ;;  %v5733_v61 = vld [vmem:[%s10097_s1 + $0x488] sm:$0xff]  ;;  %v5734_v11 = vld [vmem:[%s10097_s1 + $0x578] sm:$0xff]  ;;  %v5736_v8 = vld [vmem:[%s10097_s1 + $0x5f0] sm:$0xff] }
 0x22a   :  { %5113 = vmatprep.subr.mxu1 %v5718_v17  ;;  %5066 = vmatprep.subr.mxu0 %v5719_v51  ;;  %v5735_v46 = vld [vmem:[%s10097_s1 + $0x408] sm:$0xff]  ;;  %v3793_v5 = vld [vmem:[%s10098_s0 + $0x8d0] sm:$0xff] }
 0x22b   :  { %5114 = vmatpush3.msra.mxu1 %v5720_v44  ;;  %5067 = vmatpush3.msra.mxu0 %v5721_v23  ;;  %v9515_v42 = vadd.f32 %v4641_v60, %v4588_v37  ;;  %v5737_v60 = vld [vmem:[%s10097_s1 + $0x480] sm:$0xff]  ;;  %v5738_v17 = vld [vmem:[%s10097_s1 + $0x570] sm:$0xff]  ;;  %v3792_v51 = vld [vmem:[%s10098_s0 + $0x8c8] sm:$0xff] }
 0x22c   :  { %5115 = vmatprep.subr.mxu1 %v5722_v35  ;;  %3133 = vmatprep.mubr.f32.mxu1 %v3867_v25  ;;  %v4589_v32 = vpop.f32.mrf.mxu0  ;;  %v4642_v1 = vpop.f32.mrf.mxu1  ;;  %v5739_v44 = vld [vmem:[%s10097_s1 + $0x400] sm:$0xff]  ;;  %v3817_v23 = vld [vmem:[%s10098_s0 + $0x990] sm:$0xff]  ;;  %v5740_v35 = vld [vmem:[%s10097_s1 + $0x5e8] sm:$0xff] }
 0x22d   :  { %5068 = vmatprep.subr.mxu0 %v5723_v14  ;;  %5116 = vmatpush3.msra.mxu1 %v5724_v40  ;;  %v5741_v40 = vld [vmem:[%s10097_s1 + $0x568] sm:$0xff] }
 0x22e   :  { %3134 = vmatmul.mubr.f32.gmra.mxu1 %v3866_v48  ;;  %5069 = vmatpush3.msra.mxu0 %v5725_v31  ;;  %v4590_v53 = vpop.f32.mrf.mxu0  ;;  %v4643_v34 = vpop.f32.mrf.mxu1  ;;  %v3816_v31 = vld [vmem:[%s10098_s0 + $0x988] sm:$0xff] }
 0x22f   :  { %5117 = vmatprep.subr.mxu1 %v5726_v27  ;;  %5070 = vmatprep.subr.mxu0 %v5727_v59  ;;  %v4591_v58 = vadd.f32 %v4590_v53, %v4589_v32  ;;  %v4644_v24 = vadd.f32 %v4643_v34, %v4642_v1  ;;  %v3806_v32 = vld [vmem:[%s10098_s0 + $0x938] sm:$0xff]  ;;  %v3805_v53 = vld [vmem:[%s10098_s0 + $0x930] sm:$0xff]  ;;  %v5743_v59 = vld [vmem:[%s10097_s1 + $0x560] sm:$0xff] }
 0x230   :  { %5118 = vmatpush3.msra.mxu1 %v5728_v26  ;;  %5071 = vmatpush3.msra.mxu0 %v5729_v7  ;;  %v3830_v26 = vld [vmem:[%s10098_s0 + $0x9f8] sm:$0xff] }
 0x231   :  { %3203 = vmatprep.mubr.f32.mxu0 %v3791_v13  ;;  %5119 = vmatprep.subr.mxu1 %v5730_v49  ;;  %v9550_v63 = vadd.f32 %v4644_v24, %v4591_v58  ;;  %v5742_v13 = vld [vmem:[%s10097_s1 + $0x5e0] sm:$0xff]  ;;  %v5744_v24 = vld [vmem:[%s10097_s1 + $0x5d8] sm:$0xff]  ;;  %v3829_v49 = vld [vmem:[%s10098_s0 + $0x9f0] sm:$0xff] }
 0x232   :  { %3204 = vmatmul.mubr.f32.vlgmr.msra.gmra.mxu0 %v3790_v2  ;;  %5120 = vmatpush3.msra.mxu1 %v5731_v6  ;;  %v4592_v57 = vpop.f32.mrf.mxu0  ;;  %v4645_v9 = vpop.f32.mrf.mxu1  ;;  %v5745_v7 = vld [vmem:[%s10097_s1 + $0x558] sm:$0xff] }
 0x233   :  { %5146 = vmatprep.subr.mxu0 %v5732_v22  ;;  %5121 = vmatprep.subr.mxu1 %v5733_v61  ;;  %v5747_v61 = vld [vmem:[%s10097_s1 + $0x550] sm:$0xff] }
 0x234   :  { %5147 = vmatpush3.msra.mxu0 %v5734_v11  ;;  %5122 = vmatpush3.msra.mxu1 %v5735_v46  ;;  %v4593_v15 = vpop.f32.mrf.mxu0  ;;  %v4646_v39 = vpop.f32.mrf.mxu1  ;;  %v3818_v11 = vld [vmem:[%s10098_s0 + $0x998] sm:$0xff] }
 0x235   :  { %5148 = vmatprep.subr.mxu0 %v5736_v8  ;;  %3208 = vmatprep.mubr.f32.mxu0 %v3804_v0  ;;  %v4594_v25 = vadd.f32 %v4593_v15, %v4592_v57  ;;  %v4647_v37 = vadd.f32 %v4646_v39, %v4645_v9  ;;  %v5746_v0 = vld [vmem:[%s10097_s1 + $0x5d0] sm:$0xff]  ;;  %v3819_v57 = vld [vmem:[%s10098_s0 + $0x9a0] sm:$0xff]  ;;  %v5748_v46 = vld [vmem:[%s10097_s1 + $0x638] sm:$0xff] }
 0x236   :  { %5123 = vmatprep.subr.mxu1 %v5737_v60  ;;  %5149 = vmatpush3.msra.mxu0 %v5738_v17  ;;  %v5749_v39 = vld [vmem:[%s10097_s1 + $0x5c8] sm:$0xff]  ;;  %v3843_v8 = vld [vmem:[%s10098_s0 + $0xa60] sm:$0xff]  ;;  %v3842_v60 = vld [vmem:[%s10098_s0 + $0xa58] sm:$0xff] }
 0x237   :  { %3209 = vmatmul.mubr.f32.gmra.mxu0 %v3803_v33  ;;  %5124 = vmatpush3.msra.mxu1 %v5739_v44  ;;  %v9594_v48 = vadd.f32 %v4647_v37, %v4594_v25  ;;  %v5750_v37 = vld [vmem:[%s10097_s1 + $0x548] sm:$0xff]  ;;  %v5751_v17 = vld [vmem:[%s10097_s1 + $0x5c0] sm:$0xff] }
 0x238   :  { %3303 = vmatprep.mubr.f32.mxu1 %v3793_v5  ;;  %5150 = vmatprep.subr.mxu0 %v5740_v35  ;;  %v4595_v1 = vpop.f32.mrf.mxu0  ;;  %v4648_v14 = vpop.f32.mrf.mxu1  ;;  %v3831_v35 = vld [vmem:[%s10098_s0 + $0xa00] sm:$0xff] }
 0x239   :  { %3304 = vmatmul.mubr.f32.vlgmr.msra.gmra.mxu1 %v3792_v51  ;;  %5151 = vmatpush3.msra.mxu0 %v5741_v40  ;;  %v3832_v51 = vld [vmem:[%s10098_s0 + $0xa08] sm:$0xff] }
 0x23a   :  { %5152 = vmatprep.subr.mxu0 %v5742_v13  ;;  %3213 = vmatprep.mubr.f32.mxu0 %v3817_v23  ;;  %v4596_v34 = vpop.f32.mrf.mxu0  ;;  %v4649_v27 = vpop.f32.mrf.mxu1  ;;  %v5752_v23 = vld [vmem:[%s10097_s1 + $0x540] sm:$0xff]  ;;  %v3856_v40 = vld [vmem:[%s10098_s0 + $0xac8] sm:$0xff] }
 0x23b   :  { %5153 = vmatpush3.msra.mxu0 %v5743_v59  ;;  %3308 = vmatprep.mubr.f32.mxu1 %v3806_v32  ;;  %v4597_v2 = vadd.f32 %v4596_v34, %v4595_v1  ;;  %v4650_v58 = vadd.f32 %v4649_v27, %v4648_v14  ;;  %v5753_v1 = vld [vmem:[%s10097_s1 + $0x630] sm:$0xff]  ;;  %v5754_v14 = vld [vmem:[%s10097_s1 + $0x5b8] sm:$0xff] }
 0x23c   :  { %3214 = vmatmul.mubr.f32.gmra.mxu0 %v3816_v31  ;;  %5154 = vmatprep.subr.mxu0 %v5744_v24  ;;  %v3845_v34 = vld [vmem:[%s10098_s0 + $0xa70] sm:$0xff]  ;;  %v5757_v24 = vld [vmem:[%s10097_s1 + $0x628] sm:$0xff] }
 0x23d   :  { %3309 = vmatmul.mubr.f32.gmra.mxu1 %v3805_v53  ;;  %5155 = vmatpush3.msra.mxu0 %v5745_v7  ;;  %v9629_v6 = vadd.f32 %v4650_v58, %v4597_v2  ;;  %v5755_v53 = vld [vmem:[%s10097_s1 + $0x538] sm:$0xff]  ;;  %v5756_v59 = vld [vmem:[%s10097_s1 + $0x5b0] sm:$0xff]  ;;  %v3855_v2 = vld [vmem:[%s10098_s0 + $0xac0] sm:$0xff] }
 0x23e   :  { %5156 = vmatprep.subr.mxu0 %v5746_v0  ;;  %5325 = vmatprep.subr.mxu1 %v10303_v19  ;;  %v4598_v9 = vpop.f32.mrf.mxu0  ;;  %v4651_v22 = vpop.f32.mrf.mxu1  ;;  %v5758_v0 = vld [vmem:[%s10097_s1 + $0x530] sm:$0xff] }
 0x23f   :  { %3218 = vmatprep.mubr.f32.mxu0 %v3830_v26  ;;  %5157 = vmatpush3.msra.mxu0 %v5747_v61  ;;  %v3844_v26 = vld [vmem:[%s10098_s0 + $0xa68] sm:$0xff] }
 0x240   :  { %5326 = vmatpush3.msra.mxu1 %v5748_v46  ;;  %3219 = vmatmul.mubr.f32.gmra.mxu0 %v3829_v49  ;;  %v4599_v33 = vpop.f32.mrf.mxu0  ;;  %v4652_v15 = vpop.f32.mrf.mxu1 }
 0x241   :  { %3313 = vmatprep.mubr.f32.mxu1 %v3819_v57  ;;  %5158 = vmatprep.subr.mxu0 %v5749_v39  ;;  %v4600_v5 = vadd.f32 %v4599_v33, %v4598_v9  ;;  %v4653_v25 = vadd.f32 %v4652_v15, %v4651_v22  ;;  %v5759_v9 = vld [vmem:[%s10097_s1 + $0x5a8] sm:$0xff]  ;;  %v3869_v22 = vld [vmem:[%s10098_s0 + $0xb30] sm:$0x3]  ;;  %v5761_v33 = vld [vmem:[%s10097_s1 + $0x5a0] sm:$0xff] }
 0x242   :  { %3314 = vmatmul.mubr.f32.gmra.mxu1 %v3818_v11  ;;  %5159 = vmatpush3.msra.mxu0 %v5750_v37  ;;  %v3858_v11 = vld [vmem:[%s10098_s0 + $0xad8] sm:$0xff]  ;;  %v3868_v15 = vld [vmem:[%s10098_s0 + $0xb28] sm:$0x3]  ;;  %v5763_v37 = vld [vmem:[%s10097_s1 + $0x520] sm:$0xff] }
 0x243   :  { %5160 = vmatprep.subr.mxu0 %v5751_v17  ;;  %5327 = vmatprep.subr.mxu1 %v10303_v19  ;;  %v9666_v44 = vadd.f32 %v4653_v25, %v4600_v5  ;;  %v3857_v5 = vld [vmem:[%s10098_s0 + $0xad0] sm:$0xff]  ;;  %v5764_v17 = vld [vmem:[%s10097_s1 + $0x598] sm:$0xff] }
 0x244   :  { %3223 = vmatprep.mubr.f32.mxu0 %v3843_v8  ;;  %5161 = vmatpush3.msra.mxu0 %v5752_v23  ;;  %v4686_v32 = vpop.f32.mrf.mxu0  ;;  %v5762_v8 = vld [vmem:[%s10097_s1 + $0x620] sm:$0xff] }
 0x245   :  { %5328 = vmatpush3.msra.mxu1 %v5753_v1  ;;  %3224 = vmatmul.mubr.f32.gmra.mxu0 %v3842_v60  ;;  %v5766_v1 = vld [vmem:[%s10097_s1 + $0x618] sm:$0xff] }
 0x246   :  { %3318 = vmatprep.mubr.f32.mxu1 %v3832_v51  ;;  %5162 = vmatprep.subr.mxu0 %v5754_v14  ;;  %v4687_v31 = vpop.f32.mrf.mxu0  ;;  %v4739_v13 = vpop.f32.mrf.mxu1  ;;  %v3871_v51 = vld [vmem:[%s10098_s0 + $0xb40] sm:$0x3]  ;;  %v3870_v14 = vld [vmem:[%s10098_s0 + $0xb38] sm:$0x3] }
 0x247   :  { %3319 = vmatmul.mubr.f32.gmra.mxu1 %v3831_v35  ;;  %5163 = vmatpush3.msra.mxu0 %v5755_v53  ;;  %v4688_v27 = vadd.f32 %v4687_v31, %v4686_v32  ;;  %v5767_v31 = vld [vmem:[%s10097_s1 + $0x590] sm:$0xff] }
 0x248   :  { %5329 = vmatprep.subr.mxu1 %v10303_v19  ;;  %5164 = vmatprep.subr.mxu0 %v5756_v59  ;;  %v4740_v58 = vpop.f32.mrf.mxu1 }
 0x249   :  { %5330 = vmatpush3.msra.mxu1 %v5757_v24  ;;  %3228 = vmatprep.mubr.f32.mxu0 %v3856_v40  ;;  %v2272_v7 = vadd.f32 %v4688_v27, %v9421_v50  ;;  %v4741_v49 = vadd.f32 %v4740_v58, %v4739_v13  ;;  %v5760_v50 = vld [vmem:[%s10097_s1 + $0x528] sm:$0xff]  ;;  %v3795_v27 = vld [vmem:[%s10098_s0 + $0x8e0] sm:$0xff] }
 0x24a   :  { %5165 = vmatpush3.msra.mxu0 %v5758_v0  ;;  %3323 = vmatprep.mubr.f32.mxu1 %v3845_v34  ;;  %v4689_v57 = vpop.f32.mrf.mxu0  ;;  %v5768_v34 = vld [vmem:[%s10097_s1 + $0x510] sm:$0xff]  ;;  %v5770_v24 = vld [vmem:[%s10097_s1 + $0x508] sm:$0xff] }
 0x24b   :  { %3229 = vmatmul.mubr.f32.gmra.mxu0 %v3855_v2  ;;  %5166 = vmatprep.subr.mxu0 %v5759_v9  ;;  %v9712_v61 = vadd.f32 %v4741_v49, %v2272_v7  ;;  %v5769_v2 = vld [vmem:[%s10097_s1 + $0x588] sm:$0xff]  ;;  %v3794_v7 = vld [vmem:[%s10098_s0 + $0x8d8] sm:$0xff] }
 0x24c   :  { %3324 = vmatmul.mubr.f32.gmra.mxu1 %v3844_v26  ;;  %5167 = vmatpush3.msra.mxu0 %v5760_v50  ;;  %v4690_v46 = vpop.f32.mrf.mxu0  ;;  %v5771_v26 = vld [vmem:[%s10097_s1 + $0x610] sm:$0xff] }
 0x24d   :  { %5331 = vmatprep.subr.mxu1 %v10303_v19  ;;  %5168 = vmatprep.subr.mxu0 %v5761_v33  ;;  %v4691_v39 = vadd.f32 %v4690_v46, %v4689_v57  ;;  %v3808_v57 = vld [vmem:[%s10098_s0 + $0x948] sm:$0xff] }
 0x24e   :  { %5332 = vmatpush3.msra.mxu1 %v5762_v8  ;;  %3233 = vmatprep.mubr.f32.mxu0 %v3869_v22  ;;  %v4742_v25 = vpop.f32.mrf.mxu1  ;;  %v5773_v22 = vld [vmem:[%s10097_s1 + $0x500] sm:$0xff]  ;;  %v3796_v46 = vld [vmem:[%s10098_s0 + $0x8e8] sm:$0xff] }
 0x24f   :  { %5169 = vmatpush3.msra.mxu0 %v5763_v37  ;;  %3328 = vmatprep.mubr.f32.mxu1 %v3858_v11  ;;  %v2277_v60 = vadd.f32 %v4691_v39, %v9477_v16  ;;  %v5765_v16 = vld [vmem:[%s10097_s1 + $0x518] sm:$0xff]  ;;  %v5774_v11 = vld [vmem:[%s10097_s1 + $0x608] sm:$0xff]  ;;  %v3807_v39 = vld [vmem:[%s10098_s0 + $0x940] sm:$0xff] }
 0x250   :  { %3234 = vmatmul.mubr.f32.gmra.mxu0 %v3868_v15  ;;  %5170 = vmatprep.subr.mxu0 %v5764_v17  ;;  %v4692_v23 = vpop.f32.mrf.mxu0  ;;  %v4743_v35 = vpop.f32.mrf.mxu1 }
 0x251   :  { %5333 = vmatprep.subr.mxu1 %v10303_v19  ;;  %3329 = vmatmul.mubr.f32.gmra.mxu1 %v3857_v5  ;;  %v4744_v32 = vadd.f32 %v4743_v35, %v4742_v25  ;;  %v5775_v5 = vld [vmem:[%s10097_s1 + $0x600] sm:$0xff]  ;;  %v3821_v25 = vld [vmem:[%s10098_s0 + $0x9b0] sm:$0xff]  ;;  %v3820_v35 = vld [vmem:[%s10098_s0 + $0x9a8] sm:$0xff] }
 0x252   :  { %5171 = vmatpush3.msra.mxu0 %v5765_v16  ;;  %5334 = vmatpush3.msra.mxu1 %v5766_v1  ;;  %v4693_v40 = vpop.f32.mrf.mxu0 }
 0x253   :  { %5172 = vmatprep.subr.mxu0 %v5767_v31  ;;  %3333 = vmatprep.mubr.f32.mxu1 %v3871_v51  ;;  %v9756_v13 = vadd.f32 %v4744_v32, %v2277_v60  ;;  %v4694_v53 = vadd.f32 %v4693_v40, %v4692_v23  ;;  %v3809_v51 = vld [vmem:[%s10098_s0 + $0x950] sm:$0xff]  ;;  %v3822_v40 = vld [vmem:[%s10098_s0 + $0x9b8] sm:$0xff] }
 0x254   :  { %5173 = vmatpush3.msra.mxu0 %v5768_v34  ;;  %5335 = vmatprep.subr.mxu1 %v10303_v19  ;;  %v4745_v59 = vpop.f32.mrf.mxu1 }
 0x255   :  { %5174 = vmatprep.subr.mxu0 %v5769_v2  ;;  %3334 = vmatmul.mubr.f32.gmra.mxu1 %v3870_v14  ;;  %v2282_v58 = vadd.f32 %v4694_v53, %v9515_v42  ;;  %v5772_v42 = vld [vmem:[%s10097_s1 + $0x580] sm:$0xff]  ;;  %v3833_v53 = vld [vmem:[%s10098_s0 + $0xa10] sm:$0xff] }
 0x256   :  { %5175 = vmatpush3.msra.mxu0 %v5770_v24  ;;  %5336 = vmatpush3.msra.mxu1 %v5771_v26  ;;  %v4695_v49 = vpop.f32.mrf.mxu0  ;;  %v4746_v0 = vpop.f32.mrf.mxu1 }
 0x257   :  { %5176 = vmatprep.subr.mxu0 %v5772_v42  ;;  %3403 = vmatprep.mubr.f32.mxu0 %v3795_v27  ;;  %v4747_v9 = vadd.f32 %v4746_v0, %v4745_v59  ;;  %v3847_v59 = vld [vmem:[%s10098_s0 + $0xa80] sm:$0xff]  ;;  %v3860_v0 = vld [vmem:[%s10098_s0 + $0xae8] sm:$0xff] }
 0x258   :  { %5177 = vmatpush3.msra.mxu0 %v5773_v22  ;;  %5337 = vmatprep.subr.mxu1 %v10303_v19  ;;  %v4696_v50 = vpop.f32.mrf.mxu0  ;;  %v3848_v22 = vld [vmem:[%s10098_s0 + $0xa88] sm:$0xff] }
 0x259   :  { %3404 = vmatmul.mubr.f32.vlgmr.msra.gmra.mxu0 %v3794_v7  ;;  %5338 = vmatpush3.msra.mxu1 %v5774_v11  ;;  %v9794_v33 = vadd.f32 %v4747_v9, %v2282_v58  ;;  %v4697_v15 = vadd.f32 %v4696_v50, %v4695_v49  ;;  %v3846_v7 = vld [vmem:[%s10098_s0 + $0xa78] sm:$0xff]  ;;  %v3859_v11 = vld [vmem:[%s10098_s0 + $0xae0] sm:$0xff] }
 0x25a   :  { %3408 = vmatprep.mubr.f32.mxu0 %v3808_v57  ;;  %5339 = vmatprep.subr.mxu1 %v10303_v19  ;;  %v4748_v8 = vpop.f32.mrf.mxu1 }
 0x25b   :  { %5340 = vmatpush3.msra.mxu1 %v5775_v5  ;;  %5341 = vmatprep.mubr.msk.f32.mxu1 %vm5779_vm1, %v10303_v19  ;;  %v2287_v37 = vadd.f32 %v4697_v15, %v9550_v63  ;;  %v3834_v63 = vld [vmem:[%s10098_s0 + $0xa18] sm:$0xff]  ;;  %v3861_v5 = vld [vmem:[%s10098_s0 + $0xaf0] sm:$0xff] }
 0x25c   :  { %5342 = vmatmul.mubr.msk.f32.vlgmr.msra.gmra.mxu1 %vm310_vm0, %v3796_v46  ;;  %v4698_v60 = vpop.f32.mrf.mxu0  ;;  %v4749_v17 = vpop.f32.mrf.mxu1 }
 0x25d   :  { %3409 = vmatmul.mubr.f32.gmra.mxu0 %v3807_v39  ;;  %5344 = vmatprep.mubr.msk.f32.mxu1 %vm5779_vm1, %v10303_v19  ;;  %v4750_v23 = vadd.f32 %v4749_v17, %v4748_v8 }
 0x25e   :  { %3413 = vmatprep.mubr.f32.mxu0 %v3821_v25  ;;  %v4699_v32 = vpop.f32.mrf.mxu0 }
 0x25f   :  { %v9821_v16 = vadd.f32 %v4750_v23, %v2287_v37  ;;  %v4700_v1 = vadd.f32 %v4699_v32, %v4698_v60  ;;  %v3872_v37 = vld [vmem:[%s10098_s0 + $0xb48] sm:$0x3] }
 0x260   :  { %5345 = vmatmul.mubr.msk.f32.gmra.mxu1 %vm310_vm0, %v3809_v51  ;;  %v4751_v14 = vpop.f32.mrf.mxu1  ;;  %v3874_v51 = vld [vmem:[%s10098_s0 + $0xb58] sm:$0x3] }
 0x261   :  { %3414 = vmatmul.mubr.f32.gmra.mxu0 %v3820_v35  ;;  %5347 = vmatprep.mubr.msk.f32.mxu1 %vm5779_vm1, %v10303_v19  ;;  %v2292_v31 = vadd.f32 %v4700_v1, %v9594_v48  ;;  %v3835_v48 = vld [vmem:[%s10098_s0 + $0xa20] sm:$0xff] }
 0x262   :  { %3418 = vmatprep.mubr.f32.mxu0 %v3834_v63  ;;  %v4701_v34 = vpop.f32.mrf.mxu0  ;;  %v4752_v27 = vpop.f32.mrf.mxu1 }
 0x263   :  { %v4753_v2 = vadd.f32 %v4752_v27, %v4751_v14 }
 0x264   :  { %5348 = vmatmul.mubr.msk.f32.gmra.mxu1 %vm310_vm0, %v3822_v40  ;;  %v4702_v58 = vpop.f32.mrf.mxu0 }
 0x265   :  { %3419 = vmatmul.mubr.f32.gmra.mxu0 %v3833_v53  ;;  %5350 = vmatprep.mubr.msk.f32.mxu1 %vm5779_vm1, %v10303_v19  ;;  %v9842_v24 = vadd.f32 %v4753_v2, %v2292_v31  ;;  %v4703_v26 = vadd.f32 %v4702_v58, %v4701_v34 }
 0x266   :  { %3423 = vmatprep.mubr.f32.mxu0 %v3847_v59  ;;  %v4754_v49 = vpop.f32.mrf.mxu1 }
 0x267   :  { %v2297_v42 = vadd.f32 %v4703_v26, %v9629_v6  ;;  %v3873_v6 = vld [vmem:[%s10098_s0 + $0xb50] sm:$0x3] }
 0x268   :  { %5351 = vmatmul.mubr.msk.f32.gmra.mxu1 %vm310_vm0, %v3835_v48  ;;  %v4704_v57 = vpop.f32.mrf.mxu0  ;;  %v4755_v9 = vpop.f32.mrf.mxu1 }
 0x269   :  { %3424 = vmatmul.mubr.f32.gmra.mxu0 %v3846_v7  ;;  %5353 = vmatprep.mubr.msk.f32.mxu1 %vm5779_vm1, %v10303_v19  ;;  %v4756_v50 = vadd.f32 %v4755_v9, %v4754_v49 }
 0x26a   :  { %3428 = vmatprep.mubr.f32.mxu0 %v3860_v0  ;;  %v4705_v46 = vpop.f32.mrf.mxu0 }
 0x26b   :  { %v2397_v15 = vadd.f32 %v4756_v50, %v2297_v42  ;;  %v4706_v39 = vadd.f32 %v4705_v46, %v4704_v57 }
 0x26c   :  { %5354 = vmatmul.mubr.msk.f32.gmra.mxu1 %vm310_vm0, %v3848_v22  ;;  %v4757_v8 = vpop.f32.mrf.mxu1 }
 0x26d   :  { %3429 = vmatmul.mubr.f32.gmra.mxu0 %v3859_v11  ;;  %5356 = vmatprep.mubr.msk.f32.mxu1 %vm5779_vm1, %v10303_v19  ;;  %v2302_v25 = vadd.f32 %v4706_v39, %v9666_v44 }
 0x26e   :  { %3433 = vmatprep.mubr.f32.mxu0 %v3873_v6  ;;  %v4758_v60 = vpop.f32.mrf.mxu1 }
 0x26f   :  { %v4759_v17 = vadd.f32 %v4758_v60, %v4757_v8 }
 0x270   :  { %5357 = vmatmul.mubr.msk.f32.gmra.mxu1 %vm310_vm0, %v3861_v5 }
 0x271   :  { %3434 = vmatmul.mubr.f32.gmra.mxu0 %v3872_v37  ;;  %5359 = vmatprep.mubr.msk.f32.mxu1 %vm5779_vm1, %v10303_v19  ;;  %v2402_v23 = vadd.f32 %v4759_v17, %v2302_v25 }
 0x272   :  { %v4792_v35 = vpop.f32.mrf.mxu0 }
 0x274   :  { %5360 = vmatmul.mubr.msk.f32.gmra.mxu1 %vm310_vm0, %v3874_v51  ;;  %v4793_v44 = vpop.f32.mrf.mxu0  ;;  %v4845_v32 = vpop.f32.mrf.mxu1 }
 0x275   :  { %v4794_v63 = vadd.f32 %v4793_v44, %v4792_v35 }
 0x276   :  { %v4846_v1 = vpop.f32.mrf.mxu1 }
 0x277   :  { %v2472_v14 = vadd.f32 %v4794_v63, %v9712_v61  ;;  %v4795_v40 = vpop.f32.mrf.mxu0  ;;  %v4847_v31 = vadd.f32 %v4846_v1, %v4845_v32 }
 0x279   :  { %v4796_v53 = vpop.f32.mrf.mxu0  ;;  %v2572_v34 = vadd.f32 %v4847_v31, %v2472_v14 }
 0x27a   :  { %v4797_v27 = vadd.f32 %v4796_v53, %v4795_v40 }
 0x27b   :  { %v4848_v19 = vpop.f32.mrf.mxu1 }
 0x27c   :  { %v2477_v59 = vadd.f32 %v4797_v27, %v9756_v13 }
 0x27d   :  { %v4798_v2 = vpop.f32.mrf.mxu0  ;;  %v4849_v58 = vpop.f32.mrf.mxu1 }
 0x27e   :  { %v4850_v48 = vadd.f32 %v4849_v58, %v4848_v19 }
 0x27f   :  { %v4799_v26 = vpop.f32.mrf.mxu0 }
 0x280   :  { %v4800_v7 = vadd.f32 %v4799_v26, %v4798_v2  ;;  %v4851_v49 = vpop.f32.mrf.mxu1  ;;  %v2577_v0 = vadd.f32 %v4850_v48, %v2477_v59 }
 0x282   :  { %v2482_v42 = vadd.f32 %v4800_v7, %v9794_v33  ;;  %v4801_v57 = vpop.f32.mrf.mxu0  ;;  %v4852_v9 = vpop.f32.mrf.mxu1 }
 0x283   :  { %v4853_v61 = vadd.f32 %v4852_v9, %v4851_v49 }
 0x284   :  { %v4802_v22 = vpop.f32.mrf.mxu0 }
 0x285   :  { %v4803_v50 = vadd.f32 %v4802_v22, %v4801_v57  ;;  %v4854_v11 = vpop.f32.mrf.mxu1  ;;  %v2582_v46 = vadd.f32 %v4853_v61, %v2482_v42  ;;  %v9888_v42 = vld [vmem:[%s10099_s2] ss:$0 sm:$0xff] }
 0x286   :  { %v9894_v57 = vld [vmem:[%s10100_s3] ss:$0 sm:$0xff] }
 0x287   :  { %v2487_v6 = vadd.f32 %v4803_v50, %v9821_v16  ;;  %v4804_v39 = vpop.f32.mrf.mxu0  ;;  %v4855_v13 = vpop.f32.mrf.mxu1 }
 0x288   :  { %v4856_v8 = vadd.f32 %v4855_v13, %v4854_v11 }
 0x289   :  { %v4805_v5 = vpop.f32.mrf.mxu0 }
 0x28a   :  { %v4806_v25 = vadd.f32 %v4805_v5, %v4804_v39  ;;  %v4857_v37 = vpop.f32.mrf.mxu1  ;;  %v2587_v60 = vadd.f32 %v4856_v8, %v2487_v6 }
 0x28c   :  { %v2492_v17 = vadd.f32 %v4806_v25, %v9842_v24  ;;  %v4807_v51 = vpop.f32.mrf.mxu0  ;;  %v4858_v33 = vpop.f32.mrf.mxu1 }
 0x28d   :  { %v4859_v35 = vadd.f32 %v4858_v33, %v4857_v37 }
 0x28e   :  { %v4808_v44 = vpop.f32.mrf.mxu0 }
 0x28f   :  { %v4809_v32 = vadd.f32 %v4808_v44, %v4807_v51  ;;  %v4860_v63 = vpop.f32.mrf.mxu1  ;;  %v2592_v1 = vadd.f32 %v4859_v35, %v2492_v17 }
 0x291   :  { %v2497_v14 = vadd.f32 %v4809_v32, %v2397_v15  ;;  %v4810_v40 = vpop.f32.mrf.mxu0  ;;  %v4861_v31 = vpop.f32.mrf.mxu1 }
 0x292   :  { %v4862_v16 = vadd.f32 %v4861_v31, %v4860_v63 }
 0x293   :  { %v4811_v53 = vpop.f32.mrf.mxu0 }
 0x294   :  { %v4812_v27 = vadd.f32 %v4811_v53, %v4810_v40  ;;  %v4863_v19 = vpop.f32.mrf.mxu1  ;;  %v2597_v59 = vadd.f32 %v4862_v16, %v2497_v14 }
 0x296   :  { %v2502_v2 = vadd.f32 %v4812_v27, %v2402_v23  ;;  %v4864_v58 = vpop.f32.mrf.mxu1 }
 0x297   :  { %v4865_v48 = vadd.f32 %v4864_v58, %v4863_v19  ;;  %v2671_v26 = vpop.f32.mrf.mxu0 }
 0x298   :  { %v2672_v24 = vadd.f32 %v2671_v26, %v2572_v34 }
 0x299   :  { %v5306_v7 = vpop.f32.mrf.mxu0  ;;  %v2602_v49 = vadd.f32 %v4865_v48, %v2502_v2 }
 0x29a   :  { %v2705_v15 = vmul.f32 %v9888_v42, %v2672_v24 }
 0x29c   :  { %v2712_v23 = vadd.f32 %v9894_v57, %v2705_v15  ;;  %v2676_v9 = vpop.f32.mrf.mxu0 }
 0x29d   :  { %v2677_v61 = vadd.f32 %v2676_v9, %v2577_v0 }
 0x29e   :  { %v9900_v34 = vmax.f32 %v1885_v10, %v2712_v23  ;;  %v5309_v22 = vpop.f32.mrf.mxu0  ;;  %v4913_v50 = vpop.f32.mrf.mxu1 }
 0x29f   :  { %v2706_v11 = vmul.f32 %v9888_v42, %v2677_v61 }
 0x2a0   :  { %v4914_v6 = vpop.f32.mrf.mxu1 }
 0x2a1   :  { %v2713_v39 = vadd.f32 %v9894_v57, %v2706_v11  ;;  %v9904_v13 = vadd.f32 %v4914_v6, %v4913_v50 }
 0x2a2   :  { %v2681_v8 = vpop.f32.mrf.mxu0 }
 0x2a3   :  { %v9909_v5 = vmax.f32 %v1886_v62, %v2713_v39  ;;  %v2682_v0 = vadd.f32 %v2681_v8, %v2582_v46 }
 0x2a4   :  { %v5312_v25 = vpop.f32.mrf.mxu0 }
 0x2a5   :  { %10351 = vst [vmem:[#allocation2_spill] sm:$0xff] %v9909_v5  ;;  %v2707_v20 = vmul.f32 %v9888_v42, %v2682_v0 }
 0x2a7   :  { %v2714_v47 = vadd.f32 %v9894_v57, %v2707_v20  ;;  %v2686_v10 = vpop.f32.mrf.mxu0 }
 0x2a8   :  { %v2687_v37 = vadd.f32 %v2686_v10, %v2587_v60  ;;  %v4916_v17 = vpop.f32.mrf.mxu1 }
 0x2a9   :  { %v9916_v51 = vmax.f32 %v1887_v38, %v2714_v47  ;;  %v5315_v33 = vpop.f32.mrf.mxu0 }
 0x2aa   :  { %v2708_v35 = vmul.f32 %v9888_v42, %v2687_v37  ;;  %v4917_v3 = vpop.f32.mrf.mxu1 }
 0x2ab   :  { %10352 = vst [vmem:[#allocation3_spill] sm:$0xff] %v9916_v51  ;;  %v9919_v52 = vadd.f32 %v4917_v3, %v4916_v17 }
 0x2ac   :  { %v2715_v62 = vadd.f32 %v9894_v57, %v2708_v35 }
 0x2ad   :  { %v2691_v46 = vpop.f32.mrf.mxu0 }
 0x2ae   :  { %v9925_v44 = vmax.f32 %v1888_v56, %v2715_v62  ;;  %v2692_v60 = vadd.f32 %v2691_v46, %v2592_v1  ;;  %v4919_v32 = vpop.f32.mrf.mxu1 }
 0x2af   :  { %v5318_v63 = vpop.f32.mrf.mxu0 }
 0x2b0   :  { %10353 = vst [vmem:[#allocation4_spill] sm:$0xff] %v9925_v44  ;;  %v2709_v43 = vmul.f32 %v9888_v42, %v2692_v60  ;;  %v4920_v29 = vpop.f32.mrf.mxu1 }
 0x2b1   :  { %v9928_v38 = vadd.f32 %v4920_v29, %v4919_v32 }
 0x2b2   :  { %v2716_v14 = vadd.f32 %v9894_v57, %v2709_v43 }
 0x2b3   :  { %v2696_v40 = vpop.f32.mrf.mxu0 }
 0x2b4   :  { %v9934_v31 = vmax.f32 %v1889_v4, %v2716_v14  ;;  %v2697_v16 = vadd.f32 %v2696_v40, %v2597_v59  ;;  %v4922_v54 = vpop.f32.mrf.mxu1 }
 0x2b5   :  { %v5321_v36 = vpop.f32.mrf.mxu0 }
 0x2b6   :  { %10354 = vst [vmem:[#allocation5_spill] sm:$0xff] %v9934_v31  ;;  %v2710_v56 = vmul.f32 %v9888_v42, %v2697_v16  ;;  %v4923_v1 = vpop.f32.mrf.mxu1 }
 0x2b7   :  { %v9937_v53 = vadd.f32 %v4923_v1, %v4922_v54 }
 0x2b8   :  { %v2717_v27 = vadd.f32 %v9894_v57, %v2710_v56 }
 0x2b9   :  { %v2701_v19 = vpop.f32.mrf.mxu0 }
 0x2ba   :  { %v9943_v2 = vmax.f32 %v1890_v55, %v2717_v27  ;;  %v2702_v58 = vadd.f32 %v2701_v19, %v2602_v49  ;;  %v4925_v30 = vpop.f32.mrf.mxu1 }
 0x2bb   :  { %v5324_v28 = vpop.f32.mrf.mxu0 }
 0x2bc   :  { %10355 = vst [vmem:[#allocation6_spill] sm:$0xff] %v9943_v2  ;;  %v2711_v4 = vmul.f32 %v9888_v42, %v2702_v58  ;;  %v4926_v59 = vpop.f32.mrf.mxu1 }
 0x2bd   :  { %v9946_v48 = vadd.f32 %v4926_v59, %v4925_v30 }
 0x2be   :  { %v2718_v26 = vadd.f32 %v9894_v57, %v2711_v4 }
 0x2bf   :  { %v4928_v24 = vpop.f32.mrf.mxu1 }
 0x2c0   :  { %v9952_v7 = vmax.f32 %v1891_v21, %v2718_v26 }
 0x2c1   :  { %v4929_v15 = vpop.f32.mrf.mxu1 }
 0x2c2   :  { %10356 = vst [vmem:[#allocation7_spill] sm:$0xff] %v9952_v7  ;;  %v9954_v12 = vadd.f32 %v4929_v15, %v4928_v24 }
 0x2c3   :  { %v4966_v45 = vpop.f32.mrf.mxu0 }
 0x2c4   :  { %10357 = vst [vmem:[#allocation8_spill] sm:$0xff] %v9954_v12 }
 0x2c5   :  { %v4931_v55 = vpop.f32.mrf.mxu1  ;;  %v4967_v49 = vpop.f32.mrf.mxu0 }
 0x2c6   :  { %v4968_v44 = vadd.f32 %v4967_v49, %v4966_v45 }
 0x2c7   :  { %v4932_v23 = vpop.f32.mrf.mxu1 }
 0x2c8   :  { %v9956_v9 = vadd.f32 %v4932_v23, %v4931_v55 }
 0x2c9   :  { %v4969_v61 = vpop.f32.mrf.mxu0 }
 0x2ca   :  { %10358 = vst [vmem:[#allocation9_spill] sm:$0xff] %v9956_v9 }
 0x2cb   :  { %v5019_v22 = vpop.f32.mrf.mxu1  ;;  %v4970_v50 = vpop.f32.mrf.mxu0 }
 0x2cc   :  { %v4971_v5 = vadd.f32 %v4970_v50, %v4969_v61 }
 0x2cd   :  { %v5020_v11 = vpop.f32.mrf.mxu1 }
 0x2ce   :  { %v3011_v45 = vadd.f32 %v4971_v5, %v9919_v52 }
 0x2cf   :  { %v4972_v6 = vpop.f32.mrf.mxu0 }
 0x2d1   :  { %v5022_v39 = vpop.f32.mrf.mxu1  ;;  %v4973_v8 = vpop.f32.mrf.mxu0 }
 0x2d3   :  { %v5023_v0 = vpop.f32.mrf.mxu1 }
 0x2d5   :  { %v9958_v18 = vpop.f32.mrf.mxu0 }
 0x2d7   :  { %v5025_v41 = vpop.f32.mrf.mxu1  ;;  %v9960_v21 = vpop.f32.mrf.mxu0 }
 0x2d9   :  { %v5026_v25 = vpop.f32.mrf.mxu1 }
 0x2db   :  { %v9962_v20 = vpop.f32.mrf.mxu0 }
 0x2dd   :  { %v9964_v47 = vpop.f32.mrf.mxu1  ;;  %v9968_v37 = vpop.f32.mrf.mxu0 }
 0x2df   :  { %v9966_v10 = vpop.f32.mrf.mxu1 }
 0x2e1   :  { %v9972_v33 = vpop.f32.mrf.mxu0 }
 0x2e3   :  { %v9970_v17 = vpop.f32.mrf.mxu1  ;;  %v9976_v3 = vpop.f32.mrf.mxu0 }
 0x2e5   :  { %v9974_v35 = vpop.f32.mrf.mxu1 }
 0x2e7   :  { %v9980_v46 = vpop.f32.mrf.mxu0 }
 0x2e8   :  { %10359 = vst [vmem:[#allocation10_spill] sm:$0xff] %v9980_v46 }
 0x2e9   :  { %v9978_v62 = vpop.f32.mrf.mxu1  ;;  %v9984_v32 = vpop.f32.mrf.mxu0 }
 0x2ea   :  { %10361 = vst [vmem:[#allocation12_spill] sm:$0xff] %v9984_v32 }
 0x2eb   :  { %v9982_v60 = vpop.f32.mrf.mxu1 }
 0x2ec   :  { %10360 = vst [vmem:[#allocation11_spill] sm:$0xff] %v9982_v60 }
 0x2ee   :  { %v9986_v43 = vpop.f32.mrf.mxu1 }
 0x2ef   :  { %10362 = vst [vmem:[#allocation13_spill] sm:$0xff] %v9986_v43  ;;  %v3006_v43 = vadd.f32 %v4968_v44, %v9904_v13 }
 0x2f0   :  { %v9988_v14 = vpop.f32.mrf.mxu1 }
 0x2f1   :  { %10363 = vst [vmem:[#allocation14_spill] sm:$0xff] %v9988_v14  ;;  %v5021_v14 = vadd.f32 %v5020_v11, %v5019_v22  ;;  %v5027_v22 = vadd.f32 %v5026_v25, %v5025_v41  ;;  %v5030_v41 = vadd.f32 %v9966_v10, %v9964_v47  ;;  %v5033_v47 = vadd.f32 %v9974_v35, %v9970_v17 }
 0x2f2   :  { %v5072_v63 = vpop.f32.mrf.mxu0 }
 0x2f3   :  { %v3106_v12 = vadd.f32 %v5021_v14, %v3006_v43 }
 0x2f4   :  { %v5073_v29 = vpop.f32.mrf.mxu0 }
 0x2f5   :  { %v5074_v32 = vadd.f32 %v5073_v29, %v5072_v63 }
 0x2f7   :  { %v5075_v40 = vpop.f32.mrf.mxu0  ;;  %v3206_v49 = vadd.f32 %v5074_v32, %v3106_v12 }
 0x2f9   :  { %v5125_v16 = vpop.f32.mrf.mxu1  ;;  %v5076_v54 = vpop.f32.mrf.mxu0 }
 0x2fb   :  { %v5126_v36 = vpop.f32.mrf.mxu1 }
 0x2fc   :  { %v5078_v56 = vpop.f32.mrf.mxu0 }
 0x2fd   :  { %v5128_v1 = vpop.f32.mrf.mxu1 }
 0x2fe   :  { %v5079_v27 = vpop.f32.mrf.mxu0 }
 0x2ff   :  { %v5129_v19 = vpop.f32.mrf.mxu1 }
 0x300   :  { %v5081_v58 = vpop.f32.mrf.mxu0  ;;  %v5130_v61 = vadd.f32 %v5129_v19, %v5128_v1 }
 0x302   :  { %v5131_v30 = vpop.f32.mrf.mxu1  ;;  %v5082_v28 = vpop.f32.mrf.mxu0 }
 0x304   :  { %v5132_v4 = vpop.f32.mrf.mxu1 }
 0x305   :  { %v9990_v59 = vpop.f32.mrf.mxu0  ;;  %v5133_v32 = vadd.f32 %v5132_v4, %v5131_v30 }
 0x307   :  { %v5134_v26 = vpop.f32.mrf.mxu1  ;;  %v9992_v24 = vpop.f32.mrf.mxu0 }
 0x309   :  { %v5135_v15 = vpop.f32.mrf.mxu1 }
 0x30a   :  { %v5136_v10 = vadd.f32 %v5135_v15, %v5134_v26 }
 0x30b   :  { %v9994_v55 = vpop.f32.mrf.mxu0 }
 0x30c   :  { %10364 = vst [vmem:[#allocation15_spill] sm:$0xff] %v9994_v55  ;;  %v9996_v23 = vpop.f32.mrf.mxu1 }
 0x30d   :  { %10365 = vst [vmem:[#allocation16_spill] sm:$0xff] %v9996_v23  ;;  %v10000_v2 = vpop.f32.mrf.mxu0  ;;  %v5127_v23 = vadd.f32 %v5126_v36, %v5125_v16 }
 0x30e   :  { %v9998_v7 = vpop.f32.mrf.mxu1  ;;  %10367 = vst [vmem:[#allocation18_spill] sm:$0xff] %v10000_v2  ;;  %v4974_v2 = vadd.f32 %v4973_v8, %v4972_v6 }
 0x30f   :  { %10366 = vst [vmem:[#allocation17_spill] sm:$0xff] %v9998_v7  ;;  %v5024_v7 = vadd.f32 %v5023_v0, %v5022_v39  ;;  %v3306_v44 = vadd.f32 %v5127_v23, %v3206_v49  ;;  %v4977_v39 = vadd.f32 %v9960_v21, %v9958_v18  ;;  %v5080_v0 = vadd.f32 %v5079_v27, %v5078_v56 }
 0x310   :  { %v10004_v51 = vpop.f32.mrf.mxu0  ;;  %v3016_v29 = vadd.f32 %v4974_v2, %v9928_v38  ;;  %v4980_v2 = vadd.f32 %v9968_v37, %v9962_v20  ;;  %v5083_v18 = vadd.f32 %v5082_v28, %v5081_v58  ;;  %v4983_v37 = vadd.f32 %v9976_v3, %v9972_v33 }
 0x311   :  { %v10002_v31 = vpop.f32.mrf.mxu1  ;;  %10369 = vst [vmem:[#allocation20_spill] sm:$0xff] %v10004_v51  ;;  %v5077_v51 = vadd.f32 %v5076_v54, %v5075_v40  ;;  %v3111_v13 = vadd.f32 %v5024_v7, %v3011_v45  ;;  %v3021_v38 = vadd.f32 %v4977_v39, %v9937_v53  ;;  %v5086_v28 = vadd.f32 %v9992_v24, %v9990_v59  ;;  %v10370_v45 = vld [vmem:[#allocation11_spill] sm:$0xff] }
 0x312   :  { %10368 = vst [vmem:[#allocation19_spill] sm:$0xff] %v10002_v31  ;;  %v10011_v55 = vpop.f32.mrf.mxu0  ;;  %v3116_v12 = vadd.f32 %v5027_v22, %v3016_v29  ;;  %v3026_v20 = vadd.f32 %v4980_v2, %v9946_v48  ;;  %v5036_v49 = vadd.f32 %v10370_v45, %v9978_v62  ;;  %v10375_v29 = vld [vmem:[#allocation12_spill] sm:$0xff] }
 0x313   :  { %v10006_v9 = vpop.f32.mrf.mxu1  ;;  %v3211_v8 = vadd.f32 %v5077_v51, %v3111_v13  ;;  %v3121_v36 = vadd.f32 %v5030_v41, %v3021_v38 }
 0x314   :  { %v3216_v21 = vadd.f32 %v5080_v0, %v3116_v12  ;;  %v3126_v23 = vadd.f32 %v5033_v47, %v3026_v20  ;;  %v10371_v48 = vld [vmem:[#allocation16_spill] sm:$0xff]  ;;  %v10382_v47 = vld [vmem:[#allocation9_spill] sm:$0xff] }
 0x315   :  { %v10009_v46 = vpop.f32.mrf.mxu1  ;;  %v3311_v7 = vadd.f32 %v5130_v61, %v3211_v8  ;;  %v3221_v58 = vadd.f32 %v5083_v18, %v3121_v36  ;;  %v10376_v8 = vld [vmem:[#allocation15_spill] sm:$0xff]  ;;  %v10377_v0 = vld [vmem:[#allocation18_spill] sm:$0xff] }
 0x316   :  { %v3316_v1 = vadd.f32 %v5133_v32, %v3216_v21  ;;  %v5089_v62 = vadd.f32 %v10377_v0, %v10376_v8 }
 0x317   :  { %v10014_v31 = vpop.f32.mrf.mxu1  ;;  %v3321_v22 = vadd.f32 %v5136_v10, %v3221_v58 }
 0x319   :  { %v5178_v60 = vpop.f32.mrf.mxu0  ;;  %v10381_v2 = vld [vmem:[#allocation19_spill] sm:$0xff] }
 0x31a   :  { %v5142_v18 = vadd.f32 %v10006_v9, %v10381_v2  ;;  %v10384_v9 = vld [vmem:[#allocation3_spill] sm:$0xff] }
 0x31b   :  { %v5179_v11 = vpop.f32.mrf.mxu0 }
 0x31c   :  { %v5180_v50 = vadd.f32 %v5179_v11, %v5178_v60  ;;  %v3505_v63 = vpop.f32.mrf.mxu1  ;;  %v10372_v11 = vld [vmem:[#allocation17_spill] sm:$0xff] }
 0x31d   :  { %v5181_v6 = vpop.f32.mrf.mxu0  ;;  %v5139_v13 = vadd.f32 %v10372_v11, %v10371_v48 }
 0x31e   :  { %v3406_v5 = vadd.f32 %v5180_v50, %v3306_v44  ;;  %v5343_v52 = vpop.f32.mrf.mxu1 }
 0x31f   :  { %v5182_v25 = vpop.f32.mrf.mxu0  ;;  %v10378_v52 = vld [vmem:[#allocation2_spill] sm:$0xff] }
 0x320   :  { %v3506_v43 = vadd.f32 %v3505_v63, %v3406_v5  ;;  %v5183_v60 = vadd.f32 %v5182_v25, %v5181_v6  ;;  %v3510_v14 = vpop.f32.mrf.mxu1  ;;  %v10374_v63 = vld [vmem:[#allocation10_spill] sm:$0xff]  ;;  %v3226_v6 = vadd.f32 %v5086_v28, %v3126_v23 }
 0x321   :  { %v5184_v51 = vpop.f32.mrf.mxu0  ;;  %v4986_v39 = vadd.f32 %v10375_v29, %v10374_v63 }
 0x322   :  { %v3539_v40 = vmul.f32 %v9888_v42, %v3506_v43  ;;  %v3411_v16 = vadd.f32 %v5183_v60, %v3311_v7  ;;  %v5346_v54 = vpop.f32.mrf.mxu1  ;;  %v10379_v43 = vld [vmem:[#allocation13_spill] sm:$0xff]  ;;  %v10380_v60 = vld [vmem:[#allocation14_spill] sm:$0xff]  ;;  %v3326_v38 = vadd.f32 %v5139_v13, %v3226_v6 }
 0x323   :  { %v5185_v56 = vpop.f32.mrf.mxu0  ;;  %v3036_v10 = vadd.f32 %v4986_v39, %v10382_v47 }
 0x324   :  { %v3546_v27 = vadd.f32 %v9894_v57, %v3539_v40  ;;  %v3511_v53 = vadd.f32 %v3510_v14, %v3411_v16  ;;  %v5186_v19 = vadd.f32 %v5185_v56, %v5184_v51  ;;  %v3515_v30 = vpop.f32.mrf.mxu1  ;;  %v5039_v14 = vadd.f32 %v10380_v60, %v10379_v43 }
 0x325   :  { %v5187_v4 = vpop.f32.mrf.mxu0 }
 0x326   :  { %v3553_v17 = vmax.f32 %v9900_v34, %v3546_v27  ;;  %v3540_v35 = vmul.f32 %v9888_v42, %v3511_v53  ;;  %v3416_v26 = vadd.f32 %v5186_v19, %v3316_v1  ;;  %v5349_v15 = vpop.f32.mrf.mxu1  ;;  %v10373_v34 = vld [vmem:[#allocation8_spill] sm:$0xff]  ;;  %v3136_v58 = vadd.f32 %v5039_v14, %v3036_v10 }
 0x327   :  { %v5188_v33 = vpop.f32.mrf.mxu0  ;;  %v3031_v50 = vadd.f32 %v4983_v37, %v10373_v34  ;;  %v10383_v1 = vld [vmem:[#allocation20_spill] sm:$0xff]  ;;  %v10386_v34 = vld [vmem:[#allocation5_spill] sm:$0xff] }
 0x328   :  { %v3560_v3 = vmax.f32 %v3553_v17, 0.0  ;;  %v3547_v44 = vadd.f32 %v9894_v57, %v3540_v35  ;;  %v3516_v59 = vadd.f32 %v3515_v30, %v3416_v26  ;;  %v5189_v24 = vadd.f32 %v5188_v33, %v5187_v4  ;;  %v3520_v61 = vpop.f32.mrf.mxu1 }
 0x329   :  { %v5190_v5 = vpop.f32.mrf.mxu0  ;;  %v3131_v32 = vadd.f32 %v5036_v49, %v3031_v50  ;;  %v5092_v27 = vadd.f32 %v10011_v55, %v10383_v1  ;;  %v5145_v4 = vadd.f32 %v10014_v31, %v10009_v46 }
 0x32a   :  { %3567 = vst.msk [vmem:[%s10101_s4] sm:$0xff] %vm310_vm0, %v3560_v3  ;;  %v3554_v12 = vmax.f32 %v10378_v52, %v3547_v44  ;;  %v3541_v41 = vmul.f32 %v9888_v42, %v3516_v59  ;;  %v3421_v25 = vadd.f32 %v5189_v24, %v3321_v22  ;;  %v5352_v7 = vpop.f32.mrf.mxu1  ;;  %v10385_v22 = vld [vmem:[#allocation4_spill] sm:$0xff] }
 0x32b   :  { %v5191_v51 = vpop.f32.mrf.mxu0  ;;  %v3231_v56 = vadd.f32 %v5089_v62, %v3131_v32  ;;  %v3236_v45 = vadd.f32 %v5092_v27, %v3136_v58  ;;  %v10387_v62 = vld [vmem:[#allocation6_spill] sm:$0xff] }
 0x32c   :  { %v3561_v21 = vmax.f32 %v3554_v12, 0.0  ;;  %v3548_v40 = vadd.f32 %v9894_v57, %v3541_v41  ;;  %v3521_v16 = vadd.f32 %v3520_v61, %v3421_v25  ;;  %v5192_v54 = vadd.f32 %v5191_v51, %v5190_v5  ;;  %v3525_v36 = vpop.f32.mrf.mxu1  ;;  %v10388_v25 = vld [vmem:[#allocation7_spill] sm:$0xff] }
 0x32d   :  { %v5193_v53 = vpop.f32.mrf.mxu0  ;;  %v3331_v28 = vadd.f32 %v5142_v18, %v3231_v56  ;;  %v3336_v46 = vadd.f32 %v5145_v4, %v3236_v45 }
 0x32e   :  { %3568 = vst.msk [vmem:[%s10101_s4 + $0x8] sm:$0xff] %vm310_vm0, %v3561_v21  ;;  %v3555_v19 = vmax.f32 %v10384_v9, %v3548_v40  ;;  %v3542_v30 = vmul.f32 %v9888_v42, %v3521_v16  ;;  %v3426_v20 = vadd.f32 %v5192_v54, %v3326_v38  ;;  %v5355_v37 = vpop.f32.mrf.mxu1 }
 0x32f   :  { %v5194_v17 = vpop.f32.mrf.mxu0 }
 0x330   :  { %v3562_v35 = vmax.f32 %v3555_v19, 0.0  ;;  %v3549_v55 = vadd.f32 %v9894_v57, %v3542_v30  ;;  %v3526_v26 = vadd.f32 %v3525_v36, %v3426_v20  ;;  %v5195_v15 = vadd.f32 %v5194_v17, %v5193_v53  ;;  %v3530_v23 = vpop.f32.mrf.mxu1 }
 0x331   :  { %v5196_v49 = vpop.f32.mrf.mxu0 }
 0x332   :  { %3569 = vst.msk [vmem:[%s10101_s4 + $0x10] sm:$0xff] %vm310_vm0, %v3562_v35  ;;  %v3556_v48 = vmax.f32 %v10385_v22, %v3549_v55  ;;  %v3543_v11 = vmul.f32 %v9888_v42, %v3526_v26  ;;  %v3431_v13 = vadd.f32 %v5195_v15, %v3331_v28  ;;  %v5358_v31 = vpop.f32.mrf.mxu1 }
 0x333   :  { %v5197_v33 = vpop.f32.mrf.mxu0 }
 0x334   :  { %v3563_v3 = vmax.f32 %v3556_v48, 0.0  ;;  %v3550_v44 = vadd.f32 %v9894_v57, %v3543_v11  ;;  %v3531_v59 = vadd.f32 %v3530_v23, %v3431_v13  ;;  %v5198_v24 = vadd.f32 %v5197_v33, %v5196_v49  ;;  %v3535_v61 = vpop.f32.mrf.mxu1 }
 0x336   :  { %3570 = vst.msk [vmem:[%s10101_s4 + $0x18] sm:$0xff] %vm310_vm0, %v3563_v3  ;;  %v3557_v50 = vmax.f32 %v10386_v34, %v3550_v44  ;;  %v3544_v63 = vmul.f32 %v9888_v42, %v3531_v59  ;;  %v3436_v29 = vadd.f32 %v5198_v24, %v3336_v46  ;;  %v5361_v39 = vpop.f32.mrf.mxu1 }
 0x338   :  { %v3564_v6 = vmax.f32 %v3557_v50, 0.0  ;;  %v3551_v8 = vadd.f32 %v9894_v57, %v3544_v63  ;;  %v3536_v0 = vadd.f32 %v3535_v61, %v3436_v29 }
 0x33a   :  { %3571 = vst.msk [vmem:[%s10101_s4 + $0x20] sm:$0xff] %vm310_vm0, %v3564_v6  ;;  %v3558_v5 = vmax.f32 %v10387_v62, %v3551_v8  ;;  %v3545_v52 = vmul.f32 %v9888_v42, %v3536_v0 }
 0x33c   :  { %v3565_v12 = vmax.f32 %v3558_v5, 0.0  ;;  %v3552_v41 = vadd.f32 %v9894_v57, %v3545_v52 }
 0x33e   :  { %3572 = vst.msk [vmem:[%s10101_s4 + $0x28] sm:$0xff] %vm310_vm0, %v3565_v12  ;;  %v3559_v7 = vmax.f32 %v10388_v25, %v3552_v41 }
 0x340   :  { %v3566_v32 = vmax.f32 %v3559_v7, 0.0 }
 0x342   :  { %3574 = vst.msk [vmem:[%s10101_s4 + $0x30] sm:$0x3] %vm3573_vm2, %v3566_v32 }

</bundles_post_ra>
